<compile_context>
chip_gen: v7x
topology: tpu7x:2x2x1
jax: 0.10.0
libtpu: 0.0.40
codegen_flags: <defaults>
</compile_context>

<pallas_src>
import functools

import jax
import jax.numpy as jnp
from jax.experimental import pallas as pl
from jax.experimental.pallas import tpu as pltpu


LAT = 3 * 3 * 64            # 576 latent width
LATP = 640                  # 576 rounded up to a lane multiple
DOWN_CH = (32, 32, 64, 64)
DOWN_CFG = ((2, 2), (2, 2), (2, 2), (2, 2))     # (stride, pad) per encoder conv
UP_CFG = ((2, 2), (2, 1), (2, 2), (2, 1))       # (stride, pad) per decoder convT
_TM = 512                                       # max rows per grid step


def _round_up(x, m):
    return (x + m - 1) // m * m


# ----------------------------------------------------------------------------
# Pallas kernels
# ----------------------------------------------------------------------------
def _mm_bias_act_kernel(x_ref, w_ref, b_ref, o_ref, *, act):
    # bf16 x bf16 matmul, f32 accumulation; bias + activation on the f32 acc.
    y = jnp.dot(x_ref[...], w_ref[...], preferred_element_type=jnp.float32)
    y = y + b_ref[...]
    if act == "relu":
        y = jnp.maximum(y, 0.0)
    elif act == "sigmoid":
        y = jax.nn.sigmoid(y)
    o_ref[...] = y.astype(o_ref.dtype)


def _fc_head_kernel(h_ref, w_ref, b_ref, eps_ref, mu_ref, lv_ref, z_ref, *,
                    lat_pad):
    # Fused fc11 + fc12 (concatenated along N) + reparameterization epilogue.
    y = jnp.dot(h_ref[...], w_ref[...], preferred_element_type=jnp.float32)
    y = y + b_ref[...]
    mu = y[:, :lat_pad]
    lv = y[:, lat_pad:]
    mu_ref[...] = mu
    lv_ref[...] = lv
    z_ref[...] = (mu + eps_ref[...] * jnp.exp(0.5 * lv)).astype(z_ref.dtype)


# ----------------------------------------------------------------------------
# Pallas wrappers
# ----------------------------------------------------------------------------
def matmul_bias_act(x, w_pad, b_pad, *, act="none", out_dtype=jnp.bfloat16):
    """(M, K) @ (K, Np) + bias with fused activation on the MXU.

    K and Np are already lane-aligned (padding hoisted into prepare_params);
    only M may need padding to a sublane multiple here.
    """
    M, K = x.shape
    Kp, Np = w_pad.shape
    assert K == Kp and Np % 128 == 0, (K, Kp, Np)
    x = x.astype(jnp.bfloat16)

    Mp = _round_up(M, 8)
    if Mp != M:
        x = jnp.pad(x, ((0, Mp - M), (0, 0)))
    if Mp <= _TM:
        tm = Mp
    else:  # Mp is a multiple of 8, so a divisor always exists.
        tm = next(t for t in range(_TM, 0, -8) if Mp % t == 0)
    steps = Mp // tm

    out = pl.pallas_call(
        functools.partial(_mm_bias_act_kernel, act=act),
        out_shape=jax.ShapeDtypeStruct((Mp, Np), out_dtype),
        grid=(steps,),
        in_specs=[
            pl.BlockSpec((tm, Kp), lambda i: (i, 0)),
            pl.BlockSpec((Kp, Np), lambda i: (0, 0)),   # weight resident over M
            pl.BlockSpec((1, Np), lambda i: (0, 0)),
        ],
        out_specs=pl.BlockSpec((tm, Np), lambda i: (i, 0)),
        compiler_params=pltpu.CompilerParams(
            dimension_semantics=("parallel",)),
    )(x, w_pad, b_pad)
    return out if Mp == M else out[:M]


def fc_head(h, w_cat, b_cat, eps):
    """Fused fc11 + fc12 + reparameterization.

    Returns (mu[:B,:576] f32, logvar[:B,:576] f32, z (Mp, LATP) bf16); z is
    kept padded so fc2 can consume it directly without a re-pad round trip.
    """
    B = h.shape[0]
    Mp = _round_up(B, 8)
    Kp, N2 = w_cat.shape                                  # (LATP, 2*LATP)
    hp = jnp.zeros((Mp, Kp), jnp.bfloat16).at[:B, :LAT].set(
        h.astype(jnp.bfloat16))
    ep = jnp.zeros((Mp, LATP), jnp.float32).at[:B, :LAT].set(
        eps.astype(jnp.float32))

    mu, lv, z = pl.pallas_call(
        functools.partial(_fc_head_kernel, lat_pad=LATP),
        out_shape=(
            jax.ShapeDtypeStruct((Mp, LATP), jnp.float32),
            jax.ShapeDtypeStruct((Mp, LATP), jnp.float32),
            jax.ShapeDtypeStruct((Mp, LATP), jnp.bfloat16),
        ),
        grid=(1,),
        in_specs=[
            pl.BlockSpec((Mp, Kp), lambda i: (0, 0)),
            pl.BlockSpec((Kp, N2), lambda i: (0, 0)),
            pl.BlockSpec((1, N2), lambda i: (0, 0)),
            pl.BlockSpec((Mp, LATP), lambda i: (0, 0)),
        ],
        out_specs=(
            pl.BlockSpec((Mp, LATP), lambda i: (0, 0)),
            pl.BlockSpec((Mp, LATP), lambda i: (0, 0)),
            pl.BlockSpec((Mp, LATP), lambda i: (0, 0)),
        ),
        compiler_params=pltpu.CompilerParams(
            dimension_semantics=("parallel",)),
    )(hp, w_cat, b_cat, ep)
    return mu[:B, :LAT], lv[:B, :LAT], z


# ----------------------------------------------------------------------------
# Channels-last conv layers built on the fused Pallas matmul
# ----------------------------------------------------------------------------
def _im2col_nhwc(x, kh, kw, stride, pad):
    """(B, H, W, C) -> ((B*OH*OW, kh*kw*C), OH, OW); K order = (kh, kw, C)."""
    if pad:
        x = jnp.pad(x, ((0, 0), (pad, pad), (pad, pad), (0, 0)))
    B, H, W, C = x.shape
    oh = (H - kh) // stride + 1
    ow = (W - kw) // stride + 1
    cols = []
    for i in range(kh):
        for j in range(kw):
            cols.append(
                x[:, i:i + stride * oh:stride, j:j + stride * ow:stride, :])
    p = jnp.concatenate(cols, axis=-1)                    # (B, OH, OW, kh*kw*C)
    return p.reshape(B * oh * ow, kh * kw * C), oh, ow


def conv2d_nhwc(x, w_pad, b_pad, n_out, *, stride, pad, act, out_dtype):
    B = x.shape[0]
    cols, oh, ow = _im2col_nhwc(x, 4, 4, stride, pad)
    y = matmul_bias_act(cols, w_pad, b_pad, act=act, out_dtype=out_dtype)
    return y[:, :n_out].reshape(B, oh, ow, n_out)


def conv_transpose2d_nhwc(x, w_pad, b_pad, n_out, *, stride, pad, act,
                          out_dtype):
    # TODO(synk): replace zero-dilation with a stride-phase (sub-pixel)
    # decomposition to avoid the ~75% structural-zero MXU work in the decoder.
    B, H, W, C = x.shape
    if stride > 1:
        xd = jnp.zeros((B, (H - 1) * stride + 1, (W - 1) * stride + 1, C),
                       x.dtype)
        xd = xd.at[:, ::stride, ::stride, :].set(x)
    else:
        xd = x
    return conv2d_nhwc(xd, w_pad, b_pad, n_out, stride=1, pad=4 - 1 - pad,
                       act=act, out_dtype=out_dtype)


# ----------------------------------------------------------------------------
# One-time parameter preparation (hoisted out of the forward)
# ----------------------------------------------------------------------------
def prepare_params(params, in_channel=3):
    def pad_w(wm):                                        # (K, N) -> (Kp, Np) bf16
        K, N = wm.shape
        Kp, Np = _round_up(K, 128), _round_up(N, 128)
        return jnp.zeros((Kp, Np), jnp.bfloat16).at[:K, :N].set(
            wm.astype(jnp.bfloat16))

    def pad_b(b, np_=None):
        N = b.shape[0]
        Np = np_ if np_ is not None else _round_up(N, 128)
        return jnp.zeros((1, Np), jnp.float32).at[0, :N].set(
            b.astype(jnp.float32))

    def prep_conv(w, b, c_pad=None):                      # Conv2d (O, C, kh, kw)
        O, C, kh, kw = w.shape
        wm = jnp.transpose(w, (2, 3, 1, 0))               # (kh, kw, C, O)
        if c_pad is not None and c_pad > C:
            wm = jnp.pad(wm, ((0, 0), (0, 0), (0, c_pad - C), (0, 0)))
        return pad_w(wm.reshape(-1, O)), pad_b(b)

    def prep_convT(w, b):                                 # ConvTranspose2d (Ci, Co, kh, kw)
        Ci, Co, kh, kw = w.shape
        wm = jnp.transpose(jnp.flip(w, axis=(2, 3)), (2, 3, 0, 1)).reshape(-1, Co)
        return pad_w(wm), pad_b(b)

    def perm_fc_in(wT):                                   # fc input rows (C,H,W)->(H,W,C)
        return wT.reshape(64, 3, 3, -1).transpose(1, 2, 0, 3).reshape(LAT, -1)

    c_in_pad = _round_up(in_channel, 8)
    down = [prep_conv(*params["down"][0], c_pad=c_in_pad)]
    down += [prep_conv(w, b) for (w, b) in params["down"][1:]]
    up = [prep_convT(w, b) for (w, b) in params["up"]]

    # fc11 / fc12 fused along N, each half lane-padded to LATP.
    (w11, b11), (w12, b12) = params["fc11"], params["fc12"]
    fc_cat_w = jnp.concatenate(
        [pad_w(perm_fc_in(w11.T)), pad_w(perm_fc_in(w12.T))], axis=1)
    fc_cat_b = jnp.concatenate([pad_b(b11, LATP), pad_b(b12, LATP)], axis=1)

    # fc2: fold the (C,H,W)->(H,W,C) output permutation into the weights so the
    # decoder reshapes straight to channels-last with no transpose.
    w2, b2 = params["fc2"]
    w2T = w2.T.reshape(LAT, 64, 3, 3).transpose(0, 2, 3, 1).reshape(LAT, LAT)
    b2p = b2.reshape(64, 3, 3).transpose(1, 2, 0).reshape(LAT)

    return {
        "down": down, "up": up,
        "fc_cat_w": fc_cat_w, "fc_cat_b": fc_cat_b,
        "fc2_w": pad_w(w2T), "fc2_b": pad_b(b2p, LATP),
    }


# ----------------------------------------------------------------------------
# GradConVAE forward
# ----------------------------------------------------------------------------
def grad_con_vae_forward(prep, x, eps, *, in_channel=3):
    """x: (B, C, H, W) NCHW (PyTorch layout); eps: (B, 576) normal sample."""
    B = x.shape[0]
    c_in_pad = _round_up(in_channel, 8)

    # encoder: one NCHW -> channels-last conversion, then 4x fused conv+ReLU.
    h = jnp.transpose(x, (0, 2, 3, 1))
    if c_in_pad > in_channel:
        h = jnp.pad(h, ((0, 0), (0, 0), (0, 0), (0, c_in_pad - in_channel)))
    h = h.astype(jnp.bfloat16)
    # TODO(synk): the four tiny encoder convs could be fused into a single
    # pallas_call with activations kept in VMEM scratch to cut launches further.
    for (w_pad, b_pad), n_out, (s, p) in zip(prep["down"], DOWN_CH, DOWN_CFG):
        h = conv2d_nhwc(h, w_pad, b_pad, n_out, stride=s, pad=p,
                        act="relu", out_dtype=jnp.bfloat16)
    h_flat = h.reshape(B, LAT)     # (H,W,C) order; fc weights pre-permuted to match

    # fused fc11 + fc12 + reparameterization (training mode; eps == randn_like).
    mu, logvar, z = fc_head(h_flat, prep["fc_cat_w"], prep["fc_cat_b"], eps)

    # decoder
    h_d = matmul_bias_act(z, prep["fc2_w"], prep["fc2_b"], act="none",
                          out_dtype=jnp.bfloat16)
    h_d = h_d[:B, :LAT].reshape(B, 3, 3, 64)   # channels-last (perm in fc2 weights)

    up_ch = (64, 32, 32, in_channel)
    n_up = len(prep["up"])
    for li, ((w_pad, b_pad), n_out, (s, p)) in enumerate(
            zip(prep["up"], up_ch, UP_CFG)):
        last = li == n_up - 1
        h_d = conv_transpose2d_nhwc(
            h_d, w_pad, b_pad, n_out, stride=s, pad=p,
            act="sigmoid" if last else "relu",
            out_dtype=jnp.float32 if last else jnp.bfloat16)

    recon = jnp.transpose(h_d, (0, 3, 1, 2))   # channels-last -> NCHW once
    return recon, mu, logvar


# ----------------------------------------------------------------------------
# Deterministic parameter init (shapes match the PyTorch module)
# ----------------------------------------------------------------------------
def init_params(key, in_channel=3):
    keys = iter(jax.random.split(key, 32))

    def unif(k, shape, fan_in):
        bound = 1.0 / float(fan_in) ** 0.5
        return jax.random.uniform(k, shape, jnp.float32, -bound, bound)

    def conv(o, c, kh=4, kw=4):
        fan = c * kh * kw
        return (unif(next(keys), (o, c, kh, kw), fan),
                unif(next(keys), (o,), fan))

    def convT(ci, co, kh=4, kw=4):
        fan = co * kh * kw
        return (unif(next(keys), (ci, co, kh, kw), fan),
                unif(next(keys), (co,), fan))

    def lin(o, i):
        return (unif(next(keys), (o, i), i), unif(next(keys), (o,), i))

    return {
        "down": [conv(32, in_channel), conv(32, 32), conv(64, 32), conv(64, 64)],
        "fc11": lin(LAT, LAT),
        "fc12": lin(LAT, LAT),
        "fc2": lin(LAT, LAT),
        "up": [convT(64, 64), convT(64, 32), convT(32, 32), convT(32, in_channel)],
    }


if __name__ == "__main__":
    key = jax.random.PRNGKey(0)
    pkey, xkey, ekey = jax.random.split(key, 3)

    raw_params = init_params(pkey, in_channel=3)
    prep = prepare_params(raw_params, in_channel=3)   # one-time weight prep
    prep = jax.block_until_ready(prep)

    # Input spatial size 28 is forced by the fc dims (28 -> 15 -> 8 -> 5 -> 3).
    x = jax.random.uniform(xkey, (2, 3, 28, 28), jnp.float32)
    eps = jax.random.normal(ekey, (2, LAT), jnp.float32)

    fwd = jax.jit(functools.partial(grad_con_vae_forward, in_channel=3))
    recon, mu, logvar = jax.block_until_ready(fwd(prep, x, eps))

    assert recon.shape == (2, 3, 28, 28), recon.shape
    assert mu.shape == (2, LAT) and logvar.shape == (2, LAT)
    assert recon.dtype == jnp.float32
    print("KERNEL_OK")
</pallas_src>

<mosaic_0001>
module attributes {stable_mosaic.version = 11 : i64} {
  func.func @_mm_bias_act_kernel(%arg0: i32, %arg1: memref<456x128xbf16, #tpu.memory_space<vmem>>, %arg2: memref<128x128xbf16, #tpu.memory_space<vmem>>, %arg3: memref<1x128xf32, #tpu.memory_space<vmem>>, %arg4: memref<456x128xbf16, #tpu.memory_space<vmem>>) attributes {dimension_semantics = [#tpu.dimension_semantics<parallel>], iteration_bounds = array<i64: 1>, scalar_prefetch = 0 : i64, scratch_operands = 0 : i64, tpu.core_type = #tpu.core_type<tc>, window_params = [{transform_indices = @transform_0, window_bounds = array<i64: 456, 128>}, {pipeline_mode = #tpu.pipeline_mode<synchronous>, transform_indices = @transform_1, window_bounds = array<i64: 128, 128>}, {pipeline_mode = #tpu.pipeline_mode<synchronous>, transform_indices = @transform_2, window_bounds = array<i64: 1, 128>}, {transform_indices = @transform_3, window_bounds = array<i64: 456, 128>}]} {
    %c0 = arith.constant 0 : index
    %c0_0 = arith.constant 0 : index
    %0 = vector.load %arg1[%c0, %c0_0] : memref<456x128xbf16, #tpu.memory_space<vmem>>, vector<456x128xbf16>
    %c0_1 = arith.constant 0 : index
    %c0_2 = arith.constant 0 : index
    %1 = vector.load %arg2[%c0_1, %c0_2] : memref<128x128xbf16, #tpu.memory_space<vmem>>, vector<128x128xbf16>
    %cst = arith.constant dense<0.000000e+00> : vector<456x128xf32>
    %2 = tpu.matmul %0, %1, %cst {dimension_numbers = #tpu.dot_dimension_numbers<[1], [0], [0], [1], [0, 0, 1, 1], [], []>} : vector<456x128xbf16>, vector<128x128xbf16>, vector<456x128xf32> -> vector<456x128xf32>
    %c0_3 = arith.constant 0 : index
    %c0_4 = arith.constant 0 : index
    %3 = vector.load %arg3[%c0_3, %c0_4] : memref<1x128xf32, #tpu.memory_space<vmem>>, vector<1x128xf32>
    %4 = vector.broadcast %3 : vector<1x128xf32> to vector<456x128xf32>
    %5 = arith.addf %2, %4 : vector<456x128xf32>
    %cst_5 = arith.constant 0.000000e+00 : f32
    %6 = vector.broadcast %cst_5 : f32 to vector<456x128xf32>
    %7 = arith.maximumf %5, %6 : vector<456x128xf32>
    %8 = arith.truncf %7 : vector<456x128xf32> to vector<456x128xbf16>
    %c0_6 = arith.constant 0 : index
    %c0_7 = arith.constant 0 : index
    %9 = vector.load %arg4[%c0_6, %c0_7] : memref<456x128xbf16, #tpu.memory_space<vmem>>, vector<456x128xbf16>
    tpu.vector_store %arg4[%c0_6, %c0_7], %8 {strides = array<i32>} : memref<456x128xbf16, #tpu.memory_space<vmem>>, vector<456x128xbf16>,
    return
  }
  func.func @transform_0(%arg0: i32) -> (i32, i32) {
    %c0_i32 = arith.constant 0 : i32
    %c0_i32_0 = arith.constant 0 : i32
    return %arg0, %c0_i32 : i32, i32
  }
  func.func @transform_1(%arg0: i32) -> (i32, i32) {
    %c0_i32 = arith.constant 0 : i32
    %c0_i32_0 = arith.constant 0 : i32
    %c0_i32_1 = arith.constant 0 : i32
    return %c0_i32, %c0_i32_0 : i32, i32
  }
  func.func @transform_2(%arg0: i32) -> (i32, i32) {
    %c0_i32 = arith.constant 0 : i32
    %c0_i32_0 = arith.constant 0 : i32
    %c0_i32_1 = arith.constant 0 : i32
    return %c0_i32, %c0_i32_0 : i32, i32
  }
  func.func @transform_3(%arg0: i32) -> (i32, i32) {
    %c0_i32 = arith.constant 0 : i32
    %c0_i32_0 = arith.constant 0 : i32
    return %arg0, %c0_i32 : i32, i32
  }
}

module attributes {stable_mosaic.version = 11 : i64} {
  func.func @_mm_bias_act_kernel(%arg0: i32, %arg1: memref<128x512xbf16, #tpu.memory_space<vmem>>, %arg2: memref<512x128xbf16, #tpu.memory_space<vmem>>, %arg3: memref<1x128xf32, #tpu.memory_space<vmem>>, %arg4: memref<128x128xbf16, #tpu.memory_space<vmem>>) attributes {dimension_semantics = [#tpu.dimension_semantics<parallel>], iteration_bounds = array<i64: 1>, scalar_prefetch = 0 : i64, scratch_operands = 0 : i64, tpu.core_type = #tpu.core_type<tc>, window_params = [{transform_indices = @transform_0, window_bounds = array<i64: 128, 512>}, {pipeline_mode = #tpu.pipeline_mode<synchronous>, transform_indices = @transform_1, window_bounds = array<i64: 512, 128>}, {pipeline_mode = #tpu.pipeline_mode<synchronous>, transform_indices = @transform_2, window_bounds = array<i64: 1, 128>}, {transform_indices = @transform_3, window_bounds = array<i64: 128, 128>}]} {
    %c0 = arith.constant 0 : index
    %c0_0 = arith.constant 0 : index
    %0 = vector.load %arg1[%c0, %c0_0] : memref<128x512xbf16, #tpu.memory_space<vmem>>, vector<128x512xbf16>
    %c0_1 = arith.constant 0 : index
    %c0_2 = arith.constant 0 : index
    %1 = vector.load %arg2[%c0_1, %c0_2] : memref<512x128xbf16, #tpu.memory_space<vmem>>, vector<512x128xbf16>
    %cst = arith.constant dense<0.000000e+00> : vector<128x128xf32>
    %2 = tpu.matmul %0, %1, %cst {dimension_numbers = #tpu.dot_dimension_numbers<[1], [0], [0], [1], [0, 0, 1, 1], [], []>} : vector<128x512xbf16>, vector<512x128xbf16>, vector<128x128xf32> -> vector<128x128xf32>
    %c0_3 = arith.constant 0 : index
    %c0_4 = arith.constant 0 : index
    %3 = vector.load %arg3[%c0_3, %c0_4] : memref<1x128xf32, #tpu.memory_space<vmem>>, vector<1x128xf32>
    %4 = vector.broadcast %3 : vector<1x128xf32> to vector<128x128xf32>
    %5 = arith.addf %2, %4 : vector<128x128xf32>
    %cst_5 = arith.constant 0.000000e+00 : f32
    %6 = vector.broadcast %cst_5 : f32 to vector<128x128xf32>
    %7 = arith.maximumf %5, %6 : vector<128x128xf32>
    %8 = arith.truncf %7 : vector<128x128xf32> to vector<128x128xbf16>
    %c0_6 = arith.constant 0 : index
    %c0_7 = arith.constant 0 : index
    %9 = vector.load %arg4[%c0_6, %c0_7] : memref<128x128xbf16, #tpu.memory_space<vmem>>, vector<128x128xbf16>
    tpu.vector_store %arg4[%c0_6, %c0_7], %8 {strides = array<i32>} : memref<128x128xbf16, #tpu.memory_space<vmem>>, vector<128x128xbf16>,
    return
  }
  func.func @transform_0(%arg0: i32) -> (i32, i32) {
    %c0_i32 = arith.constant 0 : i32
    %c0_i32_0 = arith.constant 0 : i32
    return %arg0, %c0_i32 : i32, i32
  }
  func.func @transform_1(%arg0: i32) -> (i32, i32) {
    %c0_i32 = arith.constant 0 : i32
    %c0_i32_0 = arith.constant 0 : i32
    %c0_i32_1 = arith.constant 0 : i32
    return %c0_i32, %c0_i32_0 : i32, i32
  }
  func.func @transform_2(%arg0: i32) -> (i32, i32) {
    %c0_i32 = arith.constant 0 : i32
    %c0_i32_0 = arith.constant 0 : i32
    %c0_i32_1 = arith.constant 0 : i32
    return %c0_i32, %c0_i32_0 : i32, i32
  }
  func.func @transform_3(%arg0: i32) -> (i32, i32) {
    %c0_i32 = arith.constant 0 : i32
    %c0_i32_0 = arith.constant 0 : i32
    return %arg0, %c0_i32 : i32, i32
  }
}

module attributes {stable_mosaic.version = 11 : i64} {
  func.func @_mm_bias_act_kernel(%arg0: i32, %arg1: memref<56x512xbf16, #tpu.memory_space<vmem>>, %arg2: memref<512x128xbf16, #tpu.memory_space<vmem>>, %arg3: memref<1x128xf32, #tpu.memory_space<vmem>>, %arg4: memref<56x128xbf16, #tpu.memory_space<vmem>>) attributes {dimension_semantics = [#tpu.dimension_semantics<parallel>], iteration_bounds = array<i64: 1>, scalar_prefetch = 0 : i64, scratch_operands = 0 : i64, tpu.core_type = #tpu.core_type<tc>, window_params = [{transform_indices = @transform_0, window_bounds = array<i64: 56, 512>}, {pipeline_mode = #tpu.pipeline_mode<synchronous>, transform_indices = @transform_1, window_bounds = array<i64: 512, 128>}, {pipeline_mode = #tpu.pipeline_mode<synchronous>, transform_indices = @transform_2, window_bounds = array<i64: 1, 128>}, {transform_indices = @transform_3, window_bounds = array<i64: 56, 128>}]} {
    %c0 = arith.constant 0 : index
    %c0_0 = arith.constant 0 : index
    %0 = vector.load %arg1[%c0, %c0_0] : memref<56x512xbf16, #tpu.memory_space<vmem>>, vector<56x512xbf16>
    %c0_1 = arith.constant 0 : index
    %c0_2 = arith.constant 0 : index
    %1 = vector.load %arg2[%c0_1, %c0_2] : memref<512x128xbf16, #tpu.memory_space<vmem>>, vector<512x128xbf16>
    %cst = arith.constant dense<0.000000e+00> : vector<56x128xf32>
    %2 = tpu.matmul %0, %1, %cst {dimension_numbers = #tpu.dot_dimension_numbers<[1], [0], [0], [1], [0, 0, 1, 1], [], []>} : vector<56x512xbf16>, vector<512x128xbf16>, vector<56x128xf32> -> vector<56x128xf32>
    %c0_3 = arith.constant 0 : index
    %c0_4 = arith.constant 0 : index
    %3 = vector.load %arg3[%c0_3, %c0_4] : memref<1x128xf32, #tpu.memory_space<vmem>>, vector<1x128xf32>
    %4 = vector.broadcast %3 : vector<1x128xf32> to vector<56x128xf32>
    %5 = arith.addf %2, %4 : vector<56x128xf32>
    %cst_5 = arith.constant 0.000000e+00 : f32
    %6 = vector.broadcast %cst_5 : f32 to vector<56x128xf32>
    %7 = arith.maximumf %5, %6 : vector<56x128xf32>
    %8 = arith.truncf %7 : vector<56x128xf32> to vector<56x128xbf16>
    %c0_6 = arith.constant 0 : index
    %c0_7 = arith.constant 0 : index
    %9 = vector.load %arg4[%c0_6, %c0_7] : memref<56x128xbf16, #tpu.memory_space<vmem>>, vector<56x128xbf16>
    tpu.vector_store %arg4[%c0_6, %c0_7], %8 {strides = array<i32>} : memref<56x128xbf16, #tpu.memory_space<vmem>>, vector<56x128xbf16>,
    return
  }
  func.func @transform_0(%arg0: i32) -> (i32, i32) {
    %c0_i32 = arith.constant 0 : i32
    %c0_i32_0 = arith.constant 0 : i32
    return %arg0, %c0_i32 : i32, i32
  }
  func.func @transform_1(%arg0: i32) -> (i32, i32) {
    %c0_i32 = arith.constant 0 : i32
    %c0_i32_0 = arith.constant 0 : i32
    %c0_i32_1 = arith.constant 0 : i32
    return %c0_i32, %c0_i32_0 : i32, i32
  }
  func.func @transform_2(%arg0: i32) -> (i32, i32) {
    %c0_i32 = arith.constant 0 : i32
    %c0_i32_0 = arith.constant 0 : i32
    %c0_i32_1 = arith.constant 0 : i32
    return %c0_i32, %c0_i32_0 : i32, i32
  }
  func.func @transform_3(%arg0: i32) -> (i32, i32) {
    %c0_i32 = arith.constant 0 : i32
    %c0_i32_0 = arith.constant 0 : i32
    return %arg0, %c0_i32 : i32, i32
  }
}

module attributes {stable_mosaic.version = 11 : i64} {
  func.func @_mm_bias_act_kernel(%arg0: i32, %arg1: memref<24x1024xbf16, #tpu.memory_space<vmem>>, %arg2: memref<1024x128xbf16, #tpu.memory_space<vmem>>, %arg3: memref<1x128xf32, #tpu.memory_space<vmem>>, %arg4: memref<24x128xbf16, #tpu.memory_space<vmem>>) attributes {dimension_semantics = [#tpu.dimension_semantics<parallel>], iteration_bounds = array<i64: 1>, scalar_prefetch = 0 : i64, scratch_operands = 0 : i64, tpu.core_type = #tpu.core_type<tc>, window_params = [{transform_indices = @transform_0, window_bounds = array<i64: 24, 1024>}, {pipeline_mode = #tpu.pipeline_mode<synchronous>, transform_indices = @transform_1, window_bounds = array<i64: 1024, 128>}, {pipeline_mode = #tpu.pipeline_mode<synchronous>, transform_indices = @transform_2, window_bounds = array<i64: 1, 128>}, {transform_indices = @transform_3, window_bounds = array<i64: 24, 128>}]} {
    %c0 = arith.constant 0 : index
    %c0_0 = arith.constant 0 : index
    %0 = vector.load %arg1[%c0, %c0_0] : memref<24x1024xbf16, #tpu.memory_space<vmem>>, vector<24x1024xbf16>
    %c0_1 = arith.constant 0 : index
    %c0_2 = arith.constant 0 : index
    %1 = vector.load %arg2[%c0_1, %c0_2] : memref<1024x128xbf16, #tpu.memory_space<vmem>>, vector<1024x128xbf16>
    %cst = arith.constant dense<0.000000e+00> : vector<24x128xf32>
    %2 = tpu.matmul %0, %1, %cst {dimension_numbers = #tpu.dot_dimension_numbers<[1], [0], [0], [1], [0, 0, 1, 1], [], []>} : vector<24x1024xbf16>, vector<1024x128xbf16>, vector<24x128xf32> -> vector<24x128xf32>
    %c0_3 = arith.constant 0 : index
    %c0_4 = arith.constant 0 : index
    %3 = vector.load %arg3[%c0_3, %c0_4] : memref<1x128xf32, #tpu.memory_space<vmem>>, vector<1x128xf32>
    %4 = vector.broadcast %3 : vector<1x128xf32> to vector<24x128xf32>
    %5 = arith.addf %2, %4 : vector<24x128xf32>
    %cst_5 = arith.constant 0.000000e+00 : f32
    %6 = vector.broadcast %cst_5 : f32 to vector<24x128xf32>
    %7 = arith.maximumf %5, %6 : vector<24x128xf32>
    %8 = arith.truncf %7 : vector<24x128xf32> to vector<24x128xbf16>
    %c0_6 = arith.constant 0 : index
    %c0_7 = arith.constant 0 : index
    %9 = vector.load %arg4[%c0_6, %c0_7] : memref<24x128xbf16, #tpu.memory_space<vmem>>, vector<24x128xbf16>
    tpu.vector_store %arg4[%c0_6, %c0_7], %8 {strides = array<i32>} : memref<24x128xbf16, #tpu.memory_space<vmem>>, vector<24x128xbf16>,
    return
  }
  func.func @transform_0(%arg0: i32) -> (i32, i32) {
    %c0_i32 = arith.constant 0 : i32
    %c0_i32_0 = arith.constant 0 : i32
    return %arg0, %c0_i32 : i32, i32
  }
  func.func @transform_1(%arg0: i32) -> (i32, i32) {
    %c0_i32 = arith.constant 0 : i32
    %c0_i32_0 = arith.constant 0 : i32
    %c0_i32_1 = arith.constant 0 : i32
    return %c0_i32, %c0_i32_0 : i32, i32
  }
  func.func @transform_2(%arg0: i32) -> (i32, i32) {
    %c0_i32 = arith.constant 0 : i32
    %c0_i32_0 = arith.constant 0 : i32
    %c0_i32_1 = arith.constant 0 : i32
    return %c0_i32, %c0_i32_0 : i32, i32
  }
  func.func @transform_3(%arg0: i32) -> (i32, i32) {
    %c0_i32 = arith.constant 0 : i32
    %c0_i32_0 = arith.constant 0 : i32
    return %arg0, %c0_i32 : i32, i32
  }
}

module attributes {stable_mosaic.version = 11 : i64} {
  func.func @_fc_head_kernel(%arg0: i32, %arg1: memref<8x640xbf16, #tpu.memory_space<vmem>>, %arg2: memref<640x1280xbf16, #tpu.memory_space<vmem>>, %arg3: memref<1x1280xf32, #tpu.memory_space<vmem>>, %arg4: memref<8x640xf32, #tpu.memory_space<vmem>>, %arg5: memref<8x640xf32, #tpu.memory_space<vmem>>, %arg6: memref<8x640xf32, #tpu.memory_space<vmem>>, %arg7: memref<8x640xbf16, #tpu.memory_space<vmem>>) attributes {dimension_semantics = [#tpu.dimension_semantics<parallel>], iteration_bounds = array<i64: 1>, scalar_prefetch = 0 : i64, scratch_operands = 0 : i64, tpu.core_type = #tpu.core_type<tc>, window_params = [{pipeline_mode = #tpu.pipeline_mode<synchronous>, transform_indices = @transform_0, window_bounds = array<i64: 8, 640>}, {pipeline_mode = #tpu.pipeline_mode<synchronous>, transform_indices = @transform_1, window_bounds = array<i64: 640, 1280>}, {pipeline_mode = #tpu.pipeline_mode<synchronous>, transform_indices = @transform_2, window_bounds = array<i64: 1, 1280>}, {pipeline_mode = #tpu.pipeline_mode<synchronous>, transform_indices = @transform_3, window_bounds = array<i64: 8, 640>}, {pipeline_mode = #tpu.pipeline_mode<synchronous>, transform_indices = @transform_4, window_bounds = array<i64: 8, 640>}, {pipeline_mode = #tpu.pipeline_mode<synchronous>, transform_indices = @transform_5, window_bounds = array<i64: 8, 640>}, {pipeline_mode = #tpu.pipeline_mode<synchronous>, transform_indices = @transform_6, window_bounds = array<i64: 8, 640>}]} {
    %c0 = arith.constant 0 : index
    %c0_0 = arith.constant 0 : index
    %0 = vector.load %arg1[%c0, %c0_0] : memref<8x640xbf16, #tpu.memory_space<vmem>>, vector<8x640xbf16>
    %c0_1 = arith.constant 0 : index
    %c0_2 = arith.constant 0 : index
    %1 = vector.load %arg2[%c0_1, %c0_2] : memref<640x1280xbf16, #tpu.memory_space<vmem>>, vector<640x1280xbf16>
    %cst = arith.constant dense<0.000000e+00> : vector<8x1280xf32>
    %2 = tpu.matmul %0, %1, %cst {dimension_numbers = #tpu.dot_dimension_numbers<[1], [0], [0], [1], [0, 0, 1, 1], [], []>} : vector<8x640xbf16>, vector<640x1280xbf16>, vector<8x1280xf32> -> vector<8x1280xf32>
    %c0_3 = arith.constant 0 : index
    %c0_4 = arith.constant 0 : index
    %3 = vector.load %arg3[%c0_3, %c0_4] : memref<1x1280xf32, #tpu.memory_space<vmem>>, vector<1x1280xf32>
    %4 = vector.broadcast %3 : vector<1x1280xf32> to vector<8x1280xf32>
    %5 = arith.addf %2, %4 : vector<8x1280xf32>
    %6 = vector.extract_strided_slice %5 {offsets = [0, 0], sizes = [8, 640], strides = [1, 1]} : vector<8x1280xf32> to vector<8x640xf32>
    %7 = vector.extract_strided_slice %5 {offsets = [0, 640], sizes = [8, 640], strides = [1, 1]} : vector<8x1280xf32> to vector<8x640xf32>
    %c0_5 = arith.constant 0 : index
    %c0_6 = arith.constant 0 : index
    %8 = vector.load %arg5[%c0_5, %c0_6] : memref<8x640xf32, #tpu.memory_space<vmem>>, vector<8x640xf32>
    tpu.vector_store %arg5[%c0_5, %c0_6], %6 {strides = array<i32>} : memref<8x640xf32, #tpu.memory_space<vmem>>, vector<8x640xf32>,
    %c0_7 = arith.constant 0 : index
    %c0_8 = arith.constant 0 : index
    %9 = vector.load %arg6[%c0_7, %c0_8] : memref<8x640xf32, #tpu.memory_space<vmem>>, vector<8x640xf32>
    tpu.vector_store %arg6[%c0_7, %c0_8], %7 {strides = array<i32>} : memref<8x640xf32, #tpu.memory_space<vmem>>, vector<8x640xf32>,
    %c0_9 = arith.constant 0 : index
    %c0_10 = arith.constant 0 : index
    %10 = vector.load %arg4[%c0_9, %c0_10] : memref<8x640xf32, #tpu.memory_space<vmem>>, vector<8x640xf32>
    %cst_11 = arith.constant 5.000000e-01 : f32
    %11 = vector.broadcast %cst_11 : f32 to vector<8x640xf32>
    %12 = arith.mulf %11, %7 : vector<8x640xf32>
    %13 = math.exp %12 : vector<8x640xf32>
    %14 = arith.mulf %10, %13 : vector<8x640xf32>
    %15 = arith.addf %6, %14 : vector<8x640xf32>
    %16 = arith.truncf %15 : vector<8x640xf32> to vector<8x640xbf16>
    %c0_12 = arith.constant 0 : index
    %c0_13 = arith.constant 0 : index
    %17 = vector.load %arg7[%c0_12, %c0_13] : memref<8x640xbf16, #tpu.memory_space<vmem>>, vector<8x640xbf16>
    tpu.vector_store %arg7[%c0_12, %c0_13], %16 {strides = array<i32>} : memref<8x640xbf16, #tpu.memory_space<vmem>>, vector<8x640xbf16>,
    return
  }
  func.func @transform_0(%arg0: i32) -> (i32, i32) {
    %c0_i32 = arith.constant 0 : i32
    %c0_i32_0 = arith.constant 0 : i32
    %c0_i32_1 = arith.constant 0 : i32
    return %c0_i32, %c0_i32_0 : i32, i32
  }
  func.func @transform_1(%arg0: i32) -> (i32, i32) {
    %c0_i32 = arith.constant 0 : i32
    %c0_i32_0 = arith.constant 0 : i32
    %c0_i32_1 = arith.constant 0 : i32
    return %c0_i32, %c0_i32_0 : i32, i32
  }
  func.func @transform_2(%arg0: i32) -> (i32, i32) {
    %c0_i32 = arith.constant 0 : i32
    %c0_i32_0 = arith.constant 0 : i32
    %c0_i32_1 = arith.constant 0 : i32
    return %c0_i32, %c0_i32_0 : i32, i32
  }
  func.func @transform_3(%arg0: i32) -> (i32, i32) {
    %c0_i32 = arith.constant 0 : i32
    %c0_i32_0 = arith.constant 0 : i32
    %c0_i32_1 = arith.constant 0 : i32
    return %c0_i32, %c0_i32_0 : i32, i32
  }
  func.func @transform_4(%arg0: i32) -> (i32, i32) {
    %c0_i32 = arith.constant 0 : i32
    %c0_i32_0 = arith.constant 0 : i32
    %c0_i32_1 = arith.constant 0 : i32
    return %c0_i32, %c0_i32_0 : i32, i32
  }
  func.func @transform_5(%arg0: i32) -> (i32, i32) {
    %c0_i32 = arith.constant 0 : i32
    %c0_i32_0 = arith.constant 0 : i32
    %c0_i32_1 = arith.constant 0 : i32
    return %c0_i32, %c0_i32_0 : i32, i32
  }
  func.func @transform_6(%arg0: i32) -> (i32, i32) {
    %c0_i32 = arith.constant 0 : i32
    %c0_i32_0 = arith.constant 0 : i32
    %c0_i32_1 = arith.constant 0 : i32
    return %c0_i32, %c0_i32_0 : i32, i32
  }
}

module attributes {stable_mosaic.version = 11 : i64} {
  func.func @_mm_bias_act_kernel(%arg0: i32, %arg1: memref<8x640xbf16, #tpu.memory_space<vmem>>, %arg2: memref<640x640xbf16, #tpu.memory_space<vmem>>, %arg3: memref<1x640xf32, #tpu.memory_space<vmem>>, %arg4: memref<8x640xbf16, #tpu.memory_space<vmem>>) attributes {dimension_semantics = [#tpu.dimension_semantics<parallel>], iteration_bounds = array<i64: 1>, scalar_prefetch = 0 : i64, scratch_operands = 0 : i64, tpu.core_type = #tpu.core_type<tc>, window_params = [{transform_indices = @transform_0, window_bounds = array<i64: 8, 640>}, {pipeline_mode = #tpu.pipeline_mode<synchronous>, transform_indices = @transform_1, window_bounds = array<i64: 640, 640>}, {pipeline_mode = #tpu.pipeline_mode<synchronous>, transform_indices = @transform_2, window_bounds = array<i64: 1, 640>}, {transform_indices = @transform_3, window_bounds = array<i64: 8, 640>}]} {
    %c0 = arith.constant 0 : index
    %c0_0 = arith.constant 0 : index
    %0 = vector.load %arg1[%c0, %c0_0] : memref<8x640xbf16, #tpu.memory_space<vmem>>, vector<8x640xbf16>
    %c0_1 = arith.constant 0 : index
    %c0_2 = arith.constant 0 : index
    %1 = vector.load %arg2[%c0_1, %c0_2] : memref<640x640xbf16, #tpu.memory_space<vmem>>, vector<640x640xbf16>
    %cst = arith.constant dense<0.000000e+00> : vector<8x640xf32>
    %2 = tpu.matmul %0, %1, %cst {dimension_numbers = #tpu.dot_dimension_numbers<[1], [0], [0], [1], [0, 0, 1, 1], [], []>} : vector<8x640xbf16>, vector<640x640xbf16>, vector<8x640xf32> -> vector<8x640xf32>
    %c0_3 = arith.constant 0 : index
    %c0_4 = arith.constant 0 : index
    %3 = vector.load %arg3[%c0_3, %c0_4] : memref<1x640xf32, #tpu.memory_space<vmem>>, vector<1x640xf32>
    %4 = vector.broadcast %3 : vector<1x640xf32> to vector<8x640xf32>
    %5 = arith.addf %2, %4 : vector<8x640xf32>
    %6 = arith.truncf %5 : vector<8x640xf32> to vector<8x640xbf16>
    %c0_5 = arith.constant 0 : index
    %c0_6 = arith.constant 0 : index
    %7 = vector.load %arg4[%c0_5, %c0_6] : memref<8x640xbf16, #tpu.memory_space<vmem>>, vector<8x640xbf16>
    tpu.vector_store %arg4[%c0_5, %c0_6], %6 {strides = array<i32>} : memref<8x640xbf16, #tpu.memory_space<vmem>>, vector<8x640xbf16>,
    return
  }
  func.func @transform_0(%arg0: i32) -> (i32, i32) {
    %c0_i32 = arith.constant 0 : i32
    %c0_i32_0 = arith.constant 0 : i32
    return %arg0, %c0_i32 : i32, i32
  }
  func.func @transform_1(%arg0: i32) -> (i32, i32) {
    %c0_i32 = arith.constant 0 : i32
    %c0_i32_0 = arith.constant 0 : i32
    %c0_i32_1 = arith.constant 0 : i32
    return %c0_i32, %c0_i32_0 : i32, i32
  }
  func.func @transform_2(%arg0: i32) -> (i32, i32) {
    %c0_i32 = arith.constant 0 : i32
    %c0_i32_0 = arith.constant 0 : i32
    %c0_i32_1 = arith.constant 0 : i32
    return %c0_i32, %c0_i32_0 : i32, i32
  }
  func.func @transform_3(%arg0: i32) -> (i32, i32) {
    %c0_i32 = arith.constant 0 : i32
    %c0_i32_0 = arith.constant 0 : i32
    return %arg0, %c0_i32 : i32, i32
  }
}

module attributes {stable_mosaic.version = 11 : i64} {
  func.func @_mm_bias_act_kernel(%arg0: i32, %arg1: memref<32x1024xbf16, #tpu.memory_space<vmem>>, %arg2: memref<1024x128xbf16, #tpu.memory_space<vmem>>, %arg3: memref<1x128xf32, #tpu.memory_space<vmem>>, %arg4: memref<32x128xbf16, #tpu.memory_space<vmem>>) attributes {dimension_semantics = [#tpu.dimension_semantics<parallel>], iteration_bounds = array<i64: 1>, scalar_prefetch = 0 : i64, scratch_operands = 0 : i64, tpu.core_type = #tpu.core_type<tc>, window_params = [{transform_indices = @transform_0, window_bounds = array<i64: 32, 1024>}, {pipeline_mode = #tpu.pipeline_mode<synchronous>, transform_indices = @transform_1, window_bounds = array<i64: 1024, 128>}, {pipeline_mode = #tpu.pipeline_mode<synchronous>, transform_indices = @transform_2, window_bounds = array<i64: 1, 128>}, {transform_indices = @transform_3, window_bounds = array<i64: 32, 128>}]} {
    %c0 = arith.constant 0 : index
    %c0_0 = arith.constant 0 : index
    %0 = vector.load %arg1[%c0, %c0_0] : memref<32x1024xbf16, #tpu.memory_space<vmem>>, vector<32x1024xbf16>
    %c0_1 = arith.constant 0 : index
    %c0_2 = arith.constant 0 : index
    %1 = vector.load %arg2[%c0_1, %c0_2] : memref<1024x128xbf16, #tpu.memory_space<vmem>>, vector<1024x128xbf16>
    %cst = arith.constant dense<0.000000e+00> : vector<32x128xf32>
    %2 = tpu.matmul %0, %1, %cst {dimension_numbers = #tpu.dot_dimension_numbers<[1], [0], [0], [1], [0, 0, 1, 1], [], []>} : vector<32x1024xbf16>, vector<1024x128xbf16>, vector<32x128xf32> -> vector<32x128xf32>
    %c0_3 = arith.constant 0 : index
    %c0_4 = arith.constant 0 : index
    %3 = vector.load %arg3[%c0_3, %c0_4] : memref<1x128xf32, #tpu.memory_space<vmem>>, vector<1x128xf32>
    %4 = vector.broadcast %3 : vector<1x128xf32> to vector<32x128xf32>
    %5 = arith.addf %2, %4 : vector<32x128xf32>
    %cst_5 = arith.constant 0.000000e+00 : f32
    %6 = vector.broadcast %cst_5 : f32 to vector<32x128xf32>
    %7 = arith.maximumf %5, %6 : vector<32x128xf32>
    %8 = arith.truncf %7 : vector<32x128xf32> to vector<32x128xbf16>
    %c0_6 = arith.constant 0 : index
    %c0_7 = arith.constant 0 : index
    %9 = vector.load %arg4[%c0_6, %c0_7] : memref<32x128xbf16, #tpu.memory_space<vmem>>, vector<32x128xbf16>
    tpu.vector_store %arg4[%c0_6, %c0_7], %8 {strides = array<i32>} : memref<32x128xbf16, #tpu.memory_space<vmem>>, vector<32x128xbf16>,
    return
  }
  func.func @transform_0(%arg0: i32) -> (i32, i32) {
    %c0_i32 = arith.constant 0 : i32
    %c0_i32_0 = arith.constant 0 : i32
    return %arg0, %c0_i32 : i32, i32
  }
  func.func @transform_1(%arg0: i32) -> (i32, i32) {
    %c0_i32 = arith.constant 0 : i32
    %c0_i32_0 = arith.constant 0 : i32
    %c0_i32_1 = arith.constant 0 : i32
    return %c0_i32, %c0_i32_0 : i32, i32
  }
  func.func @transform_2(%arg0: i32) -> (i32, i32) {
    %c0_i32 = arith.constant 0 : i32
    %c0_i32_0 = arith.constant 0 : i32
    %c0_i32_1 = arith.constant 0 : i32
    return %c0_i32, %c0_i32_0 : i32, i32
  }
  func.func @transform_3(%arg0: i32) -> (i32, i32) {
    %c0_i32 = arith.constant 0 : i32
    %c0_i32_0 = arith.constant 0 : i32
    return %arg0, %c0_i32 : i32, i32
  }
}

module attributes {stable_mosaic.version = 11 : i64} {
  func.func @_mm_bias_act_kernel(%arg0: i32, %arg1: memref<128x1024xbf16, #tpu.memory_space<vmem>>, %arg2: memref<1024x128xbf16, #tpu.memory_space<vmem>>, %arg3: memref<1x128xf32, #tpu.memory_space<vmem>>, %arg4: memref<128x128xbf16, #tpu.memory_space<vmem>>) attributes {dimension_semantics = [#tpu.dimension_semantics<parallel>], iteration_bounds = array<i64: 1>, scalar_prefetch = 0 : i64, scratch_operands = 0 : i64, tpu.core_type = #tpu.core_type<tc>, window_params = [{transform_indices = @transform_0, window_bounds = array<i64: 128, 1024>}, {pipeline_mode = #tpu.pipeline_mode<synchronous>, transform_indices = @transform_1, window_bounds = array<i64: 1024, 128>}, {pipeline_mode = #tpu.pipeline_mode<synchronous>, transform_indices = @transform_2, window_bounds = array<i64: 1, 128>}, {transform_indices = @transform_3, window_bounds = array<i64: 128, 128>}]} {
    %c0 = arith.constant 0 : index
    %c0_0 = arith.constant 0 : index
    %0 = vector.load %arg1[%c0, %c0_0] : memref<128x1024xbf16, #tpu.memory_space<vmem>>, vector<128x1024xbf16>
    %c0_1 = arith.constant 0 : index
    %c0_2 = arith.constant 0 : index
    %1 = vector.load %arg2[%c0_1, %c0_2] : memref<1024x128xbf16, #tpu.memory_space<vmem>>, vector<1024x128xbf16>
    %cst = arith.constant dense<0.000000e+00> : vector<128x128xf32>
    %2 = tpu.matmul %0, %1, %cst {dimension_numbers = #tpu.dot_dimension_numbers<[1], [0], [0], [1], [0, 0, 1, 1], [], []>} : vector<128x1024xbf16>, vector<1024x128xbf16>, vector<128x128xf32> -> vector<128x128xf32>
    %c0_3 = arith.constant 0 : index
    %c0_4 = arith.constant 0 : index
    %3 = vector.load %arg3[%c0_3, %c0_4] : memref<1x128xf32, #tpu.memory_space<vmem>>, vector<1x128xf32>
    %4 = vector.broadcast %3 : vector<1x128xf32> to vector<128x128xf32>
    %5 = arith.addf %2, %4 : vector<128x128xf32>
    %cst_5 = arith.constant 0.000000e+00 : f32
    %6 = vector.broadcast %cst_5 : f32 to vector<128x128xf32>
    %7 = arith.maximumf %5, %6 : vector<128x128xf32>
    %8 = arith.truncf %7 : vector<128x128xf32> to vector<128x128xbf16>
    %c0_6 = arith.constant 0 : index
    %c0_7 = arith.constant 0 : index
    %9 = vector.load %arg4[%c0_6, %c0_7] : memref<128x128xbf16, #tpu.memory_space<vmem>>, vector<128x128xbf16>
    tpu.vector_store %arg4[%c0_6, %c0_7], %8 {strides = array<i32>} : memref<128x128xbf16, #tpu.memory_space<vmem>>, vector<128x128xbf16>,
    return
  }
  func.func @transform_0(%arg0: i32) -> (i32, i32) {
    %c0_i32 = arith.constant 0 : i32
    %c0_i32_0 = arith.constant 0 : i32
    return %arg0, %c0_i32 : i32, i32
  }
  func.func @transform_1(%arg0: i32) -> (i32, i32) {
    %c0_i32 = arith.constant 0 : i32
    %c0_i32_0 = arith.constant 0 : i32
    %c0_i32_1 = arith.constant 0 : i32
    return %c0_i32, %c0_i32_0 : i32, i32
  }
  func.func @transform_2(%arg0: i32) -> (i32, i32) {
    %c0_i32 = arith.constant 0 : i32
    %c0_i32_0 = arith.constant 0 : i32
    %c0_i32_1 = arith.constant 0 : i32
    return %c0_i32, %c0_i32_0 : i32, i32
  }
  func.func @transform_3(%arg0: i32) -> (i32, i32) {
    %c0_i32 = arith.constant 0 : i32
    %c0_i32_0 = arith.constant 0 : i32
    return %arg0, %c0_i32 : i32, i32
  }
}

module attributes {stable_mosaic.version = 11 : i64} {
  func.func @_mm_bias_act_kernel(%arg0: i32, %arg1: memref<392x512xbf16, #tpu.memory_space<vmem>>, %arg2: memref<512x128xbf16, #tpu.memory_space<vmem>>, %arg3: memref<1x128xf32, #tpu.memory_space<vmem>>, %arg4: memref<392x128xbf16, #tpu.memory_space<vmem>>) attributes {dimension_semantics = [#tpu.dimension_semantics<parallel>], iteration_bounds = array<i64: 1>, scalar_prefetch = 0 : i64, scratch_operands = 0 : i64, tpu.core_type = #tpu.core_type<tc>, window_params = [{transform_indices = @transform_0, window_bounds = array<i64: 392, 512>}, {pipeline_mode = #tpu.pipeline_mode<synchronous>, transform_indices = @transform_1, window_bounds = array<i64: 512, 128>}, {pipeline_mode = #tpu.pipeline_mode<synchronous>, transform_indices = @transform_2, window_bounds = array<i64: 1, 128>}, {transform_indices = @transform_3, window_bounds = array<i64: 392, 128>}]} {
    %c0 = arith.constant 0 : index
    %c0_0 = arith.constant 0 : index
    %0 = vector.load %arg1[%c0, %c0_0] : memref<392x512xbf16, #tpu.memory_space<vmem>>, vector<392x512xbf16>
    %c0_1 = arith.constant 0 : index
    %c0_2 = arith.constant 0 : index
    %1 = vector.load %arg2[%c0_1, %c0_2] : memref<512x128xbf16, #tpu.memory_space<vmem>>, vector<512x128xbf16>
    %cst = arith.constant dense<0.000000e+00> : vector<392x128xf32>
    %2 = tpu.matmul %0, %1, %cst {dimension_numbers = #tpu.dot_dimension_numbers<[1], [0], [0], [1], [0, 0, 1, 1], [], []>} : vector<392x512xbf16>, vector<512x128xbf16>, vector<392x128xf32> -> vector<392x128xf32>
    %c0_3 = arith.constant 0 : index
    %c0_4 = arith.constant 0 : index
    %3 = vector.load %arg3[%c0_3, %c0_4] : memref<1x128xf32, #tpu.memory_space<vmem>>, vector<1x128xf32>
    %4 = vector.broadcast %3 : vector<1x128xf32> to vector<392x128xf32>
    %5 = arith.addf %2, %4 : vector<392x128xf32>
    %cst_5 = arith.constant 0.000000e+00 : f32
    %6 = vector.broadcast %cst_5 : f32 to vector<392x128xf32>
    %7 = arith.maximumf %5, %6 : vector<392x128xf32>
    %8 = arith.truncf %7 : vector<392x128xf32> to vector<392x128xbf16>
    %c0_6 = arith.constant 0 : index
    %c0_7 = arith.constant 0 : index
    %9 = vector.load %arg4[%c0_6, %c0_7] : memref<392x128xbf16, #tpu.memory_space<vmem>>, vector<392x128xbf16>
    tpu.vector_store %arg4[%c0_6, %c0_7], %8 {strides = array<i32>} : memref<392x128xbf16, #tpu.memory_space<vmem>>, vector<392x128xbf16>,
    return
  }
  func.func @transform_0(%arg0: i32) -> (i32, i32) {
    %c0_i32 = arith.constant 0 : i32
    %c0_i32_0 = arith.constant 0 : i32
    return %arg0, %c0_i32 : i32, i32
  }
  func.func @transform_1(%arg0: i32) -> (i32, i32) {
    %c0_i32 = arith.constant 0 : i32
    %c0_i32_0 = arith.constant 0 : i32
    %c0_i32_1 = arith.constant 0 : i32
    return %c0_i32, %c0_i32_0 : i32, i32
  }
  func.func @transform_2(%arg0: i32) -> (i32, i32) {
    %c0_i32 = arith.constant 0 : i32
    %c0_i32_0 = arith.constant 0 : i32
    %c0_i32_1 = arith.constant 0 : i32
    return %c0_i32, %c0_i32_0 : i32, i32
  }
  func.func @transform_3(%arg0: i32) -> (i32, i32) {
    %c0_i32 = arith.constant 0 : i32
    %c0_i32_0 = arith.constant 0 : i32
    return %arg0, %c0_i32 : i32, i32
  }
}

module attributes {stable_mosaic.version = 11 : i64} {
  func.func @_mm_bias_act_kernel(%arg0: i32, %arg1: memref<392x512xbf16, #tpu.memory_space<vmem>>, %arg2: memref<512x128xbf16, #tpu.memory_space<vmem>>, %arg3: memref<1x128xf32, #tpu.memory_space<vmem>>, %arg4: memref<392x128xf32, #tpu.memory_space<vmem>>) attributes {dimension_semantics = [#tpu.dimension_semantics<parallel>], iteration_bounds = array<i64: 4>, scalar_prefetch = 0 : i64, scratch_operands = 0 : i64, tpu.core_type = #tpu.core_type<tc>, window_params = [{transform_indices = @transform_0, window_bounds = array<i64: 392, 512>}, {pipeline_mode = #tpu.pipeline_mode<synchronous>, transform_indices = @transform_1, window_bounds = array<i64: 512, 128>}, {pipeline_mode = #tpu.pipeline_mode<synchronous>, transform_indices = @transform_2, window_bounds = array<i64: 1, 128>}, {transform_indices = @transform_3, window_bounds = array<i64: 392, 128>}]} {
    %c0 = arith.constant 0 : index
    %c0_0 = arith.constant 0 : index
    %0 = vector.load %arg1[%c0, %c0_0] : memref<392x512xbf16, #tpu.memory_space<vmem>>, vector<392x512xbf16>
    %c0_1 = arith.constant 0 : index
    %c0_2 = arith.constant 0 : index
    %1 = vector.load %arg2[%c0_1, %c0_2] : memref<512x128xbf16, #tpu.memory_space<vmem>>, vector<512x128xbf16>
    %cst = arith.constant dense<0.000000e+00> : vector<392x128xf32>
    %2 = tpu.matmul %0, %1, %cst {dimension_numbers = #tpu.dot_dimension_numbers<[1], [0], [0], [1], [0, 0, 1, 1], [], []>} : vector<392x512xbf16>, vector<512x128xbf16>, vector<392x128xf32> -> vector<392x128xf32>
    %c0_3 = arith.constant 0 : index
    %c0_4 = arith.constant 0 : index
    %3 = vector.load %arg3[%c0_3, %c0_4] : memref<1x128xf32, #tpu.memory_space<vmem>>, vector<1x128xf32>
    %4 = vector.broadcast %3 : vector<1x128xf32> to vector<392x128xf32>
    %5 = arith.addf %2, %4 : vector<392x128xf32>
    %6 = arith.negf %5 : vector<392x128xf32>
    %7 = math.exp %6 : vector<392x128xf32>
    %cst_5 = arith.constant 1.000000e+00 : f32
    %8 = vector.broadcast %cst_5 : f32 to vector<392x128xf32>
    %9 = arith.addf %8, %7 : vector<392x128xf32>
    %10 = arith.divf %8, %9 : vector<392x128xf32>
    %c0_6 = arith.constant 0 : index
    %c0_7 = arith.constant 0 : index
    %11 = vector.load %arg4[%c0_6, %c0_7] : memref<392x128xf32, #tpu.memory_space<vmem>>, vector<392x128xf32>
    tpu.vector_store %arg4[%c0_6, %c0_7], %10 {strides = array<i32>} : memref<392x128xf32, #tpu.memory_space<vmem>>, vector<392x128xf32>,
    return
  }
  func.func @transform_0(%arg0: i32) -> (i32, i32) {
    %c0_i32 = arith.constant 0 : i32
    %c0_i32_0 = arith.constant 0 : i32
    return %arg0, %c0_i32 : i32, i32
  }
  func.func @transform_1(%arg0: i32) -> (i32, i32) {
    %c0_i32 = arith.constant 0 : i32
    %c0_i32_0 = arith.constant 0 : i32
    %c0_i32_1 = arith.constant 0 : i32
    return %c0_i32, %c0_i32_0 : i32, i32
  }
  func.func @transform_2(%arg0: i32) -> (i32, i32) {
    %c0_i32 = arith.constant 0 : i32
    %c0_i32_0 = arith.constant 0 : i32
    %c0_i32_1 = arith.constant 0 : i32
    return %c0_i32, %c0_i32_0 : i32, i32
  }
  func.func @transform_3(%arg0: i32) -> (i32, i32) {
    %c0_i32 = arith.constant 0 : i32
    %c0_i32_0 = arith.constant 0 : i32
    return %arg0, %c0_i32 : i32, i32
  }
}

</mosaic_0001>

<bundles_post_ra>
// kernel: grad_con_vae_forward.10
= control target key start
LH: loop header
LB: loop body
LE: loop exit
PB: predicated region body
PF: predicated region fallthrough
CT: control target
= control target key end

     0   :  { %v1469_v0 = vmov 0.0   ;;  %vm1470_vm0 = vmmov 0   ;;  %s1825_s1 = inlined_call_operand.vmem [shape: bf16[128,128], index: 1, kind: input, shape index: {}]   ;;  %s1826_s0 = inlined_call_operand.vmem [shape: bf16[456,128], index: 0, kind: input, shape index: {}]   ;;  %s1827_s2 = inlined_call_operand.vmem [shape: f32[1,128], index: 2, kind: input, shape index: {}]   ;;  %s1828_s3 = inlined_call_operand.vmem [shape: bf16[456,128], index: 3, kind: output, shape index: {}]  }
   0x1   :  { %1282 = vmatprep.subr.bf16.mxu0 %v1469_v0  ;;  %v1432_v1 = vld [vmem:[%s1825_s1] sm:$0xff]   ;;  %1414 = vmatprep.subr.bf16.mxu1 %v1469_v0  ;;  %v1433_v2 = vld [vmem:[%s1825_s1 + $0x8] sm:$0xff]   ;;  %v1434_v3 = vld [vmem:[%s1825_s1 + $0x10] sm:$0xff]  }
   0x2   :  { %1298 = vmatprep.mubr.msk.bf16.mxu0 %vm1470_vm0, %v1469_v0  ;;  %1358 = vmatprep.mubr.msk.bf16.mxu1 %vm1470_vm0, %v1469_v0  ;;  %v1435_v4 = vld [vmem:[%s1825_s1 + $0x18] sm:$0xff]   ;;  %v1436_v5 = vld [vmem:[%s1825_s1 + $0x20] sm:$0xff]   ;;  %v1437_v6 = vld [vmem:[%s1825_s1 + $0x28] sm:$0xff]  }
   0x3   :  { %1283 = vmatpush3.bf16.msra.mxu0 %v1432_v1  ;;  %1422 = vmatpush3.bf16.msra.mxu1 %v1432_v1  ;;  %v1438_v7 = vld [vmem:[%s1825_s1 + $0x30] sm:$0xff]   ;;  %v1439_v8 = vld [vmem:[%s1825_s1 + $0x38] sm:$0xff]   ;;  %v1440_v9 = vld [vmem:[%s1826_s0] sm:$0xff]  }
   0x4   :  { %1284 = vmatprep.subr.bf16.mxu0 %v1469_v0  ;;  %1415 = vmatprep.subr.bf16.mxu1 %v1469_v0  ;;  %v1441_v10 = vld [vmem:[%s1826_s0 + $0x78] sm:$0xff]   ;;  %v1442_v11 = vld [vmem:[%s1826_s0 + $0x8] sm:$0xff]   ;;  %v1443_v12 = vld [vmem:[%s1826_s0 + $0x80] sm:$0xff]  }
   0x5   :  { %v1444_v13 = vld [vmem:[%s1826_s0 + $0x10] sm:$0xff]   ;;  %v1445_v14 = vld [vmem:[%s1826_s0 + $0x88] sm:$0xff]   ;;  %v1446_v15 = vld [vmem:[%s1826_s0 + $0x18] sm:$0xff]  }
   0x6   :  { %v1447_v16 = vld [vmem:[%s1826_s0 + $0x90] sm:$0xff]   ;;  %v1448_v17 = vld [vmem:[%s1826_s0 + $0x20] sm:$0xff]   ;;  %v1449_v18 = vld [vmem:[%s1826_s0 + $0x98] sm:$0xff]  }
   0x7   :  { %1285 = vmatpush3.bf16.msra.mxu0 %v1433_v2  ;;  %1423 = vmatpush3.bf16.msra.mxu1 %v1433_v2  ;;  %v1450_v19 = vld [vmem:[%s1826_s0 + $0x28] sm:$0xff]   ;;  %v1451_v20 = vld [vmem:[%s1826_s0 + $0xa0] sm:$0xff]   ;;  %v1452_v21 = vld [vmem:[%s1826_s0 + $0x30] sm:$0xff]  }
   0x8   :  { %1286 = vmatprep.subr.bf16.mxu0 %v1469_v0  ;;  %1416 = vmatprep.subr.bf16.mxu1 %v1469_v0  ;;  %v1453_v22 = vld [vmem:[%s1826_s0 + $0xa8] sm:$0xff]   ;;  %v1454_v23 = vld [vmem:[%s1826_s0 + $0x38] sm:$0xff]   ;;  %v1455_v24 = vld [vmem:[%s1826_s0 + $0xb0] sm:$0xff]  }
   0x9   :  { %v1456_v25 = vld [vmem:[%s1826_s0 + $0x40] sm:$0xff]   ;;  %v1457_v26 = vld [vmem:[%s1826_s0 + $0xb8] sm:$0xff]   ;;  %v1458_v27 = vld [vmem:[%s1826_s0 + $0x48] sm:$0xff]  }
   0xa   :  { %v1459_v28 = vld [vmem:[%s1826_s0 + $0xc0] sm:$0xff]   ;;  %v1460_v29 = vld [vmem:[%s1826_s0 + $0x50] sm:$0xff]   ;;  %v1461_v30 = vld [vmem:[%s1826_s0 + $0xc8] sm:$0xff]  }
   0xb   :  { %1287 = vmatpush3.bf16.msra.mxu0 %v1434_v3  ;;  %1424 = vmatpush3.bf16.msra.mxu1 %v1434_v3  ;;  %v1462_v31 = vld [vmem:[%s1826_s0 + $0x58] sm:$0xff]   ;;  %v1463_v32 = vld [vmem:[%s1826_s0 + $0xd0] sm:$0xff]   ;;  %v1464_v33 = vld [vmem:[%s1826_s0 + $0x60] sm:$0xff]  }
   0xc   :  { %1288 = vmatprep.subr.bf16.mxu0 %v1469_v0  ;;  %1417 = vmatprep.subr.bf16.mxu1 %v1469_v0  ;;  %v1465_v34 = vld [vmem:[%s1826_s0 + $0xd8] sm:$0xff]   ;;  %v1466_v35 = vld [vmem:[%s1826_s0 + $0x68] sm:$0xff]   ;;  %v1467_v36 = vld [vmem:[%s1826_s0 + $0xe0] ss:$0 sps:$4 sm:$0xff]  }
   0xd   :  { %v1468_v37 = vld [vmem:[%s1826_s0 + $0x70] sm:$0xff]   ;;  %v1679_v38 = vld [vmem:[%s1827_s2] ss:$0 sm:$0xff] }
   0xf   :  { %1289 = vmatpush3.bf16.msra.mxu0 %v1435_v4  ;;  %1425 = vmatpush3.bf16.msra.mxu1 %v1435_v4 }
  0x10   :  { %1290 = vmatprep.subr.bf16.mxu0 %v1469_v0  ;;  %1418 = vmatprep.subr.bf16.mxu1 %v1469_v0 }
  0x13   :  { %1291 = vmatpush3.bf16.msra.mxu0 %v1436_v5  ;;  %1426 = vmatpush3.bf16.msra.mxu1 %v1436_v5 }
  0x14   :  { %1292 = vmatprep.subr.bf16.mxu0 %v1469_v0  ;;  %1419 = vmatprep.subr.bf16.mxu1 %v1469_v0 }
  0x17   :  { %1293 = vmatpush3.bf16.msra.mxu0 %v1437_v6  ;;  %1427 = vmatpush3.bf16.msra.mxu1 %v1437_v6 }
  0x18   :  { %1294 = vmatprep.subr.bf16.mxu0 %v1469_v0  ;;  %1420 = vmatprep.subr.bf16.mxu1 %v1469_v0 }
  0x1b   :  { %1295 = vmatpush3.bf16.msra.mxu0 %v1438_v7  ;;  %1428 = vmatpush3.bf16.msra.mxu1 %v1438_v7 }
  0x1c   :  { %1296 = vmatprep.subr.bf16.mxu0 %v1469_v0  ;;  %1421 = vmatprep.subr.bf16.mxu1 %v1469_v0 }
  0x1f   :  { %1297 = vmatpush3.bf16.msra.mxu0 %v1439_v8  ;;  %1429 = vmatpush3.bf16.msra.mxu1 %v1439_v8 }
  0x22   :  { %1299 = vmatmul.mubr.bf16.vlgmr.msra.gmra.mrb[0].mxu0 %v1440_v9  ;;  %1359 = vmatmul.mubr.bf16.vlgmr.msra.gmra.mrb[0].mxu1 %v1441_v10 }
  0x23   :  { %1302 = vmatprep.mubr.msk.bf16.mxu0 %vm1470_vm0, %v1469_v0  ;;  %1362 = vmatprep.mubr.msk.bf16.mxu1 %vm1470_vm0, %v1469_v0 }
  0x2a   :  { %1303 = vmatmul.mubr.bf16.gmra.mrb[4].mxu0 %v1442_v11  ;;  %1363 = vmatmul.mubr.bf16.gmra.mrb[4].mxu1 %v1443_v12 }
  0x2b   :  { %1306 = vmatprep.mubr.msk.bf16.mxu0 %vm1470_vm0, %v1469_v0  ;;  %1366 = vmatprep.mubr.msk.bf16.mxu1 %vm1470_vm0, %v1469_v0 }
  0x32   :  { %1307 = vmatmul.mubr.bf16.gmra.mrb[8].mxu0 %v1444_v13  ;;  %1367 = vmatmul.mubr.bf16.gmra.mrb[8].mxu1 %v1445_v14 }
  0x33   :  { %1310 = vmatprep.mubr.msk.bf16.mxu0 %vm1470_vm0, %v1469_v0  ;;  %1370 = vmatprep.mubr.msk.bf16.mxu1 %vm1470_vm0, %v1469_v0 }
  0x3a   :  { %1311 = vmatmul.mubr.bf16.gmra.mrb[12].mxu0 %v1446_v15  ;;  %1371 = vmatmul.mubr.bf16.gmra.mrb[12].mxu1 %v1447_v16 }
  0x3b   :  { %1314 = vmatprep.mubr.msk.bf16.mxu0 %vm1470_vm0, %v1469_v0  ;;  %1374 = vmatprep.mubr.msk.bf16.mxu1 %vm1470_vm0, %v1469_v0 }
  0x42   :  { %1315 = vmatmul.mubr.bf16.gmra.mrb[16].mxu0 %v1448_v17  ;;  %1375 = vmatmul.mubr.bf16.gmra.mrb[16].mxu1 %v1449_v18 }
  0x43   :  { %1318 = vmatprep.mubr.msk.bf16.mxu0 %vm1470_vm0, %v1469_v0  ;;  %1378 = vmatprep.mubr.msk.bf16.mxu1 %vm1470_vm0, %v1469_v0 }
  0x4a   :  { %1319 = vmatmul.mubr.bf16.gmra.mrb[20].mxu0 %v1450_v19  ;;  %1379 = vmatmul.mubr.bf16.gmra.mrb[20].mxu1 %v1451_v20 }
  0x4b   :  { %1322 = vmatprep.mubr.msk.bf16.mxu0 %vm1470_vm0, %v1469_v0  ;;  %1382 = vmatprep.mubr.msk.bf16.mxu1 %vm1470_vm0, %v1469_v0 }
  0x52   :  { %1323 = vmatmul.mubr.bf16.gmra.mrb[24].mxu0 %v1452_v21  ;;  %1383 = vmatmul.mubr.bf16.gmra.mrb[24].mxu1 %v1453_v22 }
  0x53   :  { %1326 = vmatprep.mubr.msk.bf16.mxu0 %vm1470_vm0, %v1469_v0  ;;  %1386 = vmatprep.mubr.msk.bf16.mxu1 %vm1470_vm0, %v1469_v0 }
  0x5a   :  { %1327 = vmatmul.mubr.bf16.gmra.mrb[28].mxu0 %v1454_v23  ;;  %1387 = vmatmul.mubr.bf16.gmra.mrb[28].mxu1 %v1455_v24 }
  0x5b   :  { %1330 = vmatprep.mubr.msk.bf16.mxu0 %vm1470_vm0, %v1469_v0  ;;  %1390 = vmatprep.mubr.msk.bf16.mxu1 %vm1470_vm0, %v1469_v0 }
  0x62   :  { %1331 = vmatmul.mubr.bf16.gmra.mrb[32].mxu0 %v1456_v25  ;;  %1391 = vmatmul.mubr.bf16.gmra.mrb[32].mxu1 %v1457_v26 }
  0x63   :  { %1334 = vmatprep.mubr.msk.bf16.mxu0 %vm1470_vm0, %v1469_v0  ;;  %1394 = vmatprep.mubr.msk.bf16.mxu1 %vm1470_vm0, %v1469_v0 }
  0x6a   :  { %1335 = vmatmul.mubr.bf16.gmra.mrb[36].mxu0 %v1458_v27  ;;  %1395 = vmatmul.mubr.bf16.gmra.mrb[36].mxu1 %v1459_v28 }
  0x6b   :  { %1338 = vmatprep.mubr.msk.bf16.mxu0 %vm1470_vm0, %v1469_v0  ;;  %1398 = vmatprep.mubr.msk.bf16.mxu1 %vm1470_vm0, %v1469_v0 }
  0x72   :  { %1339 = vmatmul.mubr.bf16.gmra.mrb[40].mxu0 %v1460_v29  ;;  %1399 = vmatmul.mubr.bf16.gmra.mrb[40].mxu1 %v1461_v30 }
  0x73   :  { %1342 = vmatprep.mubr.msk.bf16.mxu0 %vm1470_vm0, %v1469_v0  ;;  %1402 = vmatprep.mubr.msk.bf16.mxu1 %vm1470_vm0, %v1469_v0 }
  0x7a   :  { %1343 = vmatmul.mubr.bf16.gmra.mrb[44].mxu0 %v1462_v31  ;;  %1403 = vmatmul.mubr.bf16.gmra.mrb[44].mxu1 %v1463_v32 }
  0x7b   :  { %1346 = vmatprep.mubr.msk.bf16.mxu0 %vm1470_vm0, %v1469_v0  ;;  %1406 = vmatprep.mubr.msk.bf16.mxu1 %vm1470_vm0, %v1469_v0 }
  0x82   :  { %1347 = vmatmul.mubr.bf16.gmra.mrb[48].mxu0 %v1464_v33  ;;  %1407 = vmatmul.mubr.bf16.gmra.mrb[48].mxu1 %v1465_v34 }
  0x83   :  { %1350 = vmatprep.mubr.msk.bf16.mxu0 %vm1470_vm0, %v1469_v0  ;;  %1410 = vmatprep.mubr.msk.bf16.mxu1 %vm1470_vm0, %v1469_v0 }
  0x8a   :  { %1351 = vmatmul.mubr.bf16.gmra.mrb[52].mxu0 %v1466_v35  ;;  %1411 = vmatmul.mubr.bf16.gmra.mrb[52].mxu1 %v1467_v36 }
  0x8b   :  { %1354 = vmatprep.mubr.msk.bf16.mxu0 %vm1470_vm0, %v1469_v0 }
  0x92   :  { %1355 = vmatmul.mubr.bf16.gmra.mrb[56].mxu0 %v1468_v37 }
  0xf5   :  { %v349_v39 = vpop.f32.mrb[0].mxu0  ;;  %v469_v40 = vpop.f32.mrb[0].mxu1 }
  0xf6   :  { %v350_v41 = vadd.f32 %v1679_v38, %v349_v39  ;;  %v1300_v42 = vpop.f32.mrb[1].mxu0  ;;  %v470_v43 = vadd.f32 %v1679_v38, %v469_v40  ;;  %v1360_v44 = vpop.f32.mrb[1].mxu1 }
  0xf7   :  { %v352_v45 = vpop.f32.mrb[2].mxu0  ;;  %v472_v46 = vpop.f32.mrb[2].mxu1 }
  0xf8   :  { %v353_v47 = vadd.f32 %v1679_v38, %v352_v45  ;;  %v1301_v48 = vpop.f32.mrb[3].mxu0  ;;  %v609_v49 = vmax.f32 %v470_v43, 0.0  ;;  %v473_v50 = vadd.f32 %v1679_v38, %v472_v46  ;;  %v1361_v51 = vpop.f32.mrb[3].mxu1  ;;  %v579_v52 = vmax.f32 %v350_v41, 0.0 }
  0xfa   :  { %v580_v53 = vmax.f32 %v353_v47, 0.0  ;;  %v610_v54 = vmax.f32 %v473_v50, 0.0 }
  0xfc   :  { %v1081_v55 = vpack.c.bf16 %v580_v53, %v579_v52  ;;  %v1156_v56 = vpack.c.bf16 %v610_v54, %v609_v49 }
  0xfd   :  { %v357_v57 = vpop.f32.mrb[4].mxu0  ;;  %v477_v58 = vpop.f32.mrb[4].mxu1 }
  0xfe   :  { %1082 = vst [vmem:[%s1828_s3] sm:$0xff] %v1081_v55   ;;  %v358_v59 = vadd.f32 %v1679_v38, %v357_v57  ;;  %v1304_v60 = vpop.f32.mrb[5].mxu0  ;;  %1232 = vst [vmem:[%s1828_s3 + $0x78] sm:$0xff] %v1156_v56   ;;  %v478_v61 = vadd.f32 %v1679_v38, %v477_v58  ;;  %v1364_v62 = vpop.f32.mrb[5].mxu1 }
  0xff   :  { %v360_v63 = vpop.f32.mrb[6].mxu0  ;;  %v480_v0 = vpop.f32.mrb[6].mxu1 }
 0x100   :  { %v361_v1 = vadd.f32 %v1679_v38, %v360_v63  ;;  %v1305_v2 = vpop.f32.mrb[7].mxu0  ;;  %v611_v3 = vmax.f32 %v478_v61, 0.0  ;;  %v481_v4 = vadd.f32 %v1679_v38, %v480_v0  ;;  %v1365_v5 = vpop.f32.mrb[7].mxu1  ;;  %v581_v6 = vmax.f32 %v358_v59, 0.0 }
 0x102   :  { %v582_v7 = vmax.f32 %v361_v1, 0.0  ;;  %v612_v8 = vmax.f32 %v481_v4, 0.0 }
 0x104   :  { %v1086_v9 = vpack.c.bf16 %v582_v7, %v581_v6  ;;  %v1161_v10 = vpack.c.bf16 %v612_v8, %v611_v3 }
 0x105   :  { %v365_v11 = vpop.f32.mrb[8].mxu0  ;;  %v485_v12 = vpop.f32.mrb[8].mxu1 }
 0x106   :  { %1218 = vst [vmem:[%s1828_s3 + $0x8] sm:$0xff] %v1086_v9   ;;  %v366_v13 = vadd.f32 %v1679_v38, %v365_v11  ;;  %v1308_v14 = vpop.f32.mrb[9].mxu0  ;;  %1233 = vst [vmem:[%s1828_s3 + $0x80] sm:$0xff] %v1161_v10   ;;  %v486_v15 = vadd.f32 %v1679_v38, %v485_v12  ;;  %v1368_v16 = vpop.f32.mrb[9].mxu1 }
 0x107   :  { %v368_v17 = vpop.f32.mrb[10].mxu0  ;;  %v488_v18 = vpop.f32.mrb[10].mxu1 }
 0x108   :  { %v369_v19 = vadd.f32 %v1679_v38, %v368_v17  ;;  %v1309_v20 = vpop.f32.mrb[11].mxu0  ;;  %v613_v21 = vmax.f32 %v486_v15, 0.0  ;;  %v489_v22 = vadd.f32 %v1679_v38, %v488_v18  ;;  %v1369_v23 = vpop.f32.mrb[11].mxu1  ;;  %v583_v24 = vmax.f32 %v366_v13, 0.0 }
 0x10a   :  { %v584_v25 = vmax.f32 %v369_v19, 0.0  ;;  %v614_v26 = vmax.f32 %v489_v22, 0.0 }
 0x10c   :  { %v1091_v27 = vpack.c.bf16 %v584_v25, %v583_v24  ;;  %v1166_v28 = vpack.c.bf16 %v614_v26, %v613_v21 }
 0x10d   :  { %v373_v29 = vpop.f32.mrb[12].mxu0  ;;  %v493_v30 = vpop.f32.mrb[12].mxu1 }
 0x10e   :  { %1219 = vst [vmem:[%s1828_s3 + $0x10] sm:$0xff] %v1091_v27   ;;  %v374_v31 = vadd.f32 %v1679_v38, %v373_v29  ;;  %v1312_v32 = vpop.f32.mrb[13].mxu0  ;;  %1234 = vst [vmem:[%s1828_s3 + $0x88] sm:$0xff] %v1166_v28   ;;  %v494_v33 = vadd.f32 %v1679_v38, %v493_v30  ;;  %v1372_v34 = vpop.f32.mrb[13].mxu1 }
 0x10f   :  { %v376_v35 = vpop.f32.mrb[14].mxu0  ;;  %v496_v36 = vpop.f32.mrb[14].mxu1 }
 0x110   :  { %v377_v37 = vadd.f32 %v1679_v38, %v376_v35  ;;  %v1313_v39 = vpop.f32.mrb[15].mxu0  ;;  %v615_v40 = vmax.f32 %v494_v33, 0.0  ;;  %v497_v41 = vadd.f32 %v1679_v38, %v496_v36  ;;  %v1373_v42 = vpop.f32.mrb[15].mxu1  ;;  %v585_v43 = vmax.f32 %v374_v31, 0.0 }
 0x112   :  { %v586_v44 = vmax.f32 %v377_v37, 0.0  ;;  %v616_v45 = vmax.f32 %v497_v41, 0.0 }
 0x114   :  { %v1096_v46 = vpack.c.bf16 %v586_v44, %v585_v43  ;;  %v1171_v47 = vpack.c.bf16 %v616_v45, %v615_v40 }
 0x115   :  { %v381_v48 = vpop.f32.mrb[16].mxu0  ;;  %v501_v49 = vpop.f32.mrb[16].mxu1 }
 0x116   :  { %1220 = vst [vmem:[%s1828_s3 + $0x18] sm:$0xff] %v1096_v46   ;;  %v382_v50 = vadd.f32 %v1679_v38, %v381_v48  ;;  %v1316_v51 = vpop.f32.mrb[17].mxu0  ;;  %1235 = vst [vmem:[%s1828_s3 + $0x90] sm:$0xff] %v1171_v47   ;;  %v502_v52 = vadd.f32 %v1679_v38, %v501_v49  ;;  %v1376_v53 = vpop.f32.mrb[17].mxu1 }
 0x117   :  { %v384_v54 = vpop.f32.mrb[18].mxu0  ;;  %v504_v55 = vpop.f32.mrb[18].mxu1 }
 0x118   :  { %v385_v56 = vadd.f32 %v1679_v38, %v384_v54  ;;  %v1317_v57 = vpop.f32.mrb[19].mxu0  ;;  %v617_v58 = vmax.f32 %v502_v52, 0.0  ;;  %v505_v59 = vadd.f32 %v1679_v38, %v504_v55  ;;  %v1377_v60 = vpop.f32.mrb[19].mxu1  ;;  %v587_v61 = vmax.f32 %v382_v50, 0.0 }
 0x11a   :  { %v588_v62 = vmax.f32 %v385_v56, 0.0  ;;  %v618_v63 = vmax.f32 %v505_v59, 0.0 }
 0x11c   :  { %v1101_v0 = vpack.c.bf16 %v588_v62, %v587_v61  ;;  %v1176_v1 = vpack.c.bf16 %v618_v63, %v617_v58 }
 0x11d   :  { %v389_v2 = vpop.f32.mrb[20].mxu0  ;;  %v509_v3 = vpop.f32.mrb[20].mxu1 }
 0x11e   :  { %1221 = vst [vmem:[%s1828_s3 + $0x20] sm:$0xff] %v1101_v0   ;;  %v390_v4 = vadd.f32 %v1679_v38, %v389_v2  ;;  %v1320_v5 = vpop.f32.mrb[21].mxu0  ;;  %1236 = vst [vmem:[%s1828_s3 + $0x98] sm:$0xff] %v1176_v1   ;;  %v510_v6 = vadd.f32 %v1679_v38, %v509_v3  ;;  %v1380_v7 = vpop.f32.mrb[21].mxu1 }
 0x11f   :  { %v392_v8 = vpop.f32.mrb[22].mxu0  ;;  %v512_v9 = vpop.f32.mrb[22].mxu1 }
 0x120   :  { %v393_v10 = vadd.f32 %v1679_v38, %v392_v8  ;;  %v1321_v11 = vpop.f32.mrb[23].mxu0  ;;  %v619_v12 = vmax.f32 %v510_v6, 0.0  ;;  %v513_v13 = vadd.f32 %v1679_v38, %v512_v9  ;;  %v1381_v14 = vpop.f32.mrb[23].mxu1  ;;  %v589_v15 = vmax.f32 %v390_v4, 0.0 }
 0x122   :  { %v590_v16 = vmax.f32 %v393_v10, 0.0  ;;  %v620_v17 = vmax.f32 %v513_v13, 0.0 }
 0x124   :  { %v1106_v18 = vpack.c.bf16 %v590_v16, %v589_v15  ;;  %v1181_v19 = vpack.c.bf16 %v620_v17, %v619_v12 }
 0x125   :  { %v397_v20 = vpop.f32.mrb[24].mxu0  ;;  %v517_v21 = vpop.f32.mrb[24].mxu1 }
 0x126   :  { %1222 = vst [vmem:[%s1828_s3 + $0x28] sm:$0xff] %v1106_v18   ;;  %v398_v22 = vadd.f32 %v1679_v38, %v397_v20  ;;  %v1324_v23 = vpop.f32.mrb[25].mxu0  ;;  %1237 = vst [vmem:[%s1828_s3 + $0xa0] sm:$0xff] %v1181_v19   ;;  %v518_v24 = vadd.f32 %v1679_v38, %v517_v21  ;;  %v1384_v25 = vpop.f32.mrb[25].mxu1 }
 0x127   :  { %v400_v26 = vpop.f32.mrb[26].mxu0  ;;  %v520_v27 = vpop.f32.mrb[26].mxu1 }
 0x128   :  { %v401_v28 = vadd.f32 %v1679_v38, %v400_v26  ;;  %v1325_v29 = vpop.f32.mrb[27].mxu0  ;;  %v621_v30 = vmax.f32 %v518_v24, 0.0  ;;  %v521_v31 = vadd.f32 %v1679_v38, %v520_v27  ;;  %v1385_v32 = vpop.f32.mrb[27].mxu1  ;;  %v591_v33 = vmax.f32 %v398_v22, 0.0 }
 0x12a   :  { %v592_v34 = vmax.f32 %v401_v28, 0.0  ;;  %v622_v35 = vmax.f32 %v521_v31, 0.0 }
 0x12c   :  { %v1111_v36 = vpack.c.bf16 %v592_v34, %v591_v33  ;;  %v1186_v37 = vpack.c.bf16 %v622_v35, %v621_v30 }
 0x12d   :  { %v405_v39 = vpop.f32.mrb[28].mxu0  ;;  %v525_v40 = vpop.f32.mrb[28].mxu1 }
 0x12e   :  { %1223 = vst [vmem:[%s1828_s3 + $0x30] sm:$0xff] %v1111_v36   ;;  %v406_v41 = vadd.f32 %v1679_v38, %v405_v39  ;;  %v1328_v42 = vpop.f32.mrb[29].mxu0  ;;  %1238 = vst [vmem:[%s1828_s3 + $0xa8] sm:$0xff] %v1186_v37   ;;  %v526_v43 = vadd.f32 %v1679_v38, %v525_v40  ;;  %v1388_v44 = vpop.f32.mrb[29].mxu1 }
 0x12f   :  { %v408_v45 = vpop.f32.mrb[30].mxu0  ;;  %v528_v46 = vpop.f32.mrb[30].mxu1 }
 0x130   :  { %v409_v47 = vadd.f32 %v1679_v38, %v408_v45  ;;  %v1329_v48 = vpop.f32.mrb[31].mxu0  ;;  %v623_v49 = vmax.f32 %v526_v43, 0.0  ;;  %v529_v50 = vadd.f32 %v1679_v38, %v528_v46  ;;  %v1389_v51 = vpop.f32.mrb[31].mxu1  ;;  %v593_v52 = vmax.f32 %v406_v41, 0.0 }
 0x132   :  { %v594_v53 = vmax.f32 %v409_v47, 0.0  ;;  %v624_v54 = vmax.f32 %v529_v50, 0.0 }
 0x134   :  { %v1116_v55 = vpack.c.bf16 %v594_v53, %v593_v52  ;;  %v1191_v56 = vpack.c.bf16 %v624_v54, %v623_v49 }
 0x135   :  { %v413_v57 = vpop.f32.mrb[32].mxu0  ;;  %v533_v58 = vpop.f32.mrb[32].mxu1 }
 0x136   :  { %1224 = vst [vmem:[%s1828_s3 + $0x38] sm:$0xff] %v1116_v55   ;;  %v414_v59 = vadd.f32 %v1679_v38, %v413_v57  ;;  %v1332_v60 = vpop.f32.mrb[33].mxu0  ;;  %1239 = vst [vmem:[%s1828_s3 + $0xb0] sm:$0xff] %v1191_v56   ;;  %v534_v61 = vadd.f32 %v1679_v38, %v533_v58  ;;  %v1392_v62 = vpop.f32.mrb[33].mxu1 }
 0x137   :  { %v416_v63 = vpop.f32.mrb[34].mxu0  ;;  %v536_v0 = vpop.f32.mrb[34].mxu1 }
 0x138   :  { %v417_v1 = vadd.f32 %v1679_v38, %v416_v63  ;;  %v1333_v2 = vpop.f32.mrb[35].mxu0  ;;  %v625_v3 = vmax.f32 %v534_v61, 0.0  ;;  %v537_v4 = vadd.f32 %v1679_v38, %v536_v0  ;;  %v1393_v5 = vpop.f32.mrb[35].mxu1  ;;  %v595_v6 = vmax.f32 %v414_v59, 0.0 }
 0x13a   :  { %v596_v7 = vmax.f32 %v417_v1, 0.0  ;;  %v626_v8 = vmax.f32 %v537_v4, 0.0 }
 0x13c   :  { %v1121_v9 = vpack.c.bf16 %v596_v7, %v595_v6  ;;  %v1196_v10 = vpack.c.bf16 %v626_v8, %v625_v3 }
 0x13d   :  { %v421_v11 = vpop.f32.mrb[36].mxu0  ;;  %v541_v12 = vpop.f32.mrb[36].mxu1 }
 0x13e   :  { %1225 = vst [vmem:[%s1828_s3 + $0x40] sm:$0xff] %v1121_v9   ;;  %v422_v13 = vadd.f32 %v1679_v38, %v421_v11  ;;  %v1336_v14 = vpop.f32.mrb[37].mxu0  ;;  %1240 = vst [vmem:[%s1828_s3 + $0xb8] sm:$0xff] %v1196_v10   ;;  %v542_v15 = vadd.f32 %v1679_v38, %v541_v12  ;;  %v1396_v16 = vpop.f32.mrb[37].mxu1 }
 0x13f   :  { %v424_v17 = vpop.f32.mrb[38].mxu0  ;;  %v544_v18 = vpop.f32.mrb[38].mxu1 }
 0x140   :  { %v425_v19 = vadd.f32 %v1679_v38, %v424_v17  ;;  %v1337_v20 = vpop.f32.mrb[39].mxu0  ;;  %v627_v21 = vmax.f32 %v542_v15, 0.0  ;;  %v545_v22 = vadd.f32 %v1679_v38, %v544_v18  ;;  %v1397_v23 = vpop.f32.mrb[39].mxu1  ;;  %v597_v24 = vmax.f32 %v422_v13, 0.0 }
 0x142   :  { %v598_v25 = vmax.f32 %v425_v19, 0.0  ;;  %v628_v26 = vmax.f32 %v545_v22, 0.0 }
 0x144   :  { %v1126_v27 = vpack.c.bf16 %v598_v25, %v597_v24  ;;  %v1201_v28 = vpack.c.bf16 %v628_v26, %v627_v21 }
 0x145   :  { %v429_v29 = vpop.f32.mrb[40].mxu0  ;;  %v549_v30 = vpop.f32.mrb[40].mxu1 }
 0x146   :  { %1226 = vst [vmem:[%s1828_s3 + $0x48] sm:$0xff] %v1126_v27   ;;  %v430_v31 = vadd.f32 %v1679_v38, %v429_v29  ;;  %v1340_v32 = vpop.f32.mrb[41].mxu0  ;;  %1241 = vst [vmem:[%s1828_s3 + $0xc0] sm:$0xff] %v1201_v28   ;;  %v550_v33 = vadd.f32 %v1679_v38, %v549_v30  ;;  %v1400_v34 = vpop.f32.mrb[41].mxu1 }
 0x147   :  { %v432_v35 = vpop.f32.mrb[42].mxu0  ;;  %v552_v36 = vpop.f32.mrb[42].mxu1 }
 0x148   :  { %v433_v37 = vadd.f32 %v1679_v38, %v432_v35  ;;  %v1341_v39 = vpop.f32.mrb[43].mxu0  ;;  %v629_v40 = vmax.f32 %v550_v33, 0.0  ;;  %v553_v41 = vadd.f32 %v1679_v38, %v552_v36  ;;  %v1401_v42 = vpop.f32.mrb[43].mxu1  ;;  %v599_v43 = vmax.f32 %v430_v31, 0.0 }
 0x14a   :  { %v600_v44 = vmax.f32 %v433_v37, 0.0  ;;  %v630_v45 = vmax.f32 %v553_v41, 0.0 }
 0x14c   :  { %v1131_v46 = vpack.c.bf16 %v600_v44, %v599_v43  ;;  %v1206_v47 = vpack.c.bf16 %v630_v45, %v629_v40 }
 0x14d   :  { %v437_v48 = vpop.f32.mrb[44].mxu0  ;;  %v557_v49 = vpop.f32.mrb[44].mxu1 }
 0x14e   :  { %1227 = vst [vmem:[%s1828_s3 + $0x50] sm:$0xff] %v1131_v46   ;;  %v438_v50 = vadd.f32 %v1679_v38, %v437_v48  ;;  %v1344_v51 = vpop.f32.mrb[45].mxu0  ;;  %1242 = vst [vmem:[%s1828_s3 + $0xc8] sm:$0xff] %v1206_v47   ;;  %v558_v52 = vadd.f32 %v1679_v38, %v557_v49  ;;  %v1404_v53 = vpop.f32.mrb[45].mxu1 }
 0x14f   :  { %v440_v54 = vpop.f32.mrb[46].mxu0  ;;  %v560_v55 = vpop.f32.mrb[46].mxu1 }
 0x150   :  { %v441_v56 = vadd.f32 %v1679_v38, %v440_v54  ;;  %v1345_v57 = vpop.f32.mrb[47].mxu0  ;;  %v631_v58 = vmax.f32 %v558_v52, 0.0  ;;  %v561_v59 = vadd.f32 %v1679_v38, %v560_v55  ;;  %v1405_v60 = vpop.f32.mrb[47].mxu1  ;;  %v601_v61 = vmax.f32 %v438_v50, 0.0 }
 0x152   :  { %v602_v62 = vmax.f32 %v441_v56, 0.0  ;;  %v632_v63 = vmax.f32 %v561_v59, 0.0 }
 0x154   :  { %v1136_v0 = vpack.c.bf16 %v602_v62, %v601_v61  ;;  %v1211_v1 = vpack.c.bf16 %v632_v63, %v631_v58 }
 0x155   :  { %v445_v2 = vpop.f32.mrb[48].mxu0  ;;  %v565_v3 = vpop.f32.mrb[48].mxu1 }
 0x156   :  { %1228 = vst [vmem:[%s1828_s3 + $0x58] sm:$0xff] %v1136_v0   ;;  %v446_v4 = vadd.f32 %v1679_v38, %v445_v2  ;;  %v1348_v5 = vpop.f32.mrb[49].mxu0  ;;  %1243 = vst [vmem:[%s1828_s3 + $0xd0] sm:$0xff] %v1211_v1   ;;  %v566_v6 = vadd.f32 %v1679_v38, %v565_v3  ;;  %v1408_v7 = vpop.f32.mrb[49].mxu1 }
 0x157   :  { %v448_v8 = vpop.f32.mrb[50].mxu0  ;;  %v568_v9 = vpop.f32.mrb[50].mxu1 }
 0x158   :  { %v449_v10 = vadd.f32 %v1679_v38, %v448_v8  ;;  %v1349_v11 = vpop.f32.mrb[51].mxu0  ;;  %v633_v12 = vmax.f32 %v566_v6, 0.0  ;;  %v569_v13 = vadd.f32 %v1679_v38, %v568_v9  ;;  %v1409_v14 = vpop.f32.mrb[51].mxu1  ;;  %v603_v15 = vmax.f32 %v446_v4, 0.0 }
 0x15a   :  { %v604_v16 = vmax.f32 %v449_v10, 0.0  ;;  %v634_v17 = vmax.f32 %v569_v13, 0.0 }
 0x15c   :  { %v1141_v18 = vpack.c.bf16 %v604_v16, %v603_v15  ;;  %v1216_v19 = vpack.c.bf16 %v634_v17, %v633_v12 }
 0x15d   :  { %v453_v20 = vpop.f32.mrb[52].mxu0  ;;  %v573_v21 = vpop.f32.mrb[52].mxu1 }
 0x15e   :  { %1229 = vst [vmem:[%s1828_s3 + $0x60] sm:$0xff] %v1141_v18   ;;  %v454_v22 = vadd.f32 %v1679_v38, %v453_v20  ;;  %v1352_v23 = vpop.f32.mrb[53].mxu0  ;;  %1244 = vst [vmem:[%s1828_s3 + $0xd8] sm:$0xff] %v1216_v19   ;;  %v574_v24 = vadd.f32 %v1679_v38, %v573_v21  ;;  %v1412_v25 = vpop.f32.mrb[53].mxu1 }
 0x15f   :  { %v456_v26 = vpop.f32.mrb[54].mxu0  ;;  %v576_v27 = vpop.f32.mrb[54].mxu1 }
 0x160   :  { %v457_v28 = vadd.f32 %v1679_v38, %v456_v26  ;;  %v1353_v29 = vpop.f32.mrb[55].mxu0  ;;  %v635_v30 = vmax.f32 %v574_v24, 0.0  ;;  %v1413_v31 = vpop.f32.mrb[55].mxu1  ;;  %v605_v32 = vmax.f32 %v454_v22, 0.0 }
 0x162   :  { %v606_v33 = vmax.f32 %v457_v28, 0.0  ;;  %v1077_v34 = vpack.c.bf16 %v635_v30, %v635_v30 }
 0x164   :  { %v1146_v35 = vpack.c.bf16 %v606_v33, %v605_v32  ;;  %921 = vst [vmem:[%s1828_s3 + $0xe0] sm:$0xf] %v1077_v34 }
 0x165   :  { %v461_v36 = vpop.f32.mrb[56].mxu0 }
 0x166   :  { %1230 = vst [vmem:[%s1828_s3 + $0x68] sm:$0xff] %v1146_v35   ;;  %v462_v37 = vadd.f32 %v1679_v38, %v461_v36  ;;  %v1356_v39 = vpop.f32.mrb[57].mxu0 }
 0x167   :  { %v464_v40 = vpop.f32.mrb[58].mxu0 }
 0x168   :  { %v465_v41 = vadd.f32 %v1679_v38, %v464_v40  ;;  %v1357_v42 = vpop.f32.mrb[59].mxu0  ;;  %v607_v43 = vmax.f32 %v462_v37, 0.0 }
 0x16a   :  { %v608_v44 = vmax.f32 %v465_v41, 0.0 }
 0x16c   :  { %v1151_v45 = vpack.c.bf16 %v608_v44, %v607_v43 }
 0x16e   :  { %1231 = vst [vmem:[%s1828_s3 + $0x70] sm:$0xff] %v1151_v45  }

// kernel: grad_con_vae_forward.11
= control target key start
LH: loop header
LB: loop body
LE: loop exit
PB: predicated region body
PF: predicated region fallthrough
CT: control target
= control target key end

     0   :  { %s1373_s1 = inlined_call_operand.vmem [shape: bf16[512,128], index: 1, kind: input, shape index: {}]   ;;  %s1374_s0 = inlined_call_operand.vmem [shape: bf16[128,512], index: 0, kind: input, shape index: {}]   ;;  %s1375_s2 = inlined_call_operand.vmem [shape: f32[1,128], index: 2, kind: input, shape index: {}]   ;;  %s1376_s3 = inlined_call_operand.vmem [shape: bf16[128,128], index: 3, kind: output, shape index: {}]  }
   0x1   :  { %v1036_v0 = vld [vmem:[%s1373_s1 + $0x40] sm:$0xff]   ;;  %v1040_v4 = vld [vmem:[%s1373_s1 + $0x48] sm:$0xff]   ;;  %v1044_v8 = vld [vmem:[%s1373_s1 + $0x50] sm:$0xff]  }
   0x2   :  { %v1037_v1 = vld [vmem:[%s1373_s1 + $0xc0] sm:$0xff]   ;;  %908 = vmatprep.subr.bf16.mxu0 %v1036_v0  ;;  %v1041_v5 = vld [vmem:[%s1373_s1 + $0xc8] sm:$0xff]   ;;  %v1045_v9 = vld [vmem:[%s1373_s1 + $0xd0] sm:$0xff]  }
   0x3   :  { %v1038_v2 = vld [vmem:[%s1373_s1] sm:$0xff]   ;;  %972 = vmatprep.subr.bf16.mxu1 %v1037_v1  ;;  %v1042_v6 = vld [vmem:[%s1373_s1 + $0x8] sm:$0xff]   ;;  %v1046_v10 = vld [vmem:[%s1373_s1 + $0x10] sm:$0xff]  }
   0x4   :  { %v1039_v3 = vld [vmem:[%s1373_s1 + $0x80] sm:$0xff]   ;;  %909 = vmatpush3.bf16.msra.mxu0 %v1038_v2  ;;  %v1043_v7 = vld [vmem:[%s1373_s1 + $0x88] sm:$0xff]   ;;  %v1047_v11 = vld [vmem:[%s1373_s1 + $0x90] sm:$0xff]  }
   0x5   :  { %973 = vmatpush3.bf16.msra.mxu1 %v1039_v3  ;;  %910 = vmatprep.subr.bf16.mxu0 %v1040_v4  ;;  %v1048_v12 = vld [vmem:[%s1373_s1 + $0x58] sm:$0xff]   ;;  %v1052_v16 = vld [vmem:[%s1373_s1 + $0x60] sm:$0xff]   ;;  %v1056_v20 = vld [vmem:[%s1373_s1 + $0x68] sm:$0xff]  }
   0x6   :  { %974 = vmatprep.subr.bf16.mxu1 %v1041_v5  ;;  %v1049_v13 = vld [vmem:[%s1373_s1 + $0xd8] sm:$0xff]   ;;  %v1053_v17 = vld [vmem:[%s1373_s1 + $0xe0] sm:$0xff]   ;;  %v1057_v21 = vld [vmem:[%s1373_s1 + $0xe8] sm:$0xff]  }
   0x7   :  { %v1050_v14 = vld [vmem:[%s1373_s1 + $0x18] sm:$0xff]   ;;  %v1054_v18 = vld [vmem:[%s1373_s1 + $0x20] sm:$0xff]   ;;  %v1058_v22 = vld [vmem:[%s1373_s1 + $0x28] sm:$0xff]  }
   0x8   :  { %911 = vmatpush3.bf16.msra.mxu0 %v1042_v6  ;;  %v1051_v15 = vld [vmem:[%s1373_s1 + $0x98] sm:$0xff]   ;;  %v1055_v19 = vld [vmem:[%s1373_s1 + $0xa0] sm:$0xff]   ;;  %v1059_v23 = vld [vmem:[%s1373_s1 + $0xa8] sm:$0xff]  }
   0x9   :  { %975 = vmatpush3.bf16.msra.mxu1 %v1043_v7  ;;  %912 = vmatprep.subr.bf16.mxu0 %v1044_v8  ;;  %v1060_v24 = vld [vmem:[%s1373_s1 + $0x70] sm:$0xff]   ;;  %v1064_v28 = vld [vmem:[%s1373_s1 + $0x78] sm:$0xff]   ;;  %v1331_v2 = vld [vmem:[%s1375_s2] ss:$0 sm:$0xff] }
   0xa   :  { %976 = vmatprep.subr.bf16.mxu1 %v1045_v9  ;;  %v1061_v25 = vld [vmem:[%s1373_s1 + $0xf0] sm:$0xff]   ;;  %v1065_v29 = vld [vmem:[%s1373_s1 + $0xf8] sm:$0xff]  }
   0xb   :  { %v1062_v26 = vld [vmem:[%s1373_s1 + $0x30] sm:$0xff]   ;;  %v1066_v30 = vld [vmem:[%s1373_s1 + $0x38] sm:$0xff]  }
   0xc   :  { %913 = vmatpush3.bf16.msra.mxu0 %v1046_v10  ;;  %v1063_v27 = vld [vmem:[%s1373_s1 + $0xb0] sm:$0xff]   ;;  %v1067_v31 = vld [vmem:[%s1373_s1 + $0xb8] sm:$0xff]  }
   0xd   :  { %977 = vmatpush3.bf16.msra.mxu1 %v1047_v11  ;;  %914 = vmatprep.subr.bf16.mxu0 %v1048_v12  ;;  %v1068_v32 = vld [vmem:[%s1374_s0] ss:$16 sps:$4 sm:$0xff]   ;;  %v1070_v33 = vld [vmem:[%s1374_s0 + $0x4] ss:$16 sps:$4 sm:$0xff]   ;;  %v1071_v34 = vld [vmem:[%s1374_s0 + $0x8] ss:$16 sps:$4 sm:$0xff]  }
   0xe   :  { %978 = vmatprep.subr.bf16.mxu1 %v1049_v13  ;;  %v1073_v35 = vld [vmem:[%s1374_s0 + $0xc] ss:$16 sps:$4 sm:$0xff]   ;;  %502 = vmatprep.mubr.bf16.mxu0 %v1070_v33  ;;  %v1074_v36 = vld [vmem:[%s1374_s0 + $0x24] ss:$16 sps:$4 sm:$0xff]   ;;  %v1078_v38 = vld [vmem:[%s1374_s0 + $0x20] ss:$16 sps:$4 sm:$0xff]  }
   0xf   :  { %599 = vmatprep.mubr.bf16.mxu1 %v1073_v35  ;;  %v1076_v37 = vld [vmem:[%s1374_s0 + $0x2c] ss:$16 sps:$4 sm:$0xff]   ;;  %v1079_v39 = vld [vmem:[%s1374_s0 + $0x28] ss:$16 sps:$4 sm:$0xff]   ;;  %v1080_v40 = vld [vmem:[%s1374_s0 + $0x44] ss:$16 sps:$4 sm:$0xff]  }
  0x10   :  { %915 = vmatpush3.bf16.msra.mxu0 %v1050_v14  ;;  %v1082_v41 = vld [vmem:[%s1374_s0 + $0x4c] ss:$16 sps:$4 sm:$0xff]   ;;  %v1084_v42 = vld [vmem:[%s1374_s0 + $0x40] ss:$16 sps:$4 sm:$0xff]   ;;  %v1085_v43 = vld [vmem:[%s1374_s0 + $0x48] ss:$16 sps:$4 sm:$0xff]  }
  0x11   :  { %979 = vmatpush3.bf16.msra.mxu1 %v1051_v15  ;;  %916 = vmatprep.subr.bf16.mxu0 %v1052_v16  ;;  %v1086_v44 = vld [vmem:[%s1374_s0 + $0x64] ss:$16 sps:$4 sm:$0xff]   ;;  %v1088_v45 = vld [vmem:[%s1374_s0 + $0x6c] ss:$16 sps:$4 sm:$0xff]   ;;  %v1090_v46 = vld [vmem:[%s1374_s0 + $0x60] ss:$16 sps:$4 sm:$0xff]  }
  0x12   :  { %980 = vmatprep.subr.bf16.mxu1 %v1053_v17  ;;  %v1091_v47 = vld [vmem:[%s1374_s0 + $0x68] ss:$16 sps:$4 sm:$0xff]   ;;  %v1092_v48 = vld [vmem:[%s1374_s0 + $0x84] ss:$16 sps:$4 sm:$0xff]   ;;  %v1094_v49 = vld [vmem:[%s1374_s0 + $0x8c] ss:$16 sps:$4 sm:$0xff]  }
  0x13   :  { %v1096_v50 = vld [vmem:[%s1374_s0 + $0x80] ss:$16 sps:$4 sm:$0xff]   ;;  %v1097_v51 = vld [vmem:[%s1374_s0 + $0x88] ss:$16 sps:$4 sm:$0xff]   ;;  %v1098_v52 = vld [vmem:[%s1374_s0 + $0xa4] ss:$16 sps:$4 sm:$0xff]  }
  0x14   :  { %917 = vmatpush3.bf16.msra.mxu0 %v1054_v18  ;;  %v1100_v53 = vld [vmem:[%s1374_s0 + $0xac] ss:$16 sps:$4 sm:$0xff]   ;;  %v1102_v54 = vld [vmem:[%s1374_s0 + $0xa0] ss:$16 sps:$4 sm:$0xff]   ;;  %v1103_v55 = vld [vmem:[%s1374_s0 + $0xa8] ss:$16 sps:$4 sm:$0xff]  }
  0x15   :  { %981 = vmatpush3.bf16.msra.mxu1 %v1055_v19  ;;  %918 = vmatprep.subr.bf16.mxu0 %v1056_v20  ;;  %v1104_v56 = vld [vmem:[%s1374_s0 + $0xc4] ss:$16 sps:$4 sm:$0xff]   ;;  %v1106_v57 = vld [vmem:[%s1374_s0 + $0xcc] ss:$16 sps:$4 sm:$0xff]   ;;  %v1108_v58 = vld [vmem:[%s1374_s0 + $0xc0] ss:$16 sps:$4 sm:$0xff]  }
  0x16   :  { %982 = vmatprep.subr.bf16.mxu1 %v1057_v21  ;;  %v1109_v59 = vld [vmem:[%s1374_s0 + $0xc8] ss:$16 sps:$4 sm:$0xff]   ;;  %v1110_v60 = vld [vmem:[%s1374_s0 + $0xe4] ss:$16 sps:$4 sm:$0xff]   ;;  %v1112_v61 = vld [vmem:[%s1374_s0 + $0xec] ss:$16 sps:$4 sm:$0xff]  }
  0x17   :  { %v1114_v62 = vld [vmem:[%s1374_s0 + $0xe0] ss:$16 sps:$4 sm:$0xff]   ;;  %v1115_v63 = vld [vmem:[%s1374_s0 + $0xe8] ss:$16 sps:$4 sm:$0xff]  }
  0x18   :  { %919 = vmatpush3.bf16.msra.mxu0 %v1058_v22 }
  0x19   :  { %983 = vmatpush3.bf16.msra.mxu1 %v1059_v23  ;;  %920 = vmatprep.subr.bf16.mxu0 %v1060_v24 }
  0x1a   :  { %984 = vmatprep.subr.bf16.mxu1 %v1061_v25 }
  0x1c   :  { %921 = vmatpush3.bf16.msra.mxu0 %v1062_v26 }
  0x1d   :  { %985 = vmatpush3.bf16.msra.mxu1 %v1063_v27  ;;  %922 = vmatprep.subr.bf16.mxu0 %v1064_v28 }
  0x1e   :  { %986 = vmatprep.subr.bf16.mxu1 %v1065_v29 }
  0x20   :  { %923 = vmatpush3.bf16.msra.mxu0 %v1066_v30 }
  0x21   :  { %987 = vmatpush3.bf16.msra.mxu1 %v1067_v31 }
  0x23   :  { %503 = vmatmul.mubr.bf16.vlgmr.msra.gmra.mrb[0].mxu0 %v1068_v32 }
  0x24   :  { %600 = vmatmul.mubr.bf16.vlgmr.msra.gmra.mrb[0].mxu1 %v1071_v34  ;;  %510 = vmatprep.mubr.bf16.mxu0 %v1074_v36 }
  0x25   :  { %607 = vmatprep.mubr.bf16.mxu1 %v1076_v37 }
  0x2b   :  { %511 = vmatmul.mubr.bf16.gmra.mrb[4].mxu0 %v1078_v38 }
  0x2c   :  { %608 = vmatmul.mubr.bf16.gmra.mrb[4].mxu1 %v1079_v39  ;;  %518 = vmatprep.mubr.bf16.mxu0 %v1080_v40 }
  0x2d   :  { %615 = vmatprep.mubr.bf16.mxu1 %v1082_v41 }
  0x33   :  { %519 = vmatmul.mubr.bf16.gmra.mrb[8].mxu0 %v1084_v42 }
  0x34   :  { %616 = vmatmul.mubr.bf16.gmra.mrb[8].mxu1 %v1085_v43  ;;  %526 = vmatprep.mubr.bf16.mxu0 %v1086_v44 }
  0x35   :  { %623 = vmatprep.mubr.bf16.mxu1 %v1088_v45 }
  0x3b   :  { %527 = vmatmul.mubr.bf16.gmra.mrb[12].mxu0 %v1090_v46 }
  0x3c   :  { %624 = vmatmul.mubr.bf16.gmra.mrb[12].mxu1 %v1091_v47  ;;  %534 = vmatprep.mubr.bf16.mxu0 %v1092_v48 }
  0x3d   :  { %631 = vmatprep.mubr.bf16.mxu1 %v1094_v49 }
  0x43   :  { %535 = vmatmul.mubr.bf16.gmra.mrb[16].mxu0 %v1096_v50 }
  0x44   :  { %632 = vmatmul.mubr.bf16.gmra.mrb[16].mxu1 %v1097_v51  ;;  %542 = vmatprep.mubr.bf16.mxu0 %v1098_v52 }
  0x45   :  { %639 = vmatprep.mubr.bf16.mxu1 %v1100_v53 }
  0x4b   :  { %543 = vmatmul.mubr.bf16.gmra.mrb[20].mxu0 %v1102_v54 }
  0x4c   :  { %640 = vmatmul.mubr.bf16.gmra.mrb[20].mxu1 %v1103_v55  ;;  %550 = vmatprep.mubr.bf16.mxu0 %v1104_v56 }
  0x4d   :  { %647 = vmatprep.mubr.bf16.mxu1 %v1106_v57 }
  0x53   :  { %551 = vmatmul.mubr.bf16.gmra.mrb[24].mxu0 %v1108_v58 }
  0x54   :  { %648 = vmatmul.mubr.bf16.gmra.mrb[24].mxu1 %v1109_v59  ;;  %558 = vmatprep.mubr.bf16.mxu0 %v1110_v60 }
  0x55   :  { %655 = vmatprep.mubr.bf16.mxu1 %v1112_v61 }
  0x5b   :  { %559 = vmatmul.mubr.bf16.gmra.mrb[28].mxu0 %v1114_v62 }
  0x5c   :  { %656 = vmatmul.mubr.bf16.gmra.mrb[28].mxu1 %v1115_v63 }
  0xf6   :  { %v924_v0 = vpop.f32.mrb[0].mxu0 }
  0xf7   :  { %v988_v1 = vpop.f32.mrb[0].mxu1  ;;  %v925_v3 = vpop.f32.mrb[1].mxu0 }
  0xf8   :  { %v926_v4 = vadd.f32 %v925_v3, %v924_v0  ;;  %v989_v5 = vpop.f32.mrb[1].mxu1  ;;  %v927_v6 = vpop.f32.mrb[2].mxu0 }
  0xf9   :  { %v990_v7 = vadd.f32 %v989_v5, %v988_v1  ;;  %v991_v8 = vpop.f32.mrb[2].mxu1  ;;  %v928_v9 = vpop.f32.mrb[3].mxu0 }
  0xfa   :  { %v505_v10 = vadd.f32 %v926_v4, %v1331_v2  ;;  %v929_v11 = vadd.f32 %v928_v9, %v927_v6  ;;  %v992_v12 = vpop.f32.mrb[3].mxu1 }
  0xfb   :  { %v993_v13 = vadd.f32 %v992_v12, %v991_v8 }
  0xfc   :  { %v602_v14 = vadd.f32 %v990_v7, %v505_v10  ;;  %v508_v15 = vadd.f32 %v929_v11, %v1331_v2 }
  0xfe   :  { %v605_v16 = vadd.f32 %v993_v13, %v508_v15  ;;  %v930_v17 = vpop.f32.mrb[4].mxu0  ;;  %v664_v20 = vmax.f32 %v602_v14, 0.0 }
  0xff   :  { %v994_v18 = vpop.f32.mrb[4].mxu1  ;;  %v931_v19 = vpop.f32.mrb[5].mxu0 }
 0x100   :  { %v665_v21 = vmax.f32 %v605_v16, 0.0  ;;  %v932_v22 = vadd.f32 %v931_v19, %v930_v17  ;;  %v995_v23 = vpop.f32.mrb[5].mxu1  ;;  %v933_v24 = vpop.f32.mrb[6].mxu0 }
 0x101   :  { %v996_v25 = vadd.f32 %v995_v23, %v994_v18  ;;  %v997_v26 = vpop.f32.mrb[6].mxu1  ;;  %v934_v27 = vpop.f32.mrb[7].mxu0 }
 0x102   :  { %v864_v28 = vpack.c.bf16 %v665_v21, %v664_v20  ;;  %v513_v29 = vadd.f32 %v932_v22, %v1331_v2  ;;  %v935_v30 = vadd.f32 %v934_v27, %v933_v24  ;;  %v998_v31 = vpop.f32.mrb[7].mxu1 }
 0x103   :  { %v999_v32 = vadd.f32 %v998_v31, %v997_v26 }
 0x104   :  { %865 = vst [vmem:[%s1376_s3] sm:$0xff] %v864_v28   ;;  %v610_v33 = vadd.f32 %v996_v25, %v513_v29  ;;  %v516_v34 = vadd.f32 %v935_v30, %v1331_v2 }
 0x106   :  { %v613_v35 = vadd.f32 %v999_v32, %v516_v34  ;;  %v936_v36 = vpop.f32.mrb[8].mxu0  ;;  %v666_v39 = vmax.f32 %v610_v33, 0.0 }
 0x107   :  { %v1000_v37 = vpop.f32.mrb[8].mxu1  ;;  %v937_v38 = vpop.f32.mrb[9].mxu0 }
 0x108   :  { %v667_v40 = vmax.f32 %v613_v35, 0.0  ;;  %v938_v41 = vadd.f32 %v937_v38, %v936_v36  ;;  %v1001_v42 = vpop.f32.mrb[9].mxu1  ;;  %v939_v43 = vpop.f32.mrb[10].mxu0 }
 0x109   :  { %v1002_v44 = vadd.f32 %v1001_v42, %v1000_v37  ;;  %v1003_v45 = vpop.f32.mrb[10].mxu1  ;;  %v940_v46 = vpop.f32.mrb[11].mxu0 }
 0x10a   :  { %v869_v47 = vpack.c.bf16 %v667_v40, %v666_v39  ;;  %v521_v48 = vadd.f32 %v938_v41, %v1331_v2  ;;  %v941_v49 = vadd.f32 %v940_v46, %v939_v43  ;;  %v1004_v50 = vpop.f32.mrb[11].mxu1 }
 0x10b   :  { %v1005_v51 = vadd.f32 %v1004_v50, %v1003_v45 }
 0x10c   :  { %901 = vst [vmem:[%s1376_s3 + $0x8] sm:$0xff] %v869_v47   ;;  %v618_v52 = vadd.f32 %v1002_v44, %v521_v48  ;;  %v524_v53 = vadd.f32 %v941_v49, %v1331_v2 }
 0x10e   :  { %v621_v54 = vadd.f32 %v1005_v51, %v524_v53  ;;  %v942_v55 = vpop.f32.mrb[12].mxu0  ;;  %v668_v58 = vmax.f32 %v618_v52, 0.0 }
 0x10f   :  { %v1006_v56 = vpop.f32.mrb[12].mxu1  ;;  %v943_v57 = vpop.f32.mrb[13].mxu0 }
 0x110   :  { %v669_v59 = vmax.f32 %v621_v54, 0.0  ;;  %v944_v60 = vadd.f32 %v943_v57, %v942_v55  ;;  %v1007_v61 = vpop.f32.mrb[13].mxu1  ;;  %v945_v62 = vpop.f32.mrb[14].mxu0 }
 0x111   :  { %v1008_v63 = vadd.f32 %v1007_v61, %v1006_v56  ;;  %v1009_v0 = vpop.f32.mrb[14].mxu1  ;;  %v946_v1 = vpop.f32.mrb[15].mxu0 }
 0x112   :  { %v874_v3 = vpack.c.bf16 %v669_v59, %v668_v58  ;;  %v529_v4 = vadd.f32 %v944_v60, %v1331_v2  ;;  %v947_v5 = vadd.f32 %v946_v1, %v945_v62  ;;  %v1010_v6 = vpop.f32.mrb[15].mxu1 }
 0x113   :  { %v1011_v7 = vadd.f32 %v1010_v6, %v1009_v0 }
 0x114   :  { %902 = vst [vmem:[%s1376_s3 + $0x10] sm:$0xff] %v874_v3   ;;  %v626_v8 = vadd.f32 %v1008_v63, %v529_v4  ;;  %v532_v9 = vadd.f32 %v947_v5, %v1331_v2 }
 0x116   :  { %v629_v10 = vadd.f32 %v1011_v7, %v532_v9  ;;  %v948_v11 = vpop.f32.mrb[16].mxu0  ;;  %v670_v14 = vmax.f32 %v626_v8, 0.0 }
 0x117   :  { %v1012_v12 = vpop.f32.mrb[16].mxu1  ;;  %v949_v13 = vpop.f32.mrb[17].mxu0 }
 0x118   :  { %v671_v15 = vmax.f32 %v629_v10, 0.0  ;;  %v950_v16 = vadd.f32 %v949_v13, %v948_v11  ;;  %v1013_v17 = vpop.f32.mrb[17].mxu1  ;;  %v951_v18 = vpop.f32.mrb[18].mxu0 }
 0x119   :  { %v1014_v19 = vadd.f32 %v1013_v17, %v1012_v12  ;;  %v1015_v20 = vpop.f32.mrb[18].mxu1  ;;  %v952_v21 = vpop.f32.mrb[19].mxu0 }
 0x11a   :  { %v879_v22 = vpack.c.bf16 %v671_v15, %v670_v14  ;;  %v537_v23 = vadd.f32 %v950_v16, %v1331_v2  ;;  %v953_v24 = vadd.f32 %v952_v21, %v951_v18  ;;  %v1016_v25 = vpop.f32.mrb[19].mxu1 }
 0x11b   :  { %v1017_v26 = vadd.f32 %v1016_v25, %v1015_v20 }
 0x11c   :  { %903 = vst [vmem:[%s1376_s3 + $0x18] sm:$0xff] %v879_v22   ;;  %v634_v27 = vadd.f32 %v1014_v19, %v537_v23  ;;  %v540_v28 = vadd.f32 %v953_v24, %v1331_v2 }
 0x11e   :  { %v637_v29 = vadd.f32 %v1017_v26, %v540_v28  ;;  %v954_v30 = vpop.f32.mrb[20].mxu0  ;;  %v672_v33 = vmax.f32 %v634_v27, 0.0 }
 0x11f   :  { %v1018_v31 = vpop.f32.mrb[20].mxu1  ;;  %v955_v32 = vpop.f32.mrb[21].mxu0 }
 0x120   :  { %v673_v34 = vmax.f32 %v637_v29, 0.0  ;;  %v956_v35 = vadd.f32 %v955_v32, %v954_v30  ;;  %v1019_v36 = vpop.f32.mrb[21].mxu1  ;;  %v957_v37 = vpop.f32.mrb[22].mxu0 }
 0x121   :  { %v1020_v38 = vadd.f32 %v1019_v36, %v1018_v31  ;;  %v1021_v39 = vpop.f32.mrb[22].mxu1  ;;  %v958_v40 = vpop.f32.mrb[23].mxu0 }
 0x122   :  { %v884_v41 = vpack.c.bf16 %v673_v34, %v672_v33  ;;  %v545_v42 = vadd.f32 %v956_v35, %v1331_v2  ;;  %v959_v43 = vadd.f32 %v958_v40, %v957_v37  ;;  %v1022_v44 = vpop.f32.mrb[23].mxu1 }
 0x123   :  { %v1023_v45 = vadd.f32 %v1022_v44, %v1021_v39 }
 0x124   :  { %904 = vst [vmem:[%s1376_s3 + $0x20] sm:$0xff] %v884_v41   ;;  %v642_v46 = vadd.f32 %v1020_v38, %v545_v42  ;;  %v548_v47 = vadd.f32 %v959_v43, %v1331_v2 }
 0x126   :  { %v645_v48 = vadd.f32 %v1023_v45, %v548_v47  ;;  %v960_v49 = vpop.f32.mrb[24].mxu0  ;;  %v674_v52 = vmax.f32 %v642_v46, 0.0 }
 0x127   :  { %v1024_v50 = vpop.f32.mrb[24].mxu1  ;;  %v961_v51 = vpop.f32.mrb[25].mxu0 }
 0x128   :  { %v675_v53 = vmax.f32 %v645_v48, 0.0  ;;  %v962_v54 = vadd.f32 %v961_v51, %v960_v49  ;;  %v1025_v55 = vpop.f32.mrb[25].mxu1  ;;  %v963_v56 = vpop.f32.mrb[26].mxu0 }
 0x129   :  { %v1026_v57 = vadd.f32 %v1025_v55, %v1024_v50  ;;  %v1027_v58 = vpop.f32.mrb[26].mxu1  ;;  %v964_v59 = vpop.f32.mrb[27].mxu0 }
 0x12a   :  { %v889_v60 = vpack.c.bf16 %v675_v53, %v674_v52  ;;  %v553_v61 = vadd.f32 %v962_v54, %v1331_v2  ;;  %v965_v62 = vadd.f32 %v964_v59, %v963_v56  ;;  %v1028_v63 = vpop.f32.mrb[27].mxu1 }
 0x12b   :  { %v1029_v0 = vadd.f32 %v1028_v63, %v1027_v58 }
 0x12c   :  { %905 = vst [vmem:[%s1376_s3 + $0x28] sm:$0xff] %v889_v60   ;;  %v650_v1 = vadd.f32 %v1026_v57, %v553_v61  ;;  %v556_v3 = vadd.f32 %v965_v62, %v1331_v2 }
 0x12e   :  { %v653_v4 = vadd.f32 %v1029_v0, %v556_v3  ;;  %v966_v5 = vpop.f32.mrb[28].mxu0  ;;  %v676_v8 = vmax.f32 %v650_v1, 0.0 }
 0x12f   :  { %v1030_v6 = vpop.f32.mrb[28].mxu1  ;;  %v967_v7 = vpop.f32.mrb[29].mxu0 }
 0x130   :  { %v677_v9 = vmax.f32 %v653_v4, 0.0  ;;  %v968_v10 = vadd.f32 %v967_v7, %v966_v5  ;;  %v1031_v11 = vpop.f32.mrb[29].mxu1  ;;  %v969_v12 = vpop.f32.mrb[30].mxu0 }
 0x131   :  { %v1032_v13 = vadd.f32 %v1031_v11, %v1030_v6  ;;  %v1033_v14 = vpop.f32.mrb[30].mxu1  ;;  %v970_v15 = vpop.f32.mrb[31].mxu0 }
 0x132   :  { %v894_v16 = vpack.c.bf16 %v677_v9, %v676_v8  ;;  %v561_v17 = vadd.f32 %v968_v10, %v1331_v2  ;;  %v971_v18 = vadd.f32 %v970_v15, %v969_v12  ;;  %v1034_v19 = vpop.f32.mrb[31].mxu1 }
 0x133   :  { %v1035_v20 = vadd.f32 %v1034_v19, %v1033_v14 }
 0x134   :  { %906 = vst [vmem:[%s1376_s3 + $0x30] sm:$0xff] %v894_v16   ;;  %v658_v21 = vadd.f32 %v1032_v13, %v561_v17  ;;  %v564_v22 = vadd.f32 %v971_v18, %v1331_v2 }
 0x136   :  { %v661_v23 = vadd.f32 %v1035_v20, %v564_v22  ;;  %v678_v24 = vmax.f32 %v658_v21, 0.0 }
 0x138   :  { %v679_v25 = vmax.f32 %v661_v23, 0.0 }
 0x13a   :  { %v899_v26 = vpack.c.bf16 %v679_v25, %v678_v24 }
 0x13c   :  { %907 = vst [vmem:[%s1376_s3 + $0x38] sm:$0xff] %v899_v26  }

// kernel: grad_con_vae_forward.12
= control target key start
LH: loop header
LB: loop body
LE: loop exit
PB: predicated region body
PF: predicated region fallthrough
CT: control target
= control target key end

     0   :  { %s937_s1 = inlined_call_operand.vmem [shape: bf16[512,128], index: 1, kind: input, shape index: {}]   ;;  %s938_s0 = inlined_call_operand.vmem [shape: bf16[56,512], index: 0, kind: input, shape index: {}]   ;;  %s939_s2 = inlined_call_operand.vmem [shape: f32[1,128], index: 2, kind: input, shape index: {}]   ;;  %s940_s3 = inlined_call_operand.vmem [shape: bf16[56,128], index: 3, kind: output, shape index: {}]  }
   0x1   :  { %v701_v0 = vld [vmem:[%s937_s1 + $0x40] sm:$0xff]   ;;  %v705_v4 = vld [vmem:[%s937_s1 + $0x48] sm:$0xff]   ;;  %v709_v8 = vld [vmem:[%s937_s1 + $0x50] sm:$0xff]  }
   0x2   :  { %v702_v1 = vld [vmem:[%s937_s1 + $0xc0] sm:$0xff]   ;;  %621 = vmatprep.subr.bf16.mxu0 %v701_v0  ;;  %v706_v5 = vld [vmem:[%s937_s1 + $0xc8] sm:$0xff]   ;;  %v710_v9 = vld [vmem:[%s937_s1 + $0xd0] sm:$0xff]  }
   0x3   :  { %v703_v2 = vld [vmem:[%s937_s1] sm:$0xff]   ;;  %661 = vmatprep.subr.bf16.mxu1 %v702_v1  ;;  %v707_v6 = vld [vmem:[%s937_s1 + $0x8] sm:$0xff]   ;;  %v711_v10 = vld [vmem:[%s937_s1 + $0x10] sm:$0xff]  }
   0x4   :  { %v704_v3 = vld [vmem:[%s937_s1 + $0x80] sm:$0xff]   ;;  %622 = vmatpush3.bf16.msra.mxu0 %v703_v2  ;;  %v708_v7 = vld [vmem:[%s937_s1 + $0x88] sm:$0xff]   ;;  %v712_v11 = vld [vmem:[%s937_s1 + $0x90] sm:$0xff]  }
   0x5   :  { %662 = vmatpush3.bf16.msra.mxu1 %v704_v3  ;;  %623 = vmatprep.subr.bf16.mxu0 %v705_v4  ;;  %v713_v12 = vld [vmem:[%s937_s1 + $0x58] sm:$0xff]   ;;  %v717_v16 = vld [vmem:[%s937_s1 + $0x60] sm:$0xff]   ;;  %v721_v20 = vld [vmem:[%s937_s1 + $0x68] sm:$0xff]  }
   0x6   :  { %663 = vmatprep.subr.bf16.mxu1 %v706_v5  ;;  %v714_v13 = vld [vmem:[%s937_s1 + $0xd8] sm:$0xff]   ;;  %v718_v17 = vld [vmem:[%s937_s1 + $0xe0] sm:$0xff]   ;;  %v722_v21 = vld [vmem:[%s937_s1 + $0xe8] sm:$0xff]  }
   0x7   :  { %v715_v14 = vld [vmem:[%s937_s1 + $0x18] sm:$0xff]   ;;  %v719_v18 = vld [vmem:[%s937_s1 + $0x20] sm:$0xff]   ;;  %v723_v22 = vld [vmem:[%s937_s1 + $0x28] sm:$0xff]  }
   0x8   :  { %624 = vmatpush3.bf16.msra.mxu0 %v707_v6  ;;  %v716_v15 = vld [vmem:[%s937_s1 + $0x98] sm:$0xff]   ;;  %v720_v19 = vld [vmem:[%s937_s1 + $0xa0] sm:$0xff]   ;;  %v724_v23 = vld [vmem:[%s937_s1 + $0xa8] sm:$0xff]  }
   0x9   :  { %664 = vmatpush3.bf16.msra.mxu1 %v708_v7  ;;  %625 = vmatprep.subr.bf16.mxu0 %v709_v8  ;;  %v725_v24 = vld [vmem:[%s937_s1 + $0x70] sm:$0xff]   ;;  %v729_v28 = vld [vmem:[%s937_s1 + $0x78] sm:$0xff]   ;;  %v27_v42 = vld [vmem:[%s938_s0 + $0x60] sm:$0xff] }
   0xa   :  { %665 = vmatprep.subr.bf16.mxu1 %v710_v9  ;;  %v726_v25 = vld [vmem:[%s937_s1 + $0xf0] sm:$0xff]   ;;  %v730_v29 = vld [vmem:[%s937_s1 + $0xf8] sm:$0xff]   ;;  %v28_v43 = vld [vmem:[%s938_s0 + $0x68] sm:$0xff]  ;;  %v555_v46 = vcombine.high %v27_v42, %v27_v42  ;;  %v554_v48 = vcombine.low %v27_v42, %v27_v42 }
   0xb   :  { %v727_v26 = vld [vmem:[%s937_s1 + $0x30] sm:$0xff]   ;;  %v731_v30 = vld [vmem:[%s937_s1 + $0x38] sm:$0xff]   ;;  %v557_v47 = vcombine.high %v28_v43, %v28_v43  ;;  %v556_v49 = vcombine.low %v28_v43, %v28_v43  ;;  %v916_v52 = vld [vmem:[%s939_s2] ss:$0 sm:$0xff] }
   0xc   :  { %626 = vmatpush3.bf16.msra.mxu0 %v711_v10  ;;  %v728_v27 = vld [vmem:[%s937_s1 + $0xb0] sm:$0xff]   ;;  %v732_v31 = vld [vmem:[%s937_s1 + $0xb8] sm:$0xff]  }
   0xd   :  { %666 = vmatpush3.bf16.msra.mxu1 %v712_v11  ;;  %627 = vmatprep.subr.bf16.mxu0 %v713_v12  ;;  %v733_v32 = vld [vmem:[%s938_s0] ss:$16 sps:$4 sm:$0xff]   ;;  %v735_v33 = vld [vmem:[%s938_s0 + $0x4] ss:$16 sps:$4 sm:$0xff]   ;;  %v736_v34 = vld [vmem:[%s938_s0 + $0x8] ss:$16 sps:$4 sm:$0xff]  }
   0xe   :  { %667 = vmatprep.subr.bf16.mxu1 %v714_v13  ;;  %v738_v35 = vld [vmem:[%s938_s0 + $0xc] ss:$16 sps:$4 sm:$0xff]   ;;  %398 = vmatprep.mubr.bf16.mxu0 %v735_v33  ;;  %v739_v36 = vld [vmem:[%s938_s0 + $0x24] ss:$16 sps:$4 sm:$0xff]   ;;  %v743_v38 = vld [vmem:[%s938_s0 + $0x20] ss:$16 sps:$4 sm:$0xff]  }
   0xf   :  { %462 = vmatprep.mubr.bf16.mxu1 %v738_v35  ;;  %v741_v37 = vld [vmem:[%s938_s0 + $0x2c] ss:$16 sps:$4 sm:$0xff]   ;;  %v744_v39 = vld [vmem:[%s938_s0 + $0x28] ss:$16 sps:$4 sm:$0xff]   ;;  %v745_v40 = vld [vmem:[%s938_s0 + $0x44] ss:$16 sps:$4 sm:$0xff]  }
  0x10   :  { %628 = vmatpush3.bf16.msra.mxu0 %v715_v14  ;;  %v747_v41 = vld [vmem:[%s938_s0 + $0x4c] ss:$16 sps:$4 sm:$0xff]   ;;  %v749_v44 = vld [vmem:[%s938_s0 + $0x40] ss:$16 sps:$4 sm:$0xff]   ;;  %v750_v45 = vld [vmem:[%s938_s0 + $0x48] ss:$16 sps:$4 sm:$0xff]  }
  0x11   :  { %668 = vmatpush3.bf16.msra.mxu1 %v716_v15  ;;  %629 = vmatprep.subr.bf16.mxu0 %v717_v16 }
  0x12   :  { %669 = vmatprep.subr.bf16.mxu1 %v718_v17 }
  0x14   :  { %630 = vmatpush3.bf16.msra.mxu0 %v719_v18 }
  0x15   :  { %670 = vmatpush3.bf16.msra.mxu1 %v720_v19  ;;  %631 = vmatprep.subr.bf16.mxu0 %v721_v20 }
  0x16   :  { %671 = vmatprep.subr.bf16.mxu1 %v722_v21 }
  0x18   :  { %632 = vmatpush3.bf16.msra.mxu0 %v723_v22 }
  0x19   :  { %672 = vmatpush3.bf16.msra.mxu1 %v724_v23  ;;  %633 = vmatprep.subr.bf16.mxu0 %v725_v24 }
  0x1a   :  { %673 = vmatprep.subr.bf16.mxu1 %v726_v25 }
  0x1c   :  { %634 = vmatpush3.bf16.msra.mxu0 %v727_v26 }
  0x1d   :  { %674 = vmatpush3.bf16.msra.mxu1 %v728_v27  ;;  %635 = vmatprep.subr.bf16.mxu0 %v729_v28 }
  0x1e   :  { %675 = vmatprep.subr.bf16.mxu1 %v730_v29 }
  0x20   :  { %636 = vmatpush3.bf16.msra.mxu0 %v731_v30 }
  0x21   :  { %676 = vmatpush3.bf16.msra.mxu1 %v732_v31 }
  0x23   :  { %399 = vmatmul.mubr.bf16.vlgmr.msra.gmra.mrb[0].mxu0 %v733_v32 }
  0x24   :  { %463 = vmatmul.mubr.bf16.vlgmr.msra.gmra.mrb[0].mxu1 %v736_v34  ;;  %406 = vmatprep.mubr.bf16.mxu0 %v739_v36 }
  0x25   :  { %470 = vmatprep.mubr.bf16.mxu1 %v741_v37 }
  0x2b   :  { %407 = vmatmul.mubr.bf16.gmra.mrb[4].mxu0 %v743_v38 }
  0x2c   :  { %471 = vmatmul.mubr.bf16.gmra.mrb[4].mxu1 %v744_v39  ;;  %414 = vmatprep.mubr.bf16.mxu0 %v745_v40 }
  0x2d   :  { %478 = vmatprep.mubr.bf16.mxu1 %v747_v41 }
  0x33   :  { %415 = vmatmul.mubr.bf16.gmra.mrb[8].mxu0 %v749_v44 }
  0x34   :  { %479 = vmatmul.mubr.bf16.gmra.mrb[8].mxu1 %v750_v45  ;;  %422 = vmatprep.mubr.bf16.mxu0 %v555_v46 }
  0x35   :  { %486 = vmatprep.mubr.bf16.mxu1 %v557_v47 }
  0x3b   :  { %423 = vmatmul.mubr.bf16.gmra.mrb[12].mxu0 %v554_v48 }
  0x3c   :  { %487 = vmatmul.mubr.bf16.gmra.mrb[12].mxu1 %v556_v49 }
  0xf6   :  { %v637_v50 = vpop.f32.mrb[0].mxu0 }
  0xf7   :  { %v677_v51 = vpop.f32.mrb[0].mxu1  ;;  %v638_v53 = vpop.f32.mrb[1].mxu0 }
  0xf8   :  { %v639_v54 = vadd.f32 %v638_v53, %v637_v50  ;;  %v678_v55 = vpop.f32.mrb[1].mxu1  ;;  %v640_v56 = vpop.f32.mrb[2].mxu0 }
  0xf9   :  { %v679_v57 = vadd.f32 %v678_v55, %v677_v51  ;;  %v680_v58 = vpop.f32.mrb[2].mxu1  ;;  %v641_v59 = vpop.f32.mrb[3].mxu0 }
  0xfa   :  { %v401_v60 = vadd.f32 %v639_v54, %v916_v52  ;;  %v642_v61 = vadd.f32 %v641_v59, %v640_v56  ;;  %v681_v62 = vpop.f32.mrb[3].mxu1 }
  0xfb   :  { %v682_v63 = vadd.f32 %v681_v62, %v680_v58 }
  0xfc   :  { %v465_v0 = vadd.f32 %v679_v57, %v401_v60  ;;  %v404_v1 = vadd.f32 %v642_v61, %v916_v52 }
  0xfe   :  { %v468_v2 = vadd.f32 %v682_v63, %v404_v1  ;;  %v643_v3 = vpop.f32.mrb[4].mxu0  ;;  %v494_v6 = vmax.f32 %v465_v0, 0.0 }
  0xff   :  { %v683_v4 = vpop.f32.mrb[4].mxu1  ;;  %v644_v5 = vpop.f32.mrb[5].mxu0 }
 0x100   :  { %v495_v7 = vmax.f32 %v468_v2, 0.0  ;;  %v645_v8 = vadd.f32 %v644_v5, %v643_v3  ;;  %v684_v9 = vpop.f32.mrb[5].mxu1  ;;  %v646_v10 = vpop.f32.mrb[6].mxu0 }
 0x101   :  { %v685_v11 = vadd.f32 %v684_v9, %v683_v4  ;;  %v686_v12 = vpop.f32.mrb[6].mxu1  ;;  %v647_v13 = vpop.f32.mrb[7].mxu0 }
 0x102   :  { %v607_v14 = vpack.c.bf16 %v495_v7, %v494_v6  ;;  %v409_v15 = vadd.f32 %v645_v8, %v916_v52  ;;  %v648_v16 = vadd.f32 %v647_v13, %v646_v10  ;;  %v687_v17 = vpop.f32.mrb[7].mxu1 }
 0x103   :  { %v688_v18 = vadd.f32 %v687_v17, %v686_v12 }
 0x104   :  { %608 = vst [vmem:[%s940_s3] sm:$0xff] %v607_v14   ;;  %v473_v19 = vadd.f32 %v685_v11, %v409_v15  ;;  %v412_v20 = vadd.f32 %v648_v16, %v916_v52 }
 0x106   :  { %v476_v21 = vadd.f32 %v688_v18, %v412_v20  ;;  %v649_v22 = vpop.f32.mrb[8].mxu0  ;;  %v496_v25 = vmax.f32 %v473_v19, 0.0 }
 0x107   :  { %v689_v23 = vpop.f32.mrb[8].mxu1  ;;  %v650_v24 = vpop.f32.mrb[9].mxu0 }
 0x108   :  { %v497_v26 = vmax.f32 %v476_v21, 0.0  ;;  %v651_v27 = vadd.f32 %v650_v24, %v649_v22  ;;  %v690_v28 = vpop.f32.mrb[9].mxu1  ;;  %v652_v29 = vpop.f32.mrb[10].mxu0 }
 0x109   :  { %v691_v30 = vadd.f32 %v690_v28, %v689_v23  ;;  %v692_v31 = vpop.f32.mrb[10].mxu1  ;;  %v653_v32 = vpop.f32.mrb[11].mxu0 }
 0x10a   :  { %v612_v33 = vpack.c.bf16 %v497_v26, %v496_v25  ;;  %v417_v34 = vadd.f32 %v651_v27, %v916_v52  ;;  %v654_v35 = vadd.f32 %v653_v32, %v652_v29  ;;  %v693_v36 = vpop.f32.mrb[11].mxu1 }
 0x10b   :  { %v694_v37 = vadd.f32 %v693_v36, %v692_v31 }
 0x10c   :  { %619 = vst [vmem:[%s940_s3 + $0x8] sm:$0xff] %v612_v33   ;;  %v481_v38 = vadd.f32 %v691_v30, %v417_v34  ;;  %v420_v39 = vadd.f32 %v654_v35, %v916_v52 }
 0x10e   :  { %v484_v40 = vadd.f32 %v694_v37, %v420_v39  ;;  %v655_v41 = vpop.f32.mrb[12].mxu0  ;;  %v498_v44 = vmax.f32 %v481_v38, 0.0 }
 0x10f   :  { %v695_v42 = vpop.f32.mrb[12].mxu1  ;;  %v656_v43 = vpop.f32.mrb[13].mxu0 }
 0x110   :  { %v499_v45 = vmax.f32 %v484_v40, 0.0  ;;  %v657_v46 = vadd.f32 %v656_v43, %v655_v41  ;;  %v696_v47 = vpop.f32.mrb[13].mxu1  ;;  %v658_v48 = vpop.f32.mrb[14].mxu0 }
 0x111   :  { %v697_v49 = vadd.f32 %v696_v47, %v695_v42  ;;  %v698_v50 = vpop.f32.mrb[14].mxu1  ;;  %v659_v51 = vpop.f32.mrb[15].mxu0 }
 0x112   :  { %v617_v53 = vpack.c.bf16 %v499_v45, %v498_v44  ;;  %v425_v54 = vadd.f32 %v657_v46, %v916_v52  ;;  %v699_v55 = vpop.f32.mrb[15].mxu1 }
 0x114   :  { %620 = vst [vmem:[%s940_s3 + $0x10] sm:$0xff] %v617_v53   ;;  %v489_v56 = vadd.f32 %v697_v49, %v425_v54 }
 0x116   :  { %v500_v57 = vmax.f32 %v489_v56, 0.0 }
 0x118   :  { %v603_v58 = vpack.c.bf16 %v500_v57, %v500_v57 }
 0x11a   :  { %536 = vst [vmem:[%s940_s3 + $0x18] sm:$0xf] %v603_v58 }

// kernel: grad_con_vae_forward.13
= control target key start
LH: loop header
LB: loop body
LE: loop exit
PB: predicated region body
PF: predicated region fallthrough
CT: control target
= control target key end

     0   :  { %s1362_s1 = inlined_call_operand.vmem [shape: bf16[1024,128], index: 1, kind: input, shape index: {}]   ;;  %s1363_s0 = inlined_call_operand.vmem [shape: bf16[24,1024], index: 0, kind: input, shape index: {}]   ;;  %s1364_s2 = inlined_call_operand.vmem [shape: f32[1,128], index: 2, kind: input, shape index: {}]   ;;  %s1365_s3 = inlined_call_operand.vmem [shape: bf16[24,128], index: 3, kind: output, shape index: {}]  }
   0x1   :  { %v1033_v0 = vld [vmem:[%s1362_s1 + $0x40] sm:$0xff]   ;;  %v1037_v4 = vld [vmem:[%s1362_s1 + $0x48] sm:$0xff]   ;;  %v1041_v8 = vld [vmem:[%s1362_s1 + $0x50] sm:$0xff]  }
   0x2   :  { %v1034_v1 = vld [vmem:[%s1362_s1 + $0xc0] sm:$0xff]   ;;  %921 = vmatprep.subr.bf16.mxu0 %v1033_v0  ;;  %v1038_v5 = vld [vmem:[%s1362_s1 + $0xc8] sm:$0xff]   ;;  %v1042_v9 = vld [vmem:[%s1362_s1 + $0xd0] sm:$0xff]  }
   0x3   :  { %v1035_v2 = vld [vmem:[%s1362_s1] sm:$0xff]   ;;  %949 = vmatprep.subr.bf16.mxu1 %v1034_v1  ;;  %v1039_v6 = vld [vmem:[%s1362_s1 + $0x8] sm:$0xff]   ;;  %v1043_v10 = vld [vmem:[%s1362_s1 + $0x10] sm:$0xff]  }
   0x4   :  { %v1036_v3 = vld [vmem:[%s1362_s1 + $0x80] sm:$0xff]   ;;  %922 = vmatpush3.bf16.msra.mxu0 %v1035_v2  ;;  %v1040_v7 = vld [vmem:[%s1362_s1 + $0x88] sm:$0xff]   ;;  %v1044_v11 = vld [vmem:[%s1362_s1 + $0x90] sm:$0xff]  }
   0x5   :  { %950 = vmatpush3.bf16.msra.mxu1 %v1036_v3  ;;  %923 = vmatprep.subr.bf16.mxu0 %v1037_v4  ;;  %v1045_v12 = vld [vmem:[%s1362_s1 + $0x58] sm:$0xff]   ;;  %v1049_v16 = vld [vmem:[%s1362_s1 + $0x60] sm:$0xff]   ;;  %v1053_v20 = vld [vmem:[%s1362_s1 + $0x68] sm:$0xff]  }
   0x6   :  { %951 = vmatprep.subr.bf16.mxu1 %v1038_v5  ;;  %v1046_v13 = vld [vmem:[%s1362_s1 + $0xd8] sm:$0xff]   ;;  %v1050_v17 = vld [vmem:[%s1362_s1 + $0xe0] sm:$0xff]   ;;  %v1054_v21 = vld [vmem:[%s1362_s1 + $0xe8] sm:$0xff]  }
   0x7   :  { %v1047_v14 = vld [vmem:[%s1362_s1 + $0x18] sm:$0xff]   ;;  %v1051_v18 = vld [vmem:[%s1362_s1 + $0x20] sm:$0xff]   ;;  %v1055_v22 = vld [vmem:[%s1362_s1 + $0x28] sm:$0xff]  }
   0x8   :  { %924 = vmatpush3.bf16.msra.mxu0 %v1039_v6  ;;  %v1048_v15 = vld [vmem:[%s1362_s1 + $0x98] sm:$0xff]   ;;  %v1052_v19 = vld [vmem:[%s1362_s1 + $0xa0] sm:$0xff]   ;;  %v1056_v23 = vld [vmem:[%s1362_s1 + $0xa8] sm:$0xff]  }
   0x9   :  { %952 = vmatpush3.bf16.msra.mxu1 %v1040_v7  ;;  %925 = vmatprep.subr.bf16.mxu0 %v1041_v8  ;;  %v1057_v24 = vld [vmem:[%s1362_s1 + $0x70] sm:$0xff]   ;;  %v1061_v28 = vld [vmem:[%s1362_s1 + $0x78] sm:$0xff]   ;;  %v15_v32 = vld [vmem:[%s1363_s0] sm:$0xff] }
   0xa   :  { %953 = vmatprep.subr.bf16.mxu1 %v1042_v9  ;;  %v1058_v25 = vld [vmem:[%s1362_s1 + $0xf0] sm:$0xff]   ;;  %v1062_v29 = vld [vmem:[%s1362_s1 + $0xf8] sm:$0xff]   ;;  %v19_v33 = vld [vmem:[%s1363_s0 + $0x20] sm:$0xff] }
   0xb   :  { %v1059_v26 = vld [vmem:[%s1362_s1 + $0x30] sm:$0xff]   ;;  %v1063_v30 = vld [vmem:[%s1362_s1 + $0x38] sm:$0xff]   ;;  %v16_v34 = vld [vmem:[%s1363_s0 + $0x8] sm:$0xff]  ;;  %v830_v35 = vcombine.low %v15_v32, %v19_v33  ;;  %v831_v36 = vcombine.high %v15_v32, %v19_v33 }
   0xc   :  { %926 = vmatpush3.bf16.msra.mxu0 %v1043_v10  ;;  %v1060_v27 = vld [vmem:[%s1362_s1 + $0xb0] sm:$0xff]   ;;  %v1064_v31 = vld [vmem:[%s1362_s1 + $0xb8] sm:$0xff]   ;;  %v20_v37 = vld [vmem:[%s1363_s0 + $0x28] sm:$0xff] }
   0xd   :  { %954 = vmatpush3.bf16.msra.mxu1 %v1044_v11  ;;  %927 = vmatprep.subr.bf16.mxu0 %v1045_v12  ;;  %v832_v38 = vcombine.low %v16_v34, %v20_v37  ;;  %v833_v39 = vcombine.high %v16_v34, %v20_v37  ;;  %v1065_v40 = vld [vmem:[%s1362_s1 + $0x140] sm:$0xff]   ;;  %v1069_v44 = vld [vmem:[%s1362_s1 + $0x148] sm:$0xff]   ;;  %v1073_v48 = vld [vmem:[%s1362_s1 + $0x150] sm:$0xff]  }
   0xe   :  { %955 = vmatprep.subr.bf16.mxu1 %v1046_v13  ;;  %646 = vmatprep.mubr.bf16.mxu0 %v831_v36  ;;  %v1066_v41 = vld [vmem:[%s1362_s1 + $0x1c0] sm:$0xff]   ;;  %v1070_v45 = vld [vmem:[%s1362_s1 + $0x1c8] sm:$0xff]   ;;  %v1074_v49 = vld [vmem:[%s1362_s1 + $0x1d0] sm:$0xff]  }
   0xf   :  { %694 = vmatprep.mubr.bf16.mxu1 %v833_v39  ;;  %v1067_v42 = vld [vmem:[%s1362_s1 + $0x100] sm:$0xff]   ;;  %v1071_v46 = vld [vmem:[%s1362_s1 + $0x108] sm:$0xff]   ;;  %v1075_v50 = vld [vmem:[%s1362_s1 + $0x110] sm:$0xff]  }
  0x10   :  { %928 = vmatpush3.bf16.msra.mxu0 %v1047_v14  ;;  %v1068_v43 = vld [vmem:[%s1362_s1 + $0x180] sm:$0xff]   ;;  %v1072_v47 = vld [vmem:[%s1362_s1 + $0x188] sm:$0xff]   ;;  %v1076_v51 = vld [vmem:[%s1362_s1 + $0x190] sm:$0xff]  }
  0x11   :  { %956 = vmatpush3.bf16.msra.mxu1 %v1048_v15  ;;  %929 = vmatprep.subr.bf16.mxu0 %v1049_v16  ;;  %v1077_v52 = vld [vmem:[%s1362_s1 + $0x158] sm:$0xff]   ;;  %v1081_v56 = vld [vmem:[%s1362_s1 + $0x160] sm:$0xff]   ;;  %v1086_v62 = vld [vmem:[%s1362_s1 + $0x168] sm:$0xff]  }
  0x12   :  { %957 = vmatprep.subr.bf16.mxu1 %v1050_v17  ;;  %v1078_v53 = vld [vmem:[%s1362_s1 + $0x1d8] sm:$0xff]   ;;  %v1082_v57 = vld [vmem:[%s1362_s1 + $0x1e0] sm:$0xff]   ;;  %v1087_v0 = vld [vmem:[%s1362_s1 + $0x1e8] sm:$0xff]  }
  0x13   :  { %v1079_v54 = vld [vmem:[%s1362_s1 + $0x118] sm:$0xff]   ;;  %v1083_v58 = vld [vmem:[%s1362_s1 + $0x120] sm:$0xff]   ;;  %v1089_v1 = vld [vmem:[%s1362_s1 + $0x128] sm:$0xff]  }
  0x14   :  { %930 = vmatpush3.bf16.msra.mxu0 %v1051_v18  ;;  %v1080_v55 = vld [vmem:[%s1362_s1 + $0x198] sm:$0xff]   ;;  %v1084_v59 = vld [vmem:[%s1362_s1 + $0x1a0] sm:$0xff]   ;;  %v1090_v2 = vld [vmem:[%s1362_s1 + $0x1a8] sm:$0xff]  }
  0x15   :  { %958 = vmatpush3.bf16.msra.mxu1 %v1052_v19  ;;  %931 = vmatprep.subr.bf16.mxu0 %v1053_v20  ;;  %v23_v60 = vld [vmem:[%s1363_s0 + $0x40] sm:$0xff]  ;;  %v24_v3 = vld [vmem:[%s1363_s0 + $0x48] sm:$0xff]  ;;  %v1093_v6 = vld [vmem:[%s1362_s1 + $0x170] sm:$0xff]  }
  0x16   :  { %959 = vmatprep.subr.bf16.mxu1 %v1054_v21  ;;  %v839_v61 = vcombine.high %v23_v60, %v23_v60  ;;  %v838_v63 = vcombine.low %v23_v60, %v23_v60  ;;  %v841_v4 = vcombine.high %v24_v3, %v24_v3  ;;  %v840_v5 = vcombine.low %v24_v3, %v24_v3  ;;  %v1094_v7 = vld [vmem:[%s1362_s1 + $0x1f0] sm:$0xff]   ;;  %v1097_v10 = vld [vmem:[%s1362_s1 + $0x178] sm:$0xff]  }
  0x17   :  { %v1095_v8 = vld [vmem:[%s1362_s1 + $0x130] sm:$0xff]   ;;  %v1098_v11 = vld [vmem:[%s1362_s1 + $0x1f8] sm:$0xff]  }
  0x18   :  { %932 = vmatpush3.bf16.msra.mxu0 %v1055_v22  ;;  %v1096_v9 = vld [vmem:[%s1362_s1 + $0x1b0] sm:$0xff]   ;;  %v1099_v12 = vld [vmem:[%s1362_s1 + $0x138] sm:$0xff]  }
  0x19   :  { %960 = vmatpush3.bf16.msra.mxu1 %v1056_v23  ;;  %933 = vmatprep.subr.bf16.mxu0 %v1057_v24  ;;  %v1100_v13 = vld [vmem:[%s1362_s1 + $0x1b8] sm:$0xff]   ;;  %v17_v14 = vld [vmem:[%s1363_s0 + $0x10] sm:$0xff] }
  0x1a   :  { %961 = vmatprep.subr.bf16.mxu1 %v1058_v25  ;;  %v21_v15 = vld [vmem:[%s1363_s0 + $0x30] sm:$0xff]  ;;  %v18_v16 = vld [vmem:[%s1363_s0 + $0x18] sm:$0xff] }
  0x1b   :  { %v834_v17 = vcombine.low %v17_v14, %v21_v15  ;;  %v835_v18 = vcombine.high %v17_v14, %v21_v15  ;;  %v22_v19 = vld [vmem:[%s1363_s0 + $0x38] sm:$0xff]  ;;  %v25_v20 = vld [vmem:[%s1363_s0 + $0x50] sm:$0xff] }
  0x1c   :  { %934 = vmatpush3.bf16.msra.mxu0 %v1059_v26  ;;  %v26_v21 = vld [vmem:[%s1363_s0 + $0x58] sm:$0xff]  ;;  %v836_v22 = vcombine.low %v18_v16, %v22_v19  ;;  %v837_v23 = vcombine.high %v18_v16, %v22_v19  ;;  %v843_v24 = vcombine.high %v25_v20, %v25_v20  ;;  %v842_v26 = vcombine.low %v25_v20, %v25_v20 }
  0x1d   :  { %962 = vmatpush3.bf16.msra.mxu1 %v1060_v27  ;;  %935 = vmatprep.subr.bf16.mxu0 %v1061_v28  ;;  %v845_v25 = vcombine.high %v26_v21, %v26_v21  ;;  %v844_v27 = vcombine.low %v26_v21, %v26_v21 }
  0x1e   :  { %963 = vmatprep.subr.bf16.mxu1 %v1062_v29 }
  0x20   :  { %936 = vmatpush3.bf16.msra.mxu0 %v1063_v30  ;;  %v829_v30 = vld [vmem:[%s1364_s2] ss:$0 sm:$0xff] }
  0x21   :  { %964 = vmatpush3.bf16.msra.mxu1 %v1064_v31  ;;  %977 = vmatprep.subr.bf16.mxu0 %v1065_v40 }
  0x22   :  { %1005 = vmatprep.subr.bf16.mxu1 %v1066_v41 }
  0x23   :  { %647 = vmatmul.mubr.bf16.vlgmr.msra.gmra.mrb[0].mxu0 %v830_v35 }
  0x24   :  { %695 = vmatmul.mubr.bf16.vlgmr.msra.gmra.mrb[0].mxu1 %v832_v38  ;;  %978 = vmatpush3.bf16.msra.mxu0 %v1067_v42 }
  0x25   :  { %1006 = vmatpush3.bf16.msra.mxu1 %v1068_v43  ;;  %979 = vmatprep.subr.bf16.mxu0 %v1069_v44 }
  0x26   :  { %1007 = vmatprep.subr.bf16.mxu1 %v1070_v45  ;;  %654 = vmatprep.mubr.bf16.mxu0 %v839_v61 }
  0x27   :  { %702 = vmatprep.mubr.bf16.mxu1 %v841_v4 }
  0x28   :  { %980 = vmatpush3.bf16.msra.mxu0 %v1071_v46 }
  0x29   :  { %1008 = vmatpush3.bf16.msra.mxu1 %v1072_v47  ;;  %981 = vmatprep.subr.bf16.mxu0 %v1073_v48 }
  0x2a   :  { %1009 = vmatprep.subr.bf16.mxu1 %v1074_v49 }
  0x2b   :  { %655 = vmatmul.mubr.bf16.gmra.mrb[4].mxu0 %v838_v63 }
  0x2c   :  { %982 = vmatpush3.bf16.msra.mxu0 %v1075_v50  ;;  %703 = vmatmul.mubr.bf16.gmra.mrb[4].mxu1 %v840_v5 }
  0x2d   :  { %1010 = vmatpush3.bf16.msra.mxu1 %v1076_v51  ;;  %983 = vmatprep.subr.bf16.mxu0 %v1077_v52 }
  0x2e   :  { %1011 = vmatprep.subr.bf16.mxu1 %v1078_v53  ;;  %742 = vmatprep.mubr.bf16.mxu0 %v835_v18 }
  0x2f   :  { %790 = vmatprep.mubr.bf16.mxu1 %v837_v23 }
  0x30   :  { %984 = vmatpush3.bf16.msra.mxu0 %v1079_v54 }
  0x31   :  { %1012 = vmatpush3.bf16.msra.mxu1 %v1080_v55  ;;  %985 = vmatprep.subr.bf16.mxu0 %v1081_v56 }
  0x32   :  { %1013 = vmatprep.subr.bf16.mxu1 %v1082_v57 }
  0x34   :  { %986 = vmatpush3.bf16.msra.mxu0 %v1083_v58 }
  0x35   :  { %1014 = vmatpush3.bf16.msra.mxu1 %v1084_v59  ;;  %987 = vmatprep.subr.bf16.mxu0 %v1086_v62 }
  0x36   :  { %1015 = vmatprep.subr.bf16.mxu1 %v1087_v0 }
  0x38   :  { %988 = vmatpush3.bf16.msra.mxu0 %v1089_v1 }
  0x39   :  { %1016 = vmatpush3.bf16.msra.mxu1 %v1090_v2  ;;  %989 = vmatprep.subr.bf16.mxu0 %v1093_v6 }
  0x3a   :  { %1017 = vmatprep.subr.bf16.mxu1 %v1094_v7 }
  0x3c   :  { %990 = vmatpush3.bf16.msra.mxu0 %v1095_v8 }
  0x3d   :  { %1018 = vmatpush3.bf16.msra.mxu1 %v1096_v9  ;;  %991 = vmatprep.subr.bf16.mxu0 %v1097_v10 }
  0x3e   :  { %1019 = vmatprep.subr.bf16.mxu1 %v1098_v11 }
  0x40   :  { %992 = vmatpush3.bf16.msra.mxu0 %v1099_v12 }
  0x41   :  { %1020 = vmatpush3.bf16.msra.mxu1 %v1100_v13 }
  0x43   :  { %743 = vmatmul.mubr.bf16.vlgmr.msra.gmra.mrb[8].mxu0 %v834_v17 }
  0x44   :  { %791 = vmatmul.mubr.bf16.vlgmr.msra.gmra.mrb[8].mxu1 %v836_v22  ;;  %750 = vmatprep.mubr.bf16.mxu0 %v843_v24 }
  0x45   :  { %798 = vmatprep.mubr.bf16.mxu1 %v845_v25 }
  0x4b   :  { %751 = vmatmul.mubr.bf16.gmra.mrb[12].mxu0 %v842_v26 }
  0x4c   :  { %799 = vmatmul.mubr.bf16.gmra.mrb[12].mxu1 %v844_v27 }
  0xf6   :  { %v937_v28 = vpop.f32.mrb[0].mxu0 }
  0xf7   :  { %v965_v29 = vpop.f32.mrb[0].mxu1  ;;  %v938_v31 = vpop.f32.mrb[1].mxu0 }
  0xf8   :  { %v939_v32 = vadd.f32 %v938_v31, %v937_v28  ;;  %v966_v33 = vpop.f32.mrb[1].mxu1  ;;  %v940_v34 = vpop.f32.mrb[2].mxu0 }
  0xf9   :  { %v967_v35 = vadd.f32 %v966_v33, %v965_v29  ;;  %v968_v36 = vpop.f32.mrb[2].mxu1  ;;  %v941_v37 = vpop.f32.mrb[3].mxu0 }
  0xfa   :  { %v649_v38 = vadd.f32 %v939_v32, %v829_v30  ;;  %v942_v39 = vadd.f32 %v941_v37, %v940_v34  ;;  %v969_v40 = vpop.f32.mrb[3].mxu1 }
  0xfb   :  { %v970_v41 = vadd.f32 %v969_v40, %v968_v36 }
  0xfc   :  { %v697_v42 = vadd.f32 %v967_v35, %v649_v38  ;;  %v652_v43 = vadd.f32 %v942_v39, %v829_v30 }
  0xfe   :  { %v700_v44 = vadd.f32 %v970_v41, %v652_v43  ;;  %v943_v45 = vpop.f32.mrb[4].mxu0 }
  0xff   :  { %v944_v46 = vpop.f32.mrb[5].mxu0  ;;  %v971_v51 = vpop.f32.mrb[4].mxu1 }
 0x100   :  { %v945_v47 = vadd.f32 %v944_v46, %v943_v45  ;;  %v946_v48 = vpop.f32.mrb[6].mxu0  ;;  %v972_v52 = vpop.f32.mrb[5].mxu1 }
 0x101   :  { %v947_v49 = vpop.f32.mrb[7].mxu0  ;;  %v973_v53 = vadd.f32 %v972_v52, %v971_v51  ;;  %v974_v54 = vpop.f32.mrb[6].mxu1 }
 0x102   :  { %v657_v50 = vadd.f32 %v945_v47, %v829_v30  ;;  %v975_v55 = vpop.f32.mrb[7].mxu1 }
 0x104   :  { %v705_v56 = vadd.f32 %v973_v53, %v657_v50 }
 0x116   :  { %v993_v57 = vpop.f32.mrb[8].mxu0 }
 0x117   :  { %v1021_v58 = vpop.f32.mrb[8].mxu1  ;;  %v994_v59 = vpop.f32.mrb[9].mxu0 }
 0x118   :  { %v995_v60 = vadd.f32 %v994_v59, %v993_v57  ;;  %v1022_v61 = vpop.f32.mrb[9].mxu1  ;;  %v996_v62 = vpop.f32.mrb[10].mxu0 }
 0x119   :  { %v1023_v63 = vadd.f32 %v1022_v61, %v1021_v58  ;;  %v1024_v0 = vpop.f32.mrb[10].mxu1  ;;  %v997_v1 = vpop.f32.mrb[11].mxu0 }
 0x11a   :  { %v745_v2 = vadd.f32 %v995_v60, %v697_v42  ;;  %v998_v3 = vadd.f32 %v997_v1, %v996_v62  ;;  %v1025_v4 = vpop.f32.mrb[11].mxu1 }
 0x11b   :  { %v1026_v5 = vadd.f32 %v1025_v4, %v1024_v0 }
 0x11c   :  { %v793_v6 = vadd.f32 %v1023_v63, %v745_v2  ;;  %v748_v7 = vadd.f32 %v998_v3, %v700_v44 }
 0x11e   :  { %v796_v8 = vadd.f32 %v1026_v5, %v748_v7  ;;  %v999_v9 = vpop.f32.mrb[12].mxu0  ;;  %v806_v12 = vmax.f32 %v793_v6, 0.0 }
 0x11f   :  { %v1027_v10 = vpop.f32.mrb[12].mxu1  ;;  %v1000_v11 = vpop.f32.mrb[13].mxu0 }
 0x120   :  { %v807_v13 = vmax.f32 %v796_v8, 0.0  ;;  %v1001_v14 = vadd.f32 %v1000_v11, %v999_v9  ;;  %v1028_v15 = vpop.f32.mrb[13].mxu1  ;;  %v1002_v16 = vpop.f32.mrb[14].mxu0 }
 0x121   :  { %v1029_v17 = vadd.f32 %v1028_v15, %v1027_v10  ;;  %v1030_v18 = vpop.f32.mrb[14].mxu1  ;;  %v1003_v19 = vpop.f32.mrb[15].mxu0 }
 0x122   :  { %v919_v20 = vpack.c.bf16 %v807_v13, %v806_v12  ;;  %v753_v21 = vadd.f32 %v1001_v14, %v705_v56  ;;  %v1031_v22 = vpop.f32.mrb[15].mxu1 }
 0x124   :  { %v801_v23 = vadd.f32 %v1029_v17, %v753_v21  ;;  %920 = vst [vmem:[%s1365_s3] sm:$0xff] %v919_v20  }
 0x126   :  { %v808_v24 = vmax.f32 %v801_v23, 0.0 }
 0x128   :  { %v915_v25 = vpack.c.bf16 %v808_v24, %v808_v24 }
 0x12a   :  { %824 = vst [vmem:[%s1365_s3 + $0x8] sm:$0xf] %v915_v25 }

// kernel: grad_con_vae_forward.14
= control target key start
LH: loop header
LB: loop body
LE: loop exit
PB: predicated region body
PF: predicated region fallthrough
CT: control target
= control target key end

     0   :  { %s5667_s1 = inlined_call_operand.vmem [shape: bf16[640,1280], index: 1, kind: input, shape index: {}]   ;;  %s5668_s0 = inlined_call_operand.vmem [shape: bf16[8,640], index: 0, kind: input, shape index: {}]   ;;  %s5669_s2 = inlined_call_operand.vmem [shape: f32[1,1280], index: 2, kind: input, shape index: {}]   ;;  %s5670_s4 = inlined_call_operand.vmem [shape: f32[8,640], index: 4, kind: output, shape index: {0}]   ;;  %s5671_s5 = inlined_call_operand.vmem [shape: f32[8,640], index: 5, kind: output, shape index: {1}]   ;;  %s5672_s3 = inlined_call_operand.vmem [shape: f32[8,640], index: 3, kind: input, shape index: {}]   ;;  %s5673_s6 = inlined_call_operand.vmem [shape: bf16[8,640], index: 6, kind: output, shape index: {2}]  }
   0x1   :  { %v3647_v0 = vld [vmem:[%s5667_s1 + $0x4] ss:$40 sps:$4 sm:$0xff]   ;;  %v3651_v2 = vld [vmem:[%s5667_s1] ss:$40 sps:$4 sm:$0xff]   ;;  %v3653_v4 = vld [vmem:[%s5667_s1 + $0x54] ss:$40 sps:$4 sm:$0xff]  }
   0x2   :  { %v3649_v1 = vld [vmem:[%s5667_s1 + $0x504] ss:$40 sps:$4 sm:$0xff]   ;;  %2496 = vmatprep.subr.bf16.mxu1 %v3647_v0  ;;  %v3652_v3 = vld [vmem:[%s5667_s1 + $0x500] ss:$40 sps:$4 sm:$0xff]   ;;  %v3655_v5 = vld [vmem:[%s5667_s1 + $0x554] ss:$40 sps:$4 sm:$0xff]  }
   0x3   :  { %2537 = vmatprep.subr.bf16.mxu0 %v3649_v1  ;;  %2497 = vmatpush1.bf16.msra.mxu1 %v3651_v2  ;;  %v3657_v6 = vld [vmem:[%s5667_s1 + $0x50] ss:$40 sps:$4 sm:$0xff]   ;;  %v3659_v8 = vld [vmem:[%s5667_s1 + $0xa4] ss:$40 sps:$4 sm:$0xff]   ;;  %v3663_v10 = vld [vmem:[%s5667_s1 + $0xa0] ss:$40 sps:$4 sm:$0xff]  }
   0x4   :  { %2538 = vmatpush1.bf16.msra.mxu0 %v3652_v3  ;;  %2498 = vmatprep.subr.bf16.mxu1 %v3653_v4  ;;  %v3658_v7 = vld [vmem:[%s5667_s1 + $0x550] ss:$40 sps:$4 sm:$0xff]   ;;  %v3661_v9 = vld [vmem:[%s5667_s1 + $0x5a4] ss:$40 sps:$4 sm:$0xff]   ;;  %v3664_v11 = vld [vmem:[%s5667_s1 + $0x5a0] ss:$40 sps:$4 sm:$0xff]  }
   0x5   :  { %2539 = vmatprep.subr.bf16.mxu0 %v3655_v5  ;;  %v3665_v12 = vld [vmem:[%s5667_s1 + $0xf4] ss:$40 sps:$4 sm:$0xff]   ;;  %v3669_v14 = vld [vmem:[%s5667_s1 + $0xf0] ss:$40 sps:$4 sm:$0xff]   ;;  %v3671_v16 = vld [vmem:[%s5667_s1 + $0x144] ss:$40 sps:$4 sm:$0xff]  }
   0x6   :  { %v3667_v13 = vld [vmem:[%s5667_s1 + $0x5f4] ss:$40 sps:$4 sm:$0xff]   ;;  %v3670_v15 = vld [vmem:[%s5667_s1 + $0x5f0] ss:$40 sps:$4 sm:$0xff]   ;;  %v3673_v17 = vld [vmem:[%s5667_s1 + $0x644] ss:$40 sps:$4 sm:$0xff]  }
   0x7   :  { %2499 = vmatpush1.bf16.msra.mxu1 %v3657_v6  ;;  %v3675_v18 = vld [vmem:[%s5667_s1 + $0x140] ss:$40 sps:$4 sm:$0xff]   ;;  %v3677_v20 = vld [vmem:[%s5667_s1 + $0x194] ss:$40 sps:$4 sm:$0xff]   ;;  %v3681_v22 = vld [vmem:[%s5667_s1 + $0x190] ss:$40 sps:$4 sm:$0xff]  }
   0x8   :  { %2540 = vmatpush1.bf16.msra.mxu0 %v3658_v7  ;;  %2500 = vmatprep.subr.bf16.mxu1 %v3659_v8  ;;  %v3676_v19 = vld [vmem:[%s5667_s1 + $0x640] ss:$40 sps:$4 sm:$0xff]   ;;  %v3679_v21 = vld [vmem:[%s5667_s1 + $0x694] ss:$40 sps:$4 sm:$0xff]   ;;  %v3682_v23 = vld [vmem:[%s5667_s1 + $0x690] ss:$40 sps:$4 sm:$0xff]  }
   0x9   :  { %2541 = vmatprep.subr.bf16.mxu0 %v3661_v9  ;;  %v3683_v24 = vld [vmem:[%s5667_s1 + $0x1e4] ss:$40 sps:$4 sm:$0xff]   ;;  %v3687_v26 = vld [vmem:[%s5667_s1 + $0x1e0] ss:$40 sps:$4 sm:$0xff]   ;;  %v3689_v28 = vld [vmem:[%s5667_s1 + $0x234] ss:$40 sps:$4 sm:$0xff]  }
   0xa   :  { %v3685_v25 = vld [vmem:[%s5667_s1 + $0x6e4] ss:$40 sps:$4 sm:$0xff]   ;;  %v3688_v27 = vld [vmem:[%s5667_s1 + $0x6e0] ss:$40 sps:$4 sm:$0xff]   ;;  %v3691_v29 = vld [vmem:[%s5667_s1 + $0x734] ss:$40 sps:$4 sm:$0xff]  }
   0xb   :  { %2501 = vmatpush1.bf16.msra.mxu1 %v3663_v10  ;;  %v3693_v30 = vld [vmem:[%s5667_s1 + $0x230] ss:$40 sps:$4 sm:$0xff]   ;;  %v3695_v32 = vld [vmem:[%s5667_s1 + $0x284] ss:$40 sps:$4 sm:$0xff]   ;;  %v3699_v34 = vld [vmem:[%s5667_s1 + $0x280] ss:$40 sps:$4 sm:$0xff]  }
   0xc   :  { %2542 = vmatpush1.bf16.msra.mxu0 %v3664_v11  ;;  %2502 = vmatprep.subr.bf16.mxu1 %v3665_v12  ;;  %v3694_v31 = vld [vmem:[%s5667_s1 + $0x730] ss:$40 sps:$4 sm:$0xff]   ;;  %v3697_v33 = vld [vmem:[%s5667_s1 + $0x784] ss:$40 sps:$4 sm:$0xff]   ;;  %v3700_v35 = vld [vmem:[%s5667_s1 + $0x780] ss:$40 sps:$4 sm:$0xff]  }
   0xd   :  { %2543 = vmatprep.subr.bf16.mxu0 %v3667_v13  ;;  %v3701_v36 = vld [vmem:[%s5667_s1 + $0x2d4] ss:$40 sps:$4 sm:$0xff]   ;;  %v3705_v38 = vld [vmem:[%s5667_s1 + $0x2d0] ss:$40 sps:$4 sm:$0xff]   ;;  %v3707_v40 = vld [vmem:[%s5667_s1 + $0x324] ss:$40 sps:$4 sm:$0xff]  }
   0xe   :  { %v3703_v37 = vld [vmem:[%s5667_s1 + $0x7d4] ss:$40 sps:$4 sm:$0xff]   ;;  %v3706_v39 = vld [vmem:[%s5667_s1 + $0x7d0] ss:$40 sps:$4 sm:$0xff]   ;;  %v3709_v41 = vld [vmem:[%s5667_s1 + $0x824] ss:$40 sps:$4 sm:$0xff]  }
   0xf   :  { %2503 = vmatpush1.bf16.msra.mxu1 %v3669_v14  ;;  %v3711_v42 = vld [vmem:[%s5667_s1 + $0x320] ss:$40 sps:$4 sm:$0xff]   ;;  %v3713_v44 = vld [vmem:[%s5667_s1 + $0x374] ss:$40 sps:$4 sm:$0xff]   ;;  %v3717_v49 = vld [vmem:[%s5667_s1 + $0x370] ss:$40 sps:$4 sm:$0xff]  }
  0x10   :  { %2544 = vmatpush1.bf16.msra.mxu0 %v3670_v15  ;;  %2504 = vmatprep.subr.bf16.mxu1 %v3671_v16  ;;  %v3712_v43 = vld [vmem:[%s5667_s1 + $0x820] ss:$40 sps:$4 sm:$0xff]   ;;  %v3715_v45 = vld [vmem:[%s5667_s1 + $0x874] ss:$40 sps:$4 sm:$0xff]   ;;  %v3718_v50 = vld [vmem:[%s5667_s1 + $0x870] ss:$40 sps:$4 sm:$0xff]  }
  0x11   :  { %2545 = vmatprep.subr.bf16.mxu0 %v3673_v17  ;;  %v21_v46 = vld [vmem:[%s5668_s0] sm:$0xff]  ;;  %v22_v48 = vld [vmem:[%s5668_s0 + $0x8] sm:$0xff]  ;;  %v3725_v56 = vld [vmem:[%s5667_s1 + $0x414] ss:$40 sps:$4 sm:$0xff]   ;;  %v4263_v16 = vmov 0  }
  0x12   :  { %v4440_v47 = vcombine.high %v21_v46, %v21_v46  ;;  %v4451_v51 = vcombine.high %v22_v48, %v22_v48  ;;  %v3719_v52 = vld [vmem:[%s5667_s1 + $0x3c4] ss:$40 sps:$4 sm:$0xff]   ;;  %v3723_v54 = vld [vmem:[%s5667_s1 + $0x3c0] ss:$40 sps:$4 sm:$0xff]   ;;  %v3727_v57 = vld [vmem:[%s5667_s1 + $0x914] ss:$40 sps:$4 sm:$0xff]   ;;  %v4512_v7 = vcombine.low %v21_v46, %v21_v46  ;;  %v4514_v8 = vcombine.low %v22_v48, %v22_v48 }
  0x13   :  { %2505 = vmatpush1.bf16.msra.mxu1 %v3675_v18  ;;  %v3721_v53 = vld [vmem:[%s5667_s1 + $0x8c4] ss:$40 sps:$4 sm:$0xff]   ;;  %v3724_v55 = vld [vmem:[%s5667_s1 + $0x8c0] ss:$40 sps:$4 sm:$0xff]   ;;  %v3729_v58 = vld [vmem:[%s5667_s1 + $0x410] ss:$40 sps:$4 sm:$0xff]  }
  0x14   :  { %2546 = vmatpush1.bf16.msra.mxu0 %v3676_v19  ;;  %2506 = vmatprep.subr.bf16.mxu1 %v3677_v20  ;;  %v3730_v59 = vld [vmem:[%s5667_s1 + $0x910] ss:$40 sps:$4 sm:$0xff]   ;;  %v3731_v60 = vld [vmem:[%s5667_s1 + $0x464] ss:$40 sps:$4 sm:$0xff]   ;;  %v3735_v62 = vld [vmem:[%s5667_s1 + $0x460] ss:$40 sps:$4 sm:$0xff]  }
  0x15   :  { %2547 = vmatprep.subr.bf16.mxu0 %v3679_v21  ;;  %2528 = vmatprep.mubr.bf16.mxu1 %v4440_v47  ;;  %v3733_v61 = vld [vmem:[%s5667_s1 + $0x964] ss:$40 sps:$4 sm:$0xff]   ;;  %v3736_v63 = vld [vmem:[%s5667_s1 + $0x960] ss:$40 sps:$4 sm:$0xff]   ;;  %v3737_v0 = vld [vmem:[%s5667_s1 + $0x4b4] ss:$40 sps:$4 sm:$0xff]  }
  0x16   :  { %2569 = vmatprep.mubr.bf16.mxu0 %v4451_v51  ;;  %v3739_v1 = vld [vmem:[%s5667_s1 + $0x9b4] ss:$40 sps:$4 sm:$0xff]   ;;  %v3741_v2 = vld [vmem:[%s5667_s1 + $0x4b0] ss:$40 sps:$4 sm:$0xff]   ;;  %v3747_v4 = vld [vmem:[%s5667_s1 + $0xa04] ss:$40 sps:$4 sm:$0xff]  }
  0x17   :  { %2507 = vmatpush1.bf16.msra.mxu1 %v3681_v22  ;;  %v3742_v3 = vld [vmem:[%s5667_s1 + $0x9b0] ss:$40 sps:$4 sm:$0xff]   ;;  %v3750_v5 = vld [vmem:[%s5667_s1 + $0xc] ss:$40 sps:$4 sm:$0xff]   ;;  %v3745_v6 = vld [vmem:[%s5667_s1 + $0xa00] ss:$40 sps:$4 sm:$0xff]  }
  0x18   :  { %2548 = vmatpush1.bf16.msra.mxu0 %v3682_v23  ;;  %2508 = vmatprep.subr.bf16.mxu1 %v3683_v24  ;;  %v3748_v9 = vld [vmem:[%s5667_s1 + $0x8] ss:$40 sps:$4 sm:$0xff]   ;;  %v3755_v10 = vld [vmem:[%s5667_s1 + $0xa54] ss:$40 sps:$4 sm:$0xff]   ;;  %v3756_v13 = vld [vmem:[%s5667_s1 + $0x58] ss:$40 sps:$4 sm:$0xff]  }
  0x19   :  { %2549 = vmatprep.subr.bf16.mxu0 %v3685_v25  ;;  %v3758_v11 = vld [vmem:[%s5667_s1 + $0x5c] ss:$40 sps:$4 sm:$0xff]   ;;  %v3753_v12 = vld [vmem:[%s5667_s1 + $0xa50] ss:$40 sps:$4 sm:$0xff]   ;;  %v3764_v15 = vld [vmem:[%s5667_s1 + $0xac] ss:$40 sps:$4 sm:$0xff]  }
  0x1a   :  { %v3761_v14 = vld [vmem:[%s5667_s1 + $0xaa4] ss:$40 sps:$4 sm:$0xff]   ;;  %v3759_v17 = vld [vmem:[%s5667_s1 + $0xaa0] ss:$40 sps:$4 sm:$0xff]   ;;  %v3767_v19 = vld [vmem:[%s5667_s1 + $0xaf4] ss:$40 sps:$4 sm:$0xff]  }
  0x1b   :  { %2509 = vmatpush1.bf16.msra.mxu1 %v3687_v26  ;;  %v3762_v18 = vld [vmem:[%s5667_s1 + $0xa8] ss:$40 sps:$4 sm:$0xff]   ;;  %v3770_v20 = vld [vmem:[%s5667_s1 + $0xfc] ss:$40 sps:$4 sm:$0xff]   ;;  %v3768_v22 = vld [vmem:[%s5667_s1 + $0xf8] ss:$40 sps:$4 sm:$0xff]  }
  0x1c   :  { %2550 = vmatpush1.bf16.msra.mxu0 %v3688_v27  ;;  %2510 = vmatprep.subr.bf16.mxu1 %v3689_v28  ;;  %v3765_v21 = vld [vmem:[%s5667_s1 + $0xaf0] ss:$40 sps:$4 sm:$0xff]   ;;  %v3773_v23 = vld [vmem:[%s5667_s1 + $0xb44] ss:$40 sps:$4 sm:$0xff]   ;;  %v3771_v25 = vld [vmem:[%s5667_s1 + $0xb40] ss:$40 sps:$4 sm:$0xff]  }
  0x1d   :  { %2551 = vmatprep.subr.bf16.mxu0 %v3691_v29  ;;  %v3776_v24 = vld [vmem:[%s5667_s1 + $0x14c] ss:$40 sps:$4 sm:$0xff]   ;;  %v3774_v26 = vld [vmem:[%s5667_s1 + $0x148] ss:$40 sps:$4 sm:$0xff]   ;;  %v3782_v28 = vld [vmem:[%s5667_s1 + $0x19c] ss:$40 sps:$4 sm:$0xff]  }
  0x1e   :  { %v3779_v27 = vld [vmem:[%s5667_s1 + $0xb94] ss:$40 sps:$4 sm:$0xff]   ;;  %v3777_v29 = vld [vmem:[%s5667_s1 + $0xb90] ss:$40 sps:$4 sm:$0xff]   ;;  %v3805_v48 = vld [vmem:[%s5667_s1 + $0x60] ss:$40 sps:$4 sm:$0xff]  }
  0x1f   :  { %2511 = vmatpush1.bf16.msra.mxu1 %v3693_v30  ;;  %v3780_v30 = vld [vmem:[%s5667_s1 + $0x198] ss:$40 sps:$4 sm:$0xff]  }
  0x20   :  { %2552 = vmatpush1.bf16.msra.mxu0 %v3694_v31  ;;  %2512 = vmatprep.subr.bf16.mxu1 %v3695_v32  ;;  %v3785_v31 = vld [vmem:[%s5667_s1 + $0xbe4] ss:$40 sps:$4 sm:$0xff]   ;;  %v3802_v46 = vld [vmem:[%s5667_s1 + $0x2d8] ss:$40 sps:$4 sm:$0xff]  }
  0x21   :  { %2553 = vmatprep.subr.bf16.mxu0 %v3697_v33  ;;  %v3788_v32 = vld [vmem:[%s5667_s1 + $0x1ec] ss:$40 sps:$4 sm:$0xff]   ;;  %v3783_v33 = vld [vmem:[%s5667_s1 + $0xbe0] ss:$40 sps:$4 sm:$0xff]  }
  0x23   :  { %2513 = vmatpush1.bf16.msra.mxu1 %v3699_v34  ;;  %v3786_v34 = vld [vmem:[%s5667_s1 + $0x1e8] ss:$40 sps:$4 sm:$0xff]  }
  0x24   :  { %2554 = vmatpush1.bf16.msra.mxu0 %v3700_v35  ;;  %2514 = vmatprep.subr.bf16.mxu1 %v3701_v36  ;;  %v3791_v35 = vld [vmem:[%s5667_s1 + $0xc34] ss:$40 sps:$4 sm:$0xff]  }
  0x25   :  { %2555 = vmatprep.subr.bf16.mxu0 %v3703_v37  ;;  %v3794_v36 = vld [vmem:[%s5667_s1 + $0x23c] ss:$40 sps:$4 sm:$0xff]   ;;  %v3789_v37 = vld [vmem:[%s5667_s1 + $0xc30] ss:$40 sps:$4 sm:$0xff]  }
  0x27   :  { %2515 = vmatpush1.bf16.msra.mxu1 %v3705_v38  ;;  %v3792_v38 = vld [vmem:[%s5667_s1 + $0x238] ss:$40 sps:$4 sm:$0xff]  }
  0x28   :  { %2556 = vmatpush1.bf16.msra.mxu0 %v3706_v39  ;;  %2516 = vmatprep.subr.bf16.mxu1 %v3707_v40  ;;  %v3798_v39 = vld [vmem:[%s5667_s1 + $0x28c] ss:$40 sps:$4 sm:$0xff]  }
  0x29   :  { %2557 = vmatprep.subr.bf16.mxu0 %v3709_v41  ;;  %v3801_v40 = vld [vmem:[%s5667_s1 + $0x14] ss:$40 sps:$4 sm:$0xff]   ;;  %v4616_v41 = vld [vmem:[%s5668_s0 + $0x10] ss:$0 sps:$4 sm:$0xff]  }
  0x2b   :  { %2517 = vmatpush1.bf16.msra.mxu1 %v3711_v42  ;;  %v3796_v42 = vld [vmem:[%s5667_s1 + $0x288] ss:$40 sps:$4 sm:$0xff]  }
  0x2c   :  { %2558 = vmatpush1.bf16.msra.mxu0 %v3712_v43  ;;  %2518 = vmatprep.subr.bf16.mxu1 %v3713_v44  ;;  %v3799_v43 = vld [vmem:[%s5667_s1 + $0x10] ss:$40 sps:$4 sm:$0xff]   ;;  %v3804_v44 = vld [vmem:[%s5667_s1 + $0x2dc] ss:$40 sps:$4 sm:$0xff]  }
  0x2d   :  { %2559 = vmatprep.subr.bf16.mxu0 %v3715_v45  ;;  %v3807_v45 = vld [vmem:[%s5667_s1 + $0x64] ss:$40 sps:$4 sm:$0xff]  }
  0x2f   :  { %2519 = vmatpush1.bf16.msra.mxu1 %v3717_v49  ;;  %v3810_v49 = vld [vmem:[%s5667_s1 + $0x32c] ss:$40 sps:$4 sm:$0xff]  }
  0x30   :  { %2560 = vmatpush1.bf16.msra.mxu0 %v3718_v50  ;;  %2520 = vmatprep.subr.bf16.mxu1 %v3719_v52  ;;  %v3813_v50 = vld [vmem:[%s5667_s1 + $0xb4] ss:$40 sps:$4 sm:$0xff]   ;;  %v3808_v52 = vld [vmem:[%s5667_s1 + $0x328] ss:$40 sps:$4 sm:$0xff]  }
  0x31   :  { %2561 = vmatprep.subr.bf16.mxu0 %v3721_v53  ;;  %v3811_v53 = vld [vmem:[%s5667_s1 + $0xb0] ss:$40 sps:$4 sm:$0xff]  }
  0x33   :  { %2521 = vmatpush1.bf16.msra.mxu1 %v3723_v54  ;;  %v3816_v54 = vld [vmem:[%s5667_s1 + $0x37c] ss:$40 sps:$4 sm:$0xff]  }
  0x34   :  { %2562 = vmatpush1.bf16.msra.mxu0 %v3724_v55  ;;  %2522 = vmatprep.subr.bf16.mxu1 %v3725_v56  ;;  %v3819_v55 = vld [vmem:[%s5667_s1 + $0x104] ss:$40 sps:$4 sm:$0xff]   ;;  %v3814_v56 = vld [vmem:[%s5667_s1 + $0x378] ss:$40 sps:$4 sm:$0xff]  }
  0x35   :  { %2563 = vmatprep.subr.bf16.mxu0 %v3727_v57  ;;  %v3817_v57 = vld [vmem:[%s5667_s1 + $0x100] ss:$40 sps:$4 sm:$0xff]  }
  0x37   :  { %2523 = vmatpush1.bf16.msra.mxu1 %v3729_v58  ;;  %v3822_v58 = vld [vmem:[%s5667_s1 + $0x3cc] ss:$40 sps:$4 sm:$0xff]  }
  0x38   :  { %2564 = vmatpush1.bf16.msra.mxu0 %v3730_v59  ;;  %2524 = vmatprep.subr.bf16.mxu1 %v3731_v60  ;;  %v3825_v59 = vld [vmem:[%s5667_s1 + $0x154] ss:$40 sps:$4 sm:$0xff]   ;;  %v3820_v60 = vld [vmem:[%s5667_s1 + $0x3c8] ss:$40 sps:$4 sm:$0xff]  }
  0x39   :  { %2565 = vmatprep.subr.bf16.mxu0 %v3733_v61  ;;  %v3823_v61 = vld [vmem:[%s5667_s1 + $0x150] ss:$40 sps:$4 sm:$0xff]  }
  0x3b   :  { %2525 = vmatpush1.bf16.msra.mxu1 %v3735_v62  ;;  %v3828_v62 = vld [vmem:[%s5667_s1 + $0x41c] ss:$40 sps:$4 sm:$0xff]  }
  0x3c   :  { %2566 = vmatpush1.bf16.msra.mxu0 %v3736_v63  ;;  %2526 = vmatprep.subr.bf16.mxu1 %v3737_v0  ;;  %v3831_v63 = vld [vmem:[%s5667_s1 + $0x1a4] ss:$40 sps:$4 sm:$0xff]   ;;  %v3826_v0 = vld [vmem:[%s5667_s1 + $0x418] ss:$40 sps:$4 sm:$0xff]  }
  0x3d   :  { %2567 = vmatprep.subr.bf16.mxu0 %v3739_v1  ;;  %v3829_v1 = vld [vmem:[%s5667_s1 + $0x1a0] ss:$40 sps:$4 sm:$0xff]  }
  0x3f   :  { %2527 = vmatpush1.bf16.msra.mxu1 %v3741_v2  ;;  %v3834_v2 = vld [vmem:[%s5667_s1 + $0x46c] ss:$40 sps:$4 sm:$0xff]  }
  0x40   :  { %2568 = vmatpush1.bf16.msra.mxu0 %v3742_v3  ;;  %2619 = vmatprep.subr.bf16.mxu1 %v3750_v5  ;;  %v3837_v3 = vld [vmem:[%s5667_s1 + $0x1f4] ss:$40 sps:$4 sm:$0xff]   ;;  %v3835_v5 = vld [vmem:[%s5667_s1 + $0x1f0] ss:$40 sps:$4 sm:$0xff]  }
  0x41   :  { %2578 = vmatprep.subr.bf16.mxu0 %v3747_v4  ;;  %v3832_v4 = vld [vmem:[%s5667_s1 + $0x468] ss:$40 sps:$4 sm:$0xff]  }
  0x42   :  { %2529 = vmatmul.mubr.bf16.vlgmr.msra.gmra.mrb[0].mxu1 %v4512_v7 }
  0x43   :  { %2570 = vmatmul.mubr.bf16.vlgmr.msra.gmra.mrb[0].mxu0 %v4514_v8  ;;  %2620 = vmatpush1.bf16.msra.mxu1 %v3748_v9  ;;  %v3843_v9 = vld [vmem:[%s5667_s1 + $0x244] ss:$40 sps:$4 sm:$0xff]  }
  0x44   :  { %2579 = vmatpush1.bf16.msra.mxu0 %v3745_v6  ;;  %2621 = vmatprep.subr.bf16.mxu1 %v3758_v11  ;;  %v3840_v6 = vld [vmem:[%s5667_s1 + $0x4bc] ss:$40 sps:$4 sm:$0xff]   ;;  %v3841_v11 = vld [vmem:[%s5667_s1 + $0x240] ss:$40 sps:$4 sm:$0xff]  }
  0x45   :  { %2580 = vmatprep.subr.bf16.mxu0 %v3755_v10  ;;  %2610 = vmatprep.mubr.bf16.mxu0 %v4263_v16  ;;  %v3838_v10 = vld [vmem:[%s5667_s1 + $0x4b8] ss:$40 sps:$4 sm:$0xff]  }
  0x46   :  { %2651 = vmatprep.mubr.bf16.mxu1 %v4440_v47 }
  0x47   :  { %2622 = vmatpush1.bf16.msra.mxu1 %v3756_v13  ;;  %v3849_v13 = vld [vmem:[%s5667_s1 + $0x294] ss:$40 sps:$4 sm:$0xff]  }
  0x48   :  { %2581 = vmatpush1.bf16.msra.mxu0 %v3753_v12  ;;  %2623 = vmatprep.subr.bf16.mxu1 %v3764_v15  ;;  %v3846_v12 = vld [vmem:[%s5667_s1 + $0x50c] ss:$40 sps:$4 sm:$0xff]   ;;  %v3847_v15 = vld [vmem:[%s5667_s1 + $0x290] ss:$40 sps:$4 sm:$0xff]  }
  0x49   :  { %2582 = vmatprep.subr.bf16.mxu0 %v3761_v14  ;;  %v3844_v14 = vld [vmem:[%s5667_s1 + $0x508] ss:$40 sps:$4 sm:$0xff]  }
  0x4b   :  { %2624 = vmatpush1.bf16.msra.mxu1 %v3762_v18  ;;  %v3855_v18 = vld [vmem:[%s5667_s1 + $0x2e4] ss:$40 sps:$4 sm:$0xff]  }
  0x4c   :  { %2583 = vmatpush1.bf16.msra.mxu0 %v3759_v17  ;;  %2625 = vmatprep.subr.bf16.mxu1 %v3770_v20  ;;  %v3852_v17 = vld [vmem:[%s5667_s1 + $0x55c] ss:$40 sps:$4 sm:$0xff]   ;;  %v3853_v20 = vld [vmem:[%s5667_s1 + $0x2e0] ss:$40 sps:$4 sm:$0xff]  }
  0x4d   :  { %2584 = vmatprep.subr.bf16.mxu0 %v3767_v19  ;;  %v3850_v19 = vld [vmem:[%s5667_s1 + $0x558] ss:$40 sps:$4 sm:$0xff]  }
  0x4f   :  { %2626 = vmatpush1.bf16.msra.mxu1 %v3768_v22  ;;  %v3861_v22 = vld [vmem:[%s5667_s1 + $0x334] ss:$40 sps:$4 sm:$0xff]  }
  0x50   :  { %2585 = vmatpush1.bf16.msra.mxu0 %v3765_v21  ;;  %2627 = vmatprep.subr.bf16.mxu1 %v3776_v24  ;;  %v3858_v21 = vld [vmem:[%s5667_s1 + $0x5ac] ss:$40 sps:$4 sm:$0xff]   ;;  %v3859_v24 = vld [vmem:[%s5667_s1 + $0x330] ss:$40 sps:$4 sm:$0xff]  }
  0x51   :  { %2586 = vmatprep.subr.bf16.mxu0 %v3773_v23  ;;  %v3856_v23 = vld [vmem:[%s5667_s1 + $0x5a8] ss:$40 sps:$4 sm:$0xff]  }
  0x53   :  { %2628 = vmatpush1.bf16.msra.mxu1 %v3774_v26  ;;  %v3867_v26 = vld [vmem:[%s5667_s1 + $0x384] ss:$40 sps:$4 sm:$0xff]  }
  0x54   :  { %2587 = vmatpush1.bf16.msra.mxu0 %v3771_v25  ;;  %2629 = vmatprep.subr.bf16.mxu1 %v3782_v28  ;;  %v3864_v25 = vld [vmem:[%s5667_s1 + $0x5fc] ss:$40 sps:$4 sm:$0xff]   ;;  %v3865_v28 = vld [vmem:[%s5667_s1 + $0x380] ss:$40 sps:$4 sm:$0xff]  }
  0x55   :  { %2588 = vmatprep.subr.bf16.mxu0 %v3779_v27  ;;  %v3862_v27 = vld [vmem:[%s5667_s1 + $0x5f8] ss:$40 sps:$4 sm:$0xff]  }
  0x57   :  { %2630 = vmatpush1.bf16.msra.mxu1 %v3780_v30  ;;  %v3873_v30 = vld [vmem:[%s5667_s1 + $0x3d4] ss:$40 sps:$4 sm:$0xff]  }
  0x58   :  { %2589 = vmatpush1.bf16.msra.mxu0 %v3777_v29  ;;  %2631 = vmatprep.subr.bf16.mxu1 %v3788_v32  ;;  %v3870_v29 = vld [vmem:[%s5667_s1 + $0x64c] ss:$40 sps:$4 sm:$0xff]   ;;  %v3871_v32 = vld [vmem:[%s5667_s1 + $0x3d0] ss:$40 sps:$4 sm:$0xff]  }
  0x59   :  { %2590 = vmatprep.subr.bf16.mxu0 %v3785_v31  ;;  %v3868_v31 = vld [vmem:[%s5667_s1 + $0x648] ss:$40 sps:$4 sm:$0xff]  }
  0x5b   :  { %2632 = vmatpush1.bf16.msra.mxu1 %v3786_v34  ;;  %v3879_v34 = vld [vmem:[%s5667_s1 + $0x424] ss:$40 sps:$4 sm:$0xff]  }
  0x5c   :  { %2591 = vmatpush1.bf16.msra.mxu0 %v3783_v33  ;;  %2633 = vmatprep.subr.bf16.mxu1 %v3794_v36  ;;  %v3876_v33 = vld [vmem:[%s5667_s1 + $0x69c] ss:$40 sps:$4 sm:$0xff]   ;;  %v3877_v36 = vld [vmem:[%s5667_s1 + $0x420] ss:$40 sps:$4 sm:$0xff]  }
  0x5d   :  { %2592 = vmatprep.subr.bf16.mxu0 %v3791_v35  ;;  %v3874_v35 = vld [vmem:[%s5667_s1 + $0x698] ss:$40 sps:$4 sm:$0xff]  }
  0x5f   :  { %2634 = vmatpush1.bf16.msra.mxu1 %v3792_v38  ;;  %v3885_v38 = vld [vmem:[%s5667_s1 + $0x474] ss:$40 sps:$4 sm:$0xff]  }
  0x60   :  { %2593 = vmatpush1.bf16.msra.mxu0 %v3789_v37  ;;  %2635 = vmatprep.subr.bf16.mxu1 %v3798_v39  ;;  %v3882_v37 = vld [vmem:[%s5667_s1 + $0x6ec] ss:$40 sps:$4 sm:$0xff]   ;;  %v3880_v39 = vld [vmem:[%s5667_s1 + $0x6e8] ss:$40 sps:$4 sm:$0xff]  }
  0x61   :  { %2742 = vmatprep.subr.bf16.mxu0 %v3801_v40  ;;  %v3883_v40 = vld [vmem:[%s5667_s1 + $0x470] ss:$40 sps:$4 sm:$0xff]  }
  0x63   :  { %2611 = vmatmul.mubr.bf16.vlgmr.msra.gmra.mrb[0].mxu0 %v4616_v41  ;;  %2636 = vmatpush1.bf16.msra.mxu1 %v3796_v42  ;;  %v3888_v42 = vld [vmem:[%s5667_s1 + $0x73c] ss:$40 sps:$4 sm:$0xff]  }
  0x64   :  { %2743 = vmatpush1.bf16.msra.mxu0 %v3799_v43  ;;  %2637 = vmatprep.subr.bf16.mxu1 %v3804_v44  ;;  %v3891_v43 = vld [vmem:[%s5667_s1 + $0x4c4] ss:$40 sps:$4 sm:$0xff]   ;;  %v3886_v44 = vld [vmem:[%s5667_s1 + $0x738] ss:$40 sps:$4 sm:$0xff]  }
  0x65   :  { %2744 = vmatprep.subr.bf16.mxu0 %v3807_v45  ;;  %2774 = vmatprep.mubr.bf16.mxu0 %v4440_v47  ;;  %v3889_v45 = vld [vmem:[%s5667_s1 + $0x4c0] ss:$40 sps:$4 sm:$0xff]  }
  0x67   :  { %2638 = vmatpush1.bf16.msra.mxu1 %v3802_v46  ;;  %v3894_v46 = vld [vmem:[%s5667_s1 + $0x78c] ss:$40 sps:$4 sm:$0xff]  }
  0x68   :  { %2745 = vmatpush1.bf16.msra.mxu0 %v3805_v48  ;;  %2639 = vmatprep.subr.bf16.mxu1 %v3810_v49  ;;  %v3897_v48 = vld [vmem:[%s5667_s1 + $0x514] ss:$40 sps:$4 sm:$0xff]   ;;  %v3892_v49 = vld [vmem:[%s5667_s1 + $0x788] ss:$40 sps:$4 sm:$0xff]  }
  0x69   :  { %2746 = vmatprep.subr.bf16.mxu0 %v3813_v50  ;;  %v3895_v50 = vld [vmem:[%s5667_s1 + $0x510] ss:$40 sps:$4 sm:$0xff]  }
  0x6b   :  { %2640 = vmatpush1.bf16.msra.mxu1 %v3808_v52  ;;  %v3900_v52 = vld [vmem:[%s5667_s1 + $0x7dc] ss:$40 sps:$4 sm:$0xff]  }
  0x6c   :  { %2747 = vmatpush1.bf16.msra.mxu0 %v3811_v53  ;;  %2641 = vmatprep.subr.bf16.mxu1 %v3816_v54  ;;  %v3903_v53 = vld [vmem:[%s5667_s1 + $0x564] ss:$40 sps:$4 sm:$0xff]   ;;  %v3898_v54 = vld [vmem:[%s5667_s1 + $0x7d8] ss:$40 sps:$4 sm:$0xff]  }
  0x6d   :  { %2748 = vmatprep.subr.bf16.mxu0 %v3819_v55  ;;  %v3901_v55 = vld [vmem:[%s5667_s1 + $0x560] ss:$40 sps:$4 sm:$0xff]  }
  0x6f   :  { %2642 = vmatpush1.bf16.msra.mxu1 %v3814_v56  ;;  %v3906_v56 = vld [vmem:[%s5667_s1 + $0x82c] ss:$40 sps:$4 sm:$0xff]  }
  0x70   :  { %2749 = vmatpush1.bf16.msra.mxu0 %v3817_v57  ;;  %2643 = vmatprep.subr.bf16.mxu1 %v3822_v58  ;;  %v3909_v57 = vld [vmem:[%s5667_s1 + $0x5b4] ss:$40 sps:$4 sm:$0xff]   ;;  %v3904_v58 = vld [vmem:[%s5667_s1 + $0x828] ss:$40 sps:$4 sm:$0xff]  }
  0x71   :  { %2750 = vmatprep.subr.bf16.mxu0 %v3825_v59  ;;  %v3907_v59 = vld [vmem:[%s5667_s1 + $0x5b0] ss:$40 sps:$4 sm:$0xff]  }
  0x73   :  { %2644 = vmatpush1.bf16.msra.mxu1 %v3820_v60  ;;  %v3912_v60 = vld [vmem:[%s5667_s1 + $0x87c] ss:$40 sps:$4 sm:$0xff]  }
  0x74   :  { %2751 = vmatpush1.bf16.msra.mxu0 %v3823_v61  ;;  %2645 = vmatprep.subr.bf16.mxu1 %v3828_v62  ;;  %v3915_v61 = vld [vmem:[%s5667_s1 + $0x604] ss:$40 sps:$4 sm:$0xff]   ;;  %v3910_v62 = vld [vmem:[%s5667_s1 + $0x878] ss:$40 sps:$4 sm:$0xff]  }
  0x75   :  { %2752 = vmatprep.subr.bf16.mxu0 %v3831_v63  ;;  %v3913_v63 = vld [vmem:[%s5667_s1 + $0x600] ss:$40 sps:$4 sm:$0xff]  }
  0x77   :  { %2646 = vmatpush1.bf16.msra.mxu1 %v3826_v0  ;;  %v3918_v0 = vld [vmem:[%s5667_s1 + $0x8cc] ss:$40 sps:$4 sm:$0xff]  }
  0x78   :  { %2753 = vmatpush1.bf16.msra.mxu0 %v3829_v1  ;;  %2647 = vmatprep.subr.bf16.mxu1 %v3834_v2  ;;  %v3921_v1 = vld [vmem:[%s5667_s1 + $0x654] ss:$40 sps:$4 sm:$0xff]   ;;  %v3916_v2 = vld [vmem:[%s5667_s1 + $0x8c8] ss:$40 sps:$4 sm:$0xff]  }
  0x79   :  { %2754 = vmatprep.subr.bf16.mxu0 %v3837_v3  ;;  %v3919_v3 = vld [vmem:[%s5667_s1 + $0x650] ss:$40 sps:$4 sm:$0xff]  }
  0x7b   :  { %2648 = vmatpush1.bf16.msra.mxu1 %v3832_v4  ;;  %v3924_v4 = vld [vmem:[%s5667_s1 + $0x91c] ss:$40 sps:$4 sm:$0xff]  }
  0x7c   :  { %2755 = vmatpush1.bf16.msra.mxu0 %v3835_v5  ;;  %2649 = vmatprep.subr.bf16.mxu1 %v3840_v6  ;;  %v3927_v5 = vld [vmem:[%s5667_s1 + $0x6a4] ss:$40 sps:$4 sm:$0xff]   ;;  %v3922_v6 = vld [vmem:[%s5667_s1 + $0x918] ss:$40 sps:$4 sm:$0xff]  }
  0x7d   :  { %2756 = vmatprep.subr.bf16.mxu0 %v3843_v9  ;;  %v3925_v9 = vld [vmem:[%s5667_s1 + $0x6a0] ss:$40 sps:$4 sm:$0xff]  }
  0x7f   :  { %2650 = vmatpush1.bf16.msra.mxu1 %v3838_v10  ;;  %v3930_v10 = vld [vmem:[%s5667_s1 + $0x96c] ss:$40 sps:$4 sm:$0xff]  }
  0x80   :  { %2757 = vmatpush1.bf16.msra.mxu0 %v3841_v11  ;;  %2660 = vmatprep.subr.bf16.mxu1 %v3846_v12  ;;  %v3933_v11 = vld [vmem:[%s5667_s1 + $0x6f4] ss:$40 sps:$4 sm:$0xff]   ;;  %v3928_v12 = vld [vmem:[%s5667_s1 + $0x968] ss:$40 sps:$4 sm:$0xff]  }
  0x81   :  { %2758 = vmatprep.subr.bf16.mxu0 %v3849_v13  ;;  %v3931_v13 = vld [vmem:[%s5667_s1 + $0x6f0] ss:$40 sps:$4 sm:$0xff]  }
  0x82   :  { %2652 = vmatmul.mubr.bf16.vlgmr.msra.gmra.mrb[4].mxu1 %v4512_v7 }
  0x83   :  { %2661 = vmatpush1.bf16.msra.mxu1 %v3844_v14  ;;  %2692 = vmatprep.mubr.bf16.mxu1 %v4451_v51  ;;  %v3936_v14 = vld [vmem:[%s5667_s1 + $0x9bc] ss:$40 sps:$4 sm:$0xff]  }
  0x84   :  { %2759 = vmatpush1.bf16.msra.mxu0 %v3847_v15  ;;  %2662 = vmatprep.subr.bf16.mxu1 %v3852_v17  ;;  %v3939_v15 = vld [vmem:[%s5667_s1 + $0x744] ss:$40 sps:$4 sm:$0xff]   ;;  %v3934_v17 = vld [vmem:[%s5667_s1 + $0x9b8] ss:$40 sps:$4 sm:$0xff]  }
  0x85   :  { %2760 = vmatprep.subr.bf16.mxu0 %v3855_v18  ;;  %v3937_v18 = vld [vmem:[%s5667_s1 + $0x740] ss:$40 sps:$4 sm:$0xff]  }
  0x87   :  { %2663 = vmatpush1.bf16.msra.mxu1 %v3850_v19  ;;  %v3942_v19 = vld [vmem:[%s5667_s1 + $0xa0c] ss:$40 sps:$4 sm:$0xff]  }
  0x88   :  { %2761 = vmatpush1.bf16.msra.mxu0 %v3853_v20  ;;  %2664 = vmatprep.subr.bf16.mxu1 %v3858_v21  ;;  %v3945_v20 = vld [vmem:[%s5667_s1 + $0x794] ss:$40 sps:$4 sm:$0xff]   ;;  %v3940_v21 = vld [vmem:[%s5667_s1 + $0xa08] ss:$40 sps:$4 sm:$0xff]  }
  0x89   :  { %2762 = vmatprep.subr.bf16.mxu0 %v3861_v22  ;;  %v3943_v22 = vld [vmem:[%s5667_s1 + $0x790] ss:$40 sps:$4 sm:$0xff]  }
  0x8b   :  { %2665 = vmatpush1.bf16.msra.mxu1 %v3856_v23  ;;  %v3948_v23 = vld [vmem:[%s5667_s1 + $0xa5c] ss:$40 sps:$4 sm:$0xff]  }
  0x8c   :  { %2763 = vmatpush1.bf16.msra.mxu0 %v3859_v24  ;;  %2666 = vmatprep.subr.bf16.mxu1 %v3864_v25  ;;  %v3951_v24 = vld [vmem:[%s5667_s1 + $0x7e4] ss:$40 sps:$4 sm:$0xff]   ;;  %v3946_v25 = vld [vmem:[%s5667_s1 + $0xa58] ss:$40 sps:$4 sm:$0xff]  }
  0x8d   :  { %2764 = vmatprep.subr.bf16.mxu0 %v3867_v26  ;;  %v3949_v26 = vld [vmem:[%s5667_s1 + $0x7e0] ss:$40 sps:$4 sm:$0xff]  }
  0x8f   :  { %2667 = vmatpush1.bf16.msra.mxu1 %v3862_v27  ;;  %v3954_v27 = vld [vmem:[%s5667_s1 + $0xaac] ss:$40 sps:$4 sm:$0xff]  }
  0x90   :  { %2765 = vmatpush1.bf16.msra.mxu0 %v3865_v28  ;;  %2668 = vmatprep.subr.bf16.mxu1 %v3870_v29  ;;  %v3957_v28 = vld [vmem:[%s5667_s1 + $0x834] ss:$40 sps:$4 sm:$0xff]   ;;  %v3952_v29 = vld [vmem:[%s5667_s1 + $0xaa8] ss:$40 sps:$4 sm:$0xff]  }
  0x91   :  { %2766 = vmatprep.subr.bf16.mxu0 %v3873_v30  ;;  %v3955_v30 = vld [vmem:[%s5667_s1 + $0x830] ss:$40 sps:$4 sm:$0xff]  }
  0x93   :  { %2669 = vmatpush1.bf16.msra.mxu1 %v3868_v31  ;;  %v3960_v31 = vld [vmem:[%s5667_s1 + $0xafc] ss:$40 sps:$4 sm:$0xff]  }
  0x94   :  { %2767 = vmatpush1.bf16.msra.mxu0 %v3871_v32  ;;  %2670 = vmatprep.subr.bf16.mxu1 %v3876_v33  ;;  %v3963_v32 = vld [vmem:[%s5667_s1 + $0x884] ss:$40 sps:$4 sm:$0xff]   ;;  %v3958_v33 = vld [vmem:[%s5667_s1 + $0xaf8] ss:$40 sps:$4 sm:$0xff]  }
  0x95   :  { %2768 = vmatprep.subr.bf16.mxu0 %v3879_v34  ;;  %v3961_v34 = vld [vmem:[%s5667_s1 + $0x880] ss:$40 sps:$4 sm:$0xff]  }
  0x97   :  { %2671 = vmatpush1.bf16.msra.mxu1 %v3874_v35  ;;  %v3966_v35 = vld [vmem:[%s5667_s1 + $0xb4c] ss:$40 sps:$4 sm:$0xff]  }
  0x98   :  { %2769 = vmatpush1.bf16.msra.mxu0 %v3877_v36  ;;  %2672 = vmatprep.subr.bf16.mxu1 %v3882_v37  ;;  %v3969_v36 = vld [vmem:[%s5667_s1 + $0x8d4] ss:$40 sps:$4 sm:$0xff]   ;;  %v3964_v37 = vld [vmem:[%s5667_s1 + $0xb48] ss:$40 sps:$4 sm:$0xff]  }
  0x99   :  { %2770 = vmatprep.subr.bf16.mxu0 %v3885_v38  ;;  %v3967_v38 = vld [vmem:[%s5667_s1 + $0x8d0] ss:$40 sps:$4 sm:$0xff]  }
  0x9b   :  { %2673 = vmatpush1.bf16.msra.mxu1 %v3880_v39  ;;  %v3972_v39 = vld [vmem:[%s5667_s1 + $0xb9c] ss:$40 sps:$4 sm:$0xff]  }
  0x9c   :  { %2771 = vmatpush1.bf16.msra.mxu0 %v3883_v40  ;;  %2674 = vmatprep.subr.bf16.mxu1 %v3888_v42  ;;  %v3975_v40 = vld [vmem:[%s5667_s1 + $0x924] ss:$40 sps:$4 sm:$0xff]   ;;  %v3970_v42 = vld [vmem:[%s5667_s1 + $0xb98] ss:$40 sps:$4 sm:$0xff]  }
  0x9d   :  { %2772 = vmatprep.subr.bf16.mxu0 %v3891_v43  ;;  %v3973_v43 = vld [vmem:[%s5667_s1 + $0x920] ss:$40 sps:$4 sm:$0xff]  }
  0x9f   :  { %2675 = vmatpush1.bf16.msra.mxu1 %v3886_v44  ;;  %v3978_v44 = vld [vmem:[%s5667_s1 + $0xbec] ss:$40 sps:$4 sm:$0xff]  }
  0xa0   :  { %2773 = vmatpush1.bf16.msra.mxu0 %v3889_v45  ;;  %2676 = vmatprep.subr.bf16.mxu1 %v3894_v46  ;;  %v3981_v45 = vld [vmem:[%s5667_s1 + $0x974] ss:$40 sps:$4 sm:$0xff]   ;;  %v3976_v46 = vld [vmem:[%s5667_s1 + $0xbe8] ss:$40 sps:$4 sm:$0xff]  }
  0xa1   :  { %2783 = vmatprep.subr.bf16.mxu0 %v3897_v48  ;;  %v3979_v48 = vld [vmem:[%s5667_s1 + $0x970] ss:$40 sps:$4 sm:$0xff]  }
  0xa3   :  { %2775 = vmatmul.mubr.bf16.vlgmr.msra.gmra.mrb[4].mxu0 %v4512_v7  ;;  %2677 = vmatpush1.bf16.msra.mxu1 %v3892_v49  ;;  %v3984_v49 = vld [vmem:[%s5667_s1 + $0xc3c] ss:$40 sps:$4 sm:$0xff]  }
  0xa4   :  { %2784 = vmatpush1.bf16.msra.mxu0 %v3895_v50  ;;  %2678 = vmatprep.subr.bf16.mxu1 %v3900_v52  ;;  %v3987_v50 = vld [vmem:[%s5667_s1 + $0x9c4] ss:$40 sps:$4 sm:$0xff]   ;;  %v3982_v52 = vld [vmem:[%s5667_s1 + $0xc38] ss:$40 sps:$4 sm:$0xff]  }
  0xa5   :  { %2785 = vmatprep.subr.bf16.mxu0 %v3903_v53  ;;  %2815 = vmatprep.mubr.bf16.mxu0 %v4451_v51  ;;  %v3985_v53 = vld [vmem:[%s5667_s1 + $0x9c0] ss:$40 sps:$4 sm:$0xff]  }
  0xa7   :  { %2679 = vmatpush1.bf16.msra.mxu1 %v3898_v54  ;;  %v3990_v54 = vld [vmem:[%s5667_s1 + $0xa14] ss:$40 sps:$4 sm:$0xff]  }
  0xa8   :  { %2786 = vmatpush1.bf16.msra.mxu0 %v3901_v55  ;;  %2680 = vmatprep.subr.bf16.mxu1 %v3906_v56  ;;  %v3993_v55 = vld [vmem:[%s5667_s1 + $0x1c] ss:$40 sps:$4 sm:$0xff]   ;;  %v3988_v56 = vld [vmem:[%s5667_s1 + $0xa10] ss:$40 sps:$4 sm:$0xff]  }
  0xa9   :  { %2787 = vmatprep.subr.bf16.mxu0 %v3909_v57  ;;  %v3991_v57 = vld [vmem:[%s5667_s1 + $0x18] ss:$40 sps:$4 sm:$0xff]  }
  0xab   :  { %2681 = vmatpush1.bf16.msra.mxu1 %v3904_v58  ;;  %v3996_v58 = vld [vmem:[%s5667_s1 + $0xa64] ss:$40 sps:$4 sm:$0xff]  }
  0xac   :  { %2788 = vmatpush1.bf16.msra.mxu0 %v3907_v59  ;;  %2682 = vmatprep.subr.bf16.mxu1 %v3912_v60  ;;  %v3999_v59 = vld [vmem:[%s5667_s1 + $0x6c] ss:$40 sps:$4 sm:$0xff]   ;;  %v3994_v60 = vld [vmem:[%s5667_s1 + $0xa60] ss:$40 sps:$4 sm:$0xff]  }
  0xad   :  { %2789 = vmatprep.subr.bf16.mxu0 %v3915_v61  ;;  %v3997_v61 = vld [vmem:[%s5667_s1 + $0x68] ss:$40 sps:$4 sm:$0xff]  }
  0xaf   :  { %2683 = vmatpush1.bf16.msra.mxu1 %v3910_v62  ;;  %v4002_v62 = vld [vmem:[%s5667_s1 + $0xab4] ss:$40 sps:$4 sm:$0xff]  }
  0xb0   :  { %2790 = vmatpush1.bf16.msra.mxu0 %v3913_v63  ;;  %2684 = vmatprep.subr.bf16.mxu1 %v3918_v0  ;;  %v4000_v63 = vld [vmem:[%s5667_s1 + $0xab0] ss:$40 sps:$4 sm:$0xff]  }
  0xb1   :  { %2791 = vmatprep.subr.bf16.mxu0 %v3921_v1  ;;  %v4003_v0 = vld [vmem:[%s5667_s1 + $0xb8] ss:$40 sps:$4 sm:$0xff]   ;;  %v4008_v1 = vld [vmem:[%s5667_s1 + $0xb04] ss:$40 sps:$4 sm:$0xff]  }
  0xb3   :  { %2685 = vmatpush1.bf16.msra.mxu1 %v3916_v2  ;;  %v4011_v2 = vld [vmem:[%s5667_s1 + $0x10c] ss:$40 sps:$4 sm:$0xff]  }
  0xb4   :  { %2792 = vmatpush1.bf16.msra.mxu0 %v3919_v3  ;;  %2686 = vmatprep.subr.bf16.mxu1 %v3924_v4  ;;  %v4006_v3 = vld [vmem:[%s5667_s1 + $0xb00] ss:$40 sps:$4 sm:$0xff]  }
  0xb5   :  { %2793 = vmatprep.subr.bf16.mxu0 %v3927_v5  ;;  %v4009_v4 = vld [vmem:[%s5667_s1 + $0x108] ss:$40 sps:$4 sm:$0xff]   ;;  %v4014_v5 = vld [vmem:[%s5667_s1 + $0xb54] ss:$40 sps:$4 sm:$0xff]  }
  0xb7   :  { %2687 = vmatpush1.bf16.msra.mxu1 %v3922_v6  ;;  %v4017_v6 = vld [vmem:[%s5667_s1 + $0x15c] ss:$40 sps:$4 sm:$0xff]  }
  0xb8   :  { %2794 = vmatpush1.bf16.msra.mxu0 %v3925_v9  ;;  %2688 = vmatprep.subr.bf16.mxu1 %v3930_v10  ;;  %v4012_v9 = vld [vmem:[%s5667_s1 + $0xb50] ss:$40 sps:$4 sm:$0xff]  }
  0xb9   :  { %2795 = vmatprep.subr.bf16.mxu0 %v3933_v11  ;;  %v4015_v10 = vld [vmem:[%s5667_s1 + $0x158] ss:$40 sps:$4 sm:$0xff]   ;;  %v4020_v11 = vld [vmem:[%s5667_s1 + $0xba4] ss:$40 sps:$4 sm:$0xff]  }
  0xbb   :  { %2689 = vmatpush1.bf16.msra.mxu1 %v3928_v12  ;;  %v4023_v12 = vld [vmem:[%s5667_s1 + $0x1ac] ss:$40 sps:$4 sm:$0xff]  }
  0xbc   :  { %2796 = vmatpush1.bf16.msra.mxu0 %v3931_v13  ;;  %2690 = vmatprep.subr.bf16.mxu1 %v3936_v14  ;;  %v4018_v13 = vld [vmem:[%s5667_s1 + $0xba0] ss:$40 sps:$4 sm:$0xff]  }
  0xbd   :  { %2797 = vmatprep.subr.bf16.mxu0 %v3939_v15  ;;  %v4021_v14 = vld [vmem:[%s5667_s1 + $0x1a8] ss:$40 sps:$4 sm:$0xff]   ;;  %v4026_v15 = vld [vmem:[%s5667_s1 + $0xbf4] ss:$40 sps:$4 sm:$0xff]  }
  0xbf   :  { %2691 = vmatpush1.bf16.msra.mxu1 %v3934_v17  ;;  %v4029_v17 = vld [vmem:[%s5667_s1 + $0x1fc] ss:$40 sps:$4 sm:$0xff]  }
  0xc0   :  { %2798 = vmatpush1.bf16.msra.mxu0 %v3937_v18  ;;  %2701 = vmatprep.subr.bf16.mxu1 %v3942_v19  ;;  %v4024_v18 = vld [vmem:[%s5667_s1 + $0xbf0] ss:$40 sps:$4 sm:$0xff]  }
  0xc1   :  { %2799 = vmatprep.subr.bf16.mxu0 %v3945_v20  ;;  %v4027_v19 = vld [vmem:[%s5667_s1 + $0x1f8] ss:$40 sps:$4 sm:$0xff]   ;;  %v4032_v20 = vld [vmem:[%s5667_s1 + $0xc44] ss:$40 sps:$4 sm:$0xff]  }
  0xc2   :  { %2693 = vmatmul.mubr.bf16.vlgmr.msra.gmra.mrb[4].mxu1 %v4514_v8 }
  0xc3   :  { %2702 = vmatpush1.bf16.msra.mxu1 %v3940_v21  ;;  %2733 = vmatprep.mubr.bf16.mxu1 %v4263_v16  ;;  %v4035_v21 = vld [vmem:[%s5667_s1 + $0x24c] ss:$40 sps:$4 sm:$0xff]  }
  0xc4   :  { %2800 = vmatpush1.bf16.msra.mxu0 %v3943_v22  ;;  %2703 = vmatprep.subr.bf16.mxu1 %v3948_v23  ;;  %v4030_v22 = vld [vmem:[%s5667_s1 + $0xc40] ss:$40 sps:$4 sm:$0xff]  }
  0xc5   :  { %2801 = vmatprep.subr.bf16.mxu0 %v3951_v24  ;;  %v4033_v23 = vld [vmem:[%s5667_s1 + $0x248] ss:$40 sps:$4 sm:$0xff]   ;;  %v4038_v24 = vld [vmem:[%s5667_s1 + $0x29c] ss:$40 sps:$4 sm:$0xff]  }
  0xc7   :  { %2704 = vmatpush1.bf16.msra.mxu1 %v3946_v25  ;;  %v4041_v25 = vld [vmem:[%s5667_s1 + $0x24] ss:$40 sps:$4 sm:$0xff]  }
  0xc8   :  { %2802 = vmatpush1.bf16.msra.mxu0 %v3949_v26  ;;  %2705 = vmatprep.subr.bf16.mxu1 %v3954_v27  ;;  %v4036_v26 = vld [vmem:[%s5667_s1 + $0x298] ss:$40 sps:$4 sm:$0xff]  }
  0xc9   :  { %2803 = vmatprep.subr.bf16.mxu0 %v3957_v28  ;;  %v4039_v27 = vld [vmem:[%s5667_s1 + $0x20] ss:$40 sps:$4 sm:$0xff]   ;;  %v4044_v28 = vld [vmem:[%s5667_s1 + $0x2ec] ss:$40 sps:$4 sm:$0xff]  }
  0xcb   :  { %2706 = vmatpush1.bf16.msra.mxu1 %v3952_v29  ;;  %v4047_v29 = vld [vmem:[%s5667_s1 + $0x74] ss:$40 sps:$4 sm:$0xff]  }
  0xcc   :  { %2804 = vmatpush1.bf16.msra.mxu0 %v3955_v30  ;;  %2707 = vmatprep.subr.bf16.mxu1 %v3960_v31  ;;  %v4042_v30 = vld [vmem:[%s5667_s1 + $0x2e8] ss:$40 sps:$4 sm:$0xff]  }
  0xcd   :  { %2805 = vmatprep.subr.bf16.mxu0 %v3963_v32  ;;  %v4045_v31 = vld [vmem:[%s5667_s1 + $0x70] ss:$40 sps:$4 sm:$0xff]  }
  0xce   :  { %v5131_v32 = vld [vmem:[%s5668_s0 + $0x10] ss:$0 sps:$4 sm:$0xff]  }
  0xcf   :  { %2708 = vmatpush1.bf16.msra.mxu1 %v3958_v33  ;;  %v4050_v33 = vld [vmem:[%s5667_s1 + $0x33c] ss:$40 sps:$4 sm:$0xff]  }
  0xd0   :  { %2806 = vmatpush1.bf16.msra.mxu0 %v3961_v34  ;;  %2709 = vmatprep.subr.bf16.mxu1 %v3966_v35  ;;  %v4053_v34 = vld [vmem:[%s5667_s1 + $0xc4] ss:$40 sps:$4 sm:$0xff]   ;;  %v4048_v35 = vld [vmem:[%s5667_s1 + $0x338] ss:$40 sps:$4 sm:$0xff]  }
  0xd1   :  { %2807 = vmatprep.subr.bf16.mxu0 %v3969_v36  ;;  %v4051_v36 = vld [vmem:[%s5667_s1 + $0xc0] ss:$40 sps:$4 sm:$0xff]  }
  0xd3   :  { %2710 = vmatpush1.bf16.msra.mxu1 %v3964_v37  ;;  %v4056_v37 = vld [vmem:[%s5667_s1 + $0x38c] ss:$40 sps:$4 sm:$0xff]  }
  0xd4   :  { %2808 = vmatpush1.bf16.msra.mxu0 %v3967_v38  ;;  %2711 = vmatprep.subr.bf16.mxu1 %v3972_v39  ;;  %v4054_v38 = vld [vmem:[%s5667_s1 + $0x388] ss:$40 sps:$4 sm:$0xff]  }
  0xd5   :  { %2809 = vmatprep.subr.bf16.mxu0 %v3975_v40  ;;  %v4057_v39 = vld [vmem:[%s5667_s1 + $0x110] ss:$40 sps:$4 sm:$0xff]   ;;  %v4062_v40 = vld [vmem:[%s5667_s1 + $0x3dc] ss:$40 sps:$4 sm:$0xff]  }
  0xd7   :  { %2712 = vmatpush1.bf16.msra.mxu1 %v3970_v42  ;;  %v4065_v42 = vld [vmem:[%s5667_s1 + $0x164] ss:$40 sps:$4 sm:$0xff]  }
  0xd8   :  { %2810 = vmatpush1.bf16.msra.mxu0 %v3973_v43  ;;  %2713 = vmatprep.subr.bf16.mxu1 %v3978_v44  ;;  %v4060_v43 = vld [vmem:[%s5667_s1 + $0x3d8] ss:$40 sps:$4 sm:$0xff]  }
  0xd9   :  { %2811 = vmatprep.subr.bf16.mxu0 %v3981_v45  ;;  %v4063_v44 = vld [vmem:[%s5667_s1 + $0x160] ss:$40 sps:$4 sm:$0xff]   ;;  %v4068_v45 = vld [vmem:[%s5667_s1 + $0x42c] ss:$40 sps:$4 sm:$0xff]  }
  0xdb   :  { %2714 = vmatpush1.bf16.msra.mxu1 %v3976_v46  ;;  %v4071_v46 = vld [vmem:[%s5667_s1 + $0x1b4] ss:$40 sps:$4 sm:$0xff]  }
  0xdc   :  { %2812 = vmatpush1.bf16.msra.mxu0 %v3979_v48  ;;  %2715 = vmatprep.subr.bf16.mxu1 %v3984_v49  ;;  %v4066_v48 = vld [vmem:[%s5667_s1 + $0x428] ss:$40 sps:$4 sm:$0xff]  }
  0xdd   :  { %2813 = vmatprep.subr.bf16.mxu0 %v3987_v50  ;;  %v4069_v49 = vld [vmem:[%s5667_s1 + $0x1b0] ss:$40 sps:$4 sm:$0xff]   ;;  %v4074_v50 = vld [vmem:[%s5667_s1 + $0x47c] ss:$40 sps:$4 sm:$0xff]  }
  0xdf   :  { %2716 = vmatpush1.bf16.msra.mxu1 %v3982_v52  ;;  %v4077_v52 = vld [vmem:[%s5667_s1 + $0x204] ss:$40 sps:$4 sm:$0xff]  }
  0xe0   :  { %2814 = vmatpush1.bf16.msra.mxu0 %v3985_v53  ;;  %2865 = vmatprep.subr.bf16.mxu1 %v3993_v55  ;;  %v4072_v55 = vld [vmem:[%s5667_s1 + $0x478] ss:$40 sps:$4 sm:$0xff]  }
  0xe1   :  { %2824 = vmatprep.subr.bf16.mxu0 %v3990_v54 }
  0xe2   :  { %2734 = vmatmul.mubr.bf16.vlgmr.msra.gmra.mrb[4].mxu1 %v4616_v41  ;;  %v4005_v41 = vld [vmem:[%s5667_s1 + $0xbc] ss:$40 sps:$4 sm:$0xff]  }
  0xe3   :  { %2816 = vmatmul.mubr.bf16.vlgmr.msra.gmra.mrb[4].mxu0 %v4514_v8  ;;  %2866 = vmatpush1.bf16.msra.mxu1 %v3991_v57 }
  0xe4   :  { %2825 = vmatpush1.bf16.msra.mxu0 %v3988_v56  ;;  %2867 = vmatprep.subr.bf16.mxu1 %v3999_v59  ;;  %v4075_v56 = vld [vmem:[%s5667_s1 + $0x200] ss:$40 sps:$4 sm:$0xff]   ;;  %v4083_v59 = vld [vmem:[%s5667_s1 + $0x254] ss:$40 sps:$4 sm:$0xff]  }
  0xe5   :  { %2826 = vmatprep.subr.bf16.mxu0 %v3996_v58  ;;  %2856 = vmatprep.mubr.bf16.mxu0 %v4263_v16  ;;  %v4080_v58 = vld [vmem:[%s5667_s1 + $0x4cc] ss:$40 sps:$4 sm:$0xff]  }
  0xe6   :  { %2897 = vmatprep.mubr.bf16.mxu1 %v4440_v47 }
  0xe7   :  { %2868 = vmatpush1.bf16.msra.mxu1 %v3997_v61  ;;  %v4078_v61 = vld [vmem:[%s5667_s1 + $0x4c8] ss:$40 sps:$4 sm:$0xff]  }
  0xe8   :  { %2827 = vmatpush1.bf16.msra.mxu0 %v3994_v60  ;;  %2869 = vmatprep.subr.bf16.mxu1 %v4005_v41  ;;  %v4086_v41 = vld [vmem:[%s5667_s1 + $0x51c] ss:$40 sps:$4 sm:$0xff]  }
  0xe9   :  { %2828 = vmatprep.subr.bf16.mxu0 %v4002_v62  ;;  %v4081_v62 = vld [vmem:[%s5667_s1 + $0x250] ss:$40 sps:$4 sm:$0xff]  }
  0xeb   :  { %2870 = vmatpush1.bf16.msra.mxu1 %v4003_v0  ;;  %v4084_v0 = vld [vmem:[%s5667_s1 + $0x518] ss:$40 sps:$4 sm:$0xff]  }
  0xec   :  { %2829 = vmatpush1.bf16.msra.mxu0 %v4000_v63  ;;  %2871 = vmatprep.subr.bf16.mxu1 %v4011_v2  ;;  %v4089_v63 = vld [vmem:[%s5667_s1 + $0x2a4] ss:$40 sps:$4 sm:$0xff]  }
  0xed   :  { %2830 = vmatprep.subr.bf16.mxu0 %v4008_v1  ;;  %v4087_v1 = vld [vmem:[%s5667_s1 + $0x2a0] ss:$40 sps:$4 sm:$0xff]   ;;  %v4092_v2 = vld [vmem:[%s5667_s1 + $0x56c] ss:$40 sps:$4 sm:$0xff]  }
  0xef   :  { %2872 = vmatpush1.bf16.msra.mxu1 %v4009_v4  ;;  %v428_v4 = vlaneseq }
  0xf0   :  { %2831 = vmatpush1.bf16.msra.mxu0 %v4006_v3  ;;  %2873 = vmatprep.subr.bf16.mxu1 %v4017_v6  ;;  %v4095_v3 = vld [vmem:[%s5667_s1 + $0x2f4] ss:$40 sps:$4 sm:$0xff]   ;;  %v4093_v6 = vld [vmem:[%s5667_s1 + $0x2f0] ss:$40 sps:$4 sm:$0xff]  }
  0xf1   :  { %2832 = vmatprep.subr.bf16.mxu0 %v4014_v5  ;;  %v4090_v5 = vld [vmem:[%s5667_s1 + $0x568] ss:$40 sps:$4 sm:$0xff]  }
  0xf3   :  { %2874 = vmatpush1.bf16.msra.mxu1 %v4015_v10  ;;  %v4101_v10 = vld [vmem:[%s5667_s1 + $0x344] ss:$40 sps:$4 sm:$0xff]  }
  0xf4   :  { %2833 = vmatpush1.bf16.msra.mxu0 %v4012_v9  ;;  %2875 = vmatprep.subr.bf16.mxu1 %v4023_v12  ;;  %v4098_v9 = vld [vmem:[%s5667_s1 + $0x5bc] ss:$40 sps:$4 sm:$0xff]   ;;  %v4096_v12 = vld [vmem:[%s5667_s1 + $0x5b8] ss:$40 sps:$4 sm:$0xff]  }
  0xf5   :  { %2834 = vmatprep.subr.bf16.mxu0 %v4020_v11  ;;  %v5243_v11 = vshrl.u32 %v428_v4, 7  ;;  %v4164_v4 = vld [vmem:[%s5667_s1 + $0x92c] ss:$40 sps:$4 sm:$0xff]  }
  0xf7   :  { %2876 = vmatpush1.bf16.msra.mxu1 %v4021_v14  ;;  %v4104_v14 = vld [vmem:[%s5667_s1 + $0x60c] ss:$40 sps:$4 sm:$0xff]  }
  0xf8   :  { %2835 = vmatpush1.bf16.msra.mxu0 %v4018_v13  ;;  %2877 = vmatprep.subr.bf16.mxu1 %v4029_v17  ;;  %v4099_v13 = vld [vmem:[%s5667_s1 + $0x340] ss:$40 sps:$4 sm:$0xff]   ;;  %v430_v17 = vsub.s32 0, %v5243_v11 }
  0xf9   :  { %2836 = vmatprep.subr.bf16.mxu0 %v4026_v15  ;;  %v4107_v15 = vld [vmem:[%s5667_s1 + $0x394] ss:$40 sps:$4 sm:$0xff]  }
  0xfb   :  { %2878 = vmatpush1.bf16.msra.mxu1 %v4027_v19  ;;  %v4105_v19 = vld [vmem:[%s5667_s1 + $0x390] ss:$40 sps:$4 sm:$0xff]  }
  0xfc   :  { %2837 = vmatpush1.bf16.msra.mxu0 %v4024_v18  ;;  %2879 = vmatprep.subr.bf16.mxu1 %v4035_v21  ;;  %v4102_v18 = vld [vmem:[%s5667_s1 + $0x608] ss:$40 sps:$4 sm:$0xff]   ;;  %v434_v21 = vsub.s32 1, %v5243_v11 }
  0xfd   :  { %2838 = vmatprep.subr.bf16.mxu0 %v4032_v20  ;;  %v5267_v20 = vld [vmem:[%s5669_s2] sm:$0xff] }
  0xff   :  { %2880 = vmatpush1.bf16.msra.mxu1 %v4033_v23  ;;  %v4113_v23 = vld [vmem:[%s5667_s1 + $0x3e4] ss:$40 sps:$4 sm:$0xff]  }
 0x100   :  { %2839 = vmatpush1.bf16.msra.mxu0 %v4030_v22  ;;  %2881 = vmatprep.subr.bf16.mxu1 %v4038_v24  ;;  %v4110_v22 = vld [vmem:[%s5667_s1 + $0x65c] ss:$40 sps:$4 sm:$0xff]   ;;  %v431_v24 = vrot.slane %v5267_v20, %v430_v17 }
 0x101   :  { %2988 = vmatprep.subr.bf16.mxu0 %v4041_v25  ;;  %v4108_v25 = vld [vmem:[%s5667_s1 + $0x658] ss:$40 sps:$4 sm:$0xff]  }
 0x103   :  { %2857 = vmatmul.mubr.bf16.vlgmr.msra.gmra.mrb[4].mxu0 %v5131_v32  ;;  %2882 = vmatpush1.bf16.msra.mxu1 %v4036_v26  ;;  %v4111_v26 = vld [vmem:[%s5667_s1 + $0x3e0] ss:$40 sps:$4 sm:$0xff]  }
 0x104   :  { %2989 = vmatpush1.bf16.msra.mxu0 %v4039_v27  ;;  %2883 = vmatprep.subr.bf16.mxu1 %v4044_v28  ;;  %v435_v27 = vrot.slane %v5267_v20, %v434_v21  ;;  %v4116_v28 = vld [vmem:[%s5667_s1 + $0x6ac] ss:$40 sps:$4 sm:$0xff]  }
 0x105   :  { %2990 = vmatprep.subr.bf16.mxu0 %v4047_v29  ;;  %3020 = vmatprep.mubr.bf16.mxu0 %v4440_v47  ;;  %v4059_v47 = vld [vmem:[%s5667_s1 + $0x114] ss:$40 sps:$4 sm:$0xff]  }
 0x106   :  { %v4119_v29 = vld [vmem:[%s5667_s1 + $0x434] ss:$40 sps:$4 sm:$0xff]  }
 0x107   :  { %2884 = vmatpush1.bf16.msra.mxu1 %v4042_v30 }
 0x108   :  { %2991 = vmatpush1.bf16.msra.mxu0 %v4045_v31  ;;  %2885 = vmatprep.subr.bf16.mxu1 %v4050_v33  ;;  %v4114_v33 = vld [vmem:[%s5667_s1 + $0x6a8] ss:$40 sps:$4 sm:$0xff]  }
 0x109   :  { %2992 = vmatprep.subr.bf16.mxu0 %v4053_v34  ;;  %v4117_v34 = vld [vmem:[%s5667_s1 + $0x430] ss:$40 sps:$4 sm:$0xff]  }
 0x10b   :  { %2886 = vmatpush1.bf16.msra.mxu1 %v4048_v35  ;;  %v4122_v35 = vld [vmem:[%s5667_s1 + $0x6fc] ss:$40 sps:$4 sm:$0xff]  }
 0x10c   :  { %2993 = vmatpush1.bf16.msra.mxu0 %v4051_v36  ;;  %2887 = vmatprep.subr.bf16.mxu1 %v4056_v37  ;;  %v4125_v36 = vld [vmem:[%s5667_s1 + $0x484] ss:$40 sps:$4 sm:$0xff]  }
 0x10d   :  { %2994 = vmatprep.subr.bf16.mxu0 %v4059_v47 }
 0x10f   :  { %2888 = vmatpush1.bf16.msra.mxu1 %v4054_v38 }
 0x110   :  { %2995 = vmatpush1.bf16.msra.mxu0 %v4057_v39  ;;  %2889 = vmatprep.subr.bf16.mxu1 %v4062_v40 }
 0x111   :  { %2996 = vmatprep.subr.bf16.mxu0 %v4065_v42  ;;  %v4120_v42 = vld [vmem:[%s5667_s1 + $0x6f8] ss:$40 sps:$4 sm:$0xff]  }
 0x113   :  { %2890 = vmatpush1.bf16.msra.mxu1 %v4060_v43  ;;  %v4123_v43 = vld [vmem:[%s5667_s1 + $0x480] ss:$40 sps:$4 sm:$0xff]  }
 0x114   :  { %2997 = vmatpush1.bf16.msra.mxu0 %v4063_v44  ;;  %2891 = vmatprep.subr.bf16.mxu1 %v4068_v45  ;;  %v4128_v45 = vld [vmem:[%s5667_s1 + $0x74c] ss:$40 sps:$4 sm:$0xff]  }
 0x115   :  { %2998 = vmatprep.subr.bf16.mxu0 %v4071_v46  ;;  %v5189_v53 = vpop.f32.mrb[0].mxu1  ;;  %v4131_v46 = vld [vmem:[%s5667_s1 + $0x4d4] ss:$40 sps:$4 sm:$0xff]  }
 0x116   :  { %v5191_v54 = vpop.f32.mrb[1].mxu1  ;;  %v2531_v30 = vadd.f32 %v5189_v53, %v431_v24  ;;  %v4132_v53 = vld [vmem:[%s5667_s1 + $0x798] ss:$40 sps:$4 sm:$0xff]   ;;  %v4185_v24 = vld [vmem:[%s5667_s1 + $0x7a4] ss:$40 sps:$4 sm:$0xff]  }
 0x117   :  { %2892 = vmatpush1.bf16.msra.mxu1 %v4066_v48  ;;  %v2534_v57 = vpop.f32.mrb[2].mxu1  ;;  %v2533_v31 = vadd.f32 %v5191_v54, %v435_v27  ;;  %v4126_v48 = vld [vmem:[%s5667_s1 + $0x748] ss:$40 sps:$4 sm:$0xff]   ;;  %v4188_v27 = vld [vmem:[%s5667_s1 + $0xa6c] ss:$40 sps:$4 sm:$0xff]  }
 0x118   :  { %2999 = vmatpush1.bf16.msra.mxu0 %v4069_v49  ;;  %2893 = vmatprep.subr.bf16.mxu1 %v4074_v50  ;;  %v2535_v60 = vpop.f32.mrb[3].mxu1  ;;  %v4129_v49 = vld [vmem:[%s5667_s1 + $0x4d0] ss:$40 sps:$4 sm:$0xff]   ;;  %v4134_v50 = vld [vmem:[%s5667_s1 + $0x79c] ss:$40 sps:$4 sm:$0xff]  }
 0x119   :  { %3000 = vmatprep.subr.bf16.mxu0 %v4077_v52  ;;  %v4137_v52 = vld [vmem:[%s5667_s1 + $0x524] ss:$40 sps:$4 sm:$0xff]   ;;  %v4135_v54 = vld [vmem:[%s5667_s1 + $0x520] ss:$40 sps:$4 sm:$0xff]  }
 0x11a   :  { %v4138_v57 = vld [vmem:[%s5667_s1 + $0x7e8] ss:$40 sps:$4 sm:$0xff]   ;;  %v4144_v60 = vld [vmem:[%s5667_s1 + $0x838] ss:$40 sps:$4 sm:$0xff]  }
 0x11b   :  { %2894 = vmatpush1.bf16.msra.mxu1 %v4072_v55  ;;  %v4140_v55 = vld [vmem:[%s5667_s1 + $0x7ec] ss:$40 sps:$4 sm:$0xff]  }
 0x11c   :  { %3001 = vmatpush1.bf16.msra.mxu0 %v4075_v56  ;;  %2895 = vmatprep.subr.bf16.mxu1 %v4080_v58  ;;  %v4143_v56 = vld [vmem:[%s5667_s1 + $0x574] ss:$40 sps:$4 sm:$0xff]   ;;  %v4141_v58 = vld [vmem:[%s5667_s1 + $0x570] ss:$40 sps:$4 sm:$0xff]  }
 0x11d   :  { %3002 = vmatprep.subr.bf16.mxu0 %v4083_v59  ;;  %v4146_v59 = vld [vmem:[%s5667_s1 + $0x83c] ss:$40 sps:$4 sm:$0xff]  }
 0x11f   :  { %2896 = vmatpush1.bf16.msra.mxu1 %v4078_v61  ;;  %v4147_v61 = vld [vmem:[%s5667_s1 + $0x5c0] ss:$40 sps:$4 sm:$0xff]  }
 0x120   :  { %3003 = vmatpush1.bf16.msra.mxu0 %v4081_v62  ;;  %2906 = vmatprep.subr.bf16.mxu1 %v4086_v41  ;;  %v4152_v62 = vld [vmem:[%s5667_s1 + $0x88c] ss:$40 sps:$4 sm:$0xff]   ;;  %v4150_v41 = vld [vmem:[%s5667_s1 + $0x888] ss:$40 sps:$4 sm:$0xff]  }
 0x121   :  { %3004 = vmatprep.subr.bf16.mxu0 %v4089_v63  ;;  %v4153_v63 = vld [vmem:[%s5667_s1 + $0x610] ss:$40 sps:$4 sm:$0xff]  }
 0x122   :  { %2898 = vmatmul.mubr.bf16.vlgmr.msra.gmra.mrb[8].mxu1 %v4512_v7 }
 0x123   :  { %2907 = vmatpush1.bf16.msra.mxu1 %v4084_v0  ;;  %2938 = vmatprep.mubr.bf16.mxu1 %v4451_v51  ;;  %v4158_v0 = vld [vmem:[%s5667_s1 + $0x8dc] ss:$40 sps:$4 sm:$0xff]  }
 0x124   :  { %3005 = vmatpush1.bf16.msra.mxu0 %v4087_v1  ;;  %2908 = vmatprep.subr.bf16.mxu1 %v4092_v2  ;;  %v4161_v1 = vld [vmem:[%s5667_s1 + $0x664] ss:$40 sps:$4 sm:$0xff]   ;;  %v4156_v2 = vld [vmem:[%s5667_s1 + $0x8d8] ss:$40 sps:$4 sm:$0xff]  }
 0x125   :  { %3006 = vmatprep.subr.bf16.mxu0 %v4095_v3  ;;  %v4159_v3 = vld [vmem:[%s5667_s1 + $0x660] ss:$40 sps:$4 sm:$0xff]  }
 0x127   :  { %2909 = vmatpush1.bf16.msra.mxu1 %v4090_v5  ;;  %v4167_v5 = vld [vmem:[%s5667_s1 + $0x6b4] ss:$40 sps:$4 sm:$0xff]  }
 0x128   :  { %3007 = vmatpush1.bf16.msra.mxu0 %v4093_v6  ;;  %2910 = vmatprep.subr.bf16.mxu1 %v4098_v9  ;;  %v4162_v6 = vld [vmem:[%s5667_s1 + $0x928] ss:$40 sps:$4 sm:$0xff]  }
 0x129   :  { %3008 = vmatprep.subr.bf16.mxu0 %v4101_v10  ;;  %v4165_v9 = vld [vmem:[%s5667_s1 + $0x6b0] ss:$40 sps:$4 sm:$0xff]   ;;  %v4170_v10 = vld [vmem:[%s5667_s1 + $0x97c] ss:$40 sps:$4 sm:$0xff]  }
 0x12b   :  { %2911 = vmatpush1.bf16.msra.mxu1 %v4096_v12  ;;  %v4173_v12 = vld [vmem:[%s5667_s1 + $0x704] ss:$40 sps:$4 sm:$0xff]  }
 0x12c   :  { %3009 = vmatpush1.bf16.msra.mxu0 %v4099_v13  ;;  %2912 = vmatprep.subr.bf16.mxu1 %v4104_v14  ;;  %v4168_v13 = vld [vmem:[%s5667_s1 + $0x978] ss:$40 sps:$4 sm:$0xff]  }
 0x12d   :  { %3010 = vmatprep.subr.bf16.mxu0 %v4107_v15  ;;  %v4171_v14 = vld [vmem:[%s5667_s1 + $0x700] ss:$40 sps:$4 sm:$0xff]   ;;  %v4176_v15 = vld [vmem:[%s5667_s1 + $0x9cc] ss:$40 sps:$4 sm:$0xff]  }
 0x12f   :  { %2913 = vmatpush1.bf16.msra.mxu1 %v4102_v18  ;;  %v4179_v18 = vld [vmem:[%s5667_s1 + $0x754] ss:$40 sps:$4 sm:$0xff]  }
 0x130   :  { %3011 = vmatpush1.bf16.msra.mxu0 %v4105_v19  ;;  %2914 = vmatprep.subr.bf16.mxu1 %v4110_v22  ;;  %v4174_v19 = vld [vmem:[%s5667_s1 + $0x9c8] ss:$40 sps:$4 sm:$0xff]  }
 0x131   :  { %3012 = vmatprep.subr.bf16.mxu0 %v4113_v23  ;;  %v4177_v22 = vld [vmem:[%s5667_s1 + $0x750] ss:$40 sps:$4 sm:$0xff]   ;;  %v4182_v23 = vld [vmem:[%s5667_s1 + $0xa1c] ss:$40 sps:$4 sm:$0xff]  }
 0x133   :  { %2915 = vmatpush1.bf16.msra.mxu1 %v4108_v25  ;;  %v4180_v25 = vld [vmem:[%s5667_s1 + $0xa18] ss:$40 sps:$4 sm:$0xff]  }
 0x134   :  { %3013 = vmatpush1.bf16.msra.mxu0 %v4111_v26  ;;  %2916 = vmatprep.subr.bf16.mxu1 %v4116_v28  ;;  %v4183_v26 = vld [vmem:[%s5667_s1 + $0x7a0] ss:$40 sps:$4 sm:$0xff]   ;;  %v4191_v28 = vld [vmem:[%s5667_s1 + $0x7f4] ss:$40 sps:$4 sm:$0xff]  }
 0x135   :  { %3014 = vmatprep.subr.bf16.mxu0 %v4119_v29  ;;  %v4186_v29 = vld [vmem:[%s5667_s1 + $0xa68] ss:$40 sps:$4 sm:$0xff]  }
 0x136   :  { %v2612_v37 = vpop.f32.mrb[0].mxu0 }
 0x137   :  { %v5308_v47 = vadd.f32 %v2612_v37, %v2531_v30  ;;  %v2614_v38 = vpop.f32.mrb[1].mxu0  ;;  %2917 = vmatpush1.bf16.msra.mxu1 %v4114_v33  ;;  %v4189_v30 = vld [vmem:[%s5667_s1 + $0x7f0] ss:$40 sps:$4 sm:$0xff]   ;;  %v4197_v33 = vld [vmem:[%s5667_s1 + $0x844] ss:$40 sps:$4 sm:$0xff]  }
 0x138   :  { %v5310_v39 = vadd.f32 %v2614_v38, %v2533_v31  ;;  %v2616_v40 = vpop.f32.mrb[2].mxu0  ;;  %3015 = vmatpush1.bf16.msra.mxu0 %v4117_v34  ;;  %2918 = vmatprep.subr.bf16.mxu1 %v4122_v35  ;;  %v4194_v31 = vld [vmem:[%s5667_s1 + $0xabc] ss:$40 sps:$4 sm:$0xff]   ;;  %v4192_v34 = vld [vmem:[%s5667_s1 + $0xab8] ss:$40 sps:$4 sm:$0xff]  }
 0x139   :  { %3111 = vst [vmem:[%s5670_s4] sm:$0xff] %v5308_v47  ;;  %v2617_v44 = vpop.f32.mrb[3].mxu0  ;;  %3016 = vmatprep.subr.bf16.mxu0 %v4125_v36  ;;  %v4195_v35 = vld [vmem:[%s5667_s1 + $0x840] ss:$40 sps:$4 sm:$0xff]   ;;  %v4200_v36 = vld [vmem:[%s5667_s1 + $0xb0c] ss:$40 sps:$4 sm:$0xff]  }
 0x13a   :  { %3112 = vst [vmem:[%s5670_s4 + $0x8] sm:$0xff] %v5310_v39  ;;  %v4203_v37 = vld [vmem:[%s5667_s1 + $0x894] ss:$40 sps:$4 sm:$0xff]   ;;  %v4198_v38 = vld [vmem:[%s5667_s1 + $0xb08] ss:$40 sps:$4 sm:$0xff]  }
 0x13b   :  { %2919 = vmatpush1.bf16.msra.mxu1 %v4120_v42  ;;  %v4201_v40 = vld [vmem:[%s5667_s1 + $0x890] ss:$40 sps:$4 sm:$0xff]   ;;  %v4206_v42 = vld [vmem:[%s5667_s1 + $0xb5c] ss:$40 sps:$4 sm:$0xff]  }
 0x13c   :  { %3017 = vmatpush1.bf16.msra.mxu0 %v4123_v43  ;;  %2920 = vmatprep.subr.bf16.mxu1 %v4128_v45  ;;  %v4209_v43 = vld [vmem:[%s5667_s1 + $0x8e4] ss:$40 sps:$4 sm:$0xff]   ;;  %v4204_v44 = vld [vmem:[%s5667_s1 + $0xb58] ss:$40 sps:$4 sm:$0xff]  }
 0x13d   :  { %3018 = vmatprep.subr.bf16.mxu0 %v4131_v46  ;;  %v4207_v45 = vld [vmem:[%s5667_s1 + $0x8e0] ss:$40 sps:$4 sm:$0xff]   ;;  %v4212_v46 = vld [vmem:[%s5667_s1 + $0xbac] ss:$40 sps:$4 sm:$0xff]  }
 0x13f   :  { %2921 = vmatpush1.bf16.msra.mxu1 %v4126_v48  ;;  %v4215_v48 = vld [vmem:[%s5667_s1 + $0x934] ss:$40 sps:$4 sm:$0xff]  }
 0x140   :  { %3019 = vmatpush1.bf16.msra.mxu0 %v4129_v49  ;;  %2922 = vmatprep.subr.bf16.mxu1 %v4134_v50  ;;  %v4210_v49 = vld [vmem:[%s5667_s1 + $0xba8] ss:$40 sps:$4 sm:$0xff]  }
 0x141   :  { %3029 = vmatprep.subr.bf16.mxu0 %v4137_v52  ;;  %v4213_v50 = vld [vmem:[%s5667_s1 + $0x930] ss:$40 sps:$4 sm:$0xff]   ;;  %v4218_v52 = vld [vmem:[%s5667_s1 + $0xbfc] ss:$40 sps:$4 sm:$0xff]  }
 0x143   :  { %3021 = vmatmul.mubr.bf16.vlgmr.msra.gmra.mrb[8].mxu0 %v4512_v7  ;;  %2923 = vmatpush1.bf16.msra.mxu1 %v4132_v53  ;;  %v4149_v7 = vld [vmem:[%s5667_s1 + $0x5c4] ss:$40 sps:$4 sm:$0xff]  }
 0x144   :  { %3030 = vmatpush1.bf16.msra.mxu0 %v4135_v54  ;;  %2924 = vmatprep.subr.bf16.mxu1 %v4140_v55  ;;  %v4221_v53 = vld [vmem:[%s5667_s1 + $0x984] ss:$40 sps:$4 sm:$0xff]   ;;  %v4216_v54 = vld [vmem:[%s5667_s1 + $0xbf8] ss:$40 sps:$4 sm:$0xff]  }
 0x145   :  { %3031 = vmatprep.subr.bf16.mxu0 %v4143_v56  ;;  %3061 = vmatprep.mubr.bf16.mxu0 %v4451_v51  ;;  %v4155_v51 = vld [vmem:[%s5667_s1 + $0x614] ss:$40 sps:$4 sm:$0xff]   ;;  %v4219_v55 = vld [vmem:[%s5667_s1 + $0x980] ss:$40 sps:$4 sm:$0xff]  }
 0x146   :  { %v4224_v56 = vld [vmem:[%s5667_s1 + $0xc4c] ss:$40 sps:$4 sm:$0xff]  }
 0x147   :  { %2925 = vmatpush1.bf16.msra.mxu1 %v4138_v57  ;;  %v4227_v57 = vld [vmem:[%s5667_s1 + $0x9d4] ss:$40 sps:$4 sm:$0xff]  }
 0x148   :  { %3032 = vmatpush1.bf16.msra.mxu0 %v4141_v58  ;;  %2926 = vmatprep.subr.bf16.mxu1 %v4146_v59  ;;  %v4222_v58 = vld [vmem:[%s5667_s1 + $0xc48] ss:$40 sps:$4 sm:$0xff]  }
 0x149   :  { %3033 = vmatprep.subr.bf16.mxu0 %v4149_v7  ;;  %v4225_v59 = vld [vmem:[%s5667_s1 + $0x9d0] ss:$40 sps:$4 sm:$0xff]   ;;  %v4230_v7 = vld [vmem:[%s5667_s1 + $0xa24] ss:$40 sps:$4 sm:$0xff]  }
 0x14b   :  { %2927 = vmatpush1.bf16.msra.mxu1 %v4144_v60  ;;  %v4228_v60 = vld [vmem:[%s5667_s1 + $0xa20] ss:$40 sps:$4 sm:$0xff]  }
 0x14c   :  { %3034 = vmatpush1.bf16.msra.mxu0 %v4147_v61  ;;  %2928 = vmatprep.subr.bf16.mxu1 %v4152_v62  ;;  %v4233_v61 = vld [vmem:[%s5667_s1 + $0xa74] ss:$40 sps:$4 sm:$0xff]   ;;  %v4231_v62 = vld [vmem:[%s5667_s1 + $0xa70] ss:$40 sps:$4 sm:$0xff]  }
 0x14d   :  { %3035 = vmatprep.subr.bf16.mxu0 %v4155_v51  ;;  %v4236_v51 = vld [vmem:[%s5667_s1 + $0xac4] ss:$40 sps:$4 sm:$0xff]  }
 0x14f   :  { %2929 = vmatpush1.bf16.msra.mxu1 %v4150_v41  ;;  %v4234_v41 = vld [vmem:[%s5667_s1 + $0xac0] ss:$40 sps:$4 sm:$0xff]  }
 0x150   :  { %3036 = vmatpush1.bf16.msra.mxu0 %v4153_v63  ;;  %2930 = vmatprep.subr.bf16.mxu1 %v4158_v0  ;;  %v4242_v63 = vld [vmem:[%s5667_s1 + $0xb64] ss:$40 sps:$4 sm:$0xff]   ;;  %v4240_v0 = vld [vmem:[%s5667_s1 + $0xb60] ss:$40 sps:$4 sm:$0xff]  }
 0x151   :  { %3037 = vmatprep.subr.bf16.mxu0 %v4161_v1  ;;  %v4245_v1 = vld [vmem:[%s5667_s1 + $0xbb4] ss:$40 sps:$4 sm:$0xff]  }
 0x153   :  { %2931 = vmatpush1.bf16.msra.mxu1 %v4156_v2  ;;  %v4243_v2 = vld [vmem:[%s5667_s1 + $0xbb0] ss:$40 sps:$4 sm:$0xff]  }
 0x154   :  { %3038 = vmatpush1.bf16.msra.mxu0 %v4159_v3  ;;  %2932 = vmatprep.subr.bf16.mxu1 %v4164_v4  ;;  %v4248_v3 = vld [vmem:[%s5667_s1 + $0xc04] ss:$40 sps:$4 sm:$0xff]   ;;  %v4246_v4 = vld [vmem:[%s5667_s1 + $0xc00] ss:$40 sps:$4 sm:$0xff]  }
 0x155   :  { %3039 = vmatprep.subr.bf16.mxu0 %v4167_v5  ;;  %v4251_v5 = vld [vmem:[%s5667_s1 + $0xc54] ss:$40 sps:$4 sm:$0xff]  }
 0x157   :  { %2933 = vmatpush1.bf16.msra.mxu1 %v4162_v6  ;;  %v4249_v6 = vld [vmem:[%s5667_s1 + $0xc50] ss:$40 sps:$4 sm:$0xff]  }
 0x158   :  { %3040 = vmatpush1.bf16.msra.mxu0 %v4165_v9  ;;  %2934 = vmatprep.subr.bf16.mxu1 %v4170_v10  ;;  %v438_v9 = vsub.s32 2, %v5243_v11  ;;  %v442_v10 = vsub.s32 3, %v5243_v11 }
 0x159   :  { %3041 = vmatprep.subr.bf16.mxu0 %v4173_v12 }
 0x15a   :  { %v439_v12 = vrot.slane %v5267_v20, %v438_v9 }
 0x15b   :  { %2935 = vmatpush1.bf16.msra.mxu1 %v4168_v13  ;;  %v443_v13 = vrot.slane %v5267_v20, %v442_v10 }
 0x15c   :  { %3042 = vmatpush1.bf16.msra.mxu0 %v4171_v14  ;;  %2936 = vmatprep.subr.bf16.mxu1 %v4176_v15 }
 0x15d   :  { %3043 = vmatprep.subr.bf16.mxu0 %v4179_v18 }
 0x15f   :  { %2937 = vmatpush1.bf16.msra.mxu1 %v4174_v19 }
 0x160   :  { %3044 = vmatpush1.bf16.msra.mxu0 %v4177_v22  ;;  %2947 = vmatprep.subr.bf16.mxu1 %v4182_v23  ;;  %v446_v23 = vsub.s32 4, %v5243_v11 }
 0x161   :  { %3045 = vmatprep.subr.bf16.mxu0 %v4185_v24  ;;  %v450_v24 = vsub.s32 5, %v5243_v11 }
 0x162   :  { %2939 = vmatmul.mubr.bf16.vlgmr.msra.gmra.mrb[8].mxu1 %v4514_v8 }
 0x163   :  { %2948 = vmatpush1.bf16.msra.mxu1 %v4180_v25  ;;  %2979 = vmatprep.mubr.bf16.mxu1 %v4263_v16  ;;  %v447_v25 = vrot.slane %v5267_v20, %v446_v23 }
 0x164   :  { %3046 = vmatpush1.bf16.msra.mxu0 %v4183_v26  ;;  %2949 = vmatprep.subr.bf16.mxu1 %v4188_v27  ;;  %v451_v26 = vrot.slane %v5267_v20, %v450_v24 }
 0x165   :  { %3047 = vmatprep.subr.bf16.mxu0 %v4191_v28 }
 0x167   :  { %2950 = vmatpush1.bf16.msra.mxu1 %v4186_v29 }
 0x168   :  { %3048 = vmatpush1.bf16.msra.mxu0 %v4189_v30  ;;  %2951 = vmatprep.subr.bf16.mxu1 %v4194_v31 }
 0x169   :  { %3049 = vmatprep.subr.bf16.mxu0 %v4197_v33 }
 0x16b   :  { %2952 = vmatpush1.bf16.msra.mxu1 %v4192_v34  ;;  %v454_v34 = vsub.s32 6, %v5243_v11 }
 0x16c   :  { %3050 = vmatpush1.bf16.msra.mxu0 %v4195_v35  ;;  %2953 = vmatprep.subr.bf16.mxu1 %v4200_v36  ;;  %v458_v35 = vsub.s32 7, %v5243_v11 }
 0x16d   :  { %3051 = vmatprep.subr.bf16.mxu0 %v4203_v37  ;;  %v455_v37 = vrot.slane %v5267_v20, %v454_v34 }
 0x16f   :  { %2954 = vmatpush1.bf16.msra.mxu1 %v4198_v38  ;;  %v459_v38 = vrot.slane %v5267_v20, %v458_v35 }
 0x170   :  { %3052 = vmatpush1.bf16.msra.mxu0 %v4201_v40  ;;  %2955 = vmatprep.subr.bf16.mxu1 %v4206_v42 }
 0x171   :  { %3053 = vmatprep.subr.bf16.mxu0 %v4209_v43 }
 0x173   :  { %2956 = vmatpush1.bf16.msra.mxu1 %v4204_v44 }
 0x174   :  { %3054 = vmatpush1.bf16.msra.mxu0 %v4207_v45  ;;  %2957 = vmatprep.subr.bf16.mxu1 %v4212_v46 }
 0x175   :  { %3055 = vmatprep.subr.bf16.mxu0 %v4215_v48 }
 0x177   :  { %2958 = vmatpush1.bf16.msra.mxu1 %v4210_v49 }
 0x178   :  { %3056 = vmatpush1.bf16.msra.mxu0 %v4213_v50  ;;  %2959 = vmatprep.subr.bf16.mxu1 %v4218_v52  ;;  %v3121_v52 = vld [vmem:[%s5672_s3] sm:$0xff] }
 0x179   :  { %3057 = vmatprep.subr.bf16.mxu0 %v4221_v53  ;;  %v3122_v53 = vld [vmem:[%s5672_s3 + $0x8] sm:$0xff] }
 0x17b   :  { %2960 = vmatpush1.bf16.msra.mxu1 %v4216_v54 }
 0x17c   :  { %3058 = vmatpush1.bf16.msra.mxu0 %v4219_v55  ;;  %2961 = vmatprep.subr.bf16.mxu1 %v4224_v56 }
 0x17d   :  { %3059 = vmatprep.subr.bf16.mxu0 %v4227_v57 }
 0x17f   :  { %2962 = vmatpush1.bf16.msra.mxu1 %v4222_v58 }
 0x180   :  { %3060 = vmatpush1.bf16.msra.mxu0 %v4225_v59 }
 0x181   :  { %3070 = vmatprep.subr.bf16.mxu0 %v4230_v7  ;;  %v425_v7 = vld [vmem:[%s5669_s2 + $0x8] sm:$0x3] }
 0x182   :  { %2980 = vmatmul.mubr.bf16.vlgmr.msra.gmra.mrb[8].mxu1 %v5131_v32 }
 0x183   :  { %3062 = vmatmul.mubr.bf16.vlgmr.msra.gmra.mrb[8].mxu0 %v4514_v8  ;;  %v4239_v8 = vld [vmem:[%s5667_s1 + $0xb14] ss:$40 sps:$4 sm:$0xff]  }
 0x184   :  { %3071 = vmatpush1.bf16.msra.mxu0 %v4228_v60  ;;  %3102 = vmatprep.mubr.bf16.mxu0 %v4263_v16  ;;  %v4237_v16 = vld [vmem:[%s5667_s1 + $0xb10] ss:$40 sps:$4 sm:$0xff]  }
 0x185   :  { %3072 = vmatprep.subr.bf16.mxu0 %v4233_v61  ;;  %v463_v61 = vrot.slane %v425_v7, %v430_v17 }
 0x188   :  { %3073 = vmatpush1.bf16.msra.mxu0 %v4231_v62  ;;  %v467_v62 = vrot.slane %v425_v7, %v434_v21 }
 0x189   :  { %3074 = vmatprep.subr.bf16.mxu0 %v4236_v51 }
 0x18c   :  { %3075 = vmatpush1.bf16.msra.mxu0 %v4234_v41 }
 0x18d   :  { %3076 = vmatprep.subr.bf16.mxu0 %v4239_v8 }
 0x190   :  { %3077 = vmatpush1.bf16.msra.mxu0 %v4237_v16 }
 0x191   :  { %3078 = vmatprep.subr.bf16.mxu0 %v4242_v63 }
 0x194   :  { %3079 = vmatpush1.bf16.msra.mxu0 %v4240_v0 }
 0x195   :  { %3080 = vmatprep.subr.bf16.mxu0 %v4245_v1 }
 0x198   :  { %3081 = vmatpush1.bf16.msra.mxu0 %v4243_v2  ;;  %v3123_v2 = vld [vmem:[%s5672_s3 + $0x10] sm:$0xff] }
 0x199   :  { %3082 = vmatprep.subr.bf16.mxu0 %v4248_v3  ;;  %v3124_v3 = vld [vmem:[%s5672_s3 + $0x18] sm:$0xff] }
 0x19c   :  { %3083 = vmatpush1.bf16.msra.mxu0 %v4246_v4 }
 0x19d   :  { %3084 = vmatprep.subr.bf16.mxu0 %v4251_v5  ;;  %v3125_v5 = vld [vmem:[%s5672_s3 + $0x20] sm:$0xff] }
 0x1a0   :  { %3085 = vmatpush1.bf16.msra.mxu0 %v4249_v6 }
 0x1a3   :  { %3103 = vmatmul.mubr.bf16.vlgmr.msra.gmra.mrb[8].mxu0 %v5131_v32 }
 0x1b5   :  { %v2735_v14 = vpop.f32.mrb[4].mxu1 }
 0x1b6   :  { %v5590_v15 = vadd.f32 %v2735_v14, %v439_v12  ;;  %v2737_v18 = vpop.f32.mrb[5].mxu1 }
 0x1b7   :  { %v5592_v19 = vadd.f32 %v2737_v18, %v443_v13  ;;  %v2739_v22 = vpop.f32.mrb[6].mxu1 }
 0x1b8   :  { %3113 = vst [vmem:[%s5670_s4 + $0x10] sm:$0xff] %v5590_v15  ;;  %v2740_v32 = vpop.f32.mrb[7].mxu1 }
 0x1b9   :  { %3114 = vst [vmem:[%s5670_s4 + $0x18] sm:$0xff] %v5592_v19 }
 0x1d6   :  { %v2858_v27 = vpop.f32.mrb[4].mxu0 }
 0x1d7   :  { %v5606_v28 = vadd.f32 %v2858_v27, %v447_v25  ;;  %v2860_v29 = vpop.f32.mrb[5].mxu0 }
 0x1d8   :  { %v3605_v30 = vadd.f32 %v2860_v29, %v451_v26  ;;  %v2862_v31 = vpop.f32.mrb[6].mxu0 }
 0x1d9   :  { %3115 = vst [vmem:[%s5670_s4 + $0x20] sm:$0xff] %v5606_v28  ;;  %v2863_v33 = vpop.f32.mrb[7].mxu0 }
 0x1da   :  { %3116 = vst [vmem:[%s5671_s5] sm:$0xff] %v3605_v30  ;;  %v3126_v36 = vmul.f32 0.5, %v3605_v30 }
 0x1dc   :  { %v3131_v40 = vmul.f32 1.442695, %v3126_v36 }
 0x1de   :  { %4252 = vpow2.f32 %v3131_v40 }
 0x1e8   :  { %v4253_v20 = vpop.eup %4252 }
 0x1e9   :  { %v3141_v54 = vmul.f32 %v4253_v20, %v3121_v52 }
 0x1eb   :  { %v3146_v57 = vadd.f32 %v5308_v47, %v3141_v54 }
 0x255   :  { %v2981_v42 = vpop.f32.mrb[8].mxu1 }
 0x256   :  { %v3606_v43 = vadd.f32 %v2981_v42, %v455_v37  ;;  %v2983_v44 = vpop.f32.mrb[9].mxu1 }
 0x257   :  { %v3607_v45 = vadd.f32 %v2983_v44, %v459_v38  ;;  %v2985_v46 = vpop.f32.mrb[10].mxu1 }
 0x258   :  { %3117 = vst [vmem:[%s5671_s5 + $0x8] sm:$0xff] %v3606_v43  ;;  %v3127_v48 = vmul.f32 0.5, %v3606_v43  ;;  %v2986_v49 = vpop.f32.mrb[11].mxu1 }
 0x259   :  { %3118 = vst [vmem:[%s5671_s5 + $0x10] sm:$0xff] %v3607_v45  ;;  %v3128_v60 = vmul.f32 0.5, %v3607_v45 }
 0x25a   :  { %v3133_v50 = vmul.f32 1.442695, %v3127_v48 }
 0x25b   :  { %v3135_v51 = vmul.f32 1.442695, %v3128_v60 }
 0x25c   :  { %4254 = vpow2.f32 %v3133_v50 }
 0x25d   :  { %4256 = vpow2.f32 %v3135_v51 }
 0x266   :  { %v4255_v55 = vpop.eup %4254 }
 0x267   :  { %v3142_v56 = vmul.f32 %v4255_v55, %v3122_v53  ;;  %v4257_v1 = vpop.eup %4256 }
 0x268   :  { %v3143_v4 = vmul.f32 %v4257_v1, %v3123_v2 }
 0x269   :  { %v3147_v58 = vadd.f32 %v5310_v39, %v3142_v56 }
 0x26a   :  { %v3148_v13 = vadd.f32 %v5590_v15, %v3143_v4 }
 0x26b   :  { %v3595_v59 = vpack.c.bf16 %v3147_v58, %v3146_v57 }
 0x26d   :  { %3172 = vst [vmem:[%s5673_s6] sm:$0xff] %v3595_v59 }
 0x276   :  { %v3104_v47 = vpop.f32.mrb[8].mxu0 }
 0x277   :  { %v3608_v41 = vadd.f32 %v3104_v47, %v463_v61  ;;  %v3106_v39 = vpop.f32.mrb[9].mxu0 }
 0x278   :  { %v3609_v8 = vadd.f32 %v3106_v39, %v467_v62  ;;  %v3108_v16 = vpop.f32.mrb[10].mxu0 }
 0x279   :  { %3119 = vst [vmem:[%s5671_s5 + $0x18] sm:$0xff] %v3608_v41  ;;  %v3129_v63 = vmul.f32 0.5, %v3608_v41  ;;  %v3109_v0 = vpop.f32.mrb[11].mxu0 }
 0x27a   :  { %3120 = vst [vmem:[%s5671_s5 + $0x20] sm:$0xff] %v3609_v8  ;;  %v3130_v17 = vmul.f32 0.5, %v3609_v8 }
 0x27b   :  { %v3137_v11 = vmul.f32 1.442695, %v3129_v63 }
 0x27c   :  { %v3139_v21 = vmul.f32 1.442695, %v3130_v17 }
 0x27d   :  { %4258 = vpow2.f32 %v3137_v11 }
 0x27e   :  { %4260 = vpow2.f32 %v3139_v21 }
 0x287   :  { %v4259_v6 = vpop.eup %4258 }
 0x288   :  { %v4261_v9 = vpop.eup %4260  ;;  %v3144_v10 = vmul.f32 %v4259_v6, %v3124_v3 }
 0x289   :  { %v3145_v12 = vmul.f32 %v4261_v9, %v3125_v5 }
 0x28a   :  { %v3149_v14 = vadd.f32 %v5592_v19, %v3144_v10 }
 0x28b   :  { %v3150_v18 = vadd.f32 %v5606_v28, %v3145_v12 }
 0x28c   :  { %v3596_v22 = vpack.c.bf16 %v3149_v14, %v3148_v13 }
 0x28d   :  { %v3597_v32 = vpack.c.bf16 %v3150_v18, %v3150_v18 }
 0x28e   :  { %3173 = vst [vmem:[%s5673_s6 + $0x8] sm:$0xff] %v3596_v22 }
 0x28f   :  { %3174 = vst [vmem:[%s5673_s6 + $0x10] sm:$0xf] %v3597_v32 }

// kernel: grad_con_vae_forward.15
= control target key start
LH: loop header
LB: loop body
LE: loop exit
PB: predicated region body
PF: predicated region fallthrough
CT: control target
= control target key end

     0   :  { %vm2331_vm0 = vmmov 0   ;;  %s3004_s1 = inlined_call_operand.vmem [shape: bf16[640,640], index: 1, kind: input, shape index: {}]   ;;  %s3005_s0 = inlined_call_operand.vmem [shape: bf16[8,640], index: 0, kind: input, shape index: {}]   ;;  %s3006_s2 = inlined_call_operand.vmem [shape: f32[1,640], index: 2, kind: input, shape index: {}]   ;;  %s3007_s3 = inlined_call_operand.vmem [shape: bf16[8,640], index: 3, kind: output, shape index: {}]  }
   0x1   :  { %v2044_v0 = vld [vmem:[%s3004_s1 + $0x4] ss:$20 sps:$4 sm:$0xff]   ;;  %v2046_v1 = vld [vmem:[%s3004_s1 + $0xc] ss:$20 sps:$4 sm:$0xff]   ;;  %v2049_v3 = vld [vmem:[%s3004_s1 + $0x8] ss:$20 sps:$4 sm:$0xff]  }
   0x2   :  { %1343 = vmatprep.subr.bf16.mxu0 %v2044_v0  ;;  %v2048_v2 = vld [vmem:[%s3004_s1] ss:$20 sps:$4 sm:$0xff]   ;;  %1466 = vmatprep.subr.bf16.mxu1 %v2046_v1  ;;  %v2054_v6 = vld [vmem:[%s3004_s1 + $0x28] ss:$20 sps:$4 sm:$0xff]   ;;  %v2055_v7 = vld [vmem:[%s3004_s1 + $0x30] ss:$20 sps:$4 sm:$0xff]  }
   0x3   :  { %v2050_v4 = vld [vmem:[%s3004_s1 + $0x2c] ss:$20 sps:$4 sm:$0xff]   ;;  %1344 = vmatpush1.bf16.msra.mxu0 %v2048_v2  ;;  %1467 = vmatpush1.bf16.msra.mxu1 %v2049_v3  ;;  %v2052_v5 = vld [vmem:[%s3004_s1 + $0x34] ss:$20 sps:$4 sm:$0xff]   ;;  %v2058_v9 = vld [vmem:[%s3004_s1 + $0x5c] ss:$20 sps:$4 sm:$0xff]  }
   0x4   :  { %1345 = vmatprep.subr.bf16.mxu0 %v2050_v4  ;;  %1468 = vmatprep.subr.bf16.mxu1 %v2052_v5  ;;  %v2056_v8 = vld [vmem:[%s3004_s1 + $0x54] ss:$20 sps:$4 sm:$0xff]   ;;  %v2060_v10 = vld [vmem:[%s3004_s1 + $0x50] ss:$20 sps:$4 sm:$0xff]   ;;  %v2061_v11 = vld [vmem:[%s3004_s1 + $0x58] ss:$20 sps:$4 sm:$0xff]  }
   0x5   :  { %v2062_v12 = vld [vmem:[%s3004_s1 + $0x7c] ss:$20 sps:$4 sm:$0xff]   ;;  %v2064_v13 = vld [vmem:[%s3004_s1 + $0x84] ss:$20 sps:$4 sm:$0xff]   ;;  %v2067_v15 = vld [vmem:[%s3004_s1 + $0x80] ss:$20 sps:$4 sm:$0xff]  }
   0x6   :  { %v2066_v14 = vld [vmem:[%s3004_s1 + $0x78] ss:$20 sps:$4 sm:$0xff]   ;;  %v2072_v18 = vld [vmem:[%s3004_s1 + $0xa0] ss:$20 sps:$4 sm:$0xff]   ;;  %v2073_v19 = vld [vmem:[%s3004_s1 + $0xa8] ss:$20 sps:$4 sm:$0xff]  }
   0x7   :  { %1346 = vmatpush1.bf16.msra.mxu0 %v2054_v6  ;;  %1469 = vmatpush1.bf16.msra.mxu1 %v2055_v7  ;;  %v2068_v16 = vld [vmem:[%s3004_s1 + $0xa4] ss:$20 sps:$4 sm:$0xff]   ;;  %v2070_v17 = vld [vmem:[%s3004_s1 + $0xac] ss:$20 sps:$4 sm:$0xff]   ;;  %v2076_v21 = vld [vmem:[%s3004_s1 + $0xd4] ss:$20 sps:$4 sm:$0xff]  }
   0x8   :  { %1347 = vmatprep.subr.bf16.mxu0 %v2056_v8  ;;  %1470 = vmatprep.subr.bf16.mxu1 %v2058_v9  ;;  %v2074_v20 = vld [vmem:[%s3004_s1 + $0xcc] ss:$20 sps:$4 sm:$0xff]   ;;  %v2078_v22 = vld [vmem:[%s3004_s1 + $0xc8] ss:$20 sps:$4 sm:$0xff]   ;;  %v2079_v23 = vld [vmem:[%s3004_s1 + $0xd0] ss:$20 sps:$4 sm:$0xff]  }
   0x9   :  { %v2080_v24 = vld [vmem:[%s3004_s1 + $0xf4] ss:$20 sps:$4 sm:$0xff]   ;;  %v2082_v25 = vld [vmem:[%s3004_s1 + $0xfc] ss:$20 sps:$4 sm:$0xff]   ;;  %v2085_v27 = vld [vmem:[%s3004_s1 + $0xf8] ss:$20 sps:$4 sm:$0xff]  }
   0xa   :  { %v2084_v26 = vld [vmem:[%s3004_s1 + $0xf0] ss:$20 sps:$4 sm:$0xff]   ;;  %v2090_v30 = vld [vmem:[%s3004_s1 + $0x118] ss:$20 sps:$4 sm:$0xff]   ;;  %v2091_v31 = vld [vmem:[%s3004_s1 + $0x120] ss:$20 sps:$4 sm:$0xff]  }
   0xb   :  { %1348 = vmatpush1.bf16.msra.mxu0 %v2060_v10  ;;  %1471 = vmatpush1.bf16.msra.mxu1 %v2061_v11  ;;  %v2086_v28 = vld [vmem:[%s3004_s1 + $0x11c] ss:$20 sps:$4 sm:$0xff]   ;;  %v2088_v29 = vld [vmem:[%s3004_s1 + $0x124] ss:$20 sps:$4 sm:$0xff]   ;;  %v2094_v33 = vld [vmem:[%s3004_s1 + $0x14c] ss:$20 sps:$4 sm:$0xff]  }
   0xc   :  { %1349 = vmatprep.subr.bf16.mxu0 %v2062_v12  ;;  %1472 = vmatprep.subr.bf16.mxu1 %v2064_v13  ;;  %v2092_v32 = vld [vmem:[%s3004_s1 + $0x144] ss:$20 sps:$4 sm:$0xff]   ;;  %v2096_v34 = vld [vmem:[%s3004_s1 + $0x140] ss:$20 sps:$4 sm:$0xff]   ;;  %v2097_v35 = vld [vmem:[%s3004_s1 + $0x148] ss:$20 sps:$4 sm:$0xff]  }
   0xd   :  { %v2098_v36 = vld [vmem:[%s3004_s1 + $0x16c] ss:$20 sps:$4 sm:$0xff]   ;;  %v2100_v37 = vld [vmem:[%s3004_s1 + $0x174] ss:$20 sps:$4 sm:$0xff]   ;;  %v2103_v39 = vld [vmem:[%s3004_s1 + $0x170] ss:$20 sps:$4 sm:$0xff]  }
   0xe   :  { %v2102_v38 = vld [vmem:[%s3004_s1 + $0x168] ss:$20 sps:$4 sm:$0xff]   ;;  %v2108_v42 = vld [vmem:[%s3004_s1 + $0x190] ss:$20 sps:$4 sm:$0xff]   ;;  %v2109_v43 = vld [vmem:[%s3004_s1 + $0x198] ss:$20 sps:$4 sm:$0xff]  }
   0xf   :  { %1350 = vmatpush1.bf16.msra.mxu0 %v2066_v14  ;;  %1473 = vmatpush1.bf16.msra.mxu1 %v2067_v15  ;;  %v2104_v40 = vld [vmem:[%s3004_s1 + $0x194] ss:$20 sps:$4 sm:$0xff]   ;;  %v2106_v41 = vld [vmem:[%s3004_s1 + $0x19c] ss:$20 sps:$4 sm:$0xff]   ;;  %v2112_v45 = vld [vmem:[%s3004_s1 + $0x1c4] ss:$20 sps:$4 sm:$0xff]  }
  0x10   :  { %1351 = vmatprep.subr.bf16.mxu0 %v2068_v16  ;;  %1474 = vmatprep.subr.bf16.mxu1 %v2070_v17  ;;  %v2110_v44 = vld [vmem:[%s3004_s1 + $0x1bc] ss:$20 sps:$4 sm:$0xff]   ;;  %v15_v46 = vld [vmem:[%s3005_s0] sm:$0xff]  ;;  %v2114_v47 = vld [vmem:[%s3004_s1 + $0x1b8] ss:$20 sps:$4 sm:$0xff]  }
  0x11   :  { %v2496_v48 = vcombine.high %v15_v46, %v15_v46  ;;  %v2115_v49 = vld [vmem:[%s3004_s1 + $0x1c0] ss:$20 sps:$4 sm:$0xff]   ;;  %v2116_v50 = vld [vmem:[%s3004_s1 + $0x1e4] ss:$20 sps:$4 sm:$0xff]   ;;  %v2121_v53 = vld [vmem:[%s3004_s1 + $0x1e8] ss:$20 sps:$4 sm:$0xff]   ;;  %v2560_v5 = vcombine.low %v15_v46, %v15_v46 }
  0x12   :  { %v2118_v51 = vld [vmem:[%s3004_s1 + $0x1ec] ss:$20 sps:$4 sm:$0xff]   ;;  %v2124_v55 = vld [vmem:[%s3004_s1 + $0x214] ss:$20 sps:$4 sm:$0xff]   ;;  %v2127_v57 = vld [vmem:[%s3004_s1 + $0x210] ss:$20 sps:$4 sm:$0xff]  }
  0x13   :  { %1352 = vmatpush1.bf16.msra.mxu0 %v2072_v18  ;;  %1475 = vmatpush1.bf16.msra.mxu1 %v2073_v19  ;;  %v2120_v52 = vld [vmem:[%s3004_s1 + $0x1e0] ss:$20 sps:$4 sm:$0xff]   ;;  %v2126_v56 = vld [vmem:[%s3004_s1 + $0x208] ss:$20 sps:$4 sm:$0xff]   ;;  %v2132_v60 = vld [vmem:[%s3004_s1 + $0x230] ss:$20 sps:$4 sm:$0xff]  }
  0x14   :  { %1353 = vmatprep.subr.bf16.mxu0 %v2074_v20  ;;  %1476 = vmatprep.subr.bf16.mxu1 %v2076_v21  ;;  %v2122_v54 = vld [vmem:[%s3004_s1 + $0x20c] ss:$20 sps:$4 sm:$0xff]   ;;  %v2128_v58 = vld [vmem:[%s3004_s1 + $0x234] ss:$20 sps:$4 sm:$0xff]   ;;  %v2130_v59 = vld [vmem:[%s3004_s1 + $0x23c] ss:$20 sps:$4 sm:$0xff]  }
  0x15   :  { %1375 = vmatprep.mubr.bf16.mxu0 %v2496_v48  ;;  %1498 = vmatprep.mubr.bf16.mxu1 %v2496_v48  ;;  %v2133_v61 = vld [vmem:[%s3004_s1 + $0x238] ss:$20 sps:$4 sm:$0xff]   ;;  %v2134_v62 = vld [vmem:[%s3004_s1 + $0x25c] ss:$20 sps:$4 sm:$0xff]   ;;  %v2139_v1 = vld [vmem:[%s3004_s1 + $0x260] ss:$20 sps:$4 sm:$0xff]  }
  0x16   :  { %v2136_v63 = vld [vmem:[%s3004_s1 + $0x264] ss:$20 sps:$4 sm:$0xff]   ;;  %v2146_v3 = vld [vmem:[%s3004_s1 + $0x28c] ss:$20 sps:$4 sm:$0xff]   ;;  %v2144_v6 = vld [vmem:[%s3004_s1 + $0x288] ss:$20 sps:$4 sm:$0xff]  }
  0x17   :  { %1354 = vmatpush1.bf16.msra.mxu0 %v2078_v22  ;;  %1477 = vmatpush1.bf16.msra.mxu1 %v2079_v23  ;;  %v2138_v0 = vld [vmem:[%s3004_s1 + $0x258] ss:$20 sps:$4 sm:$0xff]   ;;  %v2141_v4 = vld [vmem:[%s3004_s1 + $0x280] ss:$20 sps:$4 sm:$0xff]   ;;  %v2148_v9 = vld [vmem:[%s3004_s1 + $0x2a8] ss:$20 sps:$4 sm:$0xff]  }
  0x18   :  { %1355 = vmatprep.subr.bf16.mxu0 %v2080_v24  ;;  %1478 = vmatprep.subr.bf16.mxu1 %v2082_v25  ;;  %v2143_v2 = vld [vmem:[%s3004_s1 + $0x284] ss:$20 sps:$4 sm:$0xff]   ;;  %v2150_v7 = vld [vmem:[%s3004_s1 + $0x2ac] ss:$20 sps:$4 sm:$0xff]   ;;  %v2153_v8 = vld [vmem:[%s3004_s1 + $0x2b4] ss:$20 sps:$4 sm:$0xff]  }
  0x19   :  { %v2151_v10 = vld [vmem:[%s3004_s1 + $0x2b0] ss:$20 sps:$4 sm:$0xff]   ;;  %v2156_v11 = vld [vmem:[%s3004_s1 + $0x2d4] ss:$20 sps:$4 sm:$0xff]   ;;  %v2157_v14 = vld [vmem:[%s3004_s1 + $0x2d8] ss:$20 sps:$4 sm:$0xff]  }
  0x1a   :  { %v2159_v12 = vld [vmem:[%s3004_s1 + $0x2dc] ss:$20 sps:$4 sm:$0xff]   ;;  %v2165_v16 = vld [vmem:[%s3004_s1 + $0x304] ss:$20 sps:$4 sm:$0xff]   ;;  %v2163_v18 = vld [vmem:[%s3004_s1 + $0x300] ss:$20 sps:$4 sm:$0xff]  }
  0x1b   :  { %1356 = vmatpush1.bf16.msra.mxu0 %v2084_v26  ;;  %1479 = vmatpush1.bf16.msra.mxu1 %v2085_v27  ;;  %v2154_v13 = vld [vmem:[%s3004_s1 + $0x2d0] ss:$20 sps:$4 sm:$0xff]   ;;  %v2160_v17 = vld [vmem:[%s3004_s1 + $0x2f8] ss:$20 sps:$4 sm:$0xff]   ;;  %v2166_v21 = vld [vmem:[%s3004_s1 + $0x320] ss:$20 sps:$4 sm:$0xff]  }
  0x1c   :  { %1357 = vmatprep.subr.bf16.mxu0 %v2086_v28  ;;  %1480 = vmatprep.subr.bf16.mxu1 %v2088_v29  ;;  %v2162_v15 = vld [vmem:[%s3004_s1 + $0x2fc] ss:$20 sps:$4 sm:$0xff]   ;;  %v2168_v19 = vld [vmem:[%s3004_s1 + $0x324] ss:$20 sps:$4 sm:$0xff]   ;;  %v2171_v20 = vld [vmem:[%s3004_s1 + $0x32c] ss:$20 sps:$4 sm:$0xff]  }
  0x1d   :  { %v2169_v22 = vld [vmem:[%s3004_s1 + $0x328] ss:$20 sps:$4 sm:$0xff]   ;;  %v2174_v23 = vld [vmem:[%s3004_s1 + $0x34c] ss:$20 sps:$4 sm:$0xff]   ;;  %v2175_v26 = vld [vmem:[%s3004_s1 + $0x350] ss:$20 sps:$4 sm:$0xff]  }
  0x1e   :  { %v2177_v24 = vld [vmem:[%s3004_s1 + $0x354] ss:$20 sps:$4 sm:$0xff]   ;;  %v2183_v28 = vld [vmem:[%s3004_s1 + $0x37c] ss:$20 sps:$4 sm:$0xff]  }
  0x1f   :  { %1358 = vmatpush1.bf16.msra.mxu0 %v2090_v30  ;;  %1481 = vmatpush1.bf16.msra.mxu1 %v2091_v31  ;;  %v2172_v25 = vld [vmem:[%s3004_s1 + $0x348] ss:$20 sps:$4 sm:$0xff]   ;;  %v2178_v31 = vld [vmem:[%s3004_s1 + $0x370] ss:$20 sps:$4 sm:$0xff]  }
  0x20   :  { %1359 = vmatprep.subr.bf16.mxu0 %v2092_v32  ;;  %1482 = vmatprep.subr.bf16.mxu1 %v2094_v33  ;;  %v2180_v27 = vld [vmem:[%s3004_s1 + $0x374] ss:$20 sps:$4 sm:$0xff]   ;;  %v2181_v32 = vld [vmem:[%s3004_s1 + $0x378] ss:$20 sps:$4 sm:$0xff]   ;;  %v2186_v33 = vld [vmem:[%s3004_s1 + $0x39c] ss:$20 sps:$4 sm:$0xff]  }
  0x21   :  { %v2636_v29 = vld [vmem:[%s3005_s0 + $0x8] sm:$0xff]  ;;  %v2207_v46 = vld [vmem:[%s3004_s1 + $0x41c] ss:$20 sps:$4 sm:$0xff]  }
  0x22   :  { %v2640_v30 = vcombine.high %v2636_v29, %v2636_v29 }
  0x23   :  { %1360 = vmatpush1.bf16.msra.mxu0 %v2096_v34  ;;  %1483 = vmatpush1.bf16.msra.mxu1 %v2097_v35  ;;  %v2189_v34 = vld [vmem:[%s3004_s1 + $0x3a4] ss:$20 sps:$4 sm:$0xff]  }
  0x24   :  { %1361 = vmatprep.subr.bf16.mxu0 %v2098_v36  ;;  %1484 = vmatprep.subr.bf16.mxu1 %v2100_v37  ;;  %v2184_v35 = vld [vmem:[%s3004_s1 + $0x398] ss:$20 sps:$4 sm:$0xff]   ;;  %v2187_v36 = vld [vmem:[%s3004_s1 + $0x3a0] ss:$20 sps:$4 sm:$0xff]  }
  0x25   :  { %v2192_v37 = vld [vmem:[%s3004_s1 + $0x3c4] ss:$20 sps:$4 sm:$0xff]  }
  0x27   :  { %1362 = vmatpush1.bf16.msra.mxu0 %v2102_v38  ;;  %1485 = vmatpush1.bf16.msra.mxu1 %v2103_v39  ;;  %v2195_v38 = vld [vmem:[%s3004_s1 + $0x3cc] ss:$20 sps:$4 sm:$0xff]  }
  0x28   :  { %1363 = vmatprep.subr.bf16.mxu0 %v2104_v40  ;;  %1486 = vmatprep.subr.bf16.mxu1 %v2106_v41  ;;  %v2190_v39 = vld [vmem:[%s3004_s1 + $0x3c0] ss:$20 sps:$4 sm:$0xff]   ;;  %v2193_v40 = vld [vmem:[%s3004_s1 + $0x3c8] ss:$20 sps:$4 sm:$0xff]  }
  0x29   :  { %v2198_v41 = vld [vmem:[%s3004_s1 + $0x3ec] ss:$20 sps:$4 sm:$0xff]  }
  0x2b   :  { %1364 = vmatpush1.bf16.msra.mxu0 %v2108_v42  ;;  %1487 = vmatpush1.bf16.msra.mxu1 %v2109_v43  ;;  %v2201_v42 = vld [vmem:[%s3004_s1 + $0x3f4] ss:$20 sps:$4 sm:$0xff]  }
  0x2c   :  { %1365 = vmatprep.subr.bf16.mxu0 %v2110_v44  ;;  %1488 = vmatprep.subr.bf16.mxu1 %v2112_v45  ;;  %v2196_v43 = vld [vmem:[%s3004_s1 + $0x3e8] ss:$20 sps:$4 sm:$0xff]   ;;  %v2199_v44 = vld [vmem:[%s3004_s1 + $0x3f0] ss:$20 sps:$4 sm:$0xff]  }
  0x2d   :  { %v2204_v45 = vld [vmem:[%s3004_s1 + $0x414] ss:$20 sps:$4 sm:$0xff]  }
  0x2f   :  { %1366 = vmatpush1.bf16.msra.mxu0 %v2114_v47  ;;  %1489 = vmatpush1.bf16.msra.mxu1 %v2115_v49  ;;  %v2202_v47 = vld [vmem:[%s3004_s1 + $0x410] ss:$20 sps:$4 sm:$0xff]   ;;  %v2205_v49 = vld [vmem:[%s3004_s1 + $0x418] ss:$20 sps:$4 sm:$0xff]  }
  0x30   :  { %1367 = vmatprep.subr.bf16.mxu0 %v2116_v50  ;;  %1490 = vmatprep.subr.bf16.mxu1 %v2118_v51  ;;  %v2210_v50 = vld [vmem:[%s3004_s1 + $0x43c] ss:$20 sps:$4 sm:$0xff]   ;;  %v2213_v51 = vld [vmem:[%s3004_s1 + $0x444] ss:$20 sps:$4 sm:$0xff]  }
  0x33   :  { %1368 = vmatpush1.bf16.msra.mxu0 %v2120_v52  ;;  %1491 = vmatpush1.bf16.msra.mxu1 %v2121_v53  ;;  %v2208_v52 = vld [vmem:[%s3004_s1 + $0x438] ss:$20 sps:$4 sm:$0xff]   ;;  %v2211_v53 = vld [vmem:[%s3004_s1 + $0x440] ss:$20 sps:$4 sm:$0xff]  }
  0x34   :  { %1369 = vmatprep.subr.bf16.mxu0 %v2122_v54  ;;  %1492 = vmatprep.subr.bf16.mxu1 %v2124_v55  ;;  %v2216_v54 = vld [vmem:[%s3004_s1 + $0x464] ss:$20 sps:$4 sm:$0xff]   ;;  %v2219_v55 = vld [vmem:[%s3004_s1 + $0x46c] ss:$20 sps:$4 sm:$0xff]  }
  0x37   :  { %1370 = vmatpush1.bf16.msra.mxu0 %v2126_v56  ;;  %1493 = vmatpush1.bf16.msra.mxu1 %v2127_v57  ;;  %v2214_v56 = vld [vmem:[%s3004_s1 + $0x460] ss:$20 sps:$4 sm:$0xff]   ;;  %v2217_v57 = vld [vmem:[%s3004_s1 + $0x468] ss:$20 sps:$4 sm:$0xff]  }
  0x38   :  { %1371 = vmatprep.subr.bf16.mxu0 %v2128_v58  ;;  %1494 = vmatprep.subr.bf16.mxu1 %v2130_v59  ;;  %v2222_v58 = vld [vmem:[%s3004_s1 + $0x48c] ss:$20 sps:$4 sm:$0xff]   ;;  %v2225_v59 = vld [vmem:[%s3004_s1 + $0x494] ss:$20 sps:$4 sm:$0xff]  }
  0x3b   :  { %1372 = vmatpush1.bf16.msra.mxu0 %v2132_v60  ;;  %1495 = vmatpush1.bf16.msra.mxu1 %v2133_v61  ;;  %v2220_v60 = vld [vmem:[%s3004_s1 + $0x488] ss:$20 sps:$4 sm:$0xff]   ;;  %v2223_v61 = vld [vmem:[%s3004_s1 + $0x490] ss:$20 sps:$4 sm:$0xff]  }
  0x3c   :  { %1373 = vmatprep.subr.bf16.mxu0 %v2134_v62  ;;  %1496 = vmatprep.subr.bf16.mxu1 %v2136_v63  ;;  %v2228_v62 = vld [vmem:[%s3004_s1 + $0x4b4] ss:$20 sps:$4 sm:$0xff]   ;;  %v2231_v63 = vld [vmem:[%s3004_s1 + $0x4bc] ss:$20 sps:$4 sm:$0xff]  }
  0x3f   :  { %1374 = vmatpush1.bf16.msra.mxu0 %v2138_v0  ;;  %1497 = vmatpush1.bf16.msra.mxu1 %v2139_v1  ;;  %v2226_v0 = vld [vmem:[%s3004_s1 + $0x4b0] ss:$20 sps:$4 sm:$0xff]   ;;  %v2229_v1 = vld [vmem:[%s3004_s1 + $0x4b8] ss:$20 sps:$4 sm:$0xff]  }
  0x40   :  { %1384 = vmatprep.subr.bf16.mxu0 %v2143_v2  ;;  %1507 = vmatprep.subr.bf16.mxu1 %v2146_v3  ;;  %v2234_v2 = vld [vmem:[%s3004_s1 + $0x4dc] ss:$20 sps:$4 sm:$0xff]   ;;  %v2237_v3 = vld [vmem:[%s3004_s1 + $0x4e4] ss:$20 sps:$4 sm:$0xff]  }
  0x42   :  { %1376 = vmatmul.mubr.bf16.vlgmr.msra.gmra.mrb[0].mxu0 %v2560_v5  ;;  %1499 = vmatmul.mubr.bf16.vlgmr.msra.gmra.mrb[0].mxu1 %v2560_v5 }
  0x43   :  { %1385 = vmatpush1.bf16.msra.mxu0 %v2141_v4  ;;  %1508 = vmatpush1.bf16.msra.mxu1 %v2144_v6  ;;  %v2232_v4 = vld [vmem:[%s3004_s1 + $0x4d8] ss:$20 sps:$4 sm:$0xff]   ;;  %v2235_v6 = vld [vmem:[%s3004_s1 + $0x4e0] ss:$20 sps:$4 sm:$0xff]  }
  0x44   :  { %1386 = vmatprep.subr.bf16.mxu0 %v2150_v7  ;;  %1509 = vmatprep.subr.bf16.mxu1 %v2153_v8  ;;  %v2242_v7 = vld [vmem:[%s3004_s1 + $0x504] ss:$20 sps:$4 sm:$0xff]   ;;  %v2245_v8 = vld [vmem:[%s3004_s1 + $0x50c] ss:$20 sps:$4 sm:$0xff]  }
  0x45   :  { %1416 = vmatprep.mubr.bf16.mxu0 %v2640_v30  ;;  %1539 = vmatprep.mubr.bf16.mxu1 %v2640_v30 }
  0x47   :  { %1387 = vmatpush1.bf16.msra.mxu0 %v2148_v9  ;;  %1510 = vmatpush1.bf16.msra.mxu1 %v2151_v10  ;;  %v2240_v9 = vld [vmem:[%s3004_s1 + $0x500] ss:$20 sps:$4 sm:$0xff]   ;;  %v2769_v10 = vcombine.low %v2636_v29, %v2636_v29 }
  0x48   :  { %1388 = vmatprep.subr.bf16.mxu0 %v2156_v11  ;;  %1511 = vmatprep.subr.bf16.mxu1 %v2159_v12  ;;  %v2243_v11 = vld [vmem:[%s3004_s1 + $0x508] ss:$20 sps:$4 sm:$0xff]   ;;  %v2248_v12 = vld [vmem:[%s3004_s1 + $0x52c] ss:$20 sps:$4 sm:$0xff]  }
  0x49   :  { %v2272_v29 = vld [vmem:[%s3004_s1 + $0x5cc] ss:$20 sps:$4 sm:$0xff]  }
  0x4b   :  { %1389 = vmatpush1.bf16.msra.mxu0 %v2154_v13  ;;  %1512 = vmatpush1.bf16.msra.mxu1 %v2157_v14  ;;  %v2251_v13 = vld [vmem:[%s3004_s1 + $0x534] ss:$20 sps:$4 sm:$0xff]  }
  0x4c   :  { %1390 = vmatprep.subr.bf16.mxu0 %v2162_v15  ;;  %1513 = vmatprep.subr.bf16.mxu1 %v2165_v16  ;;  %v2246_v14 = vld [vmem:[%s3004_s1 + $0x528] ss:$20 sps:$4 sm:$0xff]   ;;  %v2249_v15 = vld [vmem:[%s3004_s1 + $0x530] ss:$20 sps:$4 sm:$0xff]  }
  0x4d   :  { %v2254_v16 = vld [vmem:[%s3004_s1 + $0x554] ss:$20 sps:$4 sm:$0xff]  }
  0x4f   :  { %1391 = vmatpush1.bf16.msra.mxu0 %v2160_v17  ;;  %1514 = vmatpush1.bf16.msra.mxu1 %v2163_v18  ;;  %v2257_v17 = vld [vmem:[%s3004_s1 + $0x55c] ss:$20 sps:$4 sm:$0xff]  }
  0x50   :  { %1392 = vmatprep.subr.bf16.mxu0 %v2168_v19  ;;  %1515 = vmatprep.subr.bf16.mxu1 %v2171_v20  ;;  %v2252_v18 = vld [vmem:[%s3004_s1 + $0x550] ss:$20 sps:$4 sm:$0xff]   ;;  %v2329_v19 = vmov 0   ;;  %v2255_v20 = vld [vmem:[%s3004_s1 + $0x558] ss:$20 sps:$4 sm:$0xff]  }
  0x53   :  { %1393 = vmatpush1.bf16.msra.mxu0 %v2166_v21  ;;  %1516 = vmatpush1.bf16.msra.mxu1 %v2169_v22  ;;  %v2260_v21 = vld [vmem:[%s3004_s1 + $0x57c] ss:$20 sps:$4 sm:$0xff]   ;;  %v2263_v22 = vld [vmem:[%s3004_s1 + $0x584] ss:$20 sps:$4 sm:$0xff]  }
  0x54   :  { %1394 = vmatprep.subr.bf16.mxu0 %v2174_v23  ;;  %1517 = vmatprep.subr.bf16.mxu1 %v2177_v24  ;;  %v2258_v23 = vld [vmem:[%s3004_s1 + $0x578] ss:$20 sps:$4 sm:$0xff]   ;;  %v2261_v24 = vld [vmem:[%s3004_s1 + $0x580] ss:$20 sps:$4 sm:$0xff]  }
  0x57   :  { %1395 = vmatpush1.bf16.msra.mxu0 %v2172_v25  ;;  %1518 = vmatpush1.bf16.msra.mxu1 %v2175_v26  ;;  %v2266_v25 = vld [vmem:[%s3004_s1 + $0x5a4] ss:$20 sps:$4 sm:$0xff]   ;;  %v2269_v26 = vld [vmem:[%s3004_s1 + $0x5ac] ss:$20 sps:$4 sm:$0xff]  }
  0x58   :  { %1396 = vmatprep.subr.bf16.mxu0 %v2180_v27  ;;  %1519 = vmatprep.subr.bf16.mxu1 %v2183_v28  ;;  %v2264_v27 = vld [vmem:[%s3004_s1 + $0x5a0] ss:$20 sps:$4 sm:$0xff]   ;;  %v2267_v28 = vld [vmem:[%s3004_s1 + $0x5a8] ss:$20 sps:$4 sm:$0xff]  }
  0x5b   :  { %1397 = vmatpush1.bf16.msra.mxu0 %v2178_v31  ;;  %1520 = vmatpush1.bf16.msra.mxu1 %v2181_v32  ;;  %v2275_v31 = vld [vmem:[%s3004_s1 + $0x5d4] ss:$20 sps:$4 sm:$0xff]  }
  0x5c   :  { %1398 = vmatprep.subr.bf16.mxu0 %v2186_v33  ;;  %1521 = vmatprep.subr.bf16.mxu1 %v2189_v34  ;;  %v2270_v32 = vld [vmem:[%s3004_s1 + $0x5c8] ss:$20 sps:$4 sm:$0xff]   ;;  %v2273_v33 = vld [vmem:[%s3004_s1 + $0x5d0] ss:$20 sps:$4 sm:$0xff]  }
  0x5d   :  { %v2278_v34 = vld [vmem:[%s3004_s1 + $0x5f4] ss:$20 sps:$4 sm:$0xff]  }
  0x5f   :  { %1399 = vmatpush1.bf16.msra.mxu0 %v2184_v35  ;;  %1522 = vmatpush1.bf16.msra.mxu1 %v2187_v36  ;;  %v2281_v35 = vld [vmem:[%s3004_s1 + $0x5fc] ss:$20 sps:$4 sm:$0xff]  }
  0x60   :  { %1400 = vmatprep.subr.bf16.mxu0 %v2192_v37  ;;  %1523 = vmatprep.subr.bf16.mxu1 %v2195_v38  ;;  %v2276_v36 = vld [vmem:[%s3004_s1 + $0x5f0] ss:$20 sps:$4 sm:$0xff]   ;;  %v2279_v37 = vld [vmem:[%s3004_s1 + $0x5f8] ss:$20 sps:$4 sm:$0xff]  }
  0x61   :  { %v2284_v38 = vld [vmem:[%s3004_s1 + $0x61c] ss:$20 sps:$4 sm:$0xff]  }
  0x63   :  { %1401 = vmatpush1.bf16.msra.mxu0 %v2190_v39  ;;  %1524 = vmatpush1.bf16.msra.mxu1 %v2193_v40  ;;  %v2287_v39 = vld [vmem:[%s3004_s1 + $0x624] ss:$20 sps:$4 sm:$0xff]  }
  0x64   :  { %1402 = vmatprep.subr.bf16.mxu0 %v2198_v41  ;;  %1525 = vmatprep.subr.bf16.mxu1 %v2201_v42  ;;  %v2282_v40 = vld [vmem:[%s3004_s1 + $0x618] ss:$20 sps:$4 sm:$0xff]   ;;  %v2285_v41 = vld [vmem:[%s3004_s1 + $0x620] ss:$20 sps:$4 sm:$0xff]   ;;  %v2289_v42 = vld [vmem:[%s3004_s1 + $0x150] ss:$20 sps:$4 sm:$0xff]  }
  0x67   :  { %1403 = vmatpush1.bf16.msra.mxu0 %v2196_v43  ;;  %1526 = vmatpush1.bf16.msra.mxu1 %v2199_v44  ;;  %v2291_v43 = vld [vmem:[%s3004_s1 + $0x3d0] ss:$20 sps:$4 sm:$0xff]  }
  0x68   :  { %1404 = vmatprep.subr.bf16.mxu0 %v2204_v45  ;;  %1527 = vmatprep.subr.bf16.mxu1 %v2207_v46  ;;  %v2869_v44 = vld [vmem:[%s3005_s0 + $0x10] ss:$0 sps:$4 sm:$0xff]  }
  0x69   :  { %v2290_v45 = vld [vmem:[%s3004_s1 + $0x10] ss:$20 sps:$4 sm:$0xff]  }
  0x6a   :  { %v2292_v46 = vld [vmem:[%s3004_s1 + $0x290] ss:$20 sps:$4 sm:$0xff]  }
  0x6b   :  { %1405 = vmatpush1.bf16.msra.mxu0 %v2202_v47  ;;  %1528 = vmatpush1.bf16.msra.mxu1 %v2205_v49  ;;  %v2293_v47 = vld [vmem:[%s3004_s1 + $0x178] ss:$20 sps:$4 sm:$0xff]  }
  0x6c   :  { %1406 = vmatprep.subr.bf16.mxu0 %v2210_v50  ;;  %1529 = vmatprep.subr.bf16.mxu1 %v2213_v51  ;;  %v2295_v49 = vld [vmem:[%s3004_s1 + $0x3f8] ss:$20 sps:$4 sm:$0xff]  }
  0x6d   :  { %v2294_v50 = vld [vmem:[%s3004_s1 + $0x38] ss:$20 sps:$4 sm:$0xff]  }
  0x6e   :  { %v2296_v51 = vld [vmem:[%s3004_s1 + $0x2b8] ss:$20 sps:$4 sm:$0xff]  }
  0x6f   :  { %1407 = vmatpush1.bf16.msra.mxu0 %v2208_v52  ;;  %1530 = vmatpush1.bf16.msra.mxu1 %v2211_v53  ;;  %v2297_v52 = vld [vmem:[%s3004_s1 + $0x1a0] ss:$20 sps:$4 sm:$0xff]  }
  0x70   :  { %1408 = vmatprep.subr.bf16.mxu0 %v2216_v54  ;;  %1531 = vmatprep.subr.bf16.mxu1 %v2219_v55  ;;  %v2299_v53 = vld [vmem:[%s3004_s1 + $0x420] ss:$20 sps:$4 sm:$0xff]  }
  0x71   :  { %v2298_v54 = vld [vmem:[%s3004_s1 + $0x60] ss:$20 sps:$4 sm:$0xff]  }
  0x72   :  { %v2300_v55 = vld [vmem:[%s3004_s1 + $0x2e0] ss:$20 sps:$4 sm:$0xff]  }
  0x73   :  { %1409 = vmatpush1.bf16.msra.mxu0 %v2214_v56  ;;  %1532 = vmatpush1.bf16.msra.mxu1 %v2217_v57  ;;  %v2301_v56 = vld [vmem:[%s3004_s1 + $0x1c8] ss:$20 sps:$4 sm:$0xff]  }
  0x74   :  { %1410 = vmatprep.subr.bf16.mxu0 %v2222_v58  ;;  %1533 = vmatprep.subr.bf16.mxu1 %v2225_v59  ;;  %v2304_v57 = vld [vmem:[%s3004_s1 + $0x308] ss:$20 sps:$4 sm:$0xff]   ;;  %v2305_v58 = vld [vmem:[%s3004_s1 + $0x1f0] ss:$20 sps:$4 sm:$0xff]  }
  0x75   :  { %v2307_v59 = vld [vmem:[%s3004_s1 + $0x470] ss:$20 sps:$4 sm:$0xff]  }
  0x77   :  { %1411 = vmatpush1.bf16.msra.mxu0 %v2220_v60  ;;  %1534 = vmatpush1.bf16.msra.mxu1 %v2223_v61  ;;  %v2306_v60 = vld [vmem:[%s3004_s1 + $0xb0] ss:$20 sps:$4 sm:$0xff]  }
  0x78   :  { %1412 = vmatprep.subr.bf16.mxu0 %v2228_v62  ;;  %1535 = vmatprep.subr.bf16.mxu1 %v2231_v63  ;;  %v2308_v61 = vld [vmem:[%s3004_s1 + $0x330] ss:$20 sps:$4 sm:$0xff]   ;;  %v2309_v62 = vld [vmem:[%s3004_s1 + $0x218] ss:$20 sps:$4 sm:$0xff]  }
  0x79   :  { %v2311_v63 = vld [vmem:[%s3004_s1 + $0x498] ss:$20 sps:$4 sm:$0xff]  }
  0x7b   :  { %1413 = vmatpush1.bf16.msra.mxu0 %v2226_v0  ;;  %1536 = vmatpush1.bf16.msra.mxu1 %v2229_v1  ;;  %v2310_v0 = vld [vmem:[%s3004_s1 + $0xd8] ss:$20 sps:$4 sm:$0xff]  }
  0x7c   :  { %1414 = vmatprep.subr.bf16.mxu0 %v2234_v2  ;;  %1537 = vmatprep.subr.bf16.mxu1 %v2237_v3  ;;  %v2312_v1 = vld [vmem:[%s3004_s1 + $0x358] ss:$20 sps:$4 sm:$0xff]   ;;  %v2313_v2 = vld [vmem:[%s3004_s1 + $0x240] ss:$20 sps:$4 sm:$0xff]  }
  0x7d   :  { %v2315_v3 = vld [vmem:[%s3004_s1 + $0x4c0] ss:$20 sps:$4 sm:$0xff]  }
  0x7f   :  { %1415 = vmatpush1.bf16.msra.mxu0 %v2232_v4  ;;  %1538 = vmatpush1.bf16.msra.mxu1 %v2235_v6  ;;  %v2314_v4 = vld [vmem:[%s3004_s1 + $0x100] ss:$20 sps:$4 sm:$0xff]  }
  0x80   :  { %1425 = vmatprep.subr.bf16.mxu0 %v2242_v7  ;;  %1548 = vmatprep.subr.bf16.mxu1 %v2245_v8  ;;  %v2316_v6 = vld [vmem:[%s3004_s1 + $0x380] ss:$20 sps:$4 sm:$0xff]   ;;  %v2317_v7 = vld [vmem:[%s3004_s1 + $0x268] ss:$20 sps:$4 sm:$0xff]  }
  0x81   :  { %v2319_v8 = vld [vmem:[%s3004_s1 + $0x4e8] ss:$20 sps:$4 sm:$0xff]  }
  0x82   :  { %1417 = vmatmul.mubr.bf16.vlgmr.msra.gmra.mrb[0].mxu0 %v2769_v10  ;;  %1540 = vmatmul.mubr.bf16.vlgmr.msra.gmra.mrb[0].mxu1 %v2769_v10 }
  0x83   :  { %1426 = vmatpush1.bf16.msra.mxu0 %v2240_v9  ;;  %1549 = vmatpush1.bf16.msra.mxu1 %v2243_v11  ;;  %v2318_v9 = vld [vmem:[%s3004_s1 + $0x128] ss:$20 sps:$4 sm:$0xff]  }
  0x84   :  { %1427 = vmatprep.subr.bf16.mxu0 %v2248_v12  ;;  %1550 = vmatprep.subr.bf16.mxu1 %v2251_v13  ;;  %v2320_v11 = vld [vmem:[%s3004_s1 + $0x3a8] ss:$20 sps:$4 sm:$0xff]   ;;  %v2321_v12 = vld [vmem:[%s3004_s1 + $0x510] ss:$20 sps:$4 sm:$0xff]   ;;  %v2330_v13 = vmov 0.0  }
  0x85   :  { %1457 = vmatprep.mubr.bf16.mxu0 %v2329_v19  ;;  %1580 = vmatprep.mubr.bf16.mxu1 %v2329_v19  ;;  %v260_v19 = vlaneseq }
  0x87   :  { %1428 = vmatpush1.bf16.msra.mxu0 %v2246_v14  ;;  %1551 = vmatpush1.bf16.msra.mxu1 %v2249_v15  ;;  %v2322_v14 = vld [vmem:[%s3004_s1 + $0x538] ss:$20 sps:$4 sm:$0xff]   ;;  %v2323_v15 = vld [vmem:[%s3004_s1 + $0x560] ss:$20 sps:$4 sm:$0xff]  }
  0x88   :  { %1429 = vmatprep.subr.bf16.mxu0 %v2254_v16  ;;  %1552 = vmatprep.subr.bf16.mxu1 %v2257_v17  ;;  %v2326_v16 = vld [vmem:[%s3004_s1 + $0x5d8] ss:$20 sps:$4 sm:$0xff]   ;;  %v2327_v17 = vld [vmem:[%s3004_s1 + $0x600] ss:$20 sps:$4 sm:$0xff]  }
  0x8b   :  { %1430 = vmatpush1.bf16.msra.mxu0 %v2252_v18  ;;  %1553 = vmatpush1.bf16.msra.mxu1 %v2255_v20  ;;  %v2328_v18 = vld [vmem:[%s3004_s1 + $0x628] ss:$20 sps:$4 sm:$0xff]   ;;  %v261_v20 = vshrl.u32 %v260_v19, 7 }
  0x8c   :  { %1431 = vmatprep.subr.bf16.mxu0 %v2260_v21  ;;  %1554 = vmatprep.subr.bf16.mxu1 %v2263_v22 }
  0x8d   :  { %v262_v21 = vsub.s32 0, %v261_v20  ;;  %v270_v22 = vsub.s32 2, %v261_v20 }
  0x8f   :  { %1432 = vmatpush1.bf16.msra.mxu0 %v2258_v23  ;;  %1555 = vmatpush1.bf16.msra.mxu1 %v2261_v24  ;;  %v258_v23 = vld [vmem:[%s3006_s2] sm:$0x1f]  ;;  %v266_v24 = vsub.s32 1, %v261_v20 }
  0x90   :  { %1433 = vmatprep.subr.bf16.mxu0 %v2266_v25  ;;  %1556 = vmatprep.subr.bf16.mxu1 %v2269_v26  ;;  %v274_v25 = vsub.s32 3, %v261_v20  ;;  %v263_v26 = vrot.slane %v258_v23, %v262_v21 }
  0x93   :  { %1434 = vmatpush1.bf16.msra.mxu0 %v2264_v27  ;;  %1557 = vmatpush1.bf16.msra.mxu1 %v2267_v28  ;;  %v271_v27 = vrot.slane %v258_v23, %v270_v22  ;;  %v267_v28 = vrot.slane %v258_v23, %v266_v24 }
  0x94   :  { %1435 = vmatprep.subr.bf16.mxu0 %v2272_v29  ;;  %1558 = vmatprep.subr.bf16.mxu1 %v2275_v31  ;;  %v275_v29 = vrot.slane %v258_v23, %v274_v25 }
  0x97   :  { %1436 = vmatpush1.bf16.msra.mxu0 %v2270_v32  ;;  %1559 = vmatpush1.bf16.msra.mxu1 %v2273_v33 }
  0x98   :  { %1437 = vmatprep.subr.bf16.mxu0 %v2278_v34  ;;  %1560 = vmatprep.subr.bf16.mxu1 %v2281_v35 }
  0x9b   :  { %1438 = vmatpush1.bf16.msra.mxu0 %v2276_v36  ;;  %1561 = vmatpush1.bf16.msra.mxu1 %v2279_v37 }
  0x9c   :  { %1439 = vmatprep.subr.bf16.mxu0 %v2284_v38  ;;  %1562 = vmatprep.subr.bf16.mxu1 %v2287_v39 }
  0x9f   :  { %1440 = vmatpush1.bf16.msra.mxu0 %v2282_v40  ;;  %1563 = vmatpush1.bf16.msra.mxu1 %v2285_v41 }
  0xa0   :  { %1948 = vmatprep.subr.bf16.mxu0 %v2289_v42  ;;  %1970 = vmatprep.subr.bf16.mxu1 %v2291_v43 }
  0xa2   :  { %1458 = vmatmul.mubr.bf16.vlgmr.msra.gmra.mrb[0].mxu0 %v2869_v44  ;;  %1581 = vmatmul.mubr.bf16.vlgmr.msra.gmra.mrb[0].mxu1 %v2869_v44 }
  0xa3   :  { %1949 = vmatpush3.bf16.msra.mxu0 %v2290_v45  ;;  %1971 = vmatpush3.bf16.msra.mxu1 %v2292_v46  ;;  %v278_v45 = vsub.s32 4, %v261_v20 }
  0xa4   :  { %1950 = vmatprep.subr.bf16.mxu0 %v2293_v47  ;;  %1972 = vmatprep.subr.bf16.mxu1 %v2295_v49 }
  0xa5   :  { %1621 = vmatprep.mubr.bf16.mxu0 %v2496_v48  ;;  %1661 = vmatprep.mubr.bf16.mxu1 %v2640_v30  ;;  %v2303_v48 = vld [vmem:[%s3004_s1 + $0x448] ss:$20 sps:$4 sm:$0xff]   ;;  %v279_v47 = vrot.slane %v258_v23, %v278_v45 }
  0xa6   :  { %v2302_v30 = vld [vmem:[%s3004_s1 + $0x88] ss:$20 sps:$4 sm:$0xff]  }
  0xa7   :  { %1951 = vmatpush3.bf16.msra.mxu0 %v2294_v50  ;;  %1973 = vmatpush3.bf16.msra.mxu1 %v2296_v51 }
  0xa8   :  { %1952 = vmatprep.subr.bf16.mxu0 %v2297_v52  ;;  %1974 = vmatprep.subr.bf16.mxu1 %v2299_v53 }
  0xab   :  { %1953 = vmatpush3.bf16.msra.mxu0 %v2298_v54  ;;  %1975 = vmatpush3.bf16.msra.mxu1 %v2300_v55 }
  0xac   :  { %1954 = vmatprep.subr.bf16.mxu0 %v2301_v56  ;;  %1976 = vmatprep.subr.bf16.mxu1 %v2303_v48 }
  0xaf   :  { %1955 = vmatpush3.bf16.msra.mxu0 %v2302_v30  ;;  %1977 = vmatpush3.bf16.msra.mxu1 %v2304_v57 }
  0xb0   :  { %1956 = vmatprep.subr.bf16.mxu0 %v2305_v58  ;;  %1978 = vmatprep.subr.bf16.mxu1 %v2307_v59 }
  0xb3   :  { %1957 = vmatpush3.bf16.msra.mxu0 %v2306_v60  ;;  %1979 = vmatpush3.bf16.msra.mxu1 %v2308_v61 }
  0xb4   :  { %1958 = vmatprep.subr.bf16.mxu0 %v2309_v62  ;;  %1980 = vmatprep.subr.bf16.mxu1 %v2311_v63 }
  0xb7   :  { %1959 = vmatpush3.bf16.msra.mxu0 %v2310_v0  ;;  %1981 = vmatpush3.bf16.msra.mxu1 %v2312_v1 }
  0xb8   :  { %1960 = vmatprep.subr.bf16.mxu0 %v2313_v2  ;;  %1982 = vmatprep.subr.bf16.mxu1 %v2315_v3 }
  0xbb   :  { %1961 = vmatpush3.bf16.msra.mxu0 %v2314_v4  ;;  %1983 = vmatpush3.bf16.msra.mxu1 %v2316_v6 }
  0xbc   :  { %1962 = vmatprep.subr.bf16.mxu0 %v2317_v7  ;;  %1984 = vmatprep.subr.bf16.mxu1 %v2319_v8 }
  0xbf   :  { %1963 = vmatpush3.bf16.msra.mxu0 %v2318_v9  ;;  %1985 = vmatpush3.bf16.msra.mxu1 %v2320_v11 }
  0xc0   :  { %2001 = vmatprep.subr.bf16.mxu0 %v2330_v13 }
  0xc2   :  { %1622 = vmatmul.mubr.bf16.vlgmr.msra.gmra.mrb[4].mxu0 %v2560_v5  ;;  %1662 = vmatmul.mubr.bf16.vlgmr.msra.gmra.mrb[4].mxu1 %v2769_v10  ;;  %v2324_v5 = vld [vmem:[%s3004_s1 + $0x588] ss:$20 sps:$4 sm:$0xff]   ;;  %v2325_v10 = vld [vmem:[%s3004_s1 + $0x5b0] ss:$20 sps:$4 sm:$0xff]  }
  0xc3   :  { %2002 = vmatpush3.bf16.msra.mxu0 %v2321_v12  ;;  %2017 = vmatprep.mubr.msk.bf16.mxu0 %vm2331_vm0, %v2330_v13 }
  0xc4   :  { %2003 = vmatprep.subr.bf16.mxu0 %v2330_v13 }
  0xc7   :  { %2004 = vmatpush3.bf16.msra.mxu0 %v2322_v14 }
  0xc8   :  { %2005 = vmatprep.subr.bf16.mxu0 %v2330_v13 }
  0xcb   :  { %2006 = vmatpush3.bf16.msra.mxu0 %v2323_v15 }
  0xcc   :  { %2007 = vmatprep.subr.bf16.mxu0 %v2330_v13 }
  0xcf   :  { %2008 = vmatpush3.bf16.msra.mxu0 %v2324_v5 }
  0xd0   :  { %2009 = vmatprep.subr.bf16.mxu0 %v2330_v13 }
  0xd3   :  { %2010 = vmatpush3.bf16.msra.mxu0 %v2325_v10 }
  0xd4   :  { %2011 = vmatprep.subr.bf16.mxu0 %v2330_v13 }
  0xd7   :  { %2012 = vmatpush3.bf16.msra.mxu0 %v2326_v16 }
  0xd8   :  { %2013 = vmatprep.subr.bf16.mxu0 %v2330_v13 }
  0xdb   :  { %2014 = vmatpush3.bf16.msra.mxu0 %v2327_v17 }
  0xdc   :  { %2015 = vmatprep.subr.bf16.mxu0 %v2330_v13 }
  0xdf   :  { %2016 = vmatpush3.bf16.msra.mxu0 %v2328_v18 }
  0xe2   :  { %2018 = vmatmul.mubr.bf16.vlgmr.msra.gmra.mrb[8].mxu0 %v2869_v44 }
 0x175   :  { %v1459_v31 = vpop.f32.mrb[0].mxu0  ;;  %v1582_v32 = vpop.f32.mrb[0].mxu1 }
 0x176   :  { %v2021_v33 = vadd.f32 %v1459_v31, %v263_v26  ;;  %v2023_v34 = vadd.f32 %v1582_v32, %v271_v27  ;;  %v1461_v35 = vpop.f32.mrb[1].mxu0  ;;  %v1584_v36 = vpop.f32.mrb[1].mxu1 }
 0x177   :  { %v2022_v37 = vadd.f32 %v1461_v35, %v267_v28  ;;  %v2024_v38 = vadd.f32 %v1584_v36, %v275_v29  ;;  %v1463_v39 = vpop.f32.mrb[2].mxu0  ;;  %v1586_v40 = vpop.f32.mrb[2].mxu1 }
 0x178   :  { %v1464_v41 = vpop.f32.mrb[3].mxu0  ;;  %v1587_v42 = vpop.f32.mrb[3].mxu1 }
 0x179   :  { %v1945_v43 = vpack.c.bf16 %v2022_v37, %v2021_v33  ;;  %v1946_v44 = vpack.c.bf16 %v2024_v38, %v2023_v34 }
 0x17b   :  { %1730 = vst [vmem:[%s3007_s3] sm:$0xff] %v1945_v43  ;;  %1731 = vst [vmem:[%s3007_s3 + $0x8] sm:$0xff] %v1946_v44 }
 0x195   :  { %v1964_v46 = vpop.f32.mrb[4].mxu0  ;;  %v1986_v49 = vpop.f32.mrb[4].mxu1 }
 0x196   :  { %v1965_v50 = vpop.f32.mrb[5].mxu0  ;;  %v1987_v51 = vpop.f32.mrb[5].mxu1 }
 0x197   :  { %v1966_v52 = vadd.f32 %v1965_v50, %v1964_v46  ;;  %v1967_v53 = vpop.f32.mrb[6].mxu0  ;;  %v1988_v54 = vadd.f32 %v1987_v51, %v1986_v49  ;;  %v1989_v55 = vpop.f32.mrb[6].mxu1 }
 0x198   :  { %v1968_v56 = vpop.f32.mrb[7].mxu0  ;;  %v1990_v48 = vpop.f32.mrb[7].mxu1 }
 0x199   :  { %v1624_v30 = vadd.f32 %v1966_v52, %v279_v47 }
 0x19b   :  { %v1664_v57 = vadd.f32 %v1988_v54, %v1624_v30 }
 0x1b5   :  { %v1703_v58 = vpop.f32.mrb[8].mxu0 }
 0x1b6   :  { %v1704_v59 = vadd.f32 %v1703_v58, %v1664_v57  ;;  %v2019_v60 = vpop.f32.mrb[9].mxu0 }
 0x1b7   :  { %v1706_v61 = vpop.f32.mrb[10].mxu0 }
 0x1b8   :  { %v1947_v62 = vpack.c.bf16 %v1704_v59, %v1704_v59  ;;  %v2020_v63 = vpop.f32.mrb[11].mxu0 }
 0x1ba   :  { %1732 = vst [vmem:[%s3007_s3 + $0x10] sm:$0xf] %v1947_v62 }

// kernel: grad_con_vae_forward.16
= control target key start
LH: loop header
LB: loop body
LE: loop exit
PB: predicated region body
PF: predicated region fallthrough
CT: control target
= control target key end

     0   :  { %s1399_s1 = inlined_call_operand.vmem [shape: bf16[1024,128], index: 1, kind: input, shape index: {}]   ;;  %s1400_s0 = inlined_call_operand.vmem [shape: bf16[32,1024], index: 0, kind: input, shape index: {}]   ;;  %s1401_s2 = inlined_call_operand.vmem [shape: f32[1,128], index: 2, kind: input, shape index: {}]   ;;  %s1402_s3 = inlined_call_operand.vmem [shape: bf16[32,128], index: 3, kind: output, shape index: {}]  }
   0x1   :  { %v1066_v0 = vld [vmem:[%s1399_s1 + $0x40] sm:$0xff]   ;;  %v1070_v4 = vld [vmem:[%s1399_s1 + $0x48] sm:$0xff]   ;;  %v1074_v8 = vld [vmem:[%s1399_s1 + $0x50] sm:$0xff]  }
   0x2   :  { %v1067_v1 = vld [vmem:[%s1399_s1 + $0xc0] sm:$0xff]   ;;  %954 = vmatprep.subr.bf16.mxu0 %v1066_v0  ;;  %v1071_v5 = vld [vmem:[%s1399_s1 + $0xc8] sm:$0xff]   ;;  %v1075_v9 = vld [vmem:[%s1399_s1 + $0xd0] sm:$0xff]  }
   0x3   :  { %v1068_v2 = vld [vmem:[%s1399_s1] sm:$0xff]   ;;  %982 = vmatprep.subr.bf16.mxu1 %v1067_v1  ;;  %v1072_v6 = vld [vmem:[%s1399_s1 + $0x8] sm:$0xff]   ;;  %v1076_v10 = vld [vmem:[%s1399_s1 + $0x10] sm:$0xff]  }
   0x4   :  { %v1069_v3 = vld [vmem:[%s1399_s1 + $0x80] sm:$0xff]   ;;  %955 = vmatpush3.bf16.msra.mxu0 %v1068_v2  ;;  %v1073_v7 = vld [vmem:[%s1399_s1 + $0x88] sm:$0xff]   ;;  %v1077_v11 = vld [vmem:[%s1399_s1 + $0x90] sm:$0xff]  }
   0x5   :  { %983 = vmatpush3.bf16.msra.mxu1 %v1069_v3  ;;  %956 = vmatprep.subr.bf16.mxu0 %v1070_v4  ;;  %v1078_v12 = vld [vmem:[%s1399_s1 + $0x58] sm:$0xff]   ;;  %v1082_v16 = vld [vmem:[%s1399_s1 + $0x60] sm:$0xff]   ;;  %v1086_v20 = vld [vmem:[%s1399_s1 + $0x68] sm:$0xff]  }
   0x6   :  { %984 = vmatprep.subr.bf16.mxu1 %v1071_v5  ;;  %v1079_v13 = vld [vmem:[%s1399_s1 + $0xd8] sm:$0xff]   ;;  %v1083_v17 = vld [vmem:[%s1399_s1 + $0xe0] sm:$0xff]   ;;  %v1087_v21 = vld [vmem:[%s1399_s1 + $0xe8] sm:$0xff]  }
   0x7   :  { %v1080_v14 = vld [vmem:[%s1399_s1 + $0x18] sm:$0xff]   ;;  %v1084_v18 = vld [vmem:[%s1399_s1 + $0x20] sm:$0xff]   ;;  %v1088_v22 = vld [vmem:[%s1399_s1 + $0x28] sm:$0xff]  }
   0x8   :  { %957 = vmatpush3.bf16.msra.mxu0 %v1072_v6  ;;  %v1081_v15 = vld [vmem:[%s1399_s1 + $0x98] sm:$0xff]   ;;  %v1085_v19 = vld [vmem:[%s1399_s1 + $0xa0] sm:$0xff]   ;;  %v1089_v23 = vld [vmem:[%s1399_s1 + $0xa8] sm:$0xff]  }
   0x9   :  { %985 = vmatpush3.bf16.msra.mxu1 %v1073_v7  ;;  %958 = vmatprep.subr.bf16.mxu0 %v1074_v8  ;;  %v1090_v24 = vld [vmem:[%s1399_s1 + $0x70] sm:$0xff]   ;;  %v1094_v28 = vld [vmem:[%s1399_s1 + $0x78] sm:$0xff]   ;;  %v15_v32 = vld [vmem:[%s1400_s0] sm:$0xff] }
   0xa   :  { %986 = vmatprep.subr.bf16.mxu1 %v1075_v9  ;;  %v1091_v25 = vld [vmem:[%s1399_s1 + $0xf0] sm:$0xff]   ;;  %v1095_v29 = vld [vmem:[%s1399_s1 + $0xf8] sm:$0xff]   ;;  %v19_v33 = vld [vmem:[%s1400_s0 + $0x20] sm:$0xff] }
   0xb   :  { %v1092_v26 = vld [vmem:[%s1399_s1 + $0x30] sm:$0xff]   ;;  %v1096_v30 = vld [vmem:[%s1399_s1 + $0x38] sm:$0xff]   ;;  %v16_v34 = vld [vmem:[%s1400_s0 + $0x8] sm:$0xff]  ;;  %v855_v35 = vcombine.low %v15_v32, %v19_v33  ;;  %v856_v36 = vcombine.high %v15_v32, %v19_v33 }
   0xc   :  { %959 = vmatpush3.bf16.msra.mxu0 %v1076_v10  ;;  %v1093_v27 = vld [vmem:[%s1399_s1 + $0xb0] sm:$0xff]   ;;  %v1097_v31 = vld [vmem:[%s1399_s1 + $0xb8] sm:$0xff]   ;;  %v20_v37 = vld [vmem:[%s1400_s0 + $0x28] sm:$0xff] }
   0xd   :  { %987 = vmatpush3.bf16.msra.mxu1 %v1077_v11  ;;  %960 = vmatprep.subr.bf16.mxu0 %v1078_v12  ;;  %v857_v38 = vcombine.low %v16_v34, %v20_v37  ;;  %v858_v39 = vcombine.high %v16_v34, %v20_v37  ;;  %v1098_v40 = vld [vmem:[%s1399_s1 + $0x140] sm:$0xff]   ;;  %v1102_v44 = vld [vmem:[%s1399_s1 + $0x148] sm:$0xff]   ;;  %v1106_v48 = vld [vmem:[%s1399_s1 + $0x150] sm:$0xff]  }
   0xe   :  { %988 = vmatprep.subr.bf16.mxu1 %v1079_v13  ;;  %662 = vmatprep.mubr.bf16.mxu0 %v856_v36  ;;  %v1099_v41 = vld [vmem:[%s1399_s1 + $0x1c0] sm:$0xff]   ;;  %v1103_v45 = vld [vmem:[%s1399_s1 + $0x1c8] sm:$0xff]   ;;  %v1107_v49 = vld [vmem:[%s1399_s1 + $0x1d0] sm:$0xff]  }
   0xf   :  { %711 = vmatprep.mubr.bf16.mxu1 %v858_v39  ;;  %v1100_v42 = vld [vmem:[%s1399_s1 + $0x100] sm:$0xff]   ;;  %v1104_v46 = vld [vmem:[%s1399_s1 + $0x108] sm:$0xff]   ;;  %v1108_v50 = vld [vmem:[%s1399_s1 + $0x110] sm:$0xff]  }
  0x10   :  { %961 = vmatpush3.bf16.msra.mxu0 %v1080_v14  ;;  %v1101_v43 = vld [vmem:[%s1399_s1 + $0x180] sm:$0xff]   ;;  %v1105_v47 = vld [vmem:[%s1399_s1 + $0x188] sm:$0xff]   ;;  %v1109_v51 = vld [vmem:[%s1399_s1 + $0x190] sm:$0xff]  }
  0x11   :  { %989 = vmatpush3.bf16.msra.mxu1 %v1081_v15  ;;  %962 = vmatprep.subr.bf16.mxu0 %v1082_v16  ;;  %v1110_v52 = vld [vmem:[%s1399_s1 + $0x158] sm:$0xff]   ;;  %v1114_v56 = vld [vmem:[%s1399_s1 + $0x160] sm:$0xff]   ;;  %v1118_v63 = vld [vmem:[%s1399_s1 + $0x168] sm:$0xff]  }
  0x12   :  { %990 = vmatprep.subr.bf16.mxu1 %v1083_v17  ;;  %v1111_v53 = vld [vmem:[%s1399_s1 + $0x1d8] sm:$0xff]   ;;  %v1115_v57 = vld [vmem:[%s1399_s1 + $0x1e0] sm:$0xff]   ;;  %v1119_v1 = vld [vmem:[%s1399_s1 + $0x1e8] sm:$0xff]  }
  0x13   :  { %v1112_v54 = vld [vmem:[%s1399_s1 + $0x118] sm:$0xff]   ;;  %v1116_v58 = vld [vmem:[%s1399_s1 + $0x120] sm:$0xff]   ;;  %v1120_v2 = vld [vmem:[%s1399_s1 + $0x128] sm:$0xff]  }
  0x14   :  { %963 = vmatpush3.bf16.msra.mxu0 %v1084_v18  ;;  %v1113_v55 = vld [vmem:[%s1399_s1 + $0x198] sm:$0xff]   ;;  %v1117_v59 = vld [vmem:[%s1399_s1 + $0x1a0] sm:$0xff]   ;;  %v1121_v3 = vld [vmem:[%s1399_s1 + $0x1a8] sm:$0xff]  }
  0x15   :  { %991 = vmatpush3.bf16.msra.mxu1 %v1085_v19  ;;  %964 = vmatprep.subr.bf16.mxu0 %v1086_v20  ;;  %v23_v60 = vld [vmem:[%s1400_s0 + $0x40] sm:$0xff]  ;;  %v24_v4 = vld [vmem:[%s1400_s0 + $0x48] sm:$0xff]  ;;  %v1122_v8 = vld [vmem:[%s1399_s1 + $0x170] sm:$0xff]  }
  0x16   :  { %992 = vmatprep.subr.bf16.mxu1 %v1087_v21  ;;  %v27_v61 = vld [vmem:[%s1400_s0 + $0x60] sm:$0xff]  ;;  %v28_v5 = vld [vmem:[%s1400_s0 + $0x68] sm:$0xff]  ;;  %v1123_v9 = vld [vmem:[%s1399_s1 + $0x1f0] sm:$0xff]  }
  0x17   :  { %v864_v62 = vcombine.high %v23_v60, %v27_v61  ;;  %v863_v0 = vcombine.low %v23_v60, %v27_v61  ;;  %v866_v6 = vcombine.high %v24_v4, %v28_v5  ;;  %v865_v7 = vcombine.low %v24_v4, %v28_v5  ;;  %v1124_v10 = vld [vmem:[%s1399_s1 + $0x130] sm:$0xff]   ;;  %v1126_v12 = vld [vmem:[%s1399_s1 + $0x178] sm:$0xff]   ;;  %v854_v34 = vld [vmem:[%s1401_s2] ss:$0 sm:$0xff] }
  0x18   :  { %965 = vmatpush3.bf16.msra.mxu0 %v1088_v22  ;;  %v1125_v11 = vld [vmem:[%s1399_s1 + $0x1b0] sm:$0xff]   ;;  %v1127_v13 = vld [vmem:[%s1399_s1 + $0x1f8] sm:$0xff]  }
  0x19   :  { %993 = vmatpush3.bf16.msra.mxu1 %v1089_v23  ;;  %966 = vmatprep.subr.bf16.mxu0 %v1090_v24  ;;  %v1128_v14 = vld [vmem:[%s1399_s1 + $0x138] sm:$0xff]   ;;  %v17_v16 = vld [vmem:[%s1400_s0 + $0x10] sm:$0xff] }
  0x1a   :  { %994 = vmatprep.subr.bf16.mxu1 %v1091_v25  ;;  %v1129_v15 = vld [vmem:[%s1399_s1 + $0x1b8] sm:$0xff]   ;;  %v21_v17 = vld [vmem:[%s1400_s0 + $0x30] sm:$0xff] }
  0x1b   :  { %v18_v18 = vld [vmem:[%s1400_s0 + $0x18] sm:$0xff]  ;;  %v859_v20 = vcombine.low %v17_v16, %v21_v17  ;;  %v860_v21 = vcombine.high %v17_v16, %v21_v17  ;;  %v25_v24 = vld [vmem:[%s1400_s0 + $0x50] sm:$0xff] }
  0x1c   :  { %967 = vmatpush3.bf16.msra.mxu0 %v1092_v26  ;;  %v22_v19 = vld [vmem:[%s1400_s0 + $0x38] sm:$0xff]  ;;  %v29_v25 = vld [vmem:[%s1400_s0 + $0x70] sm:$0xff] }
  0x1d   :  { %995 = vmatpush3.bf16.msra.mxu1 %v1093_v27  ;;  %968 = vmatprep.subr.bf16.mxu0 %v1094_v28  ;;  %v861_v22 = vcombine.low %v18_v18, %v22_v19  ;;  %v862_v23 = vcombine.high %v18_v18, %v22_v19  ;;  %v26_v26 = vld [vmem:[%s1400_s0 + $0x58] sm:$0xff]  ;;  %v868_v27 = vcombine.high %v25_v24, %v29_v25 }
  0x1e   :  { %996 = vmatprep.subr.bf16.mxu1 %v1095_v29  ;;  %v30_v28 = vld [vmem:[%s1400_s0 + $0x78] sm:$0xff] }
  0x1f   :  { %v870_v29 = vcombine.high %v26_v26, %v30_v28 }
  0x20   :  { %969 = vmatpush3.bf16.msra.mxu0 %v1096_v30  ;;  %v867_v30 = vcombine.low %v25_v24, %v29_v25 }
  0x21   :  { %997 = vmatpush3.bf16.msra.mxu1 %v1097_v31  ;;  %1010 = vmatprep.subr.bf16.mxu0 %v1098_v40  ;;  %v869_v31 = vcombine.low %v26_v26, %v30_v28 }
  0x22   :  { %1038 = vmatprep.subr.bf16.mxu1 %v1099_v41 }
  0x23   :  { %663 = vmatmul.mubr.bf16.vlgmr.msra.gmra.mrb[0].mxu0 %v855_v35 }
  0x24   :  { %712 = vmatmul.mubr.bf16.vlgmr.msra.gmra.mrb[0].mxu1 %v857_v38  ;;  %1011 = vmatpush3.bf16.msra.mxu0 %v1100_v42 }
  0x25   :  { %1039 = vmatpush3.bf16.msra.mxu1 %v1101_v43  ;;  %1012 = vmatprep.subr.bf16.mxu0 %v1102_v44 }
  0x26   :  { %1040 = vmatprep.subr.bf16.mxu1 %v1103_v45  ;;  %670 = vmatprep.mubr.bf16.mxu0 %v864_v62 }
  0x27   :  { %719 = vmatprep.mubr.bf16.mxu1 %v866_v6 }
  0x28   :  { %1013 = vmatpush3.bf16.msra.mxu0 %v1104_v46 }
  0x29   :  { %1041 = vmatpush3.bf16.msra.mxu1 %v1105_v47  ;;  %1014 = vmatprep.subr.bf16.mxu0 %v1106_v48 }
  0x2a   :  { %1042 = vmatprep.subr.bf16.mxu1 %v1107_v49 }
  0x2b   :  { %671 = vmatmul.mubr.bf16.gmra.mrb[4].mxu0 %v863_v0 }
  0x2c   :  { %1015 = vmatpush3.bf16.msra.mxu0 %v1108_v50  ;;  %720 = vmatmul.mubr.bf16.gmra.mrb[4].mxu1 %v865_v7 }
  0x2d   :  { %1043 = vmatpush3.bf16.msra.mxu1 %v1109_v51  ;;  %1016 = vmatprep.subr.bf16.mxu0 %v1110_v52 }
  0x2e   :  { %1044 = vmatprep.subr.bf16.mxu1 %v1111_v53  ;;  %760 = vmatprep.mubr.bf16.mxu0 %v860_v21 }
  0x2f   :  { %809 = vmatprep.mubr.bf16.mxu1 %v862_v23 }
  0x30   :  { %1017 = vmatpush3.bf16.msra.mxu0 %v1112_v54 }
  0x31   :  { %1045 = vmatpush3.bf16.msra.mxu1 %v1113_v55  ;;  %1018 = vmatprep.subr.bf16.mxu0 %v1114_v56 }
  0x32   :  { %1046 = vmatprep.subr.bf16.mxu1 %v1115_v57 }
  0x34   :  { %1019 = vmatpush3.bf16.msra.mxu0 %v1116_v58 }
  0x35   :  { %1047 = vmatpush3.bf16.msra.mxu1 %v1117_v59  ;;  %1020 = vmatprep.subr.bf16.mxu0 %v1118_v63 }
  0x36   :  { %1048 = vmatprep.subr.bf16.mxu1 %v1119_v1 }
  0x38   :  { %1021 = vmatpush3.bf16.msra.mxu0 %v1120_v2 }
  0x39   :  { %1049 = vmatpush3.bf16.msra.mxu1 %v1121_v3  ;;  %1022 = vmatprep.subr.bf16.mxu0 %v1122_v8 }
  0x3a   :  { %1050 = vmatprep.subr.bf16.mxu1 %v1123_v9 }
  0x3c   :  { %1023 = vmatpush3.bf16.msra.mxu0 %v1124_v10 }
  0x3d   :  { %1051 = vmatpush3.bf16.msra.mxu1 %v1125_v11  ;;  %1024 = vmatprep.subr.bf16.mxu0 %v1126_v12 }
  0x3e   :  { %1052 = vmatprep.subr.bf16.mxu1 %v1127_v13 }
  0x40   :  { %1025 = vmatpush3.bf16.msra.mxu0 %v1128_v14 }
  0x41   :  { %1053 = vmatpush3.bf16.msra.mxu1 %v1129_v15 }
  0x43   :  { %761 = vmatmul.mubr.bf16.vlgmr.msra.gmra.mrb[8].mxu0 %v859_v20 }
  0x44   :  { %810 = vmatmul.mubr.bf16.vlgmr.msra.gmra.mrb[8].mxu1 %v861_v22  ;;  %768 = vmatprep.mubr.bf16.mxu0 %v868_v27 }
  0x45   :  { %817 = vmatprep.mubr.bf16.mxu1 %v870_v29 }
  0x4b   :  { %769 = vmatmul.mubr.bf16.gmra.mrb[12].mxu0 %v867_v30 }
  0x4c   :  { %818 = vmatmul.mubr.bf16.gmra.mrb[12].mxu1 %v869_v31 }
  0xf6   :  { %v970_v32 = vpop.f32.mrb[0].mxu0 }
  0xf7   :  { %v998_v33 = vpop.f32.mrb[0].mxu1  ;;  %v971_v35 = vpop.f32.mrb[1].mxu0 }
  0xf8   :  { %v972_v36 = vadd.f32 %v971_v35, %v970_v32  ;;  %v999_v37 = vpop.f32.mrb[1].mxu1  ;;  %v973_v38 = vpop.f32.mrb[2].mxu0 }
  0xf9   :  { %v1000_v39 = vadd.f32 %v999_v37, %v998_v33  ;;  %v1001_v40 = vpop.f32.mrb[2].mxu1  ;;  %v974_v41 = vpop.f32.mrb[3].mxu0 }
  0xfa   :  { %v665_v42 = vadd.f32 %v972_v36, %v854_v34  ;;  %v975_v43 = vadd.f32 %v974_v41, %v973_v38  ;;  %v1002_v44 = vpop.f32.mrb[3].mxu1 }
  0xfb   :  { %v1003_v45 = vadd.f32 %v1002_v44, %v1001_v40 }
  0xfc   :  { %v714_v46 = vadd.f32 %v1000_v39, %v665_v42  ;;  %v668_v47 = vadd.f32 %v975_v43, %v854_v34 }
  0xfe   :  { %v717_v48 = vadd.f32 %v1003_v45, %v668_v47  ;;  %v976_v49 = vpop.f32.mrb[4].mxu0 }
  0xff   :  { %v977_v50 = vpop.f32.mrb[5].mxu0  ;;  %v1004_v56 = vpop.f32.mrb[4].mxu1 }
 0x100   :  { %v978_v51 = vadd.f32 %v977_v50, %v976_v49  ;;  %v979_v52 = vpop.f32.mrb[6].mxu0  ;;  %v1005_v57 = vpop.f32.mrb[5].mxu1 }
 0x101   :  { %v980_v53 = vpop.f32.mrb[7].mxu0  ;;  %v1006_v59 = vadd.f32 %v1005_v57, %v1004_v56  ;;  %v1007_v60 = vpop.f32.mrb[6].mxu1 }
 0x102   :  { %v981_v54 = vadd.f32 %v980_v53, %v979_v52  ;;  %v673_v55 = vadd.f32 %v978_v51, %v854_v34  ;;  %v1008_v61 = vpop.f32.mrb[7].mxu1 }
 0x103   :  { %v1009_v63 = vadd.f32 %v1008_v61, %v1007_v60 }
 0x104   :  { %v676_v58 = vadd.f32 %v981_v54, %v854_v34  ;;  %v722_v62 = vadd.f32 %v1006_v59, %v673_v55 }
 0x106   :  { %v725_v0 = vadd.f32 %v1009_v63, %v676_v58 }
 0x116   :  { %v1026_v1 = vpop.f32.mrb[8].mxu0 }
 0x117   :  { %v1054_v2 = vpop.f32.mrb[8].mxu1  ;;  %v1027_v3 = vpop.f32.mrb[9].mxu0 }
 0x118   :  { %v1055_v4 = vpop.f32.mrb[9].mxu1  ;;  %v1028_v5 = vadd.f32 %v1027_v3, %v1026_v1  ;;  %v1029_v7 = vpop.f32.mrb[10].mxu0 }
 0x119   :  { %v1056_v6 = vadd.f32 %v1055_v4, %v1054_v2  ;;  %v1057_v8 = vpop.f32.mrb[10].mxu1  ;;  %v1030_v9 = vpop.f32.mrb[11].mxu0 }
 0x11a   :  { %v1058_v10 = vpop.f32.mrb[11].mxu1  ;;  %v763_v11 = vadd.f32 %v1028_v5, %v714_v46  ;;  %v1031_v12 = vadd.f32 %v1030_v9, %v1029_v7 }
 0x11b   :  { %v1059_v13 = vadd.f32 %v1058_v10, %v1057_v8 }
 0x11c   :  { %v812_v14 = vadd.f32 %v1056_v6, %v763_v11  ;;  %v766_v15 = vadd.f32 %v1031_v12, %v717_v48 }
 0x11e   :  { %v815_v16 = vadd.f32 %v1059_v13, %v766_v15  ;;  %v1032_v17 = vpop.f32.mrb[12].mxu0  ;;  %v826_v21 = vmax.f32 %v812_v14, 0.0 }
 0x11f   :  { %v1060_v18 = vpop.f32.mrb[12].mxu1  ;;  %v1033_v19 = vpop.f32.mrb[13].mxu0 }
 0x120   :  { %v1061_v20 = vpop.f32.mrb[13].mxu1  ;;  %v827_v22 = vmax.f32 %v815_v16, 0.0  ;;  %v1034_v23 = vadd.f32 %v1033_v19, %v1032_v17  ;;  %v1035_v25 = vpop.f32.mrb[14].mxu0 }
 0x121   :  { %v1062_v24 = vadd.f32 %v1061_v20, %v1060_v18  ;;  %v1063_v26 = vpop.f32.mrb[14].mxu1  ;;  %v1036_v27 = vpop.f32.mrb[15].mxu0 }
 0x122   :  { %v1064_v28 = vpop.f32.mrb[15].mxu1  ;;  %v946_v29 = vpack.c.bf16 %v827_v22, %v826_v21  ;;  %v771_v30 = vadd.f32 %v1034_v23, %v722_v62  ;;  %v1037_v31 = vadd.f32 %v1036_v27, %v1035_v25 }
 0x123   :  { %v1065_v32 = vadd.f32 %v1064_v28, %v1063_v26 }
 0x124   :  { %947 = vst [vmem:[%s1402_s3] sm:$0xff] %v946_v29   ;;  %v820_v33 = vadd.f32 %v1062_v24, %v771_v30  ;;  %v774_v34 = vadd.f32 %v1037_v31, %v725_v0 }
 0x126   :  { %v823_v35 = vadd.f32 %v1065_v32, %v774_v34  ;;  %v828_v36 = vmax.f32 %v820_v33, 0.0 }
 0x128   :  { %v829_v37 = vmax.f32 %v823_v35, 0.0 }
 0x12a   :  { %v951_v38 = vpack.c.bf16 %v829_v37, %v828_v36 }
 0x12c   :  { %953 = vst [vmem:[%s1402_s3 + $0x8] sm:$0xff] %v951_v38  }

// kernel: grad_con_vae_forward.17
= control target key start
LH: loop header
LB: loop body
LE: loop exit
PB: predicated region body
PF: predicated region fallthrough
CT: control target
= control target key end

     0   :  { %s2431_s1 = inlined_call_operand.vmem [shape: bf16[1024,128], index: 1, kind: input, shape index: {}]   ;;  %s2432_s0 = inlined_call_operand.vmem [shape: bf16[128,1024], index: 0, kind: input, shape index: {}]   ;;  %s2433_s2 = inlined_call_operand.vmem [shape: f32[1,128], index: 2, kind: input, shape index: {}]   ;;  %s2434_s3 = inlined_call_operand.vmem [shape: bf16[128,128], index: 3, kind: output, shape index: {}]  }
   0x1   :  { %v1870_v0 = vld [vmem:[%s2431_s1 + $0x40] sm:$0xff]   ;;  %v1874_v4 = vld [vmem:[%s2431_s1 + $0x48] sm:$0xff]   ;;  %v1878_v8 = vld [vmem:[%s2431_s1 + $0x50] sm:$0xff]  }
   0x2   :  { %v1871_v1 = vld [vmem:[%s2431_s1 + $0xc0] sm:$0xff]   ;;  %1614 = vmatprep.subr.bf16.mxu0 %v1870_v0  ;;  %v1875_v5 = vld [vmem:[%s2431_s1 + $0xc8] sm:$0xff]   ;;  %v1879_v9 = vld [vmem:[%s2431_s1 + $0xd0] sm:$0xff]  }
   0x3   :  { %v1872_v2 = vld [vmem:[%s2431_s1] sm:$0xff]   ;;  %1678 = vmatprep.subr.bf16.mxu1 %v1871_v1  ;;  %v1876_v6 = vld [vmem:[%s2431_s1 + $0x8] sm:$0xff]   ;;  %v1880_v10 = vld [vmem:[%s2431_s1 + $0x10] sm:$0xff]  }
   0x4   :  { %v1873_v3 = vld [vmem:[%s2431_s1 + $0x80] sm:$0xff]   ;;  %1615 = vmatpush3.bf16.msra.mxu0 %v1872_v2  ;;  %v1877_v7 = vld [vmem:[%s2431_s1 + $0x88] sm:$0xff]   ;;  %v1881_v11 = vld [vmem:[%s2431_s1 + $0x90] sm:$0xff]  }
   0x5   :  { %1679 = vmatpush3.bf16.msra.mxu1 %v1873_v3  ;;  %1616 = vmatprep.subr.bf16.mxu0 %v1874_v4  ;;  %v1882_v12 = vld [vmem:[%s2431_s1 + $0x58] sm:$0xff]   ;;  %v1886_v16 = vld [vmem:[%s2431_s1 + $0x60] sm:$0xff]   ;;  %v1890_v20 = vld [vmem:[%s2431_s1 + $0x68] sm:$0xff]  }
   0x6   :  { %1680 = vmatprep.subr.bf16.mxu1 %v1875_v5  ;;  %v1883_v13 = vld [vmem:[%s2431_s1 + $0xd8] sm:$0xff]   ;;  %v1887_v17 = vld [vmem:[%s2431_s1 + $0xe0] sm:$0xff]   ;;  %v1891_v21 = vld [vmem:[%s2431_s1 + $0xe8] sm:$0xff]  }
   0x7   :  { %v1884_v14 = vld [vmem:[%s2431_s1 + $0x18] sm:$0xff]   ;;  %v1888_v18 = vld [vmem:[%s2431_s1 + $0x20] sm:$0xff]   ;;  %v1892_v22 = vld [vmem:[%s2431_s1 + $0x28] sm:$0xff]  }
   0x8   :  { %1617 = vmatpush3.bf16.msra.mxu0 %v1876_v6  ;;  %v1885_v15 = vld [vmem:[%s2431_s1 + $0x98] sm:$0xff]   ;;  %v1889_v19 = vld [vmem:[%s2431_s1 + $0xa0] sm:$0xff]   ;;  %v1893_v23 = vld [vmem:[%s2431_s1 + $0xa8] sm:$0xff]  }
   0x9   :  { %1681 = vmatpush3.bf16.msra.mxu1 %v1877_v7  ;;  %1618 = vmatprep.subr.bf16.mxu0 %v1878_v8  ;;  %v1894_v24 = vld [vmem:[%s2431_s1 + $0x70] sm:$0xff]   ;;  %v1898_v28 = vld [vmem:[%s2431_s1 + $0x78] sm:$0xff]   ;;  %v15_v32 = vld [vmem:[%s2432_s0] sm:$0xff] }
   0xa   :  { %1682 = vmatprep.subr.bf16.mxu1 %v1879_v9  ;;  %v1895_v25 = vld [vmem:[%s2431_s1 + $0xf0] sm:$0xff]   ;;  %v1899_v29 = vld [vmem:[%s2431_s1 + $0xf8] sm:$0xff]   ;;  %v19_v33 = vld [vmem:[%s2432_s0 + $0x20] sm:$0xff] }
   0xb   :  { %v1896_v26 = vld [vmem:[%s2431_s1 + $0x30] sm:$0xff]   ;;  %v1900_v30 = vld [vmem:[%s2431_s1 + $0x38] sm:$0xff]   ;;  %v16_v34 = vld [vmem:[%s2432_s0 + $0x8] sm:$0xff]  ;;  %v1407_v35 = vcombine.low %v15_v32, %v19_v33  ;;  %v1408_v36 = vcombine.high %v15_v32, %v19_v33 }
   0xc   :  { %1619 = vmatpush3.bf16.msra.mxu0 %v1880_v10  ;;  %v1897_v27 = vld [vmem:[%s2431_s1 + $0xb0] sm:$0xff]   ;;  %v1901_v31 = vld [vmem:[%s2431_s1 + $0xb8] sm:$0xff]   ;;  %v20_v37 = vld [vmem:[%s2432_s0 + $0x28] sm:$0xff] }
   0xd   :  { %1683 = vmatpush3.bf16.msra.mxu1 %v1881_v11  ;;  %1620 = vmatprep.subr.bf16.mxu0 %v1882_v12  ;;  %v1409_v38 = vcombine.low %v16_v34, %v20_v37  ;;  %v1410_v39 = vcombine.high %v16_v34, %v20_v37  ;;  %v1902_v40 = vld [vmem:[%s2431_s1 + $0x140] sm:$0xff]   ;;  %v24_v47 = vld [vmem:[%s2432_s0 + $0x48] sm:$0xff]  ;;  %v1910_v62 = vld [vmem:[%s2431_s1 + $0x150] sm:$0xff]  }
   0xe   :  { %1684 = vmatprep.subr.bf16.mxu1 %v1883_v13  ;;  %950 = vmatprep.mubr.bf16.mxu0 %v1408_v36  ;;  %v1903_v41 = vld [vmem:[%s2431_s1 + $0x100] sm:$0xff]   ;;  %v28_v48 = vld [vmem:[%s2432_s0 + $0x68] sm:$0xff]  ;;  %v1911_v63 = vld [vmem:[%s2431_s1 + $0x110] sm:$0xff]  }
   0xf   :  { %1047 = vmatprep.mubr.bf16.mxu1 %v1410_v39  ;;  %v1904_v42 = vld [vmem:[%s2431_s1 + $0x1c0] sm:$0xff]   ;;  %v1418_v49 = vcombine.high %v24_v47, %v28_v48  ;;  %v1906_v50 = vld [vmem:[%s2431_s1 + $0x148] sm:$0xff]   ;;  %v1417_v53 = vcombine.low %v24_v47, %v28_v48  ;;  %v1912_v0 = vld [vmem:[%s2431_s1 + $0x1d0] sm:$0xff]  }
  0x10   :  { %1621 = vmatpush3.bf16.msra.mxu0 %v1884_v14  ;;  %v1905_v43 = vld [vmem:[%s2431_s1 + $0x180] sm:$0xff]   ;;  %v1907_v52 = vld [vmem:[%s2431_s1 + $0x108] sm:$0xff]   ;;  %v1913_v1 = vld [vmem:[%s2431_s1 + $0x190] sm:$0xff]  }
  0x11   :  { %1685 = vmatpush3.bf16.msra.mxu1 %v1885_v15  ;;  %1622 = vmatprep.subr.bf16.mxu0 %v1886_v16  ;;  %v23_v44 = vld [vmem:[%s2432_s0 + $0x40] sm:$0xff]  ;;  %v1908_v54 = vld [vmem:[%s2431_s1 + $0x1c8] sm:$0xff]   ;;  %v1914_v10 = vld [vmem:[%s2431_s1 + $0x158] sm:$0xff]  }
  0x12   :  { %1686 = vmatprep.subr.bf16.mxu1 %v1887_v17  ;;  %v27_v45 = vld [vmem:[%s2432_s0 + $0x60] sm:$0xff]  ;;  %v1909_v55 = vld [vmem:[%s2431_s1 + $0x188] sm:$0xff]   ;;  %v1915_v11 = vld [vmem:[%s2431_s1 + $0x118] sm:$0xff]  }
  0x13   :  { %v1416_v46 = vcombine.high %v23_v44, %v27_v45  ;;  %v1415_v51 = vcombine.low %v23_v44, %v27_v45  ;;  %v31_v56 = vld [vmem:[%s2432_s0 + $0x80] sm:$0xff]  ;;  %v32_v58 = vld [vmem:[%s2432_s0 + $0x88] sm:$0xff]  ;;  %v1916_v12 = vld [vmem:[%s2431_s1 + $0x1d8] sm:$0xff]  }
  0x14   :  { %1623 = vmatpush3.bf16.msra.mxu0 %v1888_v18  ;;  %v35_v57 = vld [vmem:[%s2432_s0 + $0xa0] sm:$0xff]  ;;  %v36_v59 = vld [vmem:[%s2432_s0 + $0xa8] sm:$0xff]  ;;  %v1917_v13 = vld [vmem:[%s2431_s1 + $0x198] sm:$0xff]  }
  0x15   :  { %1687 = vmatpush3.bf16.msra.mxu1 %v1889_v19  ;;  %1624 = vmatprep.subr.bf16.mxu0 %v1890_v20  ;;  %v1424_v60 = vcombine.high %v31_v56, %v35_v57  ;;  %v1426_v61 = vcombine.high %v32_v58, %v36_v59  ;;  %v1423_v2 = vcombine.low %v31_v56, %v35_v57  ;;  %v39_v3 = vld [vmem:[%s2432_s0 + $0xc0] sm:$0xff]  ;;  %v40_v5 = vld [vmem:[%s2432_s0 + $0xc8] sm:$0xff]  ;;  %v1927_v39 = vld [vmem:[%s2431_s1 + $0x130] sm:$0xff]  }
  0x16   :  { %1688 = vmatprep.subr.bf16.mxu1 %v1891_v21  ;;  %v43_v4 = vld [vmem:[%s2432_s0 + $0xe0] sm:$0xff]  ;;  %v1425_v6 = vcombine.low %v32_v58, %v36_v59  ;;  %v44_v8 = vld [vmem:[%s2432_s0 + $0xe8] sm:$0xff]  ;;  %v1931_v48 = vld [vmem:[%s2431_s1 + $0x138] sm:$0xff]  }
  0x17   :  { %v1432_v7 = vcombine.high %v39_v3, %v43_v4  ;;  %v1434_v9 = vcombine.high %v40_v5, %v44_v8  ;;  %v47_v14 = vld [vmem:[%s2432_s0 + $0x100] sm:$0xff]  ;;  %v48_v16 = vld [vmem:[%s2432_s0 + $0x108] sm:$0xff]  ;;  %v1431_v19 = vcombine.low %v39_v3, %v43_v4  ;;  %v1433_v21 = vcombine.low %v40_v5, %v44_v8  ;;  %v26_v8 = vld [vmem:[%s2432_s0 + $0x58] sm:$0xff] }
  0x18   :  { %1625 = vmatpush3.bf16.msra.mxu0 %v1892_v22  ;;  %v51_v15 = vld [vmem:[%s2432_s0 + $0x120] sm:$0xff]  ;;  %v52_v17 = vld [vmem:[%s2432_s0 + $0x128] sm:$0xff] }
  0x19   :  { %1689 = vmatpush3.bf16.msra.mxu1 %v1893_v23  ;;  %1626 = vmatprep.subr.bf16.mxu0 %v1894_v24  ;;  %v1918_v18 = vld [vmem:[%s2431_s1 + $0x160] sm:$0xff]   ;;  %v1440_v22 = vcombine.high %v47_v14, %v51_v15  ;;  %v1442_v24 = vcombine.high %v48_v16, %v52_v17  ;;  %v1924_v32 = vld [vmem:[%s2431_s1 + $0x1e8] sm:$0xff]   ;;  %v1439_v34 = vcombine.low %v47_v14, %v51_v15  ;;  %v33_v14 = vld [vmem:[%s2432_s0 + $0x90] sm:$0xff] }
  0x1a   :  { %1690 = vmatprep.subr.bf16.mxu1 %v1895_v25  ;;  %v1919_v20 = vld [vmem:[%s2431_s1 + $0x120] sm:$0xff]   ;;  %v1925_v33 = vld [vmem:[%s2431_s1 + $0x1a8] sm:$0xff]   ;;  %v37_v15 = vld [vmem:[%s2432_s0 + $0xb0] sm:$0xff] }
  0x1b   :  { %v1920_v23 = vld [vmem:[%s2431_s1 + $0x1e0] sm:$0xff]   ;;  %v64_v44 = vld [vmem:[%s2432_s0 + $0x188] sm:$0xff] }
  0x1c   :  { %1627 = vmatpush3.bf16.msra.mxu0 %v1896_v26  ;;  %v1921_v25 = vld [vmem:[%s2431_s1 + $0x1a0] sm:$0xff]   ;;  %v68_v45 = vld [vmem:[%s2432_s0 + $0x1a8] sm:$0xff] }
  0x1d   :  { %1691 = vmatpush3.bf16.msra.mxu1 %v1897_v27  ;;  %1628 = vmatprep.subr.bf16.mxu0 %v1898_v28  ;;  %v55_v26 = vld [vmem:[%s2432_s0 + $0x140] sm:$0xff]  ;;  %v1922_v28 = vld [vmem:[%s2431_s1 + $0x168] sm:$0xff]   ;;  %v1457_v59 = vcombine.low %v64_v44, %v68_v45 }
  0x1e   :  { %1692 = vmatprep.subr.bf16.mxu1 %v1899_v29  ;;  %v59_v27 = vld [vmem:[%s2432_s0 + $0x160] sm:$0xff]  ;;  %v56_v29 = vld [vmem:[%s2432_s0 + $0x148] sm:$0xff] }
  0x1f   :  { %v1448_v36 = vcombine.high %v55_v26, %v59_v27  ;;  %v1447_v47 = vcombine.low %v55_v26, %v59_v27  ;;  %v72_v56 = vld [vmem:[%s2432_s0 + $0x1c8] sm:$0xff]  ;;  %v1427_v26 = vcombine.low %v33_v14, %v37_v15 }
  0x20   :  { %1629 = vmatpush3.bf16.msra.mxu0 %v1900_v30  ;;  %v60_v30 = vld [vmem:[%s2432_s0 + $0x168] sm:$0xff] }
  0x21   :  { %1693 = vmatpush3.bf16.msra.mxu1 %v1901_v31  ;;  %1742 = vmatprep.subr.bf16.mxu0 %v1902_v40  ;;  %v1923_v31 = vld [vmem:[%s2431_s1 + $0x128] sm:$0xff]   ;;  %v1450_v37 = vcombine.high %v56_v29, %v60_v30  ;;  %v1928_v40 = vld [vmem:[%s2431_s1 + $0x1f0] sm:$0xff]  }
  0x22   :  { %1806 = vmatprep.subr.bf16.mxu1 %v1904_v42  ;;  %v67_v42 = vld [vmem:[%s2432_s0 + $0x1a0] sm:$0xff]  ;;  %v76_v57 = vld [vmem:[%s2432_s0 + $0x1e8] sm:$0xff] }
  0x23   :  { %951 = vmatmul.mubr.bf16.vlgmr.msra.gmra.mrb[0].mxu0 %v1407_v35  ;;  %v1441_v35 = vcombine.low %v48_v16, %v52_v17  ;;  %v1465_v3 = vcombine.low %v72_v56, %v76_v57  ;;  %v34_v16 = vld [vmem:[%s2432_s0 + $0x98] sm:$0xff] }
  0x24   :  { %1048 = vmatmul.mubr.bf16.vlgmr.msra.gmra.mrb[0].mxu1 %v1409_v38  ;;  %1743 = vmatpush3.bf16.msra.mxu0 %v1903_v41  ;;  %v1926_v38 = vld [vmem:[%s2431_s1 + $0x170] sm:$0xff]   ;;  %v63_v41 = vld [vmem:[%s2432_s0 + $0x180] sm:$0xff]  ;;  %v38_v17 = vld [vmem:[%s2432_s0 + $0xb8] sm:$0xff] }
  0x25   :  { %1807 = vmatpush3.bf16.msra.mxu1 %v1905_v43  ;;  %958 = vmatprep.mubr.bf16.mxu0 %v1416_v46  ;;  %v1929_v43 = vld [vmem:[%s2431_s1 + $0x1b0] sm:$0xff]   ;;  %v1930_v46 = vld [vmem:[%s2431_s1 + $0x178] sm:$0xff]   ;;  %v1455_v58 = vcombine.low %v63_v41, %v67_v42  ;;  %v1429_v27 = vcombine.low %v34_v16, %v38_v17 }
  0x26   :  { %1055 = vmatprep.mubr.bf16.mxu1 %v1418_v49  ;;  %1744 = vmatprep.subr.bf16.mxu0 %v1906_v50  ;;  %v1449_v49 = vcombine.low %v56_v29, %v60_v30  ;;  %v1456_v50 = vcombine.high %v63_v41, %v67_v42  ;;  %v49_v30 = vld [vmem:[%s2432_s0 + $0x110] sm:$0xff]  ;;  %v62_v41 = vld [vmem:[%s2432_s0 + $0x178] sm:$0xff] }
  0x27   :  { %1808 = vmatprep.subr.bf16.mxu1 %v1908_v54  ;;  %v71_v54 = vld [vmem:[%s2432_s0 + $0x1c0] sm:$0xff] }
  0x28   :  { %1745 = vmatpush3.bf16.msra.mxu0 %v1907_v52  ;;  %v1458_v52 = vcombine.high %v64_v44, %v68_v45 }
  0x29   :  { %1809 = vmatpush3.bf16.msra.mxu1 %v1909_v55  ;;  %1746 = vmatprep.subr.bf16.mxu0 %v1910_v62  ;;  %v75_v55 = vld [vmem:[%s2432_s0 + $0x1e0] sm:$0xff]  ;;  %v17_v62 = vld [vmem:[%s2432_s0 + $0x10] sm:$0xff] }
  0x2a   :  { %1810 = vmatprep.subr.bf16.mxu1 %v1912_v0  ;;  %v18_v0 = vld [vmem:[%s2432_s0 + $0x18] sm:$0xff] }
  0x2b   :  { %959 = vmatmul.mubr.bf16.gmra.mrb[4].mxu0 %v1415_v51  ;;  %v1932_v51 = vld [vmem:[%s2431_s1 + $0x1f8] sm:$0xff]  }
  0x2c   :  { %1056 = vmatmul.mubr.bf16.gmra.mrb[4].mxu1 %v1417_v53  ;;  %966 = vmatprep.mubr.bf16.mxu0 %v1424_v60  ;;  %v1933_v53 = vld [vmem:[%s2431_s1 + $0x1b8] sm:$0xff]   ;;  %v1464_v60 = vcombine.high %v71_v54, %v75_v55 }
  0x2d   :  { %1063 = vmatprep.mubr.bf16.mxu1 %v1426_v61  ;;  %1747 = vmatpush3.bf16.msra.mxu0 %v1911_v63  ;;  %v1466_v61 = vcombine.high %v72_v56, %v76_v57  ;;  %v21_v63 = vld [vmem:[%s2432_s0 + $0x30] sm:$0xff]  ;;  %v74_v56 = vld [vmem:[%s2432_s0 + $0x1d8] sm:$0xff] }
  0x2e   :  { %1811 = vmatpush3.bf16.msra.mxu1 %v1913_v1  ;;  %1748 = vmatprep.subr.bf16.mxu0 %v1914_v10  ;;  %v22_v1 = vld [vmem:[%s2432_s0 + $0x38] sm:$0xff]  ;;  %v1412_v4 = vcombine.high %v17_v62, %v21_v63  ;;  %v1411_v10 = vcombine.low %v17_v62, %v21_v63 }
  0x2f   :  { %1812 = vmatprep.subr.bf16.mxu1 %v1916_v12  ;;  %v1414_v5 = vcombine.high %v18_v0, %v22_v1  ;;  %v78_v57 = vld [vmem:[%s2432_s0 + $0x1f8] sm:$0xff] }
  0x30   :  { %v1469_v63 = vcombine.low %v74_v56, %v78_v57 }
  0x31   :  { %1749 = vmatpush3.bf16.msra.mxu0 %v1915_v11  ;;  %v1413_v11 = vcombine.low %v18_v0, %v22_v1 }
  0x32   :  { %1813 = vmatpush3.bf16.msra.mxu1 %v1917_v13  ;;  %1750 = vmatprep.subr.bf16.mxu0 %v1918_v18 }
  0x33   :  { %967 = vmatmul.mubr.bf16.gmra.mrb[8].mxu0 %v1423_v2  ;;  %1814 = vmatprep.subr.bf16.mxu1 %v1920_v23  ;;  %v1463_v2 = vcombine.low %v71_v54, %v75_v55  ;;  %v45_v23 = vld [vmem:[%s2432_s0 + $0xf0] sm:$0xff] }
  0x34   :  { %1064 = vmatmul.mubr.bf16.gmra.mrb[8].mxu1 %v1425_v6  ;;  %974 = vmatprep.mubr.bf16.mxu0 %v1432_v7  ;;  %v25_v6 = vld [vmem:[%s2432_s0 + $0x50] sm:$0xff] }
  0x35   :  { %1071 = vmatprep.mubr.bf16.mxu1 %v1434_v9  ;;  %1751 = vmatpush3.bf16.msra.mxu0 %v1919_v20  ;;  %v29_v7 = vld [vmem:[%s2432_s0 + $0x70] sm:$0xff]  ;;  %v30_v9 = vld [vmem:[%s2432_s0 + $0x78] sm:$0xff]  ;;  %v1428_v20 = vcombine.high %v33_v14, %v37_v15 }
  0x36   :  { %1815 = vmatpush3.bf16.msra.mxu1 %v1921_v25  ;;  %1752 = vmatprep.subr.bf16.mxu0 %v1922_v28  ;;  %v1420_v12 = vcombine.high %v25_v6, %v29_v7  ;;  %v1422_v13 = vcombine.high %v26_v8, %v30_v9  ;;  %v1419_v18 = vcombine.low %v25_v6, %v29_v7  ;;  %v46_v25 = vld [vmem:[%s2432_s0 + $0xf8] sm:$0xff]  ;;  %v73_v54 = vld [vmem:[%s2432_s0 + $0x1d0] sm:$0xff] }
  0x37   :  { %1816 = vmatprep.subr.bf16.mxu1 %v1924_v32  ;;  %v50_v32 = vld [vmem:[%s2432_s0 + $0x118] sm:$0xff]  ;;  %v77_v55 = vld [vmem:[%s2432_s0 + $0x1f0] sm:$0xff] }
  0x38   :  { %v1467_v62 = vcombine.low %v73_v54, %v77_v55 }
  0x39   :  { %1753 = vmatpush3.bf16.msra.mxu0 %v1923_v31  ;;  %v53_v31 = vld [vmem:[%s2432_s0 + $0x130] sm:$0xff] }
  0x3a   :  { %1817 = vmatpush3.bf16.msra.mxu1 %v1925_v33  ;;  %1754 = vmatprep.subr.bf16.mxu0 %v1926_v38  ;;  %v54_v33 = vld [vmem:[%s2432_s0 + $0x138] sm:$0xff]  ;;  %v57_v38 = vld [vmem:[%s2432_s0 + $0x150] sm:$0xff]  ;;  %v1443_v42 = vcombine.low %v49_v30, %v53_v31 }
  0x3b   :  { %975 = vmatmul.mubr.bf16.gmra.mrb[12].mxu0 %v1431_v19  ;;  %1818 = vmatprep.subr.bf16.mxu1 %v1928_v40  ;;  %v1421_v19 = vcombine.low %v26_v8, %v30_v9  ;;  %v58_v40 = vld [vmem:[%s2432_s0 + $0x158] sm:$0xff] }
  0x3c   :  { %1072 = vmatmul.mubr.bf16.gmra.mrb[12].mxu1 %v1433_v21  ;;  %982 = vmatprep.mubr.bf16.mxu0 %v1440_v22  ;;  %v1430_v21 = vcombine.high %v34_v16, %v38_v17  ;;  %v41_v22 = vld [vmem:[%s2432_s0 + $0xd0] sm:$0xff]  ;;  %v1454_v45 = vcombine.high %v58_v40, %v62_v41 }
  0x3d   :  { %1079 = vmatprep.mubr.bf16.mxu1 %v1442_v24  ;;  %1755 = vmatpush3.bf16.msra.mxu0 %v1927_v39  ;;  %v42_v24 = vld [vmem:[%s2432_s0 + $0xd8] sm:$0xff]  ;;  %v1436_v28 = vcombine.high %v41_v22, %v45_v23  ;;  %v61_v39 = vld [vmem:[%s2432_s0 + $0x170] sm:$0xff] }
  0x3e   :  { %1819 = vmatpush3.bf16.msra.mxu1 %v1929_v43  ;;  %1756 = vmatprep.subr.bf16.mxu0 %v1930_v46  ;;  %v1438_v29 = vcombine.high %v42_v24, %v46_v25  ;;  %v1445_v43 = vcombine.low %v50_v32, %v54_v33  ;;  %v1452_v44 = vcombine.high %v57_v38, %v61_v39  ;;  %v65_v46 = vld [vmem:[%s2432_s0 + $0x190] sm:$0xff] }
  0x3f   :  { %1820 = vmatprep.subr.bf16.mxu1 %v1932_v51  ;;  %v1453_v51 = vcombine.low %v58_v40, %v62_v41 }
  0x41   :  { %1757 = vmatpush3.bf16.msra.mxu0 %v1931_v48  ;;  %v66_v48 = vld [vmem:[%s2432_s0 + $0x198] sm:$0xff] }
  0x42   :  { %1821 = vmatpush3.bf16.msra.mxu1 %v1933_v53 }
  0x43   :  { %983 = vmatmul.mubr.bf16.gmra.mrb[16].mxu0 %v1439_v34  ;;  %v1435_v34 = vcombine.low %v41_v22, %v45_v23 }
  0x44   :  { %1080 = vmatmul.mubr.bf16.gmra.mrb[16].mxu1 %v1441_v35  ;;  %990 = vmatprep.mubr.bf16.mxu0 %v1448_v36  ;;  %v1437_v35 = vcombine.low %v42_v24, %v46_v25  ;;  %v1444_v36 = vcombine.high %v49_v30, %v53_v31 }
  0x45   :  { %1087 = vmatprep.mubr.bf16.mxu1 %v1450_v37  ;;  %v1446_v37 = vcombine.high %v50_v32, %v54_v33 }
  0x4b   :  { %991 = vmatmul.mubr.bf16.gmra.mrb[20].mxu0 %v1447_v47  ;;  %v69_v47 = vld [vmem:[%s2432_s0 + $0x1b0] sm:$0xff] }
  0x4c   :  { %1088 = vmatmul.mubr.bf16.gmra.mrb[20].mxu1 %v1449_v49  ;;  %998 = vmatprep.mubr.bf16.mxu0 %v1456_v50  ;;  %v70_v49 = vld [vmem:[%s2432_s0 + $0x1b8] sm:$0xff]  ;;  %v1451_v50 = vcombine.low %v57_v38, %v61_v39 }
  0x4d   :  { %1095 = vmatprep.mubr.bf16.mxu1 %v1458_v52  ;;  %v1460_v52 = vcombine.high %v65_v46, %v69_v47  ;;  %v1462_v53 = vcombine.high %v66_v48, %v70_v49 }
  0x53   :  { %999 = vmatmul.mubr.bf16.gmra.mrb[24].mxu0 %v1455_v58  ;;  %v1459_v58 = vcombine.low %v65_v46, %v69_v47 }
  0x54   :  { %1096 = vmatmul.mubr.bf16.gmra.mrb[24].mxu1 %v1457_v59  ;;  %1006 = vmatprep.mubr.bf16.mxu0 %v1464_v60  ;;  %v1461_v59 = vcombine.low %v66_v48, %v70_v49  ;;  %v1468_v60 = vcombine.high %v73_v54, %v77_v55 }
  0x55   :  { %1103 = vmatprep.mubr.bf16.mxu1 %v1466_v61  ;;  %v1470_v61 = vcombine.high %v74_v56, %v78_v57 }
  0x5b   :  { %1007 = vmatmul.mubr.bf16.gmra.mrb[28].mxu0 %v1463_v2  ;;  %v2341_v2 = vld [vmem:[%s2433_s2] ss:$0 sm:$0xff] }
  0x5c   :  { %1104 = vmatmul.mubr.bf16.gmra.mrb[28].mxu1 %v1465_v3  ;;  %1144 = vmatprep.mubr.bf16.mxu0 %v1412_v4 }
  0x5d   :  { %1241 = vmatprep.mubr.bf16.mxu1 %v1414_v5 }
  0x63   :  { %1145 = vmatmul.mubr.bf16.vlgmr.msra.gmra.mrb[32].mxu0 %v1411_v10 }
  0x64   :  { %1242 = vmatmul.mubr.bf16.vlgmr.msra.gmra.mrb[32].mxu1 %v1413_v11  ;;  %1152 = vmatprep.mubr.bf16.mxu0 %v1420_v12 }
  0x65   :  { %1249 = vmatprep.mubr.bf16.mxu1 %v1422_v13 }
  0x6b   :  { %1153 = vmatmul.mubr.bf16.gmra.mrb[36].mxu0 %v1419_v18 }
  0x6c   :  { %1250 = vmatmul.mubr.bf16.gmra.mrb[36].mxu1 %v1421_v19  ;;  %1160 = vmatprep.mubr.bf16.mxu0 %v1428_v20 }
  0x6d   :  { %1257 = vmatprep.mubr.bf16.mxu1 %v1430_v21 }
  0x73   :  { %1161 = vmatmul.mubr.bf16.gmra.mrb[40].mxu0 %v1427_v26 }
  0x74   :  { %1258 = vmatmul.mubr.bf16.gmra.mrb[40].mxu1 %v1429_v27  ;;  %1168 = vmatprep.mubr.bf16.mxu0 %v1436_v28 }
  0x75   :  { %1265 = vmatprep.mubr.bf16.mxu1 %v1438_v29 }
  0x7b   :  { %1169 = vmatmul.mubr.bf16.gmra.mrb[44].mxu0 %v1435_v34 }
  0x7c   :  { %1266 = vmatmul.mubr.bf16.gmra.mrb[44].mxu1 %v1437_v35  ;;  %1176 = vmatprep.mubr.bf16.mxu0 %v1444_v36 }
  0x7d   :  { %1273 = vmatprep.mubr.bf16.mxu1 %v1446_v37 }
  0x83   :  { %1177 = vmatmul.mubr.bf16.gmra.mrb[48].mxu0 %v1443_v42 }
  0x84   :  { %1274 = vmatmul.mubr.bf16.gmra.mrb[48].mxu1 %v1445_v43  ;;  %1184 = vmatprep.mubr.bf16.mxu0 %v1452_v44 }
  0x85   :  { %1281 = vmatprep.mubr.bf16.mxu1 %v1454_v45 }
  0x8b   :  { %1185 = vmatmul.mubr.bf16.gmra.mrb[52].mxu0 %v1451_v50 }
  0x8c   :  { %1282 = vmatmul.mubr.bf16.gmra.mrb[52].mxu1 %v1453_v51  ;;  %1192 = vmatprep.mubr.bf16.mxu0 %v1460_v52 }
  0x8d   :  { %1289 = vmatprep.mubr.bf16.mxu1 %v1462_v53 }
  0x93   :  { %1193 = vmatmul.mubr.bf16.gmra.mrb[56].mxu0 %v1459_v58 }
  0x94   :  { %1290 = vmatmul.mubr.bf16.gmra.mrb[56].mxu1 %v1461_v59  ;;  %1200 = vmatprep.mubr.bf16.mxu0 %v1468_v60 }
  0x95   :  { %1297 = vmatprep.mubr.bf16.mxu1 %v1470_v61 }
  0x9b   :  { %1201 = vmatmul.mubr.bf16.gmra.mrb[60].mxu0 %v1467_v62 }
  0x9c   :  { %1298 = vmatmul.mubr.bf16.gmra.mrb[60].mxu1 %v1469_v63 }
  0xf6   :  { %v1630_v0 = vpop.f32.mrb[0].mxu0 }
  0xf7   :  { %v1694_v1 = vpop.f32.mrb[0].mxu1  ;;  %v1631_v3 = vpop.f32.mrb[1].mxu0 }
  0xf8   :  { %v1632_v4 = vadd.f32 %v1631_v3, %v1630_v0  ;;  %v1695_v5 = vpop.f32.mrb[1].mxu1  ;;  %v1633_v6 = vpop.f32.mrb[2].mxu0 }
  0xf9   :  { %v1696_v7 = vadd.f32 %v1695_v5, %v1694_v1  ;;  %v1697_v8 = vpop.f32.mrb[2].mxu1  ;;  %v1634_v9 = vpop.f32.mrb[3].mxu0 }
  0xfa   :  { %v953_v10 = vadd.f32 %v1632_v4, %v2341_v2  ;;  %v1635_v11 = vadd.f32 %v1634_v9, %v1633_v6  ;;  %v1698_v12 = vpop.f32.mrb[3].mxu1 }
  0xfb   :  { %v1699_v13 = vadd.f32 %v1698_v12, %v1697_v8 }
  0xfc   :  { %v2344_v14 = vadd.f32 %v1696_v7, %v953_v10  ;;  %v956_v15 = vadd.f32 %v1635_v11, %v2341_v2 }
  0xfe   :  { %v2347_v16 = vadd.f32 %v1699_v13, %v956_v15  ;;  %v1636_v17 = vpop.f32.mrb[4].mxu0 }
  0xff   :  { %v1700_v18 = vpop.f32.mrb[4].mxu1  ;;  %v1637_v19 = vpop.f32.mrb[5].mxu0 }
 0x100   :  { %v1638_v20 = vadd.f32 %v1637_v19, %v1636_v17  ;;  %v1701_v21 = vpop.f32.mrb[5].mxu1  ;;  %v1639_v22 = vpop.f32.mrb[6].mxu0 }
 0x101   :  { %v1702_v23 = vadd.f32 %v1701_v21, %v1700_v18  ;;  %v1703_v24 = vpop.f32.mrb[6].mxu1  ;;  %v1640_v25 = vpop.f32.mrb[7].mxu0 }
 0x102   :  { %v961_v26 = vadd.f32 %v1638_v20, %v2341_v2  ;;  %v1641_v27 = vadd.f32 %v1640_v25, %v1639_v22  ;;  %v1704_v28 = vpop.f32.mrb[7].mxu1 }
 0x103   :  { %v1705_v29 = vadd.f32 %v1704_v28, %v1703_v24 }
 0x104   :  { %v2350_v30 = vadd.f32 %v1702_v23, %v961_v26  ;;  %v964_v31 = vadd.f32 %v1641_v27, %v2341_v2 }
 0x106   :  { %v2353_v32 = vadd.f32 %v1705_v29, %v964_v31  ;;  %v1642_v33 = vpop.f32.mrb[8].mxu0 }
 0x107   :  { %v1706_v34 = vpop.f32.mrb[8].mxu1  ;;  %v1643_v35 = vpop.f32.mrb[9].mxu0 }
 0x108   :  { %v1644_v36 = vadd.f32 %v1643_v35, %v1642_v33  ;;  %v1707_v37 = vpop.f32.mrb[9].mxu1  ;;  %v1645_v38 = vpop.f32.mrb[10].mxu0 }
 0x109   :  { %v1708_v39 = vadd.f32 %v1707_v37, %v1706_v34  ;;  %v1709_v40 = vpop.f32.mrb[10].mxu1  ;;  %v1646_v41 = vpop.f32.mrb[11].mxu0 }
 0x10a   :  { %v969_v42 = vadd.f32 %v1644_v36, %v2341_v2  ;;  %v1647_v43 = vadd.f32 %v1646_v41, %v1645_v38  ;;  %v1710_v44 = vpop.f32.mrb[11].mxu1 }
 0x10b   :  { %v1711_v45 = vadd.f32 %v1710_v44, %v1709_v40 }
 0x10c   :  { %v2356_v46 = vadd.f32 %v1708_v39, %v969_v42  ;;  %v972_v47 = vadd.f32 %v1647_v43, %v2341_v2 }
 0x10e   :  { %v2359_v48 = vadd.f32 %v1711_v45, %v972_v47  ;;  %v1648_v49 = vpop.f32.mrb[12].mxu0 }
 0x10f   :  { %v1712_v50 = vpop.f32.mrb[12].mxu1  ;;  %v1649_v51 = vpop.f32.mrb[13].mxu0 }
 0x110   :  { %v1650_v52 = vadd.f32 %v1649_v51, %v1648_v49  ;;  %v1713_v53 = vpop.f32.mrb[13].mxu1  ;;  %v1651_v54 = vpop.f32.mrb[14].mxu0 }
 0x111   :  { %v1714_v55 = vadd.f32 %v1713_v53, %v1712_v50  ;;  %v1715_v56 = vpop.f32.mrb[14].mxu1  ;;  %v1652_v57 = vpop.f32.mrb[15].mxu0 }
 0x112   :  { %v977_v58 = vadd.f32 %v1650_v52, %v2341_v2  ;;  %v1653_v59 = vadd.f32 %v1652_v57, %v1651_v54  ;;  %v1716_v60 = vpop.f32.mrb[15].mxu1 }
 0x113   :  { %v1717_v61 = vadd.f32 %v1716_v60, %v1715_v56 }
 0x114   :  { %v2362_v62 = vadd.f32 %v1714_v55, %v977_v58  ;;  %v980_v63 = vadd.f32 %v1653_v59, %v2341_v2 }
 0x116   :  { %v2365_v0 = vadd.f32 %v1717_v61, %v980_v63  ;;  %v1654_v1 = vpop.f32.mrb[16].mxu0 }
 0x117   :  { %v1718_v3 = vpop.f32.mrb[16].mxu1  ;;  %v1655_v4 = vpop.f32.mrb[17].mxu0 }
 0x118   :  { %v1656_v5 = vadd.f32 %v1655_v4, %v1654_v1  ;;  %v1719_v6 = vpop.f32.mrb[17].mxu1  ;;  %v1657_v7 = vpop.f32.mrb[18].mxu0 }
 0x119   :  { %v1720_v8 = vadd.f32 %v1719_v6, %v1718_v3  ;;  %v1721_v9 = vpop.f32.mrb[18].mxu1  ;;  %v1658_v10 = vpop.f32.mrb[19].mxu0 }
 0x11a   :  { %v985_v11 = vadd.f32 %v1656_v5, %v2341_v2  ;;  %v1659_v12 = vadd.f32 %v1658_v10, %v1657_v7  ;;  %v1722_v13 = vpop.f32.mrb[19].mxu1 }
 0x11b   :  { %v1723_v15 = vadd.f32 %v1722_v13, %v1721_v9 }
 0x11c   :  { %v2368_v17 = vadd.f32 %v1720_v8, %v985_v11  ;;  %v988_v18 = vadd.f32 %v1659_v12, %v2341_v2 }
 0x11e   :  { %v2371_v19 = vadd.f32 %v1723_v15, %v988_v18  ;;  %v1660_v20 = vpop.f32.mrb[20].mxu0 }
 0x11f   :  { %v1724_v21 = vpop.f32.mrb[20].mxu1  ;;  %v1661_v22 = vpop.f32.mrb[21].mxu0 }
 0x120   :  { %v1662_v23 = vadd.f32 %v1661_v22, %v1660_v20  ;;  %v1725_v24 = vpop.f32.mrb[21].mxu1  ;;  %v1663_v25 = vpop.f32.mrb[22].mxu0 }
 0x121   :  { %v1726_v26 = vadd.f32 %v1725_v24, %v1724_v21  ;;  %v1727_v27 = vpop.f32.mrb[22].mxu1  ;;  %v1664_v28 = vpop.f32.mrb[23].mxu0 }
 0x122   :  { %v993_v29 = vadd.f32 %v1662_v23, %v2341_v2  ;;  %v1665_v31 = vadd.f32 %v1664_v28, %v1663_v25  ;;  %v1728_v33 = vpop.f32.mrb[23].mxu1 }
 0x123   :  { %v1729_v34 = vadd.f32 %v1728_v33, %v1727_v27 }
 0x124   :  { %v2374_v35 = vadd.f32 %v1726_v26, %v993_v29  ;;  %v996_v36 = vadd.f32 %v1665_v31, %v2341_v2 }
 0x126   :  { %v2377_v37 = vadd.f32 %v1729_v34, %v996_v36  ;;  %v1666_v38 = vpop.f32.mrb[24].mxu0 }
 0x127   :  { %v1730_v39 = vpop.f32.mrb[24].mxu1  ;;  %v1667_v40 = vpop.f32.mrb[25].mxu0 }
 0x128   :  { %v1668_v41 = vadd.f32 %v1667_v40, %v1666_v38  ;;  %v1731_v42 = vpop.f32.mrb[25].mxu1  ;;  %v1669_v43 = vpop.f32.mrb[26].mxu0 }
 0x129   :  { %v1732_v44 = vadd.f32 %v1731_v42, %v1730_v39  ;;  %v1733_v45 = vpop.f32.mrb[26].mxu1  ;;  %v1670_v47 = vpop.f32.mrb[27].mxu0 }
 0x12a   :  { %v1001_v49 = vadd.f32 %v1668_v41, %v2341_v2  ;;  %v1671_v50 = vadd.f32 %v1670_v47, %v1669_v43  ;;  %v1734_v51 = vpop.f32.mrb[27].mxu1 }
 0x12b   :  { %v1735_v52 = vadd.f32 %v1734_v51, %v1733_v45 }
 0x12c   :  { %v2380_v53 = vadd.f32 %v1732_v44, %v1001_v49  ;;  %v1004_v54 = vadd.f32 %v1671_v50, %v2341_v2 }
 0x12e   :  { %v2383_v55 = vadd.f32 %v1735_v52, %v1004_v54  ;;  %v1672_v56 = vpop.f32.mrb[28].mxu0 }
 0x12f   :  { %v1736_v57 = vpop.f32.mrb[28].mxu1  ;;  %v1673_v58 = vpop.f32.mrb[29].mxu0 }
 0x130   :  { %v1674_v59 = vadd.f32 %v1673_v58, %v1672_v56  ;;  %v1737_v60 = vpop.f32.mrb[29].mxu1  ;;  %v1675_v61 = vpop.f32.mrb[30].mxu0 }
 0x131   :  { %v1738_v63 = vadd.f32 %v1737_v60, %v1736_v57  ;;  %v1739_v1 = vpop.f32.mrb[30].mxu1  ;;  %v1676_v3 = vpop.f32.mrb[31].mxu0 }
 0x132   :  { %v1009_v4 = vadd.f32 %v1674_v59, %v2341_v2  ;;  %v1677_v5 = vadd.f32 %v1676_v3, %v1675_v61  ;;  %v1740_v6 = vpop.f32.mrb[31].mxu1 }
 0x133   :  { %v1741_v7 = vadd.f32 %v1740_v6, %v1739_v1 }
 0x134   :  { %v2386_v8 = vadd.f32 %v1738_v63, %v1009_v4  ;;  %v1012_v9 = vadd.f32 %v1677_v5, %v2341_v2 }
 0x136   :  { %v2389_v10 = vadd.f32 %v1741_v7, %v1012_v9  ;;  %v1758_v11 = vpop.f32.mrb[32].mxu0 }
 0x137   :  { %v1822_v12 = vpop.f32.mrb[32].mxu1  ;;  %v1759_v13 = vpop.f32.mrb[33].mxu0 }
 0x138   :  { %v1760_v15 = vadd.f32 %v1759_v13, %v1758_v11  ;;  %v1823_v18 = vpop.f32.mrb[33].mxu1  ;;  %v1761_v20 = vpop.f32.mrb[34].mxu0 }
 0x139   :  { %v1824_v21 = vadd.f32 %v1823_v18, %v1822_v12  ;;  %v1825_v22 = vpop.f32.mrb[34].mxu1  ;;  %v1762_v23 = vpop.f32.mrb[35].mxu0 }
 0x13a   :  { %v1147_v24 = vadd.f32 %v1760_v15, %v2344_v14  ;;  %v1763_v25 = vadd.f32 %v1762_v23, %v1761_v20  ;;  %v1826_v26 = vpop.f32.mrb[35].mxu1 }
 0x13b   :  { %v1827_v27 = vadd.f32 %v1826_v26, %v1825_v22 }
 0x13c   :  { %v1244_v28 = vadd.f32 %v1824_v21, %v1147_v24  ;;  %v1150_v29 = vadd.f32 %v1763_v25, %v2347_v16 }
 0x13e   :  { %v1247_v2 = vadd.f32 %v1827_v27, %v1150_v29  ;;  %v1764_v31 = vpop.f32.mrb[36].mxu0  ;;  %v1306_v36 = vmax.f32 %v1244_v28, 0.0 }
 0x13f   :  { %v1828_v33 = vpop.f32.mrb[36].mxu1  ;;  %v1765_v34 = vpop.f32.mrb[37].mxu0 }
 0x140   :  { %v1307_v38 = vmax.f32 %v1247_v2, 0.0  ;;  %v1766_v39 = vadd.f32 %v1765_v34, %v1764_v31  ;;  %v1829_v40 = vpop.f32.mrb[37].mxu1  ;;  %v1767_v41 = vpop.f32.mrb[38].mxu0 }
 0x141   :  { %v1830_v42 = vadd.f32 %v1829_v40, %v1828_v33  ;;  %v1831_v43 = vpop.f32.mrb[38].mxu1  ;;  %v1768_v44 = vpop.f32.mrb[39].mxu0 }
 0x142   :  { %v1570_v45 = vpack.c.bf16 %v1307_v38, %v1306_v36  ;;  %v1155_v14 = vadd.f32 %v1766_v39, %v2350_v30  ;;  %v1769_v47 = vadd.f32 %v1768_v44, %v1767_v41  ;;  %v1832_v49 = vpop.f32.mrb[39].mxu1 }
 0x143   :  { %v1833_v50 = vadd.f32 %v1832_v49, %v1831_v43 }
 0x144   :  { %1571 = vst [vmem:[%s2434_s3] sm:$0xff] %v1570_v45   ;;  %v1252_v16 = vadd.f32 %v1830_v42, %v1155_v14  ;;  %v1158_v51 = vadd.f32 %v1769_v47, %v2353_v32 }
 0x146   :  { %v1255_v52 = vadd.f32 %v1833_v50, %v1158_v51  ;;  %v1770_v54 = vpop.f32.mrb[40].mxu0  ;;  %v1308_v58 = vmax.f32 %v1252_v16, 0.0 }
 0x147   :  { %v1834_v56 = vpop.f32.mrb[40].mxu1  ;;  %v1771_v57 = vpop.f32.mrb[41].mxu0 }
 0x148   :  { %v1309_v59 = vmax.f32 %v1255_v52, 0.0  ;;  %v1772_v60 = vadd.f32 %v1771_v57, %v1770_v54  ;;  %v1835_v61 = vpop.f32.mrb[41].mxu1  ;;  %v1773_v63 = vpop.f32.mrb[42].mxu0 }
 0x149   :  { %v1836_v30 = vadd.f32 %v1835_v61, %v1834_v56  ;;  %v1837_v1 = vpop.f32.mrb[42].mxu1  ;;  %v1774_v3 = vpop.f32.mrb[43].mxu0 }
 0x14a   :  { %v1575_v4 = vpack.c.bf16 %v1309_v59, %v1308_v58  ;;  %v1163_v5 = vadd.f32 %v1772_v60, %v2356_v46  ;;  %v1775_v6 = vadd.f32 %v1774_v3, %v1773_v63  ;;  %v1838_v7 = vpop.f32.mrb[43].mxu1 }
 0x14b   :  { %v1839_v9 = vadd.f32 %v1838_v7, %v1837_v1 }
 0x14c   :  { %1607 = vst [vmem:[%s2434_s3 + $0x8] sm:$0xff] %v1575_v4   ;;  %v1260_v32 = vadd.f32 %v1836_v30, %v1163_v5  ;;  %v1166_v11 = vadd.f32 %v1775_v6, %v2359_v48 }
 0x14e   :  { %v1263_v12 = vadd.f32 %v1839_v9, %v1166_v11  ;;  %v1776_v13 = vpop.f32.mrb[44].mxu0  ;;  %v1310_v20 = vmax.f32 %v1260_v32, 0.0 }
 0x14f   :  { %v1840_v15 = vpop.f32.mrb[44].mxu1  ;;  %v1777_v18 = vpop.f32.mrb[45].mxu0 }
 0x150   :  { %v1311_v21 = vmax.f32 %v1263_v12, 0.0  ;;  %v1778_v22 = vadd.f32 %v1777_v18, %v1776_v13  ;;  %v1841_v23 = vpop.f32.mrb[45].mxu1  ;;  %v1779_v24 = vpop.f32.mrb[46].mxu0 }
 0x151   :  { %v1842_v46 = vadd.f32 %v1841_v23, %v1840_v15  ;;  %v1843_v25 = vpop.f32.mrb[46].mxu1  ;;  %v1780_v26 = vpop.f32.mrb[47].mxu0 }
 0x152   :  { %v1580_v27 = vpack.c.bf16 %v1311_v21, %v1310_v20  ;;  %v1171_v28 = vadd.f32 %v1778_v22, %v2362_v62  ;;  %v1781_v29 = vadd.f32 %v1780_v26, %v1779_v24  ;;  %v1844_v2 = vpop.f32.mrb[47].mxu1 }
 0x153   :  { %v1845_v31 = vadd.f32 %v1844_v2, %v1843_v25 }
 0x154   :  { %1608 = vst [vmem:[%s2434_s3 + $0x10] sm:$0xff] %v1580_v27   ;;  %v1268_v48 = vadd.f32 %v1842_v46, %v1171_v28  ;;  %v1174_v33 = vadd.f32 %v1781_v29, %v2365_v0 }
 0x156   :  { %v1271_v34 = vadd.f32 %v1845_v31, %v1174_v33  ;;  %v1782_v36 = vpop.f32.mrb[48].mxu0  ;;  %v1312_v40 = vmax.f32 %v1268_v48, 0.0 }
 0x157   :  { %v1846_v38 = vpop.f32.mrb[48].mxu1  ;;  %v1783_v39 = vpop.f32.mrb[49].mxu0 }
 0x158   :  { %v1313_v41 = vmax.f32 %v1271_v34, 0.0  ;;  %v1784_v42 = vadd.f32 %v1783_v39, %v1782_v36  ;;  %v1847_v43 = vpop.f32.mrb[49].mxu1  ;;  %v1785_v44 = vpop.f32.mrb[50].mxu0 }
 0x159   :  { %v1848_v62 = vadd.f32 %v1847_v43, %v1846_v38  ;;  %v1849_v45 = vpop.f32.mrb[50].mxu1  ;;  %v1786_v14 = vpop.f32.mrb[51].mxu0 }
 0x15a   :  { %v1585_v47 = vpack.c.bf16 %v1313_v41, %v1312_v40  ;;  %v1179_v49 = vadd.f32 %v1784_v42, %v2368_v17  ;;  %v1787_v50 = vadd.f32 %v1786_v14, %v1785_v44  ;;  %v1850_v16 = vpop.f32.mrb[51].mxu1 }
 0x15b   :  { %v1851_v51 = vadd.f32 %v1850_v16, %v1849_v45 }
 0x15c   :  { %1609 = vst [vmem:[%s2434_s3 + $0x18] sm:$0xff] %v1585_v47   ;;  %v1276_v0 = vadd.f32 %v1848_v62, %v1179_v49  ;;  %v1182_v52 = vadd.f32 %v1787_v50, %v2371_v19 }
 0x15e   :  { %v1279_v54 = vadd.f32 %v1851_v51, %v1182_v52  ;;  %v1788_v56 = vpop.f32.mrb[52].mxu0  ;;  %v1314_v59 = vmax.f32 %v1276_v0, 0.0 }
 0x15f   :  { %v1852_v57 = vpop.f32.mrb[52].mxu1  ;;  %v1789_v58 = vpop.f32.mrb[53].mxu0 }
 0x160   :  { %v1315_v60 = vmax.f32 %v1279_v54, 0.0  ;;  %v1790_v61 = vadd.f32 %v1789_v58, %v1788_v56  ;;  %v1853_v63 = vpop.f32.mrb[53].mxu1  ;;  %v1791_v30 = vpop.f32.mrb[54].mxu0 }
 0x161   :  { %v1854_v17 = vadd.f32 %v1853_v63, %v1852_v57  ;;  %v1855_v1 = vpop.f32.mrb[54].mxu1  ;;  %v1792_v3 = vpop.f32.mrb[55].mxu0 }
 0x162   :  { %v1590_v4 = vpack.c.bf16 %v1315_v60, %v1314_v59  ;;  %v1187_v5 = vadd.f32 %v1790_v61, %v2374_v35  ;;  %v1793_v6 = vadd.f32 %v1792_v3, %v1791_v30  ;;  %v1856_v7 = vpop.f32.mrb[55].mxu1 }
 0x163   :  { %v1857_v9 = vadd.f32 %v1856_v7, %v1855_v1 }
 0x164   :  { %1610 = vst [vmem:[%s2434_s3 + $0x20] sm:$0xff] %v1590_v4   ;;  %v1284_v19 = vadd.f32 %v1854_v17, %v1187_v5  ;;  %v1190_v32 = vadd.f32 %v1793_v6, %v2377_v37 }
 0x166   :  { %v1287_v11 = vadd.f32 %v1857_v9, %v1190_v32  ;;  %v1794_v12 = vpop.f32.mrb[56].mxu0  ;;  %v1316_v18 = vmax.f32 %v1284_v19, 0.0 }
 0x167   :  { %v1858_v13 = vpop.f32.mrb[56].mxu1  ;;  %v1795_v15 = vpop.f32.mrb[57].mxu0 }
 0x168   :  { %v1317_v20 = vmax.f32 %v1287_v11, 0.0  ;;  %v1796_v21 = vadd.f32 %v1795_v15, %v1794_v12  ;;  %v1859_v22 = vpop.f32.mrb[57].mxu1  ;;  %v1797_v23 = vpop.f32.mrb[58].mxu0 }
 0x169   :  { %v1860_v35 = vadd.f32 %v1859_v22, %v1858_v13  ;;  %v1861_v24 = vpop.f32.mrb[58].mxu1  ;;  %v1798_v46 = vpop.f32.mrb[59].mxu0 }
 0x16a   :  { %v1595_v25 = vpack.c.bf16 %v1317_v20, %v1316_v18  ;;  %v1195_v26 = vadd.f32 %v1796_v21, %v2380_v53  ;;  %v1799_v27 = vadd.f32 %v1798_v46, %v1797_v23  ;;  %v1862_v28 = vpop.f32.mrb[59].mxu1 }
 0x16b   :  { %v1863_v29 = vadd.f32 %v1862_v28, %v1861_v24 }
 0x16c   :  { %1611 = vst [vmem:[%s2434_s3 + $0x28] sm:$0xff] %v1595_v25   ;;  %v1292_v37 = vadd.f32 %v1860_v35, %v1195_v26  ;;  %v1198_v2 = vadd.f32 %v1799_v27, %v2383_v55 }
 0x16e   :  { %v1295_v31 = vadd.f32 %v1863_v29, %v1198_v2  ;;  %v1800_v48 = vpop.f32.mrb[60].mxu0  ;;  %v1318_v36 = vmax.f32 %v1292_v37, 0.0 }
 0x16f   :  { %v1864_v33 = vpop.f32.mrb[60].mxu1  ;;  %v1801_v34 = vpop.f32.mrb[61].mxu0 }
 0x170   :  { %v1319_v38 = vmax.f32 %v1295_v31, 0.0  ;;  %v1802_v39 = vadd.f32 %v1801_v34, %v1800_v48  ;;  %v1865_v40 = vpop.f32.mrb[61].mxu1  ;;  %v1803_v41 = vpop.f32.mrb[62].mxu0 }
 0x171   :  { %v1866_v53 = vadd.f32 %v1865_v40, %v1864_v33  ;;  %v1867_v42 = vpop.f32.mrb[62].mxu1  ;;  %v1804_v43 = vpop.f32.mrb[63].mxu0 }
 0x172   :  { %v1600_v44 = vpack.c.bf16 %v1319_v38, %v1318_v36  ;;  %v1203_v62 = vadd.f32 %v1802_v39, %v2386_v8  ;;  %v1805_v45 = vadd.f32 %v1804_v43, %v1803_v41  ;;  %v1868_v14 = vpop.f32.mrb[63].mxu1 }
 0x173   :  { %v1869_v47 = vadd.f32 %v1868_v14, %v1867_v42 }
 0x174   :  { %1612 = vst [vmem:[%s2434_s3 + $0x30] sm:$0xff] %v1600_v44   ;;  %v1300_v55 = vadd.f32 %v1866_v53, %v1203_v62  ;;  %v1206_v49 = vadd.f32 %v1805_v45, %v2389_v10 }
 0x176   :  { %v1303_v50 = vadd.f32 %v1869_v47, %v1206_v49  ;;  %v1320_v16 = vmax.f32 %v1300_v55, 0.0 }
 0x178   :  { %v1321_v51 = vmax.f32 %v1303_v50, 0.0 }
 0x17a   :  { %v1605_v0 = vpack.c.bf16 %v1321_v51, %v1320_v16 }
 0x17c   :  { %1613 = vst [vmem:[%s2434_s3 + $0x38] sm:$0xff] %v1605_v0  }

// kernel: grad_con_vae_forward.18
= control target key start
LH: loop header
LB: loop body
LE: loop exit
PB: predicated region body
PF: predicated region fallthrough
CT: control target
= control target key end

     0   :  { %v2286_v0 = vmov 0   ;;  %s2858_s1 = inlined_call_operand.vmem [shape: bf16[512,128], index: 1, kind: input, shape index: {}]   ;;  %s2859_s0 = inlined_call_operand.vmem [shape: bf16[392,512], index: 0, kind: input, shape index: {}]   ;;  %s2860_s2 = inlined_call_operand.vmem [shape: f32[1,128], index: 2, kind: input, shape index: {}]   ;;  %s2861_s3 = inlined_call_operand.vmem [shape: bf16[392,128], index: 3, kind: output, shape index: {}]  }
   0x1   :  { %870 = vmatprep.subr.bf16.mxu1 %v2286_v0  ;;  %1102 = vmatprep.subr.bf16.mxu0 %v2286_v0  ;;  %v2106_v1 = vld [vmem:[%s2858_s1] sm:$0xff]   ;;  %v2108_v3 = vld [vmem:[%s2858_s1 + $0x8] sm:$0xff]   ;;  %v2110_v5 = vld [vmem:[%s2858_s1 + $0x10] sm:$0xff]  }
   0x2   :  { %v2107_v2 = vld [vmem:[%s2858_s1 + $0x80] sm:$0xff]   ;;  %871 = vmatpush1.bf16.msra.mxu1 %v2106_v1  ;;  %v2109_v4 = vld [vmem:[%s2858_s1 + $0x88] sm:$0xff]   ;;  %v2111_v6 = vld [vmem:[%s2858_s1 + $0x90] sm:$0xff]  }
   0x3   :  { %1103 = vmatpush1.bf16.msra.mxu0 %v2107_v2  ;;  %872 = vmatprep.subr.bf16.mxu1 %v2286_v0  ;;  %v2112_v7 = vld [vmem:[%s2858_s1 + $0x18] sm:$0xff]   ;;  %v2114_v9 = vld [vmem:[%s2858_s1 + $0x20] sm:$0xff]   ;;  %v2116_v11 = vld [vmem:[%s2858_s1 + $0x28] sm:$0xff]  }
   0x4   :  { %1104 = vmatprep.subr.bf16.mxu0 %v2286_v0  ;;  %v2113_v8 = vld [vmem:[%s2858_s1 + $0x98] sm:$0xff]   ;;  %v2115_v10 = vld [vmem:[%s2858_s1 + $0xa0] sm:$0xff]   ;;  %v2117_v12 = vld [vmem:[%s2858_s1 + $0xa8] sm:$0xff]  }
   0x5   :  { %v2118_v13 = vld [vmem:[%s2858_s1 + $0x30] sm:$0xff]   ;;  %v2120_v15 = vld [vmem:[%s2858_s1 + $0x38] sm:$0xff]   ;;  %v2122_v17 = vld [vmem:[%s2858_s1 + $0x40] sm:$0xff]  }
   0x6   :  { %873 = vmatpush1.bf16.msra.mxu1 %v2108_v3  ;;  %v2119_v14 = vld [vmem:[%s2858_s1 + $0xb0] sm:$0xff]   ;;  %v2121_v16 = vld [vmem:[%s2858_s1 + $0xb8] sm:$0xff]   ;;  %v2123_v18 = vld [vmem:[%s2858_s1 + $0xc0] sm:$0xff]  }
   0x7   :  { %1105 = vmatpush1.bf16.msra.mxu0 %v2109_v4  ;;  %874 = vmatprep.subr.bf16.mxu1 %v2286_v0  ;;  %v2140_v19 = vld [vmem:[%s2859_s0 + $0x4] ss:$16 sps:$4 sm:$0xff]   ;;  %v2124_v20 = vld [vmem:[%s2858_s1 + $0x48] sm:$0xff]   ;;  %v2128_v25 = vld [vmem:[%s2858_s1 + $0x58] sm:$0xff]  }
   0x8   :  { %1106 = vmatprep.subr.bf16.mxu0 %v2286_v0  ;;  %v2143_v21 = vld [vmem:[%s2859_s0 + $0xc] ss:$16 sps:$4 sm:$0xff]   ;;  %902 = vmatprep.mubr.bf16.mxu1 %v2140_v19  ;;  %v2126_v23 = vld [vmem:[%s2858_s1 + $0x50] sm:$0xff]   ;;  %v2130_v27 = vld [vmem:[%s2858_s1 + $0x60] sm:$0xff]  }
   0x9   :  { %v2125_v22 = vld [vmem:[%s2858_s1 + $0xc8] sm:$0xff]   ;;  %1134 = vmatprep.mubr.bf16.mxu0 %v2143_v21  ;;  %v2127_v24 = vld [vmem:[%s2858_s1 + $0xd0] sm:$0xff]   ;;  %v2129_v26 = vld [vmem:[%s2858_s1 + $0xd8] sm:$0xff]  }
   0xa   :  { %875 = vmatpush1.bf16.msra.mxu1 %v2110_v5  ;;  %v2131_v28 = vld [vmem:[%s2858_s1 + $0xe0] sm:$0xff]   ;;  %v2132_v29 = vld [vmem:[%s2858_s1 + $0x68] sm:$0xff]   ;;  %v2134_v31 = vld [vmem:[%s2858_s1 + $0x70] sm:$0xff]  }
   0xb   :  { %1107 = vmatpush1.bf16.msra.mxu0 %v2111_v6  ;;  %876 = vmatprep.subr.bf16.mxu1 %v2286_v0  ;;  %v2133_v30 = vld [vmem:[%s2858_s1 + $0xe8] sm:$0xff]   ;;  %v2135_v32 = vld [vmem:[%s2858_s1 + $0xf0] sm:$0xff]   ;;  %v2136_v33 = vld [vmem:[%s2858_s1 + $0x78] sm:$0xff]  }
   0xc   :  { %1108 = vmatprep.subr.bf16.mxu0 %v2286_v0  ;;  %v2137_v34 = vld [vmem:[%s2858_s1 + $0xf8] sm:$0xff]   ;;  %v2138_v35 = vld [vmem:[%s2859_s0] ss:$16 sps:$4 sm:$0xff]   ;;  %v2144_v37 = vld [vmem:[%s2859_s0 + $0x24] ss:$16 sps:$4 sm:$0xff]  }
   0xd   :  { %v2141_v36 = vld [vmem:[%s2859_s0 + $0x8] ss:$16 sps:$4 sm:$0xff]   ;;  %v2146_v38 = vld [vmem:[%s2859_s0 + $0x2c] ss:$16 sps:$4 sm:$0xff]   ;;  %v2148_v39 = vld [vmem:[%s2859_s0 + $0x20] ss:$16 sps:$4 sm:$0xff]  }
   0xe   :  { %877 = vmatpush1.bf16.msra.mxu1 %v2112_v7  ;;  %v2149_v40 = vld [vmem:[%s2859_s0 + $0x28] ss:$16 sps:$4 sm:$0xff]   ;;  %v2150_v41 = vld [vmem:[%s2859_s0 + $0x44] ss:$16 sps:$4 sm:$0xff]   ;;  %v2152_v42 = vld [vmem:[%s2859_s0 + $0x4c] ss:$16 sps:$4 sm:$0xff]  }
   0xf   :  { %1109 = vmatpush1.bf16.msra.mxu0 %v2113_v8  ;;  %878 = vmatprep.subr.bf16.mxu1 %v2286_v0  ;;  %v2154_v43 = vld [vmem:[%s2859_s0 + $0x40] ss:$16 sps:$4 sm:$0xff]   ;;  %v2155_v44 = vld [vmem:[%s2859_s0 + $0x48] ss:$16 sps:$4 sm:$0xff]   ;;  %v2156_v45 = vld [vmem:[%s2859_s0 + $0x64] ss:$16 sps:$4 sm:$0xff]  }
  0x10   :  { %1110 = vmatprep.subr.bf16.mxu0 %v2286_v0  ;;  %v2158_v46 = vld [vmem:[%s2859_s0 + $0x6c] ss:$16 sps:$4 sm:$0xff]   ;;  %v2160_v47 = vld [vmem:[%s2859_s0 + $0x60] ss:$16 sps:$4 sm:$0xff]   ;;  %v2161_v48 = vld [vmem:[%s2859_s0 + $0x68] ss:$16 sps:$4 sm:$0xff]  }
  0x11   :  { %v2162_v49 = vld [vmem:[%s2859_s0 + $0x84] ss:$16 sps:$4 sm:$0xff]   ;;  %v2164_v50 = vld [vmem:[%s2859_s0 + $0x8c] ss:$16 sps:$4 sm:$0xff]   ;;  %v2166_v51 = vld [vmem:[%s2859_s0 + $0x80] ss:$16 sps:$4 sm:$0xff]  }
  0x12   :  { %879 = vmatpush1.bf16.msra.mxu1 %v2114_v9  ;;  %v2167_v52 = vld [vmem:[%s2859_s0 + $0x88] ss:$16 sps:$4 sm:$0xff]   ;;  %v2168_v53 = vld [vmem:[%s2859_s0 + $0xa4] ss:$16 sps:$4 sm:$0xff]   ;;  %v2170_v54 = vld [vmem:[%s2859_s0 + $0xac] ss:$16 sps:$4 sm:$0xff]  }
  0x13   :  { %1111 = vmatpush1.bf16.msra.mxu0 %v2115_v10  ;;  %880 = vmatprep.subr.bf16.mxu1 %v2286_v0  ;;  %v2172_v55 = vld [vmem:[%s2859_s0 + $0xa0] ss:$16 sps:$4 sm:$0xff]   ;;  %v2173_v56 = vld [vmem:[%s2859_s0 + $0xa8] ss:$16 sps:$4 sm:$0xff]   ;;  %v2174_v57 = vld [vmem:[%s2859_s0 + $0xc4] ss:$16 sps:$4 sm:$0xff]  }
  0x14   :  { %1112 = vmatprep.subr.bf16.mxu0 %v2286_v0  ;;  %v2176_v58 = vld [vmem:[%s2859_s0 + $0xcc] ss:$16 sps:$4 sm:$0xff]   ;;  %v2178_v59 = vld [vmem:[%s2859_s0 + $0xc0] ss:$16 sps:$4 sm:$0xff]   ;;  %v2179_v60 = vld [vmem:[%s2859_s0 + $0xc8] ss:$16 sps:$4 sm:$0xff]  }
  0x15   :  { %v2180_v61 = vld [vmem:[%s2859_s0 + $0xe4] ss:$16 sps:$4 sm:$0xff]   ;;  %v2182_v62 = vld [vmem:[%s2859_s0 + $0xec] ss:$16 sps:$4 sm:$0xff]   ;;  %v2184_v63 = vld [vmem:[%s2859_s0 + $0xe0] ss:$16 sps:$4 sm:$0xff]  }
  0x16   :  { %881 = vmatpush1.bf16.msra.mxu1 %v2116_v11  ;;  %v2186_v1 = vld [vmem:[%s2859_s0 + $0x104] ss:$16 sps:$4 sm:$0xff]   ;;  %v2188_v2 = vld [vmem:[%s2859_s0 + $0x10c] ss:$16 sps:$4 sm:$0xff]   ;;  %v2190_v3 = vld [vmem:[%s2859_s0 + $0x100] ss:$16 sps:$4 sm:$0xff]  }
  0x17   :  { %1113 = vmatpush1.bf16.msra.mxu0 %v2117_v12  ;;  %882 = vmatprep.subr.bf16.mxu1 %v2286_v0  ;;  %v2191_v4 = vld [vmem:[%s2859_s0 + $0x108] ss:$16 sps:$4 sm:$0xff]   ;;  %v2192_v5 = vld [vmem:[%s2859_s0 + $0x124] ss:$16 sps:$4 sm:$0xff]   ;;  %v2194_v6 = vld [vmem:[%s2859_s0 + $0x12c] ss:$16 sps:$4 sm:$0xff]  }
  0x18   :  { %1114 = vmatprep.subr.bf16.mxu0 %v2286_v0  ;;  %v2196_v7 = vld [vmem:[%s2859_s0 + $0x120] ss:$16 sps:$4 sm:$0xff]   ;;  %v2197_v8 = vld [vmem:[%s2859_s0 + $0x128] ss:$16 sps:$4 sm:$0xff]   ;;  %v2198_v9 = vld [vmem:[%s2859_s0 + $0x144] ss:$16 sps:$4 sm:$0xff]  }
  0x19   :  { %v2200_v10 = vld [vmem:[%s2859_s0 + $0x14c] ss:$16 sps:$4 sm:$0xff]   ;;  %v2202_v11 = vld [vmem:[%s2859_s0 + $0x140] ss:$16 sps:$4 sm:$0xff]   ;;  %v2203_v12 = vld [vmem:[%s2859_s0 + $0x148] ss:$16 sps:$4 sm:$0xff]  }
  0x1a   :  { %883 = vmatpush1.bf16.msra.mxu1 %v2118_v13  ;;  %v2204_v13 = vld [vmem:[%s2859_s0 + $0x164] ss:$16 sps:$4 sm:$0xff]   ;;  %v2214_v19 = vld [vmem:[%s2859_s0 + $0x180] ss:$16 sps:$4 sm:$0xff]  }
  0x1b   :  { %1115 = vmatpush1.bf16.msra.mxu0 %v2119_v14  ;;  %884 = vmatprep.subr.bf16.mxu1 %v2286_v0  ;;  %v2206_v14 = vld [vmem:[%s2859_s0 + $0x16c] ss:$16 sps:$4 sm:$0xff]   ;;  %v2216_v21 = vld [vmem:[%s2859_s0 + $0x1a4] ss:$16 sps:$4 sm:$0xff]  }
  0x1c   :  { %1116 = vmatprep.subr.bf16.mxu0 %v2286_v0 }
  0x1e   :  { %885 = vmatpush1.bf16.msra.mxu1 %v2120_v15  ;;  %v2208_v15 = vld [vmem:[%s2859_s0 + $0x160] ss:$16 sps:$4 sm:$0xff]  }
  0x1f   :  { %1117 = vmatpush1.bf16.msra.mxu0 %v2121_v16  ;;  %886 = vmatprep.subr.bf16.mxu1 %v2286_v0  ;;  %v2209_v16 = vld [vmem:[%s2859_s0 + $0x168] ss:$16 sps:$4 sm:$0xff]  }
  0x20   :  { %1118 = vmatprep.subr.bf16.mxu0 %v2286_v0 }
  0x22   :  { %887 = vmatpush1.bf16.msra.mxu1 %v2122_v17  ;;  %v2210_v17 = vld [vmem:[%s2859_s0 + $0x184] ss:$16 sps:$4 sm:$0xff]  }
  0x23   :  { %1119 = vmatpush1.bf16.msra.mxu0 %v2123_v18  ;;  %888 = vmatprep.subr.bf16.mxu1 %v2286_v0  ;;  %v2212_v18 = vld [vmem:[%s2859_s0 + $0x18c] ss:$16 sps:$4 sm:$0xff]  }
  0x24   :  { %1120 = vmatprep.subr.bf16.mxu0 %v2286_v0 }
  0x26   :  { %889 = vmatpush1.bf16.msra.mxu1 %v2124_v20  ;;  %v2215_v20 = vld [vmem:[%s2859_s0 + $0x188] ss:$16 sps:$4 sm:$0xff]  }
  0x27   :  { %1121 = vmatpush1.bf16.msra.mxu0 %v2125_v22  ;;  %890 = vmatprep.subr.bf16.mxu1 %v2286_v0  ;;  %v2218_v22 = vld [vmem:[%s2859_s0 + $0x1ac] ss:$16 sps:$4 sm:$0xff]  }
  0x28   :  { %1122 = vmatprep.subr.bf16.mxu0 %v2286_v0 }
  0x2a   :  { %891 = vmatpush1.bf16.msra.mxu1 %v2126_v23  ;;  %v2220_v23 = vld [vmem:[%s2859_s0 + $0x1a0] ss:$16 sps:$4 sm:$0xff]  }
  0x2b   :  { %1123 = vmatpush1.bf16.msra.mxu0 %v2127_v24  ;;  %892 = vmatprep.subr.bf16.mxu1 %v2286_v0  ;;  %v2221_v24 = vld [vmem:[%s2859_s0 + $0x1a8] ss:$16 sps:$4 sm:$0xff]  }
  0x2c   :  { %1124 = vmatprep.subr.bf16.mxu0 %v2286_v0 }
  0x2e   :  { %893 = vmatpush1.bf16.msra.mxu1 %v2128_v25  ;;  %v2222_v25 = vld [vmem:[%s2859_s0 + $0x1c4] ss:$16 sps:$4 sm:$0xff]  }
  0x2f   :  { %1125 = vmatpush1.bf16.msra.mxu0 %v2129_v26  ;;  %894 = vmatprep.subr.bf16.mxu1 %v2286_v0  ;;  %v2224_v26 = vld [vmem:[%s2859_s0 + $0x1cc] ss:$16 sps:$4 sm:$0xff]  }
  0x30   :  { %1126 = vmatprep.subr.bf16.mxu0 %v2286_v0 }
  0x32   :  { %895 = vmatpush1.bf16.msra.mxu1 %v2130_v27  ;;  %v2226_v27 = vld [vmem:[%s2859_s0 + $0x1c0] ss:$16 sps:$4 sm:$0xff]  }
  0x33   :  { %1127 = vmatpush1.bf16.msra.mxu0 %v2131_v28  ;;  %896 = vmatprep.subr.bf16.mxu1 %v2286_v0  ;;  %v2227_v28 = vld [vmem:[%s2859_s0 + $0x1c8] ss:$16 sps:$4 sm:$0xff]  }
  0x34   :  { %1128 = vmatprep.subr.bf16.mxu0 %v2286_v0 }
  0x36   :  { %897 = vmatpush1.bf16.msra.mxu1 %v2132_v29  ;;  %v2228_v29 = vld [vmem:[%s2859_s0 + $0x1e4] ss:$16 sps:$4 sm:$0xff]  }
  0x37   :  { %1129 = vmatpush1.bf16.msra.mxu0 %v2133_v30  ;;  %898 = vmatprep.subr.bf16.mxu1 %v2286_v0  ;;  %v2230_v30 = vld [vmem:[%s2859_s0 + $0x1ec] ss:$16 sps:$4 sm:$0xff]  }
  0x38   :  { %1130 = vmatprep.subr.bf16.mxu0 %v2286_v0 }
  0x3a   :  { %899 = vmatpush1.bf16.msra.mxu1 %v2134_v31  ;;  %v2232_v31 = vld [vmem:[%s2859_s0 + $0x1e0] ss:$16 sps:$4 sm:$0xff]  }
  0x3b   :  { %1131 = vmatpush1.bf16.msra.mxu0 %v2135_v32  ;;  %900 = vmatprep.subr.bf16.mxu1 %v2286_v0  ;;  %v2233_v32 = vld [vmem:[%s2859_s0 + $0x1e8] ss:$16 sps:$4 sm:$0xff]  }
  0x3c   :  { %1132 = vmatprep.subr.bf16.mxu0 %v2286_v0  ;;  %v2185_v0 = vld [vmem:[%s2859_s0 + $0xe8] ss:$16 sps:$4 sm:$0xff]  }
  0x3e   :  { %901 = vmatpush1.bf16.msra.mxu1 %v2136_v33  ;;  %v2234_v33 = vld [vmem:[%s2859_s0 + $0x204] ss:$16 sps:$4 sm:$0xff]  }
  0x3f   :  { %1133 = vmatpush1.bf16.msra.mxu0 %v2137_v34  ;;  %v2236_v34 = vld [vmem:[%s2859_s0 + $0x20c] ss:$16 sps:$4 sm:$0xff]  }
  0x41   :  { %903 = vmatmul.mubr.bf16.vlgmr.msra.gmra.mrb[0].mxu1 %v2138_v35  ;;  %v2238_v35 = vld [vmem:[%s2859_s0 + $0x200] ss:$16 sps:$4 sm:$0xff]  }
  0x42   :  { %1135 = vmatmul.mubr.bf16.vlgmr.msra.gmra.mrb[0].mxu0 %v2141_v36  ;;  %910 = vmatprep.mubr.bf16.mxu1 %v2144_v37  ;;  %v2239_v36 = vld [vmem:[%s2859_s0 + $0x208] ss:$16 sps:$4 sm:$0xff]   ;;  %v2240_v37 = vld [vmem:[%s2859_s0 + $0x224] ss:$16 sps:$4 sm:$0xff]  }
  0x43   :  { %1142 = vmatprep.mubr.bf16.mxu0 %v2146_v38  ;;  %v2242_v38 = vld [vmem:[%s2859_s0 + $0x22c] ss:$16 sps:$4 sm:$0xff]  }
  0x49   :  { %911 = vmatmul.mubr.bf16.gmra.mrb[4].mxu1 %v2148_v39  ;;  %v2244_v39 = vld [vmem:[%s2859_s0 + $0x220] ss:$16 sps:$4 sm:$0xff]  }
  0x4a   :  { %1143 = vmatmul.mubr.bf16.gmra.mrb[4].mxu0 %v2149_v40  ;;  %918 = vmatprep.mubr.bf16.mxu1 %v2150_v41  ;;  %v2245_v40 = vld [vmem:[%s2859_s0 + $0x228] ss:$16 sps:$4 sm:$0xff]   ;;  %v2246_v41 = vld [vmem:[%s2859_s0 + $0x244] ss:$16 sps:$4 sm:$0xff]  }
  0x4b   :  { %1150 = vmatprep.mubr.bf16.mxu0 %v2152_v42  ;;  %v2248_v42 = vld [vmem:[%s2859_s0 + $0x24c] ss:$16 sps:$4 sm:$0xff]  }
  0x51   :  { %919 = vmatmul.mubr.bf16.gmra.mrb[8].mxu1 %v2154_v43  ;;  %v2250_v43 = vld [vmem:[%s2859_s0 + $0x240] ss:$16 sps:$4 sm:$0xff]  }
  0x52   :  { %1151 = vmatmul.mubr.bf16.gmra.mrb[8].mxu0 %v2155_v44  ;;  %926 = vmatprep.mubr.bf16.mxu1 %v2156_v45  ;;  %v2251_v44 = vld [vmem:[%s2859_s0 + $0x248] ss:$16 sps:$4 sm:$0xff]   ;;  %v2252_v45 = vld [vmem:[%s2859_s0 + $0x264] ss:$16 sps:$4 sm:$0xff]  }
  0x53   :  { %1158 = vmatprep.mubr.bf16.mxu0 %v2158_v46  ;;  %v2254_v46 = vld [vmem:[%s2859_s0 + $0x26c] ss:$16 sps:$4 sm:$0xff]  }
  0x59   :  { %927 = vmatmul.mubr.bf16.gmra.mrb[12].mxu1 %v2160_v47  ;;  %v2256_v47 = vld [vmem:[%s2859_s0 + $0x260] ss:$16 sps:$4 sm:$0xff]  }
  0x5a   :  { %1159 = vmatmul.mubr.bf16.gmra.mrb[12].mxu0 %v2161_v48  ;;  %934 = vmatprep.mubr.bf16.mxu1 %v2162_v49  ;;  %v2257_v48 = vld [vmem:[%s2859_s0 + $0x268] ss:$16 sps:$4 sm:$0xff]   ;;  %v2258_v49 = vld [vmem:[%s2859_s0 + $0x284] ss:$16 sps:$4 sm:$0xff]  }
  0x5b   :  { %1166 = vmatprep.mubr.bf16.mxu0 %v2164_v50  ;;  %v2260_v50 = vld [vmem:[%s2859_s0 + $0x28c] ss:$16 sps:$4 sm:$0xff]  }
  0x61   :  { %935 = vmatmul.mubr.bf16.gmra.mrb[16].mxu1 %v2166_v51  ;;  %v2262_v51 = vld [vmem:[%s2859_s0 + $0x280] ss:$16 sps:$4 sm:$0xff]  }
  0x62   :  { %1167 = vmatmul.mubr.bf16.gmra.mrb[16].mxu0 %v2167_v52  ;;  %942 = vmatprep.mubr.bf16.mxu1 %v2168_v53  ;;  %v2263_v52 = vld [vmem:[%s2859_s0 + $0x288] ss:$16 sps:$4 sm:$0xff]   ;;  %v2264_v53 = vld [vmem:[%s2859_s0 + $0x2a4] ss:$16 sps:$4 sm:$0xff]  }
  0x63   :  { %1174 = vmatprep.mubr.bf16.mxu0 %v2170_v54  ;;  %v2266_v54 = vld [vmem:[%s2859_s0 + $0x2ac] ss:$16 sps:$4 sm:$0xff]  }
  0x69   :  { %943 = vmatmul.mubr.bf16.gmra.mrb[20].mxu1 %v2172_v55  ;;  %v2268_v55 = vld [vmem:[%s2859_s0 + $0x2a0] ss:$16 sps:$4 sm:$0xff]  }
  0x6a   :  { %1175 = vmatmul.mubr.bf16.gmra.mrb[20].mxu0 %v2173_v56  ;;  %950 = vmatprep.mubr.bf16.mxu1 %v2174_v57  ;;  %v2269_v56 = vld [vmem:[%s2859_s0 + $0x2a8] ss:$16 sps:$4 sm:$0xff]   ;;  %v2270_v57 = vld [vmem:[%s2859_s0 + $0x2c4] ss:$16 sps:$4 sm:$0xff]  }
  0x6b   :  { %1182 = vmatprep.mubr.bf16.mxu0 %v2176_v58  ;;  %v2272_v58 = vld [vmem:[%s2859_s0 + $0x2cc] ss:$16 sps:$4 sm:$0xff]  }
  0x71   :  { %951 = vmatmul.mubr.bf16.gmra.mrb[24].mxu1 %v2178_v59  ;;  %v2274_v59 = vld [vmem:[%s2859_s0 + $0x2c0] ss:$16 sps:$4 sm:$0xff]  }
  0x72   :  { %1183 = vmatmul.mubr.bf16.gmra.mrb[24].mxu0 %v2179_v60  ;;  %958 = vmatprep.mubr.bf16.mxu1 %v2180_v61  ;;  %v2275_v60 = vld [vmem:[%s2859_s0 + $0x2c8] ss:$16 sps:$4 sm:$0xff]   ;;  %v2276_v61 = vld [vmem:[%s2859_s0 + $0x2e4] ss:$16 sps:$4 sm:$0xff]  }
  0x73   :  { %1190 = vmatprep.mubr.bf16.mxu0 %v2182_v62  ;;  %v2278_v62 = vld [vmem:[%s2859_s0 + $0x2ec] ss:$16 sps:$4 sm:$0xff]  }
  0x79   :  { %959 = vmatmul.mubr.bf16.gmra.mrb[28].mxu1 %v2184_v63  ;;  %v111_v63 = vld [vmem:[%s2859_s0 + $0x300] sm:$0xff] }
  0x7a   :  { %1191 = vmatmul.mubr.bf16.gmra.mrb[28].mxu0 %v2185_v0  ;;  %966 = vmatprep.mubr.bf16.mxu1 %v2186_v1  ;;  %v112_v0 = vld [vmem:[%s2859_s0 + $0x308] sm:$0xff]  ;;  %v2280_v1 = vld [vmem:[%s2859_s0 + $0x2e0] ss:$16 sps:$4 sm:$0xff]  }
  0x7b   :  { %1198 = vmatprep.mubr.bf16.mxu0 %v2188_v2  ;;  %v2281_v2 = vld [vmem:[%s2859_s0 + $0x2e8] ss:$16 sps:$4 sm:$0xff]  }
  0x81   :  { %967 = vmatmul.mubr.bf16.gmra.mrb[32].mxu1 %v2190_v3  ;;  %v1731_v3 = vcombine.high %v111_v63, %v111_v63 }
  0x82   :  { %1199 = vmatmul.mubr.bf16.gmra.mrb[32].mxu0 %v2191_v4  ;;  %974 = vmatprep.mubr.bf16.mxu1 %v2192_v5  ;;  %v1733_v4 = vcombine.high %v112_v0, %v112_v0  ;;  %v1730_v5 = vcombine.low %v111_v63, %v111_v63 }
  0x83   :  { %1206 = vmatprep.mubr.bf16.mxu0 %v2194_v6  ;;  %v1732_v6 = vcombine.low %v112_v0, %v112_v0 }
  0x89   :  { %975 = vmatmul.mubr.bf16.gmra.mrb[36].mxu1 %v2196_v7  ;;  %v2732_v7 = vld [vmem:[%s2860_s2] ss:$0 sm:$0xff] }
  0x8a   :  { %1207 = vmatmul.mubr.bf16.gmra.mrb[36].mxu0 %v2197_v8  ;;  %982 = vmatprep.mubr.bf16.mxu1 %v2198_v9 }
  0x8b   :  { %1214 = vmatprep.mubr.bf16.mxu0 %v2200_v10 }
  0x91   :  { %983 = vmatmul.mubr.bf16.gmra.mrb[40].mxu1 %v2202_v11 }
  0x92   :  { %1215 = vmatmul.mubr.bf16.gmra.mrb[40].mxu0 %v2203_v12  ;;  %990 = vmatprep.mubr.bf16.mxu1 %v2204_v13 }
  0x93   :  { %1222 = vmatprep.mubr.bf16.mxu0 %v2206_v14 }
  0x99   :  { %991 = vmatmul.mubr.bf16.gmra.mrb[44].mxu1 %v2208_v15 }
  0x9a   :  { %1223 = vmatmul.mubr.bf16.gmra.mrb[44].mxu0 %v2209_v16  ;;  %998 = vmatprep.mubr.bf16.mxu1 %v2210_v17 }
  0x9b   :  { %1230 = vmatprep.mubr.bf16.mxu0 %v2212_v18 }
  0xa1   :  { %999 = vmatmul.mubr.bf16.gmra.mrb[48].mxu1 %v2214_v19 }
  0xa2   :  { %1231 = vmatmul.mubr.bf16.gmra.mrb[48].mxu0 %v2215_v20  ;;  %1006 = vmatprep.mubr.bf16.mxu1 %v2216_v21 }
  0xa3   :  { %1238 = vmatprep.mubr.bf16.mxu0 %v2218_v22 }
  0xa9   :  { %1007 = vmatmul.mubr.bf16.gmra.mrb[52].mxu1 %v2220_v23 }
  0xaa   :  { %1239 = vmatmul.mubr.bf16.gmra.mrb[52].mxu0 %v2221_v24  ;;  %1014 = vmatprep.mubr.bf16.mxu1 %v2222_v25 }
  0xab   :  { %1246 = vmatprep.mubr.bf16.mxu0 %v2224_v26 }
  0xb1   :  { %1015 = vmatmul.mubr.bf16.gmra.mrb[56].mxu1 %v2226_v27 }
  0xb2   :  { %1247 = vmatmul.mubr.bf16.gmra.mrb[56].mxu0 %v2227_v28  ;;  %1022 = vmatprep.mubr.bf16.mxu1 %v2228_v29 }
  0xb3   :  { %1254 = vmatprep.mubr.bf16.mxu0 %v2230_v30 }
  0xb9   :  { %1023 = vmatmul.mubr.bf16.gmra.mrb[60].mxu1 %v2232_v31 }
  0xba   :  { %1255 = vmatmul.mubr.bf16.gmra.mrb[60].mxu0 %v2233_v32  ;;  %1030 = vmatprep.mubr.bf16.mxu1 %v2234_v33 }
  0xbb   :  { %1262 = vmatprep.mubr.bf16.mxu0 %v2236_v34 }
  0xc1   :  { %1031 = vmatmul.mubr.bf16.gmra.mrb[64].mxu1 %v2238_v35 }
  0xc2   :  { %1263 = vmatmul.mubr.bf16.gmra.mrb[64].mxu0 %v2239_v36  ;;  %1038 = vmatprep.mubr.bf16.mxu1 %v2240_v37 }
  0xc3   :  { %1270 = vmatprep.mubr.bf16.mxu0 %v2242_v38 }
  0xc9   :  { %1039 = vmatmul.mubr.bf16.gmra.mrb[68].mxu1 %v2244_v39 }
  0xca   :  { %1271 = vmatmul.mubr.bf16.gmra.mrb[68].mxu0 %v2245_v40  ;;  %1046 = vmatprep.mubr.bf16.mxu1 %v2246_v41 }
  0xcb   :  { %1278 = vmatprep.mubr.bf16.mxu0 %v2248_v42 }
  0xd1   :  { %1047 = vmatmul.mubr.bf16.gmra.mrb[72].mxu1 %v2250_v43 }
  0xd2   :  { %1279 = vmatmul.mubr.bf16.gmra.mrb[72].mxu0 %v2251_v44  ;;  %1054 = vmatprep.mubr.bf16.mxu1 %v2252_v45 }
  0xd3   :  { %1286 = vmatprep.mubr.bf16.mxu0 %v2254_v46 }
  0xd9   :  { %1055 = vmatmul.mubr.bf16.gmra.mrb[76].mxu1 %v2256_v47 }
  0xda   :  { %1287 = vmatmul.mubr.bf16.gmra.mrb[76].mxu0 %v2257_v48  ;;  %1062 = vmatprep.mubr.bf16.mxu1 %v2258_v49 }
  0xdb   :  { %1294 = vmatprep.mubr.bf16.mxu0 %v2260_v50 }
  0xe1   :  { %1063 = vmatmul.mubr.bf16.gmra.mrb[80].mxu1 %v2262_v51 }
  0xe2   :  { %1295 = vmatmul.mubr.bf16.gmra.mrb[80].mxu0 %v2263_v52  ;;  %1070 = vmatprep.mubr.bf16.mxu1 %v2264_v53 }
  0xe3   :  { %1302 = vmatprep.mubr.bf16.mxu0 %v2266_v54 }
  0xe9   :  { %1071 = vmatmul.mubr.bf16.gmra.mrb[84].mxu1 %v2268_v55 }
  0xea   :  { %1303 = vmatmul.mubr.bf16.gmra.mrb[84].mxu0 %v2269_v56  ;;  %1078 = vmatprep.mubr.bf16.mxu1 %v2270_v57 }
  0xeb   :  { %1310 = vmatprep.mubr.bf16.mxu0 %v2272_v58 }
  0xf1   :  { %1079 = vmatmul.mubr.bf16.gmra.mrb[88].mxu1 %v2274_v59 }
  0xf2   :  { %1311 = vmatmul.mubr.bf16.gmra.mrb[88].mxu0 %v2275_v60  ;;  %1086 = vmatprep.mubr.bf16.mxu1 %v2276_v61 }
  0xf3   :  { %1318 = vmatprep.mubr.bf16.mxu0 %v2278_v62 }
  0xf9   :  { %1087 = vmatmul.mubr.bf16.gmra.mrb[92].mxu1 %v2280_v1 }
  0xfa   :  { %1319 = vmatmul.mubr.bf16.gmra.mrb[92].mxu0 %v2281_v2  ;;  %1094 = vmatprep.mubr.bf16.mxu1 %v1731_v3 }
  0xfb   :  { %1326 = vmatprep.mubr.bf16.mxu0 %v1733_v4 }
 0x101   :  { %1095 = vmatmul.mubr.bf16.gmra.mrb[96].mxu1 %v1730_v5 }
 0x102   :  { %1327 = vmatmul.mubr.bf16.gmra.mrb[96].mxu0 %v1732_v6 }
 0x114   :  { %v904_v8 = vpop.f32.mrb[0].mxu1 }
 0x115   :  { %v905_v9 = vadd.f32 %v2732_v7, %v904_v8  ;;  %v1136_v10 = vpop.f32.mrb[0].mxu0  ;;  %v906_v11 = vpop.f32.mrb[1].mxu1 }
 0x116   :  { %v1138_v12 = vpop.f32.mrb[1].mxu0  ;;  %v907_v13 = vpop.f32.mrb[2].mxu1 }
 0x117   :  { %v1137_v14 = vadd.f32 %v1136_v10, %v905_v9  ;;  %v908_v15 = vadd.f32 %v2732_v7, %v907_v13  ;;  %v1139_v16 = vpop.f32.mrb[2].mxu0  ;;  %v909_v17 = vpop.f32.mrb[3].mxu1 }
 0x118   :  { %v1141_v18 = vpop.f32.mrb[3].mxu0 }
 0x119   :  { %v1140_v19 = vadd.f32 %v1139_v16, %v908_v15  ;;  %v1334_v20 = vmax.f32 %v1137_v14, 0.0 }
 0x11b   :  { %v1335_v21 = vmax.f32 %v1140_v19, 0.0 }
 0x11c   :  { %v912_v22 = vpop.f32.mrb[4].mxu1 }
 0x11d   :  { %v1867_v23 = vpack.c.bf16 %v1335_v21, %v1334_v20  ;;  %v913_v24 = vadd.f32 %v2732_v7, %v912_v22  ;;  %v1144_v25 = vpop.f32.mrb[4].mxu0  ;;  %v914_v26 = vpop.f32.mrb[5].mxu1 }
 0x11e   :  { %v1146_v27 = vpop.f32.mrb[5].mxu0  ;;  %v915_v28 = vpop.f32.mrb[6].mxu1 }
 0x11f   :  { %1868 = vst [vmem:[%s2861_s3] sm:$0xff] %v1867_v23   ;;  %v1145_v29 = vadd.f32 %v1144_v25, %v913_v24  ;;  %v916_v30 = vadd.f32 %v2732_v7, %v915_v28  ;;  %v1147_v31 = vpop.f32.mrb[6].mxu0  ;;  %v917_v32 = vpop.f32.mrb[7].mxu1 }
 0x120   :  { %v1149_v33 = vpop.f32.mrb[7].mxu0 }
 0x121   :  { %v1148_v34 = vadd.f32 %v1147_v31, %v916_v30  ;;  %v1336_v35 = vmax.f32 %v1145_v29, 0.0 }
 0x123   :  { %v1337_v36 = vmax.f32 %v1148_v34, 0.0 }
 0x124   :  { %v920_v37 = vpop.f32.mrb[8].mxu1 }
 0x125   :  { %v1872_v38 = vpack.c.bf16 %v1337_v36, %v1336_v35  ;;  %v921_v39 = vadd.f32 %v2732_v7, %v920_v37  ;;  %v1152_v40 = vpop.f32.mrb[8].mxu0  ;;  %v922_v41 = vpop.f32.mrb[9].mxu1 }
 0x126   :  { %v1154_v42 = vpop.f32.mrb[9].mxu0  ;;  %v923_v43 = vpop.f32.mrb[10].mxu1 }
 0x127   :  { %1984 = vst [vmem:[%s2861_s3 + $0x8] sm:$0xff] %v1872_v38   ;;  %v1153_v44 = vadd.f32 %v1152_v40, %v921_v39  ;;  %v924_v45 = vadd.f32 %v2732_v7, %v923_v43  ;;  %v1155_v46 = vpop.f32.mrb[10].mxu0  ;;  %v925_v47 = vpop.f32.mrb[11].mxu1 }
 0x128   :  { %v1157_v48 = vpop.f32.mrb[11].mxu0 }
 0x129   :  { %v1156_v49 = vadd.f32 %v1155_v46, %v924_v45  ;;  %v1338_v50 = vmax.f32 %v1153_v44, 0.0 }
 0x12b   :  { %v1339_v51 = vmax.f32 %v1156_v49, 0.0 }
 0x12c   :  { %v928_v52 = vpop.f32.mrb[12].mxu1 }
 0x12d   :  { %v1877_v53 = vpack.c.bf16 %v1339_v51, %v1338_v50  ;;  %v929_v54 = vadd.f32 %v2732_v7, %v928_v52  ;;  %v1160_v55 = vpop.f32.mrb[12].mxu0  ;;  %v930_v56 = vpop.f32.mrb[13].mxu1 }
 0x12e   :  { %v1162_v57 = vpop.f32.mrb[13].mxu0  ;;  %v931_v58 = vpop.f32.mrb[14].mxu1 }
 0x12f   :  { %1985 = vst [vmem:[%s2861_s3 + $0x10] sm:$0xff] %v1877_v53   ;;  %v1161_v59 = vadd.f32 %v1160_v55, %v929_v54  ;;  %v932_v60 = vadd.f32 %v2732_v7, %v931_v58  ;;  %v1163_v61 = vpop.f32.mrb[14].mxu0  ;;  %v933_v62 = vpop.f32.mrb[15].mxu1 }
 0x130   :  { %v1165_v63 = vpop.f32.mrb[15].mxu0 }
 0x131   :  { %v1164_v0 = vadd.f32 %v1163_v61, %v932_v60  ;;  %v1340_v1 = vmax.f32 %v1161_v59, 0.0 }
 0x133   :  { %v1341_v2 = vmax.f32 %v1164_v0, 0.0 }
 0x134   :  { %v936_v3 = vpop.f32.mrb[16].mxu1 }
 0x135   :  { %v1882_v4 = vpack.c.bf16 %v1341_v2, %v1340_v1  ;;  %v937_v5 = vadd.f32 %v2732_v7, %v936_v3  ;;  %v1168_v6 = vpop.f32.mrb[16].mxu0  ;;  %v938_v8 = vpop.f32.mrb[17].mxu1 }
 0x136   :  { %v1170_v9 = vpop.f32.mrb[17].mxu0  ;;  %v939_v10 = vpop.f32.mrb[18].mxu1 }
 0x137   :  { %1986 = vst [vmem:[%s2861_s3 + $0x18] sm:$0xff] %v1882_v4   ;;  %v1169_v11 = vadd.f32 %v1168_v6, %v937_v5  ;;  %v940_v12 = vadd.f32 %v2732_v7, %v939_v10  ;;  %v1171_v13 = vpop.f32.mrb[18].mxu0  ;;  %v941_v14 = vpop.f32.mrb[19].mxu1 }
 0x138   :  { %v1173_v15 = vpop.f32.mrb[19].mxu0 }
 0x139   :  { %v1172_v16 = vadd.f32 %v1171_v13, %v940_v12  ;;  %v1342_v17 = vmax.f32 %v1169_v11, 0.0 }
 0x13b   :  { %v1343_v18 = vmax.f32 %v1172_v16, 0.0 }
 0x13c   :  { %v944_v19 = vpop.f32.mrb[20].mxu1 }
 0x13d   :  { %v1887_v20 = vpack.c.bf16 %v1343_v18, %v1342_v17  ;;  %v945_v21 = vadd.f32 %v2732_v7, %v944_v19  ;;  %v1176_v22 = vpop.f32.mrb[20].mxu0  ;;  %v946_v23 = vpop.f32.mrb[21].mxu1 }
 0x13e   :  { %v1178_v24 = vpop.f32.mrb[21].mxu0  ;;  %v947_v25 = vpop.f32.mrb[22].mxu1 }
 0x13f   :  { %1987 = vst [vmem:[%s2861_s3 + $0x20] sm:$0xff] %v1887_v20   ;;  %v1177_v26 = vadd.f32 %v1176_v22, %v945_v21  ;;  %v948_v27 = vadd.f32 %v2732_v7, %v947_v25  ;;  %v1179_v28 = vpop.f32.mrb[22].mxu0  ;;  %v949_v29 = vpop.f32.mrb[23].mxu1 }
 0x140   :  { %v1181_v30 = vpop.f32.mrb[23].mxu0 }
 0x141   :  { %v1180_v31 = vadd.f32 %v1179_v28, %v948_v27  ;;  %v1344_v32 = vmax.f32 %v1177_v26, 0.0 }
 0x143   :  { %v1345_v33 = vmax.f32 %v1180_v31, 0.0 }
 0x144   :  { %v952_v34 = vpop.f32.mrb[24].mxu1 }
 0x145   :  { %v1892_v35 = vpack.c.bf16 %v1345_v33, %v1344_v32  ;;  %v953_v36 = vadd.f32 %v2732_v7, %v952_v34  ;;  %v1184_v37 = vpop.f32.mrb[24].mxu0  ;;  %v954_v38 = vpop.f32.mrb[25].mxu1 }
 0x146   :  { %v1186_v39 = vpop.f32.mrb[25].mxu0  ;;  %v955_v40 = vpop.f32.mrb[26].mxu1 }
 0x147   :  { %1988 = vst [vmem:[%s2861_s3 + $0x28] sm:$0xff] %v1892_v35   ;;  %v1185_v41 = vadd.f32 %v1184_v37, %v953_v36  ;;  %v956_v42 = vadd.f32 %v2732_v7, %v955_v40  ;;  %v1187_v43 = vpop.f32.mrb[26].mxu0  ;;  %v957_v44 = vpop.f32.mrb[27].mxu1 }
 0x148   :  { %v1189_v45 = vpop.f32.mrb[27].mxu0 }
 0x149   :  { %v1188_v46 = vadd.f32 %v1187_v43, %v956_v42  ;;  %v1346_v47 = vmax.f32 %v1185_v41, 0.0 }
 0x14b   :  { %v1347_v48 = vmax.f32 %v1188_v46, 0.0 }
 0x14c   :  { %v960_v49 = vpop.f32.mrb[28].mxu1 }
 0x14d   :  { %v1897_v50 = vpack.c.bf16 %v1347_v48, %v1346_v47  ;;  %v961_v51 = vadd.f32 %v2732_v7, %v960_v49  ;;  %v1192_v52 = vpop.f32.mrb[28].mxu0  ;;  %v962_v53 = vpop.f32.mrb[29].mxu1 }
 0x14e   :  { %v1194_v54 = vpop.f32.mrb[29].mxu0  ;;  %v963_v55 = vpop.f32.mrb[30].mxu1 }
 0x14f   :  { %1989 = vst [vmem:[%s2861_s3 + $0x30] sm:$0xff] %v1897_v50   ;;  %v1193_v56 = vadd.f32 %v1192_v52, %v961_v51  ;;  %v964_v57 = vadd.f32 %v2732_v7, %v963_v55  ;;  %v1195_v58 = vpop.f32.mrb[30].mxu0  ;;  %v965_v59 = vpop.f32.mrb[31].mxu1 }
 0x150   :  { %v1197_v60 = vpop.f32.mrb[31].mxu0 }
 0x151   :  { %v1196_v61 = vadd.f32 %v1195_v58, %v964_v57  ;;  %v1348_v62 = vmax.f32 %v1193_v56, 0.0 }
 0x153   :  { %v1349_v63 = vmax.f32 %v1196_v61, 0.0 }
 0x154   :  { %v968_v0 = vpop.f32.mrb[32].mxu1 }
 0x155   :  { %v1902_v1 = vpack.c.bf16 %v1349_v63, %v1348_v62  ;;  %v969_v2 = vadd.f32 %v2732_v7, %v968_v0  ;;  %v1200_v3 = vpop.f32.mrb[32].mxu0  ;;  %v970_v4 = vpop.f32.mrb[33].mxu1 }
 0x156   :  { %v1202_v5 = vpop.f32.mrb[33].mxu0  ;;  %v971_v6 = vpop.f32.mrb[34].mxu1 }
 0x157   :  { %1990 = vst [vmem:[%s2861_s3 + $0x38] sm:$0xff] %v1902_v1   ;;  %v1201_v8 = vadd.f32 %v1200_v3, %v969_v2  ;;  %v972_v9 = vadd.f32 %v2732_v7, %v971_v6  ;;  %v1203_v10 = vpop.f32.mrb[34].mxu0  ;;  %v973_v11 = vpop.f32.mrb[35].mxu1 }
 0x158   :  { %v1205_v12 = vpop.f32.mrb[35].mxu0 }
 0x159   :  { %v1204_v13 = vadd.f32 %v1203_v10, %v972_v9  ;;  %v1350_v14 = vmax.f32 %v1201_v8, 0.0 }
 0x15b   :  { %v1351_v15 = vmax.f32 %v1204_v13, 0.0 }
 0x15c   :  { %v976_v16 = vpop.f32.mrb[36].mxu1 }
 0x15d   :  { %v1907_v17 = vpack.c.bf16 %v1351_v15, %v1350_v14  ;;  %v977_v18 = vadd.f32 %v2732_v7, %v976_v16  ;;  %v1208_v19 = vpop.f32.mrb[36].mxu0  ;;  %v978_v20 = vpop.f32.mrb[37].mxu1 }
 0x15e   :  { %v1210_v21 = vpop.f32.mrb[37].mxu0  ;;  %v979_v22 = vpop.f32.mrb[38].mxu1 }
 0x15f   :  { %1991 = vst [vmem:[%s2861_s3 + $0x40] sm:$0xff] %v1907_v17   ;;  %v1209_v23 = vadd.f32 %v1208_v19, %v977_v18  ;;  %v980_v24 = vadd.f32 %v2732_v7, %v979_v22  ;;  %v1211_v25 = vpop.f32.mrb[38].mxu0  ;;  %v981_v26 = vpop.f32.mrb[39].mxu1 }
 0x160   :  { %v1213_v27 = vpop.f32.mrb[39].mxu0 }
 0x161   :  { %v1212_v28 = vadd.f32 %v1211_v25, %v980_v24  ;;  %v1352_v29 = vmax.f32 %v1209_v23, 0.0 }
 0x163   :  { %v1353_v30 = vmax.f32 %v1212_v28, 0.0 }
 0x164   :  { %v984_v31 = vpop.f32.mrb[40].mxu1 }
 0x165   :  { %v1912_v32 = vpack.c.bf16 %v1353_v30, %v1352_v29  ;;  %v985_v33 = vadd.f32 %v2732_v7, %v984_v31  ;;  %v1216_v34 = vpop.f32.mrb[40].mxu0  ;;  %v986_v35 = vpop.f32.mrb[41].mxu1 }
 0x166   :  { %v1218_v36 = vpop.f32.mrb[41].mxu0  ;;  %v987_v37 = vpop.f32.mrb[42].mxu1 }
 0x167   :  { %1992 = vst [vmem:[%s2861_s3 + $0x48] sm:$0xff] %v1912_v32   ;;  %v1217_v38 = vadd.f32 %v1216_v34, %v985_v33  ;;  %v988_v39 = vadd.f32 %v2732_v7, %v987_v37  ;;  %v1219_v40 = vpop.f32.mrb[42].mxu0  ;;  %v989_v41 = vpop.f32.mrb[43].mxu1 }
 0x168   :  { %v1221_v42 = vpop.f32.mrb[43].mxu0 }
 0x169   :  { %v1220_v43 = vadd.f32 %v1219_v40, %v988_v39  ;;  %v1354_v44 = vmax.f32 %v1217_v38, 0.0 }
 0x16b   :  { %v1355_v45 = vmax.f32 %v1220_v43, 0.0 }
 0x16c   :  { %v992_v46 = vpop.f32.mrb[44].mxu1 }
 0x16d   :  { %v1917_v47 = vpack.c.bf16 %v1355_v45, %v1354_v44  ;;  %v993_v48 = vadd.f32 %v2732_v7, %v992_v46  ;;  %v1224_v49 = vpop.f32.mrb[44].mxu0  ;;  %v994_v50 = vpop.f32.mrb[45].mxu1 }
 0x16e   :  { %v1226_v51 = vpop.f32.mrb[45].mxu0  ;;  %v995_v52 = vpop.f32.mrb[46].mxu1 }
 0x16f   :  { %1993 = vst [vmem:[%s2861_s3 + $0x50] sm:$0xff] %v1917_v47   ;;  %v1225_v53 = vadd.f32 %v1224_v49, %v993_v48  ;;  %v996_v54 = vadd.f32 %v2732_v7, %v995_v52  ;;  %v1227_v55 = vpop.f32.mrb[46].mxu0  ;;  %v997_v56 = vpop.f32.mrb[47].mxu1 }
 0x170   :  { %v1229_v57 = vpop.f32.mrb[47].mxu0 }
 0x171   :  { %v1228_v58 = vadd.f32 %v1227_v55, %v996_v54  ;;  %v1356_v59 = vmax.f32 %v1225_v53, 0.0 }
 0x173   :  { %v1357_v60 = vmax.f32 %v1228_v58, 0.0 }
 0x174   :  { %v1000_v61 = vpop.f32.mrb[48].mxu1 }
 0x175   :  { %v1922_v62 = vpack.c.bf16 %v1357_v60, %v1356_v59  ;;  %v1001_v63 = vadd.f32 %v2732_v7, %v1000_v61  ;;  %v1232_v0 = vpop.f32.mrb[48].mxu0  ;;  %v1002_v1 = vpop.f32.mrb[49].mxu1 }
 0x176   :  { %v1234_v2 = vpop.f32.mrb[49].mxu0  ;;  %v1003_v3 = vpop.f32.mrb[50].mxu1 }
 0x177   :  { %1994 = vst [vmem:[%s2861_s3 + $0x58] sm:$0xff] %v1922_v62   ;;  %v1233_v4 = vadd.f32 %v1232_v0, %v1001_v63  ;;  %v1004_v5 = vadd.f32 %v2732_v7, %v1003_v3  ;;  %v1235_v6 = vpop.f32.mrb[50].mxu0  ;;  %v1005_v8 = vpop.f32.mrb[51].mxu1 }
 0x178   :  { %v1237_v9 = vpop.f32.mrb[51].mxu0 }
 0x179   :  { %v1236_v10 = vadd.f32 %v1235_v6, %v1004_v5  ;;  %v1358_v11 = vmax.f32 %v1233_v4, 0.0 }
 0x17b   :  { %v1359_v12 = vmax.f32 %v1236_v10, 0.0 }
 0x17c   :  { %v1008_v13 = vpop.f32.mrb[52].mxu1 }
 0x17d   :  { %v1927_v14 = vpack.c.bf16 %v1359_v12, %v1358_v11  ;;  %v1009_v15 = vadd.f32 %v2732_v7, %v1008_v13  ;;  %v1240_v16 = vpop.f32.mrb[52].mxu0  ;;  %v1010_v17 = vpop.f32.mrb[53].mxu1 }
 0x17e   :  { %v1242_v18 = vpop.f32.mrb[53].mxu0  ;;  %v1011_v19 = vpop.f32.mrb[54].mxu1 }
 0x17f   :  { %1995 = vst [vmem:[%s2861_s3 + $0x60] sm:$0xff] %v1927_v14   ;;  %v1241_v20 = vadd.f32 %v1240_v16, %v1009_v15  ;;  %v1012_v21 = vadd.f32 %v2732_v7, %v1011_v19  ;;  %v1243_v22 = vpop.f32.mrb[54].mxu0  ;;  %v1013_v23 = vpop.f32.mrb[55].mxu1 }
 0x180   :  { %v1245_v24 = vpop.f32.mrb[55].mxu0 }
 0x181   :  { %v1244_v25 = vadd.f32 %v1243_v22, %v1012_v21  ;;  %v1360_v26 = vmax.f32 %v1241_v20, 0.0 }
 0x183   :  { %v1361_v27 = vmax.f32 %v1244_v25, 0.0 }
 0x184   :  { %v1016_v28 = vpop.f32.mrb[56].mxu1 }
 0x185   :  { %v1932_v29 = vpack.c.bf16 %v1361_v27, %v1360_v26  ;;  %v1017_v30 = vadd.f32 %v2732_v7, %v1016_v28  ;;  %v1248_v31 = vpop.f32.mrb[56].mxu0  ;;  %v1018_v32 = vpop.f32.mrb[57].mxu1 }
 0x186   :  { %v1250_v33 = vpop.f32.mrb[57].mxu0  ;;  %v1019_v34 = vpop.f32.mrb[58].mxu1 }
 0x187   :  { %1996 = vst [vmem:[%s2861_s3 + $0x68] sm:$0xff] %v1932_v29   ;;  %v1249_v35 = vadd.f32 %v1248_v31, %v1017_v30  ;;  %v1020_v36 = vadd.f32 %v2732_v7, %v1019_v34  ;;  %v1251_v37 = vpop.f32.mrb[58].mxu0  ;;  %v1021_v38 = vpop.f32.mrb[59].mxu1 }
 0x188   :  { %v1253_v39 = vpop.f32.mrb[59].mxu0 }
 0x189   :  { %v1252_v40 = vadd.f32 %v1251_v37, %v1020_v36  ;;  %v1362_v41 = vmax.f32 %v1249_v35, 0.0 }
 0x18b   :  { %v1363_v42 = vmax.f32 %v1252_v40, 0.0 }
 0x18c   :  { %v1024_v43 = vpop.f32.mrb[60].mxu1 }
 0x18d   :  { %v1937_v44 = vpack.c.bf16 %v1363_v42, %v1362_v41  ;;  %v1025_v45 = vadd.f32 %v2732_v7, %v1024_v43  ;;  %v1256_v46 = vpop.f32.mrb[60].mxu0  ;;  %v1026_v47 = vpop.f32.mrb[61].mxu1 }
 0x18e   :  { %v1258_v48 = vpop.f32.mrb[61].mxu0  ;;  %v1027_v49 = vpop.f32.mrb[62].mxu1 }
 0x18f   :  { %1997 = vst [vmem:[%s2861_s3 + $0x70] sm:$0xff] %v1937_v44   ;;  %v1257_v50 = vadd.f32 %v1256_v46, %v1025_v45  ;;  %v1028_v51 = vadd.f32 %v2732_v7, %v1027_v49  ;;  %v1259_v52 = vpop.f32.mrb[62].mxu0  ;;  %v1029_v53 = vpop.f32.mrb[63].mxu1 }
 0x190   :  { %v1261_v54 = vpop.f32.mrb[63].mxu0 }
 0x191   :  { %v1260_v55 = vadd.f32 %v1259_v52, %v1028_v51  ;;  %v1364_v56 = vmax.f32 %v1257_v50, 0.0 }
 0x193   :  { %v1365_v57 = vmax.f32 %v1260_v55, 0.0 }
 0x194   :  { %v1032_v58 = vpop.f32.mrb[64].mxu1 }
 0x195   :  { %v1942_v59 = vpack.c.bf16 %v1365_v57, %v1364_v56  ;;  %v1033_v60 = vadd.f32 %v2732_v7, %v1032_v58  ;;  %v1264_v61 = vpop.f32.mrb[64].mxu0  ;;  %v1034_v62 = vpop.f32.mrb[65].mxu1 }
 0x196   :  { %v1266_v63 = vpop.f32.mrb[65].mxu0  ;;  %v1035_v0 = vpop.f32.mrb[66].mxu1 }
 0x197   :  { %1998 = vst [vmem:[%s2861_s3 + $0x78] sm:$0xff] %v1942_v59   ;;  %v1265_v1 = vadd.f32 %v1264_v61, %v1033_v60  ;;  %v1036_v2 = vadd.f32 %v2732_v7, %v1035_v0  ;;  %v1267_v3 = vpop.f32.mrb[66].mxu0  ;;  %v1037_v4 = vpop.f32.mrb[67].mxu1 }
 0x198   :  { %v1269_v5 = vpop.f32.mrb[67].mxu0 }
 0x199   :  { %v1268_v6 = vadd.f32 %v1267_v3, %v1036_v2  ;;  %v1366_v8 = vmax.f32 %v1265_v1, 0.0 }
 0x19b   :  { %v1367_v9 = vmax.f32 %v1268_v6, 0.0 }
 0x19c   :  { %v1040_v10 = vpop.f32.mrb[68].mxu1 }
 0x19d   :  { %v1947_v11 = vpack.c.bf16 %v1367_v9, %v1366_v8  ;;  %v1041_v12 = vadd.f32 %v2732_v7, %v1040_v10  ;;  %v1272_v13 = vpop.f32.mrb[68].mxu0  ;;  %v1042_v14 = vpop.f32.mrb[69].mxu1 }
 0x19e   :  { %v1274_v15 = vpop.f32.mrb[69].mxu0  ;;  %v1043_v16 = vpop.f32.mrb[70].mxu1 }
 0x19f   :  { %1999 = vst [vmem:[%s2861_s3 + $0x80] sm:$0xff] %v1947_v11   ;;  %v1273_v17 = vadd.f32 %v1272_v13, %v1041_v12  ;;  %v1044_v18 = vadd.f32 %v2732_v7, %v1043_v16  ;;  %v1275_v19 = vpop.f32.mrb[70].mxu0  ;;  %v1045_v20 = vpop.f32.mrb[71].mxu1 }
 0x1a0   :  { %v1277_v21 = vpop.f32.mrb[71].mxu0 }
 0x1a1   :  { %v1276_v22 = vadd.f32 %v1275_v19, %v1044_v18  ;;  %v1368_v23 = vmax.f32 %v1273_v17, 0.0 }
 0x1a3   :  { %v1369_v24 = vmax.f32 %v1276_v22, 0.0 }
 0x1a4   :  { %v1048_v25 = vpop.f32.mrb[72].mxu1 }
 0x1a5   :  { %v1952_v26 = vpack.c.bf16 %v1369_v24, %v1368_v23  ;;  %v1049_v27 = vadd.f32 %v2732_v7, %v1048_v25  ;;  %v1280_v28 = vpop.f32.mrb[72].mxu0  ;;  %v1050_v29 = vpop.f32.mrb[73].mxu1 }
 0x1a6   :  { %v1282_v30 = vpop.f32.mrb[73].mxu0  ;;  %v1051_v31 = vpop.f32.mrb[74].mxu1 }
 0x1a7   :  { %2000 = vst [vmem:[%s2861_s3 + $0x88] sm:$0xff] %v1952_v26   ;;  %v1281_v32 = vadd.f32 %v1280_v28, %v1049_v27  ;;  %v1052_v33 = vadd.f32 %v2732_v7, %v1051_v31  ;;  %v1283_v34 = vpop.f32.mrb[74].mxu0  ;;  %v1053_v35 = vpop.f32.mrb[75].mxu1 }
 0x1a8   :  { %v1285_v36 = vpop.f32.mrb[75].mxu0 }
 0x1a9   :  { %v1284_v37 = vadd.f32 %v1283_v34, %v1052_v33  ;;  %v1370_v38 = vmax.f32 %v1281_v32, 0.0 }
 0x1ab   :  { %v1371_v39 = vmax.f32 %v1284_v37, 0.0 }
 0x1ac   :  { %v1056_v40 = vpop.f32.mrb[76].mxu1 }
 0x1ad   :  { %v1957_v41 = vpack.c.bf16 %v1371_v39, %v1370_v38  ;;  %v1057_v42 = vadd.f32 %v2732_v7, %v1056_v40  ;;  %v1288_v43 = vpop.f32.mrb[76].mxu0  ;;  %v1058_v44 = vpop.f32.mrb[77].mxu1 }
 0x1ae   :  { %v1290_v45 = vpop.f32.mrb[77].mxu0  ;;  %v1059_v46 = vpop.f32.mrb[78].mxu1 }
 0x1af   :  { %2001 = vst [vmem:[%s2861_s3 + $0x90] sm:$0xff] %v1957_v41   ;;  %v1289_v47 = vadd.f32 %v1288_v43, %v1057_v42  ;;  %v1060_v48 = vadd.f32 %v2732_v7, %v1059_v46  ;;  %v1291_v49 = vpop.f32.mrb[78].mxu0  ;;  %v1061_v50 = vpop.f32.mrb[79].mxu1 }
 0x1b0   :  { %v1293_v51 = vpop.f32.mrb[79].mxu0 }
 0x1b1   :  { %v1292_v52 = vadd.f32 %v1291_v49, %v1060_v48  ;;  %v1372_v53 = vmax.f32 %v1289_v47, 0.0 }
 0x1b3   :  { %v1373_v54 = vmax.f32 %v1292_v52, 0.0 }
 0x1b4   :  { %v1064_v55 = vpop.f32.mrb[80].mxu1 }
 0x1b5   :  { %v1962_v56 = vpack.c.bf16 %v1373_v54, %v1372_v53  ;;  %v1065_v57 = vadd.f32 %v2732_v7, %v1064_v55  ;;  %v1296_v58 = vpop.f32.mrb[80].mxu0  ;;  %v1066_v59 = vpop.f32.mrb[81].mxu1 }
 0x1b6   :  { %v1298_v60 = vpop.f32.mrb[81].mxu0  ;;  %v1067_v61 = vpop.f32.mrb[82].mxu1 }
 0x1b7   :  { %2002 = vst [vmem:[%s2861_s3 + $0x98] sm:$0xff] %v1962_v56   ;;  %v1297_v62 = vadd.f32 %v1296_v58, %v1065_v57  ;;  %v1068_v63 = vadd.f32 %v2732_v7, %v1067_v61  ;;  %v1299_v0 = vpop.f32.mrb[82].mxu0  ;;  %v1069_v1 = vpop.f32.mrb[83].mxu1 }
 0x1b8   :  { %v1301_v2 = vpop.f32.mrb[83].mxu0 }
 0x1b9   :  { %v1300_v3 = vadd.f32 %v1299_v0, %v1068_v63  ;;  %v1374_v4 = vmax.f32 %v1297_v62, 0.0 }
 0x1bb   :  { %v1375_v5 = vmax.f32 %v1300_v3, 0.0 }
 0x1bc   :  { %v1072_v6 = vpop.f32.mrb[84].mxu1 }
 0x1bd   :  { %v1967_v8 = vpack.c.bf16 %v1375_v5, %v1374_v4  ;;  %v1073_v9 = vadd.f32 %v2732_v7, %v1072_v6  ;;  %v1304_v10 = vpop.f32.mrb[84].mxu0  ;;  %v1074_v11 = vpop.f32.mrb[85].mxu1 }
 0x1be   :  { %v1306_v12 = vpop.f32.mrb[85].mxu0  ;;  %v1075_v13 = vpop.f32.mrb[86].mxu1 }
 0x1bf   :  { %2003 = vst [vmem:[%s2861_s3 + $0xa0] sm:$0xff] %v1967_v8   ;;  %v1305_v14 = vadd.f32 %v1304_v10, %v1073_v9  ;;  %v1076_v15 = vadd.f32 %v2732_v7, %v1075_v13  ;;  %v1307_v16 = vpop.f32.mrb[86].mxu0  ;;  %v1077_v17 = vpop.f32.mrb[87].mxu1 }
 0x1c0   :  { %v1309_v18 = vpop.f32.mrb[87].mxu0 }
 0x1c1   :  { %v1308_v19 = vadd.f32 %v1307_v16, %v1076_v15  ;;  %v1376_v20 = vmax.f32 %v1305_v14, 0.0 }
 0x1c3   :  { %v1377_v21 = vmax.f32 %v1308_v19, 0.0 }
 0x1c4   :  { %v1080_v22 = vpop.f32.mrb[88].mxu1 }
 0x1c5   :  { %v1972_v23 = vpack.c.bf16 %v1377_v21, %v1376_v20  ;;  %v1081_v24 = vadd.f32 %v2732_v7, %v1080_v22  ;;  %v1312_v25 = vpop.f32.mrb[88].mxu0  ;;  %v1082_v26 = vpop.f32.mrb[89].mxu1 }
 0x1c6   :  { %v1314_v27 = vpop.f32.mrb[89].mxu0  ;;  %v1083_v28 = vpop.f32.mrb[90].mxu1 }
 0x1c7   :  { %2004 = vst [vmem:[%s2861_s3 + $0xa8] sm:$0xff] %v1972_v23   ;;  %v1313_v29 = vadd.f32 %v1312_v25, %v1081_v24  ;;  %v1084_v30 = vadd.f32 %v2732_v7, %v1083_v28  ;;  %v1315_v31 = vpop.f32.mrb[90].mxu0  ;;  %v1085_v32 = vpop.f32.mrb[91].mxu1 }
 0x1c8   :  { %v1317_v33 = vpop.f32.mrb[91].mxu0 }
 0x1c9   :  { %v1316_v34 = vadd.f32 %v1315_v31, %v1084_v30  ;;  %v1378_v35 = vmax.f32 %v1313_v29, 0.0 }
 0x1cb   :  { %v1379_v36 = vmax.f32 %v1316_v34, 0.0 }
 0x1cc   :  { %v1088_v37 = vpop.f32.mrb[92].mxu1 }
 0x1cd   :  { %v1977_v38 = vpack.c.bf16 %v1379_v36, %v1378_v35  ;;  %v1089_v39 = vadd.f32 %v2732_v7, %v1088_v37  ;;  %v1320_v40 = vpop.f32.mrb[92].mxu0  ;;  %v1090_v41 = vpop.f32.mrb[93].mxu1 }
 0x1ce   :  { %v1322_v42 = vpop.f32.mrb[93].mxu0  ;;  %v1091_v43 = vpop.f32.mrb[94].mxu1 }
 0x1cf   :  { %2005 = vst [vmem:[%s2861_s3 + $0xb0] sm:$0xff] %v1977_v38   ;;  %v1321_v44 = vadd.f32 %v1320_v40, %v1089_v39  ;;  %v1092_v45 = vadd.f32 %v2732_v7, %v1091_v43  ;;  %v1323_v46 = vpop.f32.mrb[94].mxu0  ;;  %v1093_v47 = vpop.f32.mrb[95].mxu1 }
 0x1d0   :  { %v1325_v48 = vpop.f32.mrb[95].mxu0 }
 0x1d1   :  { %v1324_v49 = vadd.f32 %v1323_v46, %v1092_v45  ;;  %v1380_v50 = vmax.f32 %v1321_v44, 0.0 }
 0x1d3   :  { %v1381_v51 = vmax.f32 %v1324_v49, 0.0 }
 0x1d4   :  { %v1096_v52 = vpop.f32.mrb[96].mxu1 }
 0x1d5   :  { %v1982_v53 = vpack.c.bf16 %v1381_v51, %v1380_v50  ;;  %v1097_v54 = vadd.f32 %v2732_v7, %v1096_v52  ;;  %v1328_v55 = vpop.f32.mrb[96].mxu0  ;;  %v1098_v56 = vpop.f32.mrb[97].mxu1 }
 0x1d6   :  { %v1330_v57 = vpop.f32.mrb[97].mxu0  ;;  %v1099_v58 = vpop.f32.mrb[98].mxu1 }
 0x1d7   :  { %2006 = vst [vmem:[%s2861_s3 + $0xb8] sm:$0xff] %v1982_v53   ;;  %v1329_v59 = vadd.f32 %v1328_v55, %v1097_v54  ;;  %v1331_v60 = vpop.f32.mrb[98].mxu0  ;;  %v1100_v61 = vpop.f32.mrb[99].mxu1 }
 0x1d8   :  { %v1332_v62 = vpop.f32.mrb[99].mxu0 }
 0x1d9   :  { %v1382_v63 = vmax.f32 %v1329_v59, 0.0 }
 0x1db   :  { %v1863_v0 = vpack.c.bf16 %v1382_v63, %v1382_v63 }
 0x1dd   :  { %1628 = vst [vmem:[%s2861_s3 + $0xc0] sm:$0xf] %v1863_v0 }

// kernel: grad_con_vae_forward.19
= control target key start
LH: loop header
LB: loop body
LE: loop exit
PB: predicated region body
PF: predicated region fallthrough
CT: control target
= control target key end

     0   :  { %s2602_s12 = smov 0   ;;  %s2963_s0 = inlined_call_operand.vmem [shape: bf16[1568,512], index: 0, kind: input, shape index: {}]   ;;  %s2964_s1 = inlined_call_operand.vmem [shape: bf16[512,128], index: 1, kind: input, shape index: {}]   ;;  %s2965_s2 = inlined_call_operand.vmem [shape: f32[1,128], index: 2, kind: input, shape index: {}]   ;;  %s2966_s3 = inlined_call_operand.vmem [shape: f32[1568,128], index: 3, kind: output, shape index: {}]  }
   0x1 LB: > { %s1896_s13 = sadd.s32 4294967295, %s2579_s12   ;;  %p1900_p0 = scmp.ge.s32.totalorder %s2579_s12, 1  ;;  %s2579_s12 = sphi %s2602_s12, %s13_s12  }
   0x2   : > { %p139_p1 = scmp.lt.s32.totalorder %s2579_s12, 5 }
   0x4   : > { %p140_p2 = pnand %p1900_p0, %p139_p1 }
   0x5   : > { %v2196_v0 = vld [vmem:[%s2964_s1] sm:$0xff] (!%p140_p2)   ;;  %v2581_v1 = vmov (!%p140_p2), 0   ;;  %v2198_v3 = vld [vmem:[%s2964_s1 + $0x8] sm:$0xff] (!%p140_p2)   ;;  %v2200_v5 = vld [vmem:[%s2964_s1 + $0x10] sm:$0xff] (!%p140_p2)   ;;  %s164_s7 = smul.u32 (!%p140_p2), 49, %s1896_s13 }
   0x6   : > { %143 = sbr.rel (%p140_p2) target bundleno = 506 (0x1fa), region = 32  ;;  %1033 = vmatprep.subr.bf16.mxu1 (!%p140_p2), %v2581_v1  ;;  %1265 = vmatprep.subr.bf16.mxu0 (!%p140_p2), %v2581_v1  ;;  %v2197_v2 = vld [vmem:[%s2964_s1 + $0x80] sm:$0xff] (!%p140_p2)   ;;  %v2199_v4 = vld [vmem:[%s2964_s1 + $0x88] sm:$0xff] (!%p140_p2)   ;;  %v2201_v6 = vld [vmem:[%s2964_s1 + $0x90] sm:$0xff] (!%p140_p2)  }
   0x7   : > { %1034 = vmatpush1.bf16.msra.mxu1 (!%p140_p2), %v2196_v0  ;;  %1266 = vmatpush1.bf16.msra.mxu0 (!%p140_p2), %v2197_v2  ;;  %v2202_v7 = vld [vmem:[%s2964_s1 + $0x18] sm:$0xff] (!%p140_p2)   ;;  %v2204_v9 = vld [vmem:[%s2964_s1 + $0x20] sm:$0xff] (!%p140_p2)   ;;  %v2206_v11 = vld [vmem:[%s2964_s1 + $0x28] sm:$0xff] (!%p140_p2)   ;;  %p165_p3 = scmp.lt.s32.totalorder (!%p140_p2), %s164_s7, 195 }
   0x8   : > { %1035 = vmatprep.subr.bf16.mxu1 (!%p140_p2), %v2581_v1  ;;  %1267 = vmatprep.subr.bf16.mxu0 (!%p140_p2), %v2581_v1  ;;  %v2203_v8 = vld [vmem:[%s2964_s1 + $0x98] sm:$0xff] (!%p140_p2)   ;;  %v2205_v10 = vld [vmem:[%s2964_s1 + $0xa0] sm:$0xff] (!%p140_p2)   ;;  %v2207_v12 = vld [vmem:[%s2964_s1 + $0xa8] sm:$0xff] (!%p140_p2)  }
   0x9   : > { %v2208_v13 = vld [vmem:[%s2964_s1 + $0x30] sm:$0xff] (!%p140_p2)   ;;  %v2210_v15 = vld [vmem:[%s2964_s1 + $0x38] sm:$0xff] (!%p140_p2)   ;;  %v2212_v17 = vld [vmem:[%s2964_s1 + $0x40] sm:$0xff] (!%p140_p2)  }
   0xa   : > { %v2209_v14 = vld [vmem:[%s2964_s1 + $0xb0] sm:$0xff] (!%p140_p2)   ;;  %v2211_v16 = vld [vmem:[%s2964_s1 + $0xb8] sm:$0xff] (!%p140_p2)   ;;  %v2213_v18 = vld [vmem:[%s2964_s1 + $0xc0] sm:$0xff] (!%p140_p2)  }
   0xb   : > { %1036 = vmatpush1.bf16.msra.mxu1 (!%p140_p2), %v2198_v3  ;;  %1268 = vmatpush1.bf16.msra.mxu0 (!%p140_p2), %v2199_v4  ;;  %v2214_v20 = vld [vmem:[%s2964_s1 + $0x48] sm:$0xff] (!%p140_p2)   ;;  %v2216_v23 = vld [vmem:[%s2964_s1 + $0x50] sm:$0xff] (!%p140_p2)   ;;  %v2218_v25 = vld [vmem:[%s2964_s1 + $0x58] sm:$0xff] (!%p140_p2)  }
   0xc   : > { %1037 = vmatprep.subr.bf16.mxu1 (!%p140_p2), %v2581_v1  ;;  %1269 = vmatprep.subr.bf16.mxu0 (!%p140_p2), %v2581_v1  ;;  %v2215_v22 = vld [vmem:[%s2964_s1 + $0xc8] sm:$0xff] (!%p140_p2)   ;;  %v2217_v24 = vld [vmem:[%s2964_s1 + $0xd0] sm:$0xff] (!%p140_p2)   ;;  %v2219_v26 = vld [vmem:[%s2964_s1 + $0xd8] sm:$0xff] (!%p140_p2)  }
   0xd   : > { %s2968_s7 = smov (!%p165_p3, %s164_s7), 195  ;;  %v2220_v27 = vld [vmem:[%s2964_s1 + $0x60] sm:$0xff]   ;;  %v2222_v29 = vld [vmem:[%s2964_s1 + $0x68] sm:$0xff]   ;;  %v2224_v31 = vld [vmem:[%s2964_s1 + $0x70] sm:$0xff]  }
   0xe   : > { %s2088_s21 = sshll.u32 %s2968_s7, 4  ;;  %v2221_v28 = vld [vmem:[%s2964_s1 + $0xe0] sm:$0xff]   ;;  %v2223_v30 = vld [vmem:[%s2964_s1 + $0xe8] sm:$0xff]   ;;  %v2225_v32 = vld [vmem:[%s2964_s1 + $0xf0] sm:$0xff]  }
   0xf   : > { %1038 = vmatpush1.bf16.msra.mxu1 %v2200_v5  ;;  %1270 = vmatpush1.bf16.msra.mxu0 %v2201_v6  ;;  %s2685_s26 = scalar_lea.vmem %s2963_s0, %s2088_s21  ;;  %v2226_v33 = vld [vmem:[%s2964_s1 + $0x78] sm:$0xff]  }
  0x10   : > { %1039 = vmatprep.subr.bf16.mxu1 %v2581_v1  ;;  %1271 = vmatprep.subr.bf16.mxu0 %v2581_v1  ;;  %v2230_v19 = vld [vmem:[%s2685_s26 + $0x4] ss:$16 sps:$4 sm:$0xff]   ;;  %v2233_v21 = vld [vmem:[%s2685_s26 + $0xc] ss:$16 sps:$4 sm:$0xff]   ;;  %v2228_v35 = vld [vmem:[%s2685_s26] ss:$16 sps:$4 sm:$0xff]  }
  0x11   : > { %1065 = vmatprep.mubr.bf16.mxu1 %v2230_v19  ;;  %1297 = vmatprep.mubr.bf16.mxu0 %v2233_v21  ;;  %v2227_v34 = vld [vmem:[%s2964_s1 + $0xf8] sm:$0xff]   ;;  %v2234_v37 = vld [vmem:[%s2685_s26 + $0x24] ss:$16 sps:$4 sm:$0xff]   ;;  %v2238_v39 = vld [vmem:[%s2685_s26 + $0x20] ss:$16 sps:$4 sm:$0xff]  }
  0x12   : > { %v2231_v36 = vld [vmem:[%s2685_s26 + $0x8] ss:$16 sps:$4 sm:$0xff]   ;;  %v2236_v38 = vld [vmem:[%s2685_s26 + $0x2c] ss:$16 sps:$4 sm:$0xff]   ;;  %v2240_v41 = vld [vmem:[%s2685_s26 + $0x44] ss:$16 sps:$4 sm:$0xff]  }
  0x13   : > { %1040 = vmatpush1.bf16.msra.mxu1 %v2202_v7  ;;  %1272 = vmatpush1.bf16.msra.mxu0 %v2203_v8  ;;  %v2239_v40 = vld [vmem:[%s2685_s26 + $0x28] ss:$16 sps:$4 sm:$0xff]   ;;  %v2242_v42 = vld [vmem:[%s2685_s26 + $0x4c] ss:$16 sps:$4 sm:$0xff]   ;;  %v2244_v43 = vld [vmem:[%s2685_s26 + $0x40] ss:$16 sps:$4 sm:$0xff]  }
  0x14   : > { %1041 = vmatprep.subr.bf16.mxu1 %v2581_v1  ;;  %1273 = vmatprep.subr.bf16.mxu0 %v2581_v1  ;;  %v2245_v44 = vld [vmem:[%s2685_s26 + $0x48] ss:$16 sps:$4 sm:$0xff]   ;;  %v2246_v45 = vld [vmem:[%s2685_s26 + $0x64] ss:$16 sps:$4 sm:$0xff]   ;;  %v2248_v46 = vld [vmem:[%s2685_s26 + $0x6c] ss:$16 sps:$4 sm:$0xff]  }
  0x15   : > { %v2250_v47 = vld [vmem:[%s2685_s26 + $0x60] ss:$16 sps:$4 sm:$0xff]   ;;  %v2251_v48 = vld [vmem:[%s2685_s26 + $0x68] ss:$16 sps:$4 sm:$0xff]   ;;  %v2252_v49 = vld [vmem:[%s2685_s26 + $0x84] ss:$16 sps:$4 sm:$0xff]  }
  0x16   : > { %v2254_v50 = vld [vmem:[%s2685_s26 + $0x8c] ss:$16 sps:$4 sm:$0xff]   ;;  %v2256_v51 = vld [vmem:[%s2685_s26 + $0x80] ss:$16 sps:$4 sm:$0xff]   ;;  %v2257_v52 = vld [vmem:[%s2685_s26 + $0x88] ss:$16 sps:$4 sm:$0xff]  }
  0x17   : > { %1042 = vmatpush1.bf16.msra.mxu1 %v2204_v9  ;;  %1274 = vmatpush1.bf16.msra.mxu0 %v2205_v10  ;;  %v2258_v53 = vld [vmem:[%s2685_s26 + $0xa4] ss:$16 sps:$4 sm:$0xff]   ;;  %v2260_v54 = vld [vmem:[%s2685_s26 + $0xac] ss:$16 sps:$4 sm:$0xff]   ;;  %v2262_v55 = vld [vmem:[%s2685_s26 + $0xa0] ss:$16 sps:$4 sm:$0xff]  }
  0x18   : > { %1043 = vmatprep.subr.bf16.mxu1 %v2581_v1  ;;  %1275 = vmatprep.subr.bf16.mxu0 %v2581_v1  ;;  %v2263_v56 = vld [vmem:[%s2685_s26 + $0xa8] ss:$16 sps:$4 sm:$0xff]   ;;  %v2264_v57 = vld [vmem:[%s2685_s26 + $0xc4] ss:$16 sps:$4 sm:$0xff]   ;;  %v2266_v58 = vld [vmem:[%s2685_s26 + $0xcc] ss:$16 sps:$4 sm:$0xff]  }
  0x19   : > { %v2268_v59 = vld [vmem:[%s2685_s26 + $0xc0] ss:$16 sps:$4 sm:$0xff]   ;;  %v2269_v60 = vld [vmem:[%s2685_s26 + $0xc8] ss:$16 sps:$4 sm:$0xff]   ;;  %v2270_v61 = vld [vmem:[%s2685_s26 + $0xe4] ss:$16 sps:$4 sm:$0xff]  }
  0x1a   : > { %v2272_v62 = vld [vmem:[%s2685_s26 + $0xec] ss:$16 sps:$4 sm:$0xff]   ;;  %v2274_v63 = vld [vmem:[%s2685_s26 + $0xe0] ss:$16 sps:$4 sm:$0xff]   ;;  %v2275_v0 = vld [vmem:[%s2685_s26 + $0xe8] ss:$16 sps:$4 sm:$0xff]  }
  0x1b   : > { %1044 = vmatpush1.bf16.msra.mxu1 %v2206_v11  ;;  %1276 = vmatpush1.bf16.msra.mxu0 %v2207_v12  ;;  %v2278_v2 = vld [vmem:[%s2685_s26 + $0x10c] ss:$16 sps:$4 sm:$0xff]   ;;  %v2280_v3 = vld [vmem:[%s2685_s26 + $0x100] ss:$16 sps:$4 sm:$0xff]   ;;  %v2281_v4 = vld [vmem:[%s2685_s26 + $0x108] ss:$16 sps:$4 sm:$0xff]  }
  0x1c   : > { %1045 = vmatprep.subr.bf16.mxu1 %v2581_v1  ;;  %1277 = vmatprep.subr.bf16.mxu0 %v2581_v1  ;;  %v2282_v5 = vld [vmem:[%s2685_s26 + $0x124] ss:$16 sps:$4 sm:$0xff]   ;;  %v2284_v6 = vld [vmem:[%s2685_s26 + $0x12c] ss:$16 sps:$4 sm:$0xff]   ;;  %v2286_v7 = vld [vmem:[%s2685_s26 + $0x120] ss:$16 sps:$4 sm:$0xff]  }
  0x1d   : > { %v2287_v8 = vld [vmem:[%s2685_s26 + $0x128] ss:$16 sps:$4 sm:$0xff]   ;;  %v2288_v9 = vld [vmem:[%s2685_s26 + $0x144] ss:$16 sps:$4 sm:$0xff]   ;;  %v2290_v10 = vld [vmem:[%s2685_s26 + $0x14c] ss:$16 sps:$4 sm:$0xff]  }
  0x1e   : > { %v2292_v11 = vld [vmem:[%s2685_s26 + $0x140] ss:$16 sps:$4 sm:$0xff]   ;;  %v2293_v12 = vld [vmem:[%s2685_s26 + $0x148] ss:$16 sps:$4 sm:$0xff]   ;;  %v2306_v21 = vld [vmem:[%s2685_s26 + $0x1a4] ss:$16 sps:$4 sm:$0xff]  }
  0x1f   : > { %1046 = vmatpush1.bf16.msra.mxu1 %v2208_v13  ;;  %1278 = vmatpush1.bf16.msra.mxu0 %v2209_v14  ;;  %v2294_v13 = vld [vmem:[%s2685_s26 + $0x164] ss:$16 sps:$4 sm:$0xff]   ;;  %v2296_v14 = vld [vmem:[%s2685_s26 + $0x16c] ss:$16 sps:$4 sm:$0xff]   ;;  %v2304_v19 = vld [vmem:[%s2685_s26 + $0x180] ss:$16 sps:$4 sm:$0xff]  }
  0x20   : > { %1047 = vmatprep.subr.bf16.mxu1 %v2581_v1  ;;  %1279 = vmatprep.subr.bf16.mxu0 %v2581_v1 }
  0x23   : > { %1048 = vmatpush1.bf16.msra.mxu1 %v2210_v15  ;;  %1280 = vmatpush1.bf16.msra.mxu0 %v2211_v16  ;;  %v2298_v15 = vld [vmem:[%s2685_s26 + $0x160] ss:$16 sps:$4 sm:$0xff]   ;;  %v2299_v16 = vld [vmem:[%s2685_s26 + $0x168] ss:$16 sps:$4 sm:$0xff]  }
  0x24   : > { %1049 = vmatprep.subr.bf16.mxu1 %v2581_v1  ;;  %1281 = vmatprep.subr.bf16.mxu0 %v2581_v1 }
  0x27   : > { %1050 = vmatpush1.bf16.msra.mxu1 %v2212_v17  ;;  %1282 = vmatpush1.bf16.msra.mxu0 %v2213_v18  ;;  %v2300_v17 = vld [vmem:[%s2685_s26 + $0x184] ss:$16 sps:$4 sm:$0xff]   ;;  %v2302_v18 = vld [vmem:[%s2685_s26 + $0x18c] ss:$16 sps:$4 sm:$0xff]  }
  0x28   : > { %1051 = vmatprep.subr.bf16.mxu1 %v2581_v1  ;;  %1283 = vmatprep.subr.bf16.mxu0 %v2581_v1 }
  0x2b   : > { %1052 = vmatpush1.bf16.msra.mxu1 %v2214_v20  ;;  %1284 = vmatpush1.bf16.msra.mxu0 %v2215_v22  ;;  %v2305_v20 = vld [vmem:[%s2685_s26 + $0x188] ss:$16 sps:$4 sm:$0xff]   ;;  %v2308_v22 = vld [vmem:[%s2685_s26 + $0x1ac] ss:$16 sps:$4 sm:$0xff]  }
  0x2c   : > { %1053 = vmatprep.subr.bf16.mxu1 %v2581_v1  ;;  %1285 = vmatprep.subr.bf16.mxu0 %v2581_v1 }
  0x2f   : > { %1054 = vmatpush1.bf16.msra.mxu1 %v2216_v23  ;;  %1286 = vmatpush1.bf16.msra.mxu0 %v2217_v24  ;;  %v2310_v23 = vld [vmem:[%s2685_s26 + $0x1a0] ss:$16 sps:$4 sm:$0xff]   ;;  %v2311_v24 = vld [vmem:[%s2685_s26 + $0x1a8] ss:$16 sps:$4 sm:$0xff]  }
  0x30   : > { %1055 = vmatprep.subr.bf16.mxu1 %v2581_v1  ;;  %1287 = vmatprep.subr.bf16.mxu0 %v2581_v1 }
  0x33   : > { %1056 = vmatpush1.bf16.msra.mxu1 %v2218_v25  ;;  %1288 = vmatpush1.bf16.msra.mxu0 %v2219_v26  ;;  %v2312_v25 = vld [vmem:[%s2685_s26 + $0x1c4] ss:$16 sps:$4 sm:$0xff]   ;;  %v2314_v26 = vld [vmem:[%s2685_s26 + $0x1cc] ss:$16 sps:$4 sm:$0xff]  }
  0x34   : > { %1057 = vmatprep.subr.bf16.mxu1 %v2581_v1  ;;  %1289 = vmatprep.subr.bf16.mxu0 %v2581_v1 }
  0x37   : > { %1058 = vmatpush1.bf16.msra.mxu1 %v2220_v27  ;;  %1290 = vmatpush1.bf16.msra.mxu0 %v2221_v28  ;;  %v2316_v27 = vld [vmem:[%s2685_s26 + $0x1c0] ss:$16 sps:$4 sm:$0xff]   ;;  %v2317_v28 = vld [vmem:[%s2685_s26 + $0x1c8] ss:$16 sps:$4 sm:$0xff]  }
  0x38   : > { %1059 = vmatprep.subr.bf16.mxu1 %v2581_v1  ;;  %1291 = vmatprep.subr.bf16.mxu0 %v2581_v1 }
  0x3b   : > { %1060 = vmatpush1.bf16.msra.mxu1 %v2222_v29  ;;  %1292 = vmatpush1.bf16.msra.mxu0 %v2223_v30  ;;  %v2318_v29 = vld [vmem:[%s2685_s26 + $0x1e4] ss:$16 sps:$4 sm:$0xff]   ;;  %v2320_v30 = vld [vmem:[%s2685_s26 + $0x1ec] ss:$16 sps:$4 sm:$0xff]  }
  0x3c   : > { %1061 = vmatprep.subr.bf16.mxu1 %v2581_v1  ;;  %1293 = vmatprep.subr.bf16.mxu0 %v2581_v1 }
  0x3f   : > { %1062 = vmatpush1.bf16.msra.mxu1 %v2224_v31  ;;  %1294 = vmatpush1.bf16.msra.mxu0 %v2225_v32  ;;  %v2322_v31 = vld [vmem:[%s2685_s26 + $0x1e0] ss:$16 sps:$4 sm:$0xff]   ;;  %v2323_v32 = vld [vmem:[%s2685_s26 + $0x1e8] ss:$16 sps:$4 sm:$0xff]  }
  0x40   : > { %1063 = vmatprep.subr.bf16.mxu1 %v2581_v1  ;;  %1295 = vmatprep.subr.bf16.mxu0 %v2581_v1  ;;  %v2276_v1 = vld [vmem:[%s2685_s26 + $0x104] ss:$16 sps:$4 sm:$0xff]  }
  0x43   : > { %1064 = vmatpush1.bf16.msra.mxu1 %v2226_v33  ;;  %1296 = vmatpush1.bf16.msra.mxu0 %v2227_v34  ;;  %v2324_v33 = vld [vmem:[%s2685_s26 + $0x204] ss:$16 sps:$4 sm:$0xff]   ;;  %v2326_v34 = vld [vmem:[%s2685_s26 + $0x20c] ss:$16 sps:$4 sm:$0xff]  }
  0x46   : > { %1066 = vmatmul.mubr.bf16.vlgmr.msra.gmra.mrb[0].mxu1 %v2228_v35  ;;  %1298 = vmatmul.mubr.bf16.vlgmr.msra.gmra.mrb[0].mxu0 %v2231_v36  ;;  %v2328_v35 = vld [vmem:[%s2685_s26 + $0x200] ss:$16 sps:$4 sm:$0xff]   ;;  %v2329_v36 = vld [vmem:[%s2685_s26 + $0x208] ss:$16 sps:$4 sm:$0xff]  }
  0x47   : > { %1073 = vmatprep.mubr.bf16.mxu1 %v2234_v37  ;;  %1305 = vmatprep.mubr.bf16.mxu0 %v2236_v38  ;;  %v2330_v37 = vld [vmem:[%s2685_s26 + $0x224] ss:$16 sps:$4 sm:$0xff]   ;;  %v2332_v38 = vld [vmem:[%s2685_s26 + $0x22c] ss:$16 sps:$4 sm:$0xff]  }
  0x4e   : > { %1074 = vmatmul.mubr.bf16.gmra.mrb[4].mxu1 %v2238_v39  ;;  %1306 = vmatmul.mubr.bf16.gmra.mrb[4].mxu0 %v2239_v40  ;;  %v2334_v39 = vld [vmem:[%s2685_s26 + $0x220] ss:$16 sps:$4 sm:$0xff]   ;;  %v2335_v40 = vld [vmem:[%s2685_s26 + $0x228] ss:$16 sps:$4 sm:$0xff]  }
  0x4f   : > { %1081 = vmatprep.mubr.bf16.mxu1 %v2240_v41  ;;  %1313 = vmatprep.mubr.bf16.mxu0 %v2242_v42  ;;  %v2336_v41 = vld [vmem:[%s2685_s26 + $0x244] ss:$16 sps:$4 sm:$0xff]   ;;  %v2338_v42 = vld [vmem:[%s2685_s26 + $0x24c] ss:$16 sps:$4 sm:$0xff]  }
  0x56   : > { %1082 = vmatmul.mubr.bf16.gmra.mrb[8].mxu1 %v2244_v43  ;;  %1314 = vmatmul.mubr.bf16.gmra.mrb[8].mxu0 %v2245_v44  ;;  %v2340_v43 = vld [vmem:[%s2685_s26 + $0x240] ss:$16 sps:$4 sm:$0xff]   ;;  %v2341_v44 = vld [vmem:[%s2685_s26 + $0x248] ss:$16 sps:$4 sm:$0xff]  }
  0x57   : > { %1089 = vmatprep.mubr.bf16.mxu1 %v2246_v45  ;;  %1321 = vmatprep.mubr.bf16.mxu0 %v2248_v46  ;;  %v2342_v45 = vld [vmem:[%s2685_s26 + $0x264] ss:$16 sps:$4 sm:$0xff]   ;;  %v2344_v46 = vld [vmem:[%s2685_s26 + $0x26c] ss:$16 sps:$4 sm:$0xff]  }
  0x5e   : > { %1090 = vmatmul.mubr.bf16.gmra.mrb[12].mxu1 %v2250_v47  ;;  %1322 = vmatmul.mubr.bf16.gmra.mrb[12].mxu0 %v2251_v48  ;;  %v2346_v47 = vld [vmem:[%s2685_s26 + $0x260] ss:$16 sps:$4 sm:$0xff]   ;;  %v2347_v48 = vld [vmem:[%s2685_s26 + $0x268] ss:$16 sps:$4 sm:$0xff]  }
  0x5f   : > { %1097 = vmatprep.mubr.bf16.mxu1 %v2252_v49  ;;  %1329 = vmatprep.mubr.bf16.mxu0 %v2254_v50  ;;  %v2348_v49 = vld [vmem:[%s2685_s26 + $0x284] ss:$16 sps:$4 sm:$0xff]   ;;  %v2350_v50 = vld [vmem:[%s2685_s26 + $0x28c] ss:$16 sps:$4 sm:$0xff]  }
  0x66   : > { %1098 = vmatmul.mubr.bf16.gmra.mrb[16].mxu1 %v2256_v51  ;;  %1330 = vmatmul.mubr.bf16.gmra.mrb[16].mxu0 %v2257_v52  ;;  %v2352_v51 = vld [vmem:[%s2685_s26 + $0x280] ss:$16 sps:$4 sm:$0xff]   ;;  %v2353_v52 = vld [vmem:[%s2685_s26 + $0x288] ss:$16 sps:$4 sm:$0xff]  }
  0x67   : > { %1105 = vmatprep.mubr.bf16.mxu1 %v2258_v53  ;;  %1337 = vmatprep.mubr.bf16.mxu0 %v2260_v54  ;;  %v2354_v53 = vld [vmem:[%s2685_s26 + $0x2a4] ss:$16 sps:$4 sm:$0xff]   ;;  %v2356_v54 = vld [vmem:[%s2685_s26 + $0x2ac] ss:$16 sps:$4 sm:$0xff]  }
  0x6e   : > { %1106 = vmatmul.mubr.bf16.gmra.mrb[20].mxu1 %v2262_v55  ;;  %1338 = vmatmul.mubr.bf16.gmra.mrb[20].mxu0 %v2263_v56  ;;  %v2358_v55 = vld [vmem:[%s2685_s26 + $0x2a0] ss:$16 sps:$4 sm:$0xff]   ;;  %v2359_v56 = vld [vmem:[%s2685_s26 + $0x2a8] ss:$16 sps:$4 sm:$0xff]  }
  0x6f   : > { %1113 = vmatprep.mubr.bf16.mxu1 %v2264_v57  ;;  %1345 = vmatprep.mubr.bf16.mxu0 %v2266_v58  ;;  %v2360_v57 = vld [vmem:[%s2685_s26 + $0x2c4] ss:$16 sps:$4 sm:$0xff]   ;;  %v2362_v58 = vld [vmem:[%s2685_s26 + $0x2cc] ss:$16 sps:$4 sm:$0xff]  }
  0x76   : > { %1114 = vmatmul.mubr.bf16.gmra.mrb[24].mxu1 %v2268_v59  ;;  %1346 = vmatmul.mubr.bf16.gmra.mrb[24].mxu0 %v2269_v60  ;;  %v2364_v59 = vld [vmem:[%s2685_s26 + $0x2c0] ss:$16 sps:$4 sm:$0xff]   ;;  %v2365_v60 = vld [vmem:[%s2685_s26 + $0x2c8] ss:$16 sps:$4 sm:$0xff]  }
  0x77   : > { %1121 = vmatprep.mubr.bf16.mxu1 %v2270_v61  ;;  %1353 = vmatprep.mubr.bf16.mxu0 %v2272_v62  ;;  %v2366_v61 = vld [vmem:[%s2685_s26 + $0x2e4] ss:$16 sps:$4 sm:$0xff]   ;;  %v2368_v62 = vld [vmem:[%s2685_s26 + $0x2ec] ss:$16 sps:$4 sm:$0xff]  }
  0x7e   : > { %1122 = vmatmul.mubr.bf16.gmra.mrb[28].mxu1 %v2274_v63  ;;  %1354 = vmatmul.mubr.bf16.gmra.mrb[28].mxu0 %v2275_v0  ;;  %v274_v63 = vld [vmem:[%s2685_s26 + $0x300] sm:$0xff]  ;;  %v275_v0 = vld [vmem:[%s2685_s26 + $0x308] sm:$0xff] }
  0x7f   : > { %1129 = vmatprep.mubr.bf16.mxu1 %v2276_v1  ;;  %1361 = vmatprep.mubr.bf16.mxu0 %v2278_v2  ;;  %v2370_v1 = vld [vmem:[%s2685_s26 + $0x2e0] ss:$16 sps:$4 sm:$0xff]   ;;  %v2371_v2 = vld [vmem:[%s2685_s26 + $0x2e8] ss:$16 sps:$4 sm:$0xff]   ;;  %s1903_s26 = sshll.u32 %s2968_s7, 3 }
  0x80   : > { %s2863_s11 = scalar_lea.vmem %s2966_s3, %s1903_s26 }
  0x86   : > { %1130 = vmatmul.mubr.bf16.gmra.mrb[32].mxu1 %v2280_v3  ;;  %1362 = vmatmul.mubr.bf16.gmra.mrb[32].mxu0 %v2281_v4  ;;  %v2002_v3 = vcombine.high %v274_v63, %v274_v63  ;;  %v2004_v4 = vcombine.high %v275_v0, %v275_v0 }
  0x87   : > { %1137 = vmatprep.mubr.bf16.mxu1 %v2282_v5  ;;  %1369 = vmatprep.mubr.bf16.mxu0 %v2284_v6  ;;  %v2001_v5 = vcombine.low %v274_v63, %v274_v63  ;;  %v2003_v6 = vcombine.low %v275_v0, %v275_v0 }
  0x8e   : > { %1138 = vmatmul.mubr.bf16.gmra.mrb[36].mxu1 %v2286_v7  ;;  %1370 = vmatmul.mubr.bf16.gmra.mrb[36].mxu0 %v2287_v8  ;;  %v2849_v7 = vld [vmem:[%s2965_s2] ss:$0 sm:$0xff] }
  0x8f   : > { %1145 = vmatprep.mubr.bf16.mxu1 %v2288_v9  ;;  %1377 = vmatprep.mubr.bf16.mxu0 %v2290_v10 }
  0x96   : > { %1146 = vmatmul.mubr.bf16.gmra.mrb[40].mxu1 %v2292_v11  ;;  %1378 = vmatmul.mubr.bf16.gmra.mrb[40].mxu0 %v2293_v12 }
  0x97   : > { %1153 = vmatprep.mubr.bf16.mxu1 %v2294_v13  ;;  %1385 = vmatprep.mubr.bf16.mxu0 %v2296_v14 }
  0x9e   : > { %1154 = vmatmul.mubr.bf16.gmra.mrb[44].mxu1 %v2298_v15  ;;  %1386 = vmatmul.mubr.bf16.gmra.mrb[44].mxu0 %v2299_v16 }
  0x9f   : > { %1161 = vmatprep.mubr.bf16.mxu1 %v2300_v17  ;;  %1393 = vmatprep.mubr.bf16.mxu0 %v2302_v18 }
  0xa6   : > { %1162 = vmatmul.mubr.bf16.gmra.mrb[48].mxu1 %v2304_v19  ;;  %1394 = vmatmul.mubr.bf16.gmra.mrb[48].mxu0 %v2305_v20 }
  0xa7   : > { %1169 = vmatprep.mubr.bf16.mxu1 %v2306_v21  ;;  %1401 = vmatprep.mubr.bf16.mxu0 %v2308_v22 }
  0xae   : > { %1170 = vmatmul.mubr.bf16.gmra.mrb[52].mxu1 %v2310_v23  ;;  %1402 = vmatmul.mubr.bf16.gmra.mrb[52].mxu0 %v2311_v24 }
  0xaf   : > { %1177 = vmatprep.mubr.bf16.mxu1 %v2312_v25  ;;  %1409 = vmatprep.mubr.bf16.mxu0 %v2314_v26 }
  0xb6   : > { %1178 = vmatmul.mubr.bf16.gmra.mrb[56].mxu1 %v2316_v27  ;;  %1410 = vmatmul.mubr.bf16.gmra.mrb[56].mxu0 %v2317_v28 }
  0xb7   : > { %1185 = vmatprep.mubr.bf16.mxu1 %v2318_v29  ;;  %1417 = vmatprep.mubr.bf16.mxu0 %v2320_v30 }
  0xbe   : > { %1186 = vmatmul.mubr.bf16.gmra.mrb[60].mxu1 %v2322_v31  ;;  %1418 = vmatmul.mubr.bf16.gmra.mrb[60].mxu0 %v2323_v32 }
  0xbf   : > { %1193 = vmatprep.mubr.bf16.mxu1 %v2324_v33  ;;  %1425 = vmatprep.mubr.bf16.mxu0 %v2326_v34 }
  0xc6   : > { %1194 = vmatmul.mubr.bf16.gmra.mrb[64].mxu1 %v2328_v35  ;;  %1426 = vmatmul.mubr.bf16.gmra.mrb[64].mxu0 %v2329_v36 }
  0xc7   : > { %1201 = vmatprep.mubr.bf16.mxu1 %v2330_v37  ;;  %1433 = vmatprep.mubr.bf16.mxu0 %v2332_v38 }
  0xce   : > { %1202 = vmatmul.mubr.bf16.gmra.mrb[68].mxu1 %v2334_v39  ;;  %1434 = vmatmul.mubr.bf16.gmra.mrb[68].mxu0 %v2335_v40 }
  0xcf   : > { %1209 = vmatprep.mubr.bf16.mxu1 %v2336_v41  ;;  %1441 = vmatprep.mubr.bf16.mxu0 %v2338_v42 }
  0xd6   : > { %1210 = vmatmul.mubr.bf16.gmra.mrb[72].mxu1 %v2340_v43  ;;  %1442 = vmatmul.mubr.bf16.gmra.mrb[72].mxu0 %v2341_v44 }
  0xd7   : > { %1217 = vmatprep.mubr.bf16.mxu1 %v2342_v45  ;;  %1449 = vmatprep.mubr.bf16.mxu0 %v2344_v46 }
  0xde   : > { %1218 = vmatmul.mubr.bf16.gmra.mrb[76].mxu1 %v2346_v47  ;;  %1450 = vmatmul.mubr.bf16.gmra.mrb[76].mxu0 %v2347_v48 }
  0xdf   : > { %1225 = vmatprep.mubr.bf16.mxu1 %v2348_v49  ;;  %1457 = vmatprep.mubr.bf16.mxu0 %v2350_v50 }
  0xe6   : > { %1226 = vmatmul.mubr.bf16.gmra.mrb[80].mxu1 %v2352_v51  ;;  %1458 = vmatmul.mubr.bf16.gmra.mrb[80].mxu0 %v2353_v52 }
  0xe7   : > { %1233 = vmatprep.mubr.bf16.mxu1 %v2354_v53  ;;  %1465 = vmatprep.mubr.bf16.mxu0 %v2356_v54 }
  0xee   : > { %1234 = vmatmul.mubr.bf16.gmra.mrb[84].mxu1 %v2358_v55  ;;  %1466 = vmatmul.mubr.bf16.gmra.mrb[84].mxu0 %v2359_v56 }
  0xef   : > { %1241 = vmatprep.mubr.bf16.mxu1 %v2360_v57  ;;  %1473 = vmatprep.mubr.bf16.mxu0 %v2362_v58 }
  0xf6   : > { %1242 = vmatmul.mubr.bf16.gmra.mrb[88].mxu1 %v2364_v59  ;;  %1474 = vmatmul.mubr.bf16.gmra.mrb[88].mxu0 %v2365_v60 }
  0xf7   : > { %1249 = vmatprep.mubr.bf16.mxu1 %v2366_v61  ;;  %1481 = vmatprep.mubr.bf16.mxu0 %v2368_v62 }
  0xfe   : > { %1250 = vmatmul.mubr.bf16.gmra.mrb[92].mxu1 %v2370_v1  ;;  %1482 = vmatmul.mubr.bf16.gmra.mrb[92].mxu0 %v2371_v2 }
  0xff   : > { %1257 = vmatprep.mubr.bf16.mxu1 %v2002_v3  ;;  %1489 = vmatprep.mubr.bf16.mxu0 %v2004_v4 }
 0x106   : > { %1258 = vmatmul.mubr.bf16.gmra.mrb[96].mxu1 %v2001_v5  ;;  %1490 = vmatmul.mubr.bf16.gmra.mrb[96].mxu0 %v2003_v6 }
 0x119   : > { %v1067_v8 = vpop.f32.mrb[0].mxu1  ;;  %v1299_v10 = vpop.f32.mrb[0].mxu0 }
 0x11a   : > { %v1068_v9 = vadd.f32 %v2849_v7, %v1067_v8  ;;  %v1069_v11 = vpop.f32.mrb[1].mxu1  ;;  %v1301_v12 = vpop.f32.mrb[1].mxu0 }
 0x11b   : > { %v1070_v13 = vpop.f32.mrb[2].mxu1  ;;  %v1302_v16 = vpop.f32.mrb[2].mxu0 }
 0x11c   : > { %v1300_v14 = vadd.f32 %v1299_v10, %v1068_v9  ;;  %v1071_v15 = vadd.f32 %v2849_v7, %v1070_v13  ;;  %v1072_v17 = vpop.f32.mrb[3].mxu1  ;;  %v1304_v18 = vpop.f32.mrb[3].mxu0 }
 0x11e   : > { %v2037_v19 = vmul.f32 -1.442695, %v1300_v14  ;;  %v1303_v20 = vadd.f32 %v1302_v16, %v1071_v15 }
 0x120   : > { %2376 = vpow2.f32 %v2037_v19  ;;  %v2038_v21 = vmul.f32 -1.442695, %v1303_v20 }
 0x121   : > { %v1075_v22 = vpop.f32.mrb[4].mxu1  ;;  %v1307_v24 = vpop.f32.mrb[4].mxu0 }
 0x122   : > { %2378 = vpow2.f32 %v2038_v21  ;;  %v1076_v23 = vadd.f32 %v2849_v7, %v1075_v22  ;;  %v1077_v25 = vpop.f32.mrb[5].mxu1  ;;  %v1309_v26 = vpop.f32.mrb[5].mxu0 }
 0x123   : > { %v1078_v27 = vpop.f32.mrb[6].mxu1  ;;  %v1310_v30 = vpop.f32.mrb[6].mxu0 }
 0x124   : > { %v1308_v28 = vadd.f32 %v1307_v24, %v1076_v23  ;;  %v1079_v29 = vadd.f32 %v2849_v7, %v1078_v27  ;;  %v1080_v31 = vpop.f32.mrb[7].mxu1  ;;  %v1312_v32 = vpop.f32.mrb[7].mxu0 }
 0x126   : > { %v2039_v33 = vmul.f32 -1.442695, %v1308_v28  ;;  %v1311_v34 = vadd.f32 %v1310_v30, %v1079_v29 }
 0x128   : > { %2380 = vpow2.f32 %v2039_v33  ;;  %v2040_v35 = vmul.f32 -1.442695, %v1311_v34 }
 0x129   : > { %v1083_v36 = vpop.f32.mrb[8].mxu1  ;;  %v1315_v39 = vpop.f32.mrb[8].mxu0 }
 0x12a   : > { %v2377_v37 = vpop.eup %2376  ;;  %2382 = vpow2.f32 %v2040_v35  ;;  %v1084_v38 = vadd.f32 %v2849_v7, %v1083_v36  ;;  %v1085_v40 = vpop.f32.mrb[9].mxu1 }
 0x12b   : > { %v1644_v41 = vadd.f32 1.0, %v2377_v37  ;;  %v1317_v42 = vpop.f32.mrb[9].mxu0  ;;  %v1086_v43 = vpop.f32.mrb[10].mxu1 }
 0x12c   : > { %v2379_v44 = vpop.eup %2378  ;;  %v1316_v45 = vadd.f32 %v1315_v39, %v1084_v38  ;;  %v1087_v46 = vadd.f32 %v2849_v7, %v1086_v43  ;;  %v1318_v47 = vpop.f32.mrb[10].mxu0 }
 0x12d   : > { %v1088_v48 = vpop.f32.mrb[11].mxu1  ;;  %2384 = vrcp.f32 %v1644_v41  ;;  %v1645_v49 = vadd.f32 1.0, %v2379_v44  ;;  %v1320_v50 = vpop.f32.mrb[11].mxu0 }
 0x12e   : > { %v2041_v51 = vmul.f32 -1.442695, %v1316_v45  ;;  %v1319_v52 = vadd.f32 %v1318_v47, %v1087_v46 }
 0x12f   : > { %2386 = vrcp.f32 %v1645_v49 }
 0x130   : > { %2388 = vpow2.f32 %v2041_v51  ;;  %v2042_v53 = vmul.f32 -1.442695, %v1319_v52 }
 0x131   : > { %v1091_v54 = vpop.f32.mrb[12].mxu1  ;;  %v1323_v57 = vpop.f32.mrb[12].mxu0 }
 0x132   : > { %v2381_v55 = vpop.eup %2380  ;;  %2390 = vpow2.f32 %v2042_v53  ;;  %v1092_v56 = vadd.f32 %v2849_v7, %v1091_v54  ;;  %v1093_v58 = vpop.f32.mrb[13].mxu1 }
 0x133   : > { %v1646_v59 = vadd.f32 1.0, %v2381_v55  ;;  %v1325_v60 = vpop.f32.mrb[13].mxu0  ;;  %v1094_v61 = vpop.f32.mrb[14].mxu1 }
 0x134   : > { %v2383_v62 = vpop.eup %2382  ;;  %v1324_v63 = vadd.f32 %v1323_v57, %v1092_v56  ;;  %v1095_v0 = vadd.f32 %v2849_v7, %v1094_v61  ;;  %v1326_v1 = vpop.f32.mrb[14].mxu0 }
 0x135   : > { %v1096_v2 = vpop.f32.mrb[15].mxu1  ;;  %2392 = vrcp.f32 %v1646_v59  ;;  %v1647_v3 = vadd.f32 1.0, %v2383_v62  ;;  %v1328_v4 = vpop.f32.mrb[15].mxu0 }
 0x136   : > { %v2043_v5 = vmul.f32 -1.442695, %v1324_v63  ;;  %v1327_v6 = vadd.f32 %v1326_v1, %v1095_v0 }
 0x137   : > { %v2385_v8 = vpop.eup %2384  ;;  %2394 = vrcp.f32 %v1647_v3 }
 0x138   : > { %1791 = vst [vmem:[%s2863_s11] sm:$0xff] %v2385_v8  ;;  %2396 = vpow2.f32 %v2043_v5  ;;  %v2044_v9 = vmul.f32 -1.442695, %v1327_v6 }
 0x139   : > { %v2387_v10 = vpop.eup %2386  ;;  %v1099_v11 = vpop.f32.mrb[16].mxu1 }
 0x13a   : > { %v2389_v12 = vpop.eup %2388  ;;  %1792 = vst [vmem:[%s2863_s11 + $0x8] sm:$0xff] %v2387_v10  ;;  %2398 = vpow2.f32 %v2044_v9  ;;  %v1100_v13 = vadd.f32 %v2849_v7, %v1099_v11  ;;  %v1331_v14 = vpop.f32.mrb[16].mxu0 }
 0x13b   : > { %v1101_v15 = vpop.f32.mrb[17].mxu1  ;;  %v1648_v16 = vadd.f32 1.0, %v2389_v12  ;;  %v1333_v17 = vpop.f32.mrb[17].mxu0 }
 0x13c   : > { %v1102_v18 = vpop.f32.mrb[18].mxu1  ;;  %v2391_v19 = vpop.eup %2390  ;;  %v1332_v20 = vadd.f32 %v1331_v14, %v1100_v13 }
 0x13d   : > { %v1103_v21 = vadd.f32 %v2849_v7, %v1102_v18  ;;  %v1334_v22 = vpop.f32.mrb[18].mxu0  ;;  %v1104_v23 = vpop.f32.mrb[19].mxu1  ;;  %2400 = vrcp.f32 %v1648_v16  ;;  %v1649_v24 = vadd.f32 1.0, %v2391_v19 }
 0x13e   : > { %v1336_v25 = vpop.f32.mrb[19].mxu0  ;;  %v2045_v26 = vmul.f32 -1.442695, %v1332_v20 }
 0x13f   : > { %v1335_v27 = vadd.f32 %v1334_v22, %v1103_v21  ;;  %v2393_v28 = vpop.eup %2392  ;;  %2402 = vrcp.f32 %v1649_v24 }
 0x140   : > { %1793 = vst [vmem:[%s2863_s11 + $0x10] sm:$0xff] %v2393_v28  ;;  %2404 = vpow2.f32 %v2045_v26 }
 0x141   : > { %v2046_v29 = vmul.f32 -1.442695, %v1335_v27  ;;  %v2395_v30 = vpop.eup %2394  ;;  %v1107_v31 = vpop.f32.mrb[20].mxu1 }
 0x142   : > { %v2397_v32 = vpop.eup %2396  ;;  %1794 = vst [vmem:[%s2863_s11 + $0x18] sm:$0xff] %v2395_v30  ;;  %v1108_v33 = vadd.f32 %v2849_v7, %v1107_v31  ;;  %v1339_v34 = vpop.f32.mrb[20].mxu0 }
 0x143   : > { %2406 = vpow2.f32 %v2046_v29  ;;  %v1109_v35 = vpop.f32.mrb[21].mxu1  ;;  %v1650_v36 = vadd.f32 1.0, %v2397_v32  ;;  %v1341_v37 = vpop.f32.mrb[21].mxu0 }
 0x144   : > { %v1110_v38 = vpop.f32.mrb[22].mxu1  ;;  %v2399_v39 = vpop.eup %2398  ;;  %v1340_v40 = vadd.f32 %v1339_v34, %v1108_v33 }
 0x145   : > { %v1111_v41 = vadd.f32 %v2849_v7, %v1110_v38  ;;  %v1342_v42 = vpop.f32.mrb[22].mxu0  ;;  %v1112_v43 = vpop.f32.mrb[23].mxu1  ;;  %2408 = vrcp.f32 %v1650_v36  ;;  %v1651_v44 = vadd.f32 1.0, %v2399_v39 }
 0x146   : > { %v1344_v45 = vpop.f32.mrb[23].mxu0  ;;  %v2047_v46 = vmul.f32 -1.442695, %v1340_v40 }
 0x147   : > { %v1343_v47 = vadd.f32 %v1342_v42, %v1111_v41  ;;  %v2401_v48 = vpop.eup %2400  ;;  %2410 = vrcp.f32 %v1651_v44 }
 0x148   : > { %1795 = vst [vmem:[%s2863_s11 + $0x20] sm:$0xff] %v2401_v48  ;;  %2412 = vpow2.f32 %v2047_v46 }
 0x149   : > { %v2048_v49 = vmul.f32 -1.442695, %v1343_v47  ;;  %v2403_v50 = vpop.eup %2402  ;;  %v1115_v51 = vpop.f32.mrb[24].mxu1 }
 0x14a   : > { %v2405_v52 = vpop.eup %2404  ;;  %1796 = vst [vmem:[%s2863_s11 + $0x28] sm:$0xff] %v2403_v50  ;;  %v1116_v53 = vadd.f32 %v2849_v7, %v1115_v51  ;;  %v1347_v54 = vpop.f32.mrb[24].mxu0 }
 0x14b   : > { %2414 = vpow2.f32 %v2048_v49  ;;  %v1117_v55 = vpop.f32.mrb[25].mxu1  ;;  %v1652_v56 = vadd.f32 1.0, %v2405_v52  ;;  %v1349_v57 = vpop.f32.mrb[25].mxu0 }
 0x14c   : > { %v1118_v58 = vpop.f32.mrb[26].mxu1  ;;  %v1348_v60 = vadd.f32 %v1347_v54, %v1116_v53  ;;  %v1350_v62 = vpop.f32.mrb[26].mxu0 }
 0x14d   : > { %v2407_v59 = vpop.eup %2406  ;;  %v1119_v61 = vadd.f32 %v2849_v7, %v1118_v58  ;;  %v1120_v63 = vpop.f32.mrb[27].mxu1  ;;  %2416 = vrcp.f32 %v1652_v56 }
 0x14e   : > { %v1653_v0 = vadd.f32 1.0, %v2407_v59  ;;  %v1352_v1 = vpop.f32.mrb[27].mxu0  ;;  %v2049_v2 = vmul.f32 -1.442695, %v1348_v60 }
 0x14f   : > { %v1351_v3 = vadd.f32 %v1350_v62, %v1119_v61  ;;  %v2409_v4 = vpop.eup %2408 }
 0x150   : > { %2418 = vrcp.f32 %v1653_v0  ;;  %1797 = vst [vmem:[%s2863_s11 + $0x30] sm:$0xff] %v2409_v4 }
 0x151   : > { %2420 = vpow2.f32 %v2049_v2  ;;  %v2050_v5 = vmul.f32 -1.442695, %v1351_v3  ;;  %v2411_v6 = vpop.eup %2410  ;;  %v1123_v8 = vpop.f32.mrb[28].mxu1 }
 0x152   : > { %v2413_v9 = vpop.eup %2412  ;;  %1798 = vst [vmem:[%s2863_s11 + $0x38] sm:$0xff] %v2411_v6  ;;  %v1124_v10 = vadd.f32 %v2849_v7, %v1123_v8  ;;  %v1355_v11 = vpop.f32.mrb[28].mxu0 }
 0x153   : > { %2422 = vpow2.f32 %v2050_v5  ;;  %v1125_v12 = vpop.f32.mrb[29].mxu1  ;;  %v1654_v13 = vadd.f32 1.0, %v2413_v9  ;;  %v1357_v14 = vpop.f32.mrb[29].mxu0 }
 0x154   : > { %v1126_v15 = vpop.f32.mrb[30].mxu1  ;;  %v1356_v17 = vadd.f32 %v1355_v11, %v1124_v10  ;;  %v1358_v19 = vpop.f32.mrb[30].mxu0 }
 0x155   : > { %v2415_v16 = vpop.eup %2414  ;;  %v1127_v18 = vadd.f32 %v2849_v7, %v1126_v15  ;;  %v1128_v20 = vpop.f32.mrb[31].mxu1  ;;  %2424 = vrcp.f32 %v1654_v13 }
 0x156   : > { %v1655_v21 = vadd.f32 1.0, %v2415_v16  ;;  %v1360_v22 = vpop.f32.mrb[31].mxu0  ;;  %v2051_v23 = vmul.f32 -1.442695, %v1356_v17 }
 0x157   : > { %v1359_v24 = vadd.f32 %v1358_v19, %v1127_v18  ;;  %v2417_v25 = vpop.eup %2416 }
 0x158   : > { %2426 = vrcp.f32 %v1655_v21  ;;  %1799 = vst [vmem:[%s2863_s11 + $0x40] sm:$0xff] %v2417_v25 }
 0x159   : > { %2428 = vpow2.f32 %v2051_v23  ;;  %v2052_v26 = vmul.f32 -1.442695, %v1359_v24  ;;  %v1131_v28 = vpop.f32.mrb[32].mxu1  ;;  %v1363_v31 = vpop.f32.mrb[32].mxu0 }
 0x15a   : > { %v2419_v27 = vpop.eup %2418  ;;  %v1132_v30 = vadd.f32 %v2849_v7, %v1131_v28  ;;  %v1133_v32 = vpop.f32.mrb[33].mxu1 }
 0x15b   : > { %v2421_v29 = vpop.eup %2420  ;;  %1800 = vst [vmem:[%s2863_s11 + $0x48] sm:$0xff] %v2419_v27  ;;  %2430 = vpow2.f32 %v2052_v26  ;;  %v1365_v34 = vpop.f32.mrb[33].mxu0 }
 0x15c   : > { %v1656_v33 = vadd.f32 1.0, %v2421_v29  ;;  %v1134_v35 = vpop.f32.mrb[34].mxu1  ;;  %v1364_v37 = vadd.f32 %v1363_v31, %v1132_v30  ;;  %v1366_v39 = vpop.f32.mrb[34].mxu0 }
 0x15d   : > { %v2423_v36 = vpop.eup %2422  ;;  %v1135_v38 = vadd.f32 %v2849_v7, %v1134_v35  ;;  %v1136_v40 = vpop.f32.mrb[35].mxu1 }
 0x15e   : > { %2432 = vrcp.f32 %v1656_v33  ;;  %v1657_v41 = vadd.f32 1.0, %v2423_v36  ;;  %v1368_v42 = vpop.f32.mrb[35].mxu0  ;;  %v2053_v43 = vmul.f32 -1.442695, %v1364_v37 }
 0x15f   : > { %v1367_v44 = vadd.f32 %v1366_v39, %v1135_v38  ;;  %v2425_v45 = vpop.eup %2424 }
 0x160   : > { %2434 = vrcp.f32 %v1657_v41  ;;  %1801 = vst [vmem:[%s2863_s11 + $0x50] sm:$0xff] %v2425_v45 }
 0x161   : > { %2436 = vpow2.f32 %v2053_v43  ;;  %v2054_v46 = vmul.f32 -1.442695, %v1367_v44  ;;  %v1139_v48 = vpop.f32.mrb[36].mxu1  ;;  %v1371_v51 = vpop.f32.mrb[36].mxu0 }
 0x162   : > { %v2427_v47 = vpop.eup %2426  ;;  %v1140_v50 = vadd.f32 %v2849_v7, %v1139_v48  ;;  %v1141_v52 = vpop.f32.mrb[37].mxu1 }
 0x163   : > { %v2429_v49 = vpop.eup %2428  ;;  %1802 = vst [vmem:[%s2863_s11 + $0x58] sm:$0xff] %v2427_v47  ;;  %2438 = vpow2.f32 %v2054_v46  ;;  %v1373_v54 = vpop.f32.mrb[37].mxu0 }
 0x164   : > { %v1658_v53 = vadd.f32 1.0, %v2429_v49  ;;  %v1142_v55 = vpop.f32.mrb[38].mxu1  ;;  %v1372_v57 = vadd.f32 %v1371_v51, %v1140_v50  ;;  %v1374_v59 = vpop.f32.mrb[38].mxu0 }
 0x165   : > { %v2431_v56 = vpop.eup %2430  ;;  %v1143_v58 = vadd.f32 %v2849_v7, %v1142_v55  ;;  %v1144_v60 = vpop.f32.mrb[39].mxu1 }
 0x166   : > { %2440 = vrcp.f32 %v1658_v53  ;;  %v1659_v61 = vadd.f32 1.0, %v2431_v56  ;;  %v1376_v62 = vpop.f32.mrb[39].mxu0  ;;  %v2055_v63 = vmul.f32 -1.442695, %v1372_v57 }
 0x167   : > { %v1375_v0 = vadd.f32 %v1374_v59, %v1143_v58 }
 0x168   : > { %v2433_v1 = vpop.eup %2432  ;;  %2442 = vrcp.f32 %v1659_v61 }
 0x169   : > { %1803 = vst [vmem:[%s2863_s11 + $0x60] sm:$0xff] %v2433_v1  ;;  %2444 = vpow2.f32 %v2055_v63  ;;  %v2056_v2 = vmul.f32 -1.442695, %v1375_v0  ;;  %v1147_v4 = vpop.f32.mrb[40].mxu1  ;;  %v1379_v8 = vpop.f32.mrb[40].mxu0 }
 0x16a   : > { %v2435_v3 = vpop.eup %2434  ;;  %v1148_v6 = vadd.f32 %v2849_v7, %v1147_v4  ;;  %v1149_v9 = vpop.f32.mrb[41].mxu1 }
 0x16b   : > { %v2437_v5 = vpop.eup %2436  ;;  %1804 = vst [vmem:[%s2863_s11 + $0x68] sm:$0xff] %v2435_v3  ;;  %2446 = vpow2.f32 %v2056_v2  ;;  %v1381_v11 = vpop.f32.mrb[41].mxu0 }
 0x16c   : > { %v1660_v10 = vadd.f32 1.0, %v2437_v5  ;;  %v1150_v12 = vpop.f32.mrb[42].mxu1  ;;  %v1380_v14 = vadd.f32 %v1379_v8, %v1148_v6  ;;  %v1382_v16 = vpop.f32.mrb[42].mxu0 }
 0x16d   : > { %v2439_v13 = vpop.eup %2438  ;;  %v1151_v15 = vadd.f32 %v2849_v7, %v1150_v12  ;;  %v1152_v17 = vpop.f32.mrb[43].mxu1 }
 0x16e   : > { %2448 = vrcp.f32 %v1660_v10  ;;  %v1661_v18 = vadd.f32 1.0, %v2439_v13  ;;  %v1384_v19 = vpop.f32.mrb[43].mxu0  ;;  %v2057_v20 = vmul.f32 -1.442695, %v1380_v14 }
 0x16f   : > { %v1383_v21 = vadd.f32 %v1382_v16, %v1151_v15 }
 0x170   : > { %v2441_v22 = vpop.eup %2440  ;;  %2450 = vrcp.f32 %v1661_v18 }
 0x171   : > { %1805 = vst [vmem:[%s2863_s11 + $0x70] sm:$0xff] %v2441_v22  ;;  %2452 = vpow2.f32 %v2057_v20  ;;  %v2058_v23 = vmul.f32 -1.442695, %v1383_v21  ;;  %v1155_v25 = vpop.f32.mrb[44].mxu1  ;;  %v1387_v28 = vpop.f32.mrb[44].mxu0 }
 0x172   : > { %v2443_v24 = vpop.eup %2442  ;;  %v1156_v27 = vadd.f32 %v2849_v7, %v1155_v25  ;;  %v1157_v29 = vpop.f32.mrb[45].mxu1 }
 0x173   : > { %v2445_v26 = vpop.eup %2444  ;;  %1806 = vst [vmem:[%s2863_s11 + $0x78] sm:$0xff] %v2443_v24  ;;  %2454 = vpow2.f32 %v2058_v23  ;;  %v1389_v31 = vpop.f32.mrb[45].mxu0 }
 0x174   : > { %v1662_v30 = vadd.f32 1.0, %v2445_v26  ;;  %v1158_v32 = vpop.f32.mrb[46].mxu1  ;;  %v1388_v34 = vadd.f32 %v1387_v28, %v1156_v27  ;;  %v1390_v36 = vpop.f32.mrb[46].mxu0 }
 0x175   : > { %v2447_v33 = vpop.eup %2446  ;;  %v1159_v35 = vadd.f32 %v2849_v7, %v1158_v32  ;;  %v1160_v37 = vpop.f32.mrb[47].mxu1 }
 0x176   : > { %2456 = vrcp.f32 %v1662_v30  ;;  %v1663_v38 = vadd.f32 1.0, %v2447_v33  ;;  %v1392_v39 = vpop.f32.mrb[47].mxu0  ;;  %v2059_v40 = vmul.f32 -1.442695, %v1388_v34 }
 0x177   : > { %v1391_v41 = vadd.f32 %v1390_v36, %v1159_v35 }
 0x178   : > { %v2449_v42 = vpop.eup %2448  ;;  %2458 = vrcp.f32 %v1663_v38 }
 0x179   : > { %1807 = vst [vmem:[%s2863_s11 + $0x80] sm:$0xff] %v2449_v42  ;;  %2460 = vpow2.f32 %v2059_v40  ;;  %v2060_v43 = vmul.f32 -1.442695, %v1391_v41  ;;  %v1163_v45 = vpop.f32.mrb[48].mxu1  ;;  %v1395_v48 = vpop.f32.mrb[48].mxu0 }
 0x17a   : > { %v2451_v44 = vpop.eup %2450  ;;  %v1164_v47 = vadd.f32 %v2849_v7, %v1163_v45  ;;  %v1165_v49 = vpop.f32.mrb[49].mxu1 }
 0x17b   : > { %v2453_v46 = vpop.eup %2452  ;;  %1808 = vst [vmem:[%s2863_s11 + $0x88] sm:$0xff] %v2451_v44  ;;  %2462 = vpow2.f32 %v2060_v43  ;;  %v1397_v51 = vpop.f32.mrb[49].mxu0 }
 0x17c   : > { %v1664_v50 = vadd.f32 1.0, %v2453_v46  ;;  %v1166_v52 = vpop.f32.mrb[50].mxu1  ;;  %v1396_v54 = vadd.f32 %v1395_v48, %v1164_v47  ;;  %v1398_v56 = vpop.f32.mrb[50].mxu0 }
 0x17d   : > { %v2455_v53 = vpop.eup %2454  ;;  %v1167_v55 = vadd.f32 %v2849_v7, %v1166_v52  ;;  %v1168_v57 = vpop.f32.mrb[51].mxu1 }
 0x17e   : > { %2464 = vrcp.f32 %v1664_v50  ;;  %v1665_v58 = vadd.f32 1.0, %v2455_v53  ;;  %v1400_v59 = vpop.f32.mrb[51].mxu0  ;;  %v2061_v60 = vmul.f32 -1.442695, %v1396_v54 }
 0x17f   : > { %v1399_v61 = vadd.f32 %v1398_v56, %v1167_v55 }
 0x180   : > { %v2457_v62 = vpop.eup %2456  ;;  %2466 = vrcp.f32 %v1665_v58 }
 0x181   : > { %1809 = vst [vmem:[%s2863_s11 + $0x90] sm:$0xff] %v2457_v62  ;;  %2468 = vpow2.f32 %v2061_v60  ;;  %v2062_v63 = vmul.f32 -1.442695, %v1399_v61  ;;  %v1171_v1 = vpop.f32.mrb[52].mxu1  ;;  %v1403_v4 = vpop.f32.mrb[52].mxu0 }
 0x182   : > { %v2459_v0 = vpop.eup %2458  ;;  %v1172_v3 = vadd.f32 %v2849_v7, %v1171_v1  ;;  %v1173_v5 = vpop.f32.mrb[53].mxu1 }
 0x183   : > { %v2461_v2 = vpop.eup %2460  ;;  %1810 = vst [vmem:[%s2863_s11 + $0x98] sm:$0xff] %v2459_v0  ;;  %2470 = vpow2.f32 %v2062_v63  ;;  %v1405_v8 = vpop.f32.mrb[53].mxu0 }
 0x184   : > { %v1666_v6 = vadd.f32 1.0, %v2461_v2  ;;  %v1174_v9 = vpop.f32.mrb[54].mxu1  ;;  %v1404_v11 = vadd.f32 %v1403_v4, %v1172_v3  ;;  %v1406_v13 = vpop.f32.mrb[54].mxu0 }
 0x185   : > { %v2463_v10 = vpop.eup %2462  ;;  %v1175_v12 = vadd.f32 %v2849_v7, %v1174_v9  ;;  %v1176_v14 = vpop.f32.mrb[55].mxu1 }
 0x186   : > { %2472 = vrcp.f32 %v1666_v6  ;;  %v1667_v15 = vadd.f32 1.0, %v2463_v10  ;;  %v1408_v16 = vpop.f32.mrb[55].mxu0  ;;  %v2063_v17 = vmul.f32 -1.442695, %v1404_v11 }
 0x187   : > { %v1407_v18 = vadd.f32 %v1406_v13, %v1175_v12 }
 0x188   : > { %v2465_v19 = vpop.eup %2464  ;;  %2474 = vrcp.f32 %v1667_v15 }
 0x189   : > { %1811 = vst [vmem:[%s2863_s11 + $0xa0] sm:$0xff] %v2465_v19  ;;  %2476 = vpow2.f32 %v2063_v17  ;;  %v2064_v20 = vmul.f32 -1.442695, %v1407_v18  ;;  %v1179_v22 = vpop.f32.mrb[56].mxu1  ;;  %v1411_v25 = vpop.f32.mrb[56].mxu0 }
 0x18a   : > { %v2467_v21 = vpop.eup %2466  ;;  %v1180_v24 = vadd.f32 %v2849_v7, %v1179_v22  ;;  %v1181_v26 = vpop.f32.mrb[57].mxu1 }
 0x18b   : > { %v2469_v23 = vpop.eup %2468  ;;  %1812 = vst [vmem:[%s2863_s11 + $0xa8] sm:$0xff] %v2467_v21  ;;  %2478 = vpow2.f32 %v2064_v20  ;;  %v1413_v28 = vpop.f32.mrb[57].mxu0 }
 0x18c   : > { %v1668_v27 = vadd.f32 1.0, %v2469_v23  ;;  %v1182_v29 = vpop.f32.mrb[58].mxu1  ;;  %v1412_v31 = vadd.f32 %v1411_v25, %v1180_v24  ;;  %v1414_v33 = vpop.f32.mrb[58].mxu0 }
 0x18d   : > { %v2471_v30 = vpop.eup %2470  ;;  %v1183_v32 = vadd.f32 %v2849_v7, %v1182_v29  ;;  %v1184_v34 = vpop.f32.mrb[59].mxu1 }
 0x18e   : > { %2480 = vrcp.f32 %v1668_v27  ;;  %v1669_v35 = vadd.f32 1.0, %v2471_v30  ;;  %v1416_v36 = vpop.f32.mrb[59].mxu0  ;;  %v2065_v37 = vmul.f32 -1.442695, %v1412_v31 }
 0x18f   : > { %v1415_v38 = vadd.f32 %v1414_v33, %v1183_v32 }
 0x190   : > { %v2473_v39 = vpop.eup %2472  ;;  %2482 = vrcp.f32 %v1669_v35 }
 0x191   : > { %1813 = vst [vmem:[%s2863_s11 + $0xb0] sm:$0xff] %v2473_v39  ;;  %2484 = vpow2.f32 %v2065_v37  ;;  %v2066_v40 = vmul.f32 -1.442695, %v1415_v38  ;;  %v1187_v42 = vpop.f32.mrb[60].mxu1  ;;  %v1419_v45 = vpop.f32.mrb[60].mxu0 }
 0x192   : > { %v2475_v41 = vpop.eup %2474  ;;  %v1188_v44 = vadd.f32 %v2849_v7, %v1187_v42  ;;  %v1189_v46 = vpop.f32.mrb[61].mxu1 }
 0x193   : > { %v2477_v43 = vpop.eup %2476  ;;  %1814 = vst [vmem:[%s2863_s11 + $0xb8] sm:$0xff] %v2475_v41  ;;  %2486 = vpow2.f32 %v2066_v40  ;;  %v1421_v48 = vpop.f32.mrb[61].mxu0 }
 0x194   : > { %v1670_v47 = vadd.f32 1.0, %v2477_v43  ;;  %v1190_v49 = vpop.f32.mrb[62].mxu1  ;;  %v1420_v51 = vadd.f32 %v1419_v45, %v1188_v44  ;;  %v1422_v53 = vpop.f32.mrb[62].mxu0 }
 0x195   : > { %v2479_v50 = vpop.eup %2478  ;;  %v1191_v52 = vadd.f32 %v2849_v7, %v1190_v49  ;;  %v1192_v54 = vpop.f32.mrb[63].mxu1 }
 0x196   : > { %2488 = vrcp.f32 %v1670_v47  ;;  %v1671_v55 = vadd.f32 1.0, %v2479_v50  ;;  %v1424_v56 = vpop.f32.mrb[63].mxu0  ;;  %v2067_v57 = vmul.f32 -1.442695, %v1420_v51 }
 0x197   : > { %v1423_v58 = vadd.f32 %v1422_v53, %v1191_v52 }
 0x198   : > { %v2481_v59 = vpop.eup %2480  ;;  %2490 = vrcp.f32 %v1671_v55 }
 0x199   : > { %1815 = vst [vmem:[%s2863_s11 + $0xc0] sm:$0xff] %v2481_v59  ;;  %2492 = vpow2.f32 %v2067_v57  ;;  %v2068_v60 = vmul.f32 -1.442695, %v1423_v58  ;;  %v1195_v62 = vpop.f32.mrb[64].mxu1  ;;  %v1427_v1 = vpop.f32.mrb[64].mxu0 }
 0x19a   : > { %v2483_v61 = vpop.eup %2482  ;;  %v1196_v0 = vadd.f32 %v2849_v7, %v1195_v62  ;;  %v1197_v2 = vpop.f32.mrb[65].mxu1 }
 0x19b   : > { %v2485_v63 = vpop.eup %2484  ;;  %1816 = vst [vmem:[%s2863_s11 + $0xc8] sm:$0xff] %v2483_v61  ;;  %2494 = vpow2.f32 %v2068_v60  ;;  %v1429_v4 = vpop.f32.mrb[65].mxu0 }
 0x19c   : > { %v1672_v3 = vadd.f32 1.0, %v2485_v63  ;;  %v1198_v5 = vpop.f32.mrb[66].mxu1  ;;  %v1428_v8 = vadd.f32 %v1427_v1, %v1196_v0  ;;  %v1430_v10 = vpop.f32.mrb[66].mxu0 }
 0x19d   : > { %v2487_v6 = vpop.eup %2486  ;;  %v1199_v9 = vadd.f32 %v2849_v7, %v1198_v5  ;;  %v1200_v11 = vpop.f32.mrb[67].mxu1 }
 0x19e   : > { %2496 = vrcp.f32 %v1672_v3  ;;  %v1673_v12 = vadd.f32 1.0, %v2487_v6  ;;  %v1432_v13 = vpop.f32.mrb[67].mxu0  ;;  %v2069_v14 = vmul.f32 -1.442695, %v1428_v8 }
 0x19f   : > { %v1431_v15 = vadd.f32 %v1430_v10, %v1199_v9 }
 0x1a0   : > { %v2489_v16 = vpop.eup %2488  ;;  %2498 = vrcp.f32 %v1673_v12 }
 0x1a1   : > { %1817 = vst [vmem:[%s2863_s11 + $0xd0] sm:$0xff] %v2489_v16  ;;  %2500 = vpow2.f32 %v2069_v14  ;;  %v2070_v17 = vmul.f32 -1.442695, %v1431_v15  ;;  %v1203_v19 = vpop.f32.mrb[68].mxu1  ;;  %v1435_v22 = vpop.f32.mrb[68].mxu0 }
 0x1a2   : > { %v2491_v18 = vpop.eup %2490  ;;  %v1204_v21 = vadd.f32 %v2849_v7, %v1203_v19  ;;  %v1205_v23 = vpop.f32.mrb[69].mxu1 }
 0x1a3   : > { %v2493_v20 = vpop.eup %2492  ;;  %1818 = vst [vmem:[%s2863_s11 + $0xd8] sm:$0xff] %v2491_v18  ;;  %2502 = vpow2.f32 %v2070_v17  ;;  %v1437_v25 = vpop.f32.mrb[69].mxu0 }
 0x1a4   : > { %v1674_v24 = vadd.f32 1.0, %v2493_v20  ;;  %v1206_v26 = vpop.f32.mrb[70].mxu1  ;;  %v1436_v28 = vadd.f32 %v1435_v22, %v1204_v21  ;;  %v1438_v30 = vpop.f32.mrb[70].mxu0 }
 0x1a5   : > { %v2495_v27 = vpop.eup %2494  ;;  %v1207_v29 = vadd.f32 %v2849_v7, %v1206_v26  ;;  %v1208_v31 = vpop.f32.mrb[71].mxu1 }
 0x1a6   : > { %2504 = vrcp.f32 %v1674_v24  ;;  %v1675_v32 = vadd.f32 1.0, %v2495_v27  ;;  %v1440_v33 = vpop.f32.mrb[71].mxu0  ;;  %v2071_v34 = vmul.f32 -1.442695, %v1436_v28 }
 0x1a7   : > { %v1439_v35 = vadd.f32 %v1438_v30, %v1207_v29 }
 0x1a8   : > { %v2497_v36 = vpop.eup %2496  ;;  %2506 = vrcp.f32 %v1675_v32 }
 0x1a9   : > { %1819 = vst [vmem:[%s2863_s11 + $0xe0] sm:$0xff] %v2497_v36  ;;  %2508 = vpow2.f32 %v2071_v34  ;;  %v2072_v37 = vmul.f32 -1.442695, %v1439_v35  ;;  %v1211_v39 = vpop.f32.mrb[72].mxu1  ;;  %v1443_v42 = vpop.f32.mrb[72].mxu0 }
 0x1aa   : > { %v2499_v38 = vpop.eup %2498  ;;  %v1212_v41 = vadd.f32 %v2849_v7, %v1211_v39  ;;  %v1213_v43 = vpop.f32.mrb[73].mxu1 }
 0x1ab   : > { %v2501_v40 = vpop.eup %2500  ;;  %1820 = vst [vmem:[%s2863_s11 + $0xe8] sm:$0xff] %v2499_v38  ;;  %2510 = vpow2.f32 %v2072_v37  ;;  %v1445_v45 = vpop.f32.mrb[73].mxu0 }
 0x1ac   : > { %v1676_v44 = vadd.f32 1.0, %v2501_v40  ;;  %v1214_v46 = vpop.f32.mrb[74].mxu1  ;;  %v1444_v48 = vadd.f32 %v1443_v42, %v1212_v41  ;;  %v1446_v50 = vpop.f32.mrb[74].mxu0 }
 0x1ad   : > { %v2503_v47 = vpop.eup %2502  ;;  %v1215_v49 = vadd.f32 %v2849_v7, %v1214_v46  ;;  %v1216_v51 = vpop.f32.mrb[75].mxu1 }
 0x1ae   : > { %2512 = vrcp.f32 %v1676_v44  ;;  %v1677_v52 = vadd.f32 1.0, %v2503_v47  ;;  %v1448_v53 = vpop.f32.mrb[75].mxu0  ;;  %v2073_v54 = vmul.f32 -1.442695, %v1444_v48 }
 0x1af   : > { %v1447_v55 = vadd.f32 %v1446_v50, %v1215_v49 }
 0x1b0   : > { %v2505_v56 = vpop.eup %2504  ;;  %2514 = vrcp.f32 %v1677_v52 }
 0x1b1   : > { %1821 = vst [vmem:[%s2863_s11 + $0xf0] sm:$0xff] %v2505_v56  ;;  %2516 = vpow2.f32 %v2073_v54  ;;  %v2074_v57 = vmul.f32 -1.442695, %v1447_v55  ;;  %v1219_v59 = vpop.f32.mrb[76].mxu1  ;;  %v1451_v62 = vpop.f32.mrb[76].mxu0 }
 0x1b2   : > { %v2507_v58 = vpop.eup %2506  ;;  %v1220_v61 = vadd.f32 %v2849_v7, %v1219_v59  ;;  %v1221_v63 = vpop.f32.mrb[77].mxu1 }
 0x1b3   : > { %v2509_v60 = vpop.eup %2508  ;;  %1822 = vst [vmem:[%s2863_s11 + $0xf8] sm:$0xff] %v2507_v58  ;;  %2518 = vpow2.f32 %v2074_v57  ;;  %v1453_v1 = vpop.f32.mrb[77].mxu0 }
 0x1b4   : > { %v1678_v0 = vadd.f32 1.0, %v2509_v60  ;;  %v1222_v2 = vpop.f32.mrb[78].mxu1  ;;  %v1452_v4 = vadd.f32 %v1451_v62, %v1220_v61  ;;  %v1454_v6 = vpop.f32.mrb[78].mxu0 }
 0x1b5   : > { %v2511_v3 = vpop.eup %2510  ;;  %v1223_v5 = vadd.f32 %v2849_v7, %v1222_v2  ;;  %v1224_v8 = vpop.f32.mrb[79].mxu1 }
 0x1b6   : > { %2520 = vrcp.f32 %v1678_v0  ;;  %v1679_v9 = vadd.f32 1.0, %v2511_v3  ;;  %v1456_v10 = vpop.f32.mrb[79].mxu0  ;;  %v2075_v11 = vmul.f32 -1.442695, %v1452_v4 }
 0x1b7   : > { %v1455_v12 = vadd.f32 %v1454_v6, %v1223_v5 }
 0x1b8   : > { %v2513_v13 = vpop.eup %2512  ;;  %2522 = vrcp.f32 %v1679_v9 }
 0x1b9   : > { %1823 = vst [vmem:[%s2863_s11 + $0x100] sm:$0xff] %v2513_v13  ;;  %2524 = vpow2.f32 %v2075_v11  ;;  %v2076_v14 = vmul.f32 -1.442695, %v1455_v12  ;;  %v1227_v16 = vpop.f32.mrb[80].mxu1  ;;  %v1459_v19 = vpop.f32.mrb[80].mxu0 }
 0x1ba   : > { %v2515_v15 = vpop.eup %2514  ;;  %v1228_v18 = vadd.f32 %v2849_v7, %v1227_v16  ;;  %v1229_v20 = vpop.f32.mrb[81].mxu1 }
 0x1bb   : > { %v2517_v17 = vpop.eup %2516  ;;  %1824 = vst [vmem:[%s2863_s11 + $0x108] sm:$0xff] %v2515_v15  ;;  %2526 = vpow2.f32 %v2076_v14  ;;  %v1461_v22 = vpop.f32.mrb[81].mxu0 }
 0x1bc   : > { %v1680_v21 = vadd.f32 1.0, %v2517_v17  ;;  %v1230_v23 = vpop.f32.mrb[82].mxu1  ;;  %v1460_v25 = vadd.f32 %v1459_v19, %v1228_v18  ;;  %v1462_v27 = vpop.f32.mrb[82].mxu0 }
 0x1bd   : > { %v2519_v24 = vpop.eup %2518  ;;  %v1231_v26 = vadd.f32 %v2849_v7, %v1230_v23  ;;  %v1232_v28 = vpop.f32.mrb[83].mxu1  ;;  %v2938_v7 = vld [vmem:[%s2965_s2] ss:$0 sm:$0xff] }
 0x1be   : > { %2528 = vrcp.f32 %v1680_v21  ;;  %v1681_v29 = vadd.f32 1.0, %v2519_v24  ;;  %v1464_v30 = vpop.f32.mrb[83].mxu0  ;;  %v2077_v31 = vmul.f32 -1.442695, %v1460_v25 }
 0x1bf   : > { %v1463_v32 = vadd.f32 %v1462_v27, %v1231_v26 }
 0x1c0   : > { %v2521_v33 = vpop.eup %2520  ;;  %2530 = vrcp.f32 %v1681_v29 }
 0x1c1   : > { %1825 = vst [vmem:[%s2863_s11 + $0x110] sm:$0xff] %v2521_v33  ;;  %2532 = vpow2.f32 %v2077_v31  ;;  %v2078_v34 = vmul.f32 -1.442695, %v1463_v32  ;;  %v1235_v36 = vpop.f32.mrb[84].mxu1  ;;  %v1467_v39 = vpop.f32.mrb[84].mxu0 }
 0x1c2   : > { %v2523_v35 = vpop.eup %2522  ;;  %v1236_v38 = vadd.f32 %v2938_v7, %v1235_v36  ;;  %v1237_v40 = vpop.f32.mrb[85].mxu1 }
 0x1c3   : > { %v2525_v37 = vpop.eup %2524  ;;  %1826 = vst [vmem:[%s2863_s11 + $0x118] sm:$0xff] %v2523_v35  ;;  %2534 = vpow2.f32 %v2078_v34  ;;  %v1469_v42 = vpop.f32.mrb[85].mxu0 }
 0x1c4   : > { %v1682_v41 = vadd.f32 1.0, %v2525_v37  ;;  %v1238_v43 = vpop.f32.mrb[86].mxu1  ;;  %v1468_v45 = vadd.f32 %v1467_v39, %v1236_v38  ;;  %v1470_v47 = vpop.f32.mrb[86].mxu0 }
 0x1c5   : > { %v2527_v44 = vpop.eup %2526  ;;  %v1239_v46 = vadd.f32 %v2938_v7, %v1238_v43  ;;  %v1240_v48 = vpop.f32.mrb[87].mxu1 }
 0x1c6   : > { %2536 = vrcp.f32 %v1682_v41  ;;  %v1683_v49 = vadd.f32 1.0, %v2527_v44  ;;  %v1472_v50 = vpop.f32.mrb[87].mxu0  ;;  %v2079_v51 = vmul.f32 -1.442695, %v1468_v45 }
 0x1c7   : > { %v1471_v52 = vadd.f32 %v1470_v47, %v1239_v46 }
 0x1c8   : > { %v2529_v53 = vpop.eup %2528  ;;  %2538 = vrcp.f32 %v1683_v49 }
 0x1c9   : > { %1827 = vst [vmem:[%s2863_s11 + $0x120] sm:$0xff] %v2529_v53  ;;  %2540 = vpow2.f32 %v2079_v51  ;;  %v2080_v54 = vmul.f32 -1.442695, %v1471_v52  ;;  %v1243_v56 = vpop.f32.mrb[88].mxu1  ;;  %v1475_v59 = vpop.f32.mrb[88].mxu0 }
 0x1ca   : > { %v2531_v55 = vpop.eup %2530  ;;  %v1244_v58 = vadd.f32 %v2938_v7, %v1243_v56  ;;  %v1245_v60 = vpop.f32.mrb[89].mxu1 }
 0x1cb   : > { %v2533_v57 = vpop.eup %2532  ;;  %1828 = vst [vmem:[%s2863_s11 + $0x128] sm:$0xff] %v2531_v55  ;;  %2542 = vpow2.f32 %v2080_v54  ;;  %v1477_v62 = vpop.f32.mrb[89].mxu0 }
 0x1cc   : > { %v1684_v61 = vadd.f32 1.0, %v2533_v57  ;;  %v1246_v63 = vpop.f32.mrb[90].mxu1  ;;  %v1476_v1 = vadd.f32 %v1475_v59, %v1244_v58  ;;  %v1478_v3 = vpop.f32.mrb[90].mxu0 }
 0x1cd   : > { %v2535_v0 = vpop.eup %2534  ;;  %v1247_v2 = vadd.f32 %v2938_v7, %v1246_v63  ;;  %v1248_v4 = vpop.f32.mrb[91].mxu1 }
 0x1ce   : > { %2544 = vrcp.f32 %v1684_v61  ;;  %v1685_v5 = vadd.f32 1.0, %v2535_v0  ;;  %v1480_v6 = vpop.f32.mrb[91].mxu0  ;;  %v2081_v8 = vmul.f32 -1.442695, %v1476_v1 }
 0x1cf   : > { %v1479_v9 = vadd.f32 %v1478_v3, %v1247_v2 }
 0x1d0   : > { %v2537_v10 = vpop.eup %2536  ;;  %2546 = vrcp.f32 %v1685_v5 }
 0x1d1   : > { %1829 = vst [vmem:[%s2863_s11 + $0x130] sm:$0xff] %v2537_v10  ;;  %2548 = vpow2.f32 %v2081_v8  ;;  %v2082_v11 = vmul.f32 -1.442695, %v1479_v9  ;;  %v1251_v13 = vpop.f32.mrb[92].mxu1  ;;  %v1483_v16 = vpop.f32.mrb[92].mxu0 }
 0x1d2   : > { %v2539_v12 = vpop.eup %2538  ;;  %v1252_v15 = vadd.f32 %v2938_v7, %v1251_v13  ;;  %v1253_v17 = vpop.f32.mrb[93].mxu1 }
 0x1d3   : > { %v2541_v14 = vpop.eup %2540  ;;  %1830 = vst [vmem:[%s2863_s11 + $0x138] sm:$0xff] %v2539_v12  ;;  %2550 = vpow2.f32 %v2082_v11  ;;  %v1485_v19 = vpop.f32.mrb[93].mxu0 }
 0x1d4   : > { %v1686_v18 = vadd.f32 1.0, %v2541_v14  ;;  %v1254_v20 = vpop.f32.mrb[94].mxu1  ;;  %v1484_v22 = vadd.f32 %v1483_v16, %v1252_v15  ;;  %v1486_v24 = vpop.f32.mrb[94].mxu0 }
 0x1d5   : > { %v2543_v21 = vpop.eup %2542  ;;  %v1255_v23 = vadd.f32 %v2938_v7, %v1254_v20  ;;  %v1256_v25 = vpop.f32.mrb[95].mxu1 }
 0x1d6   : > { %2552 = vrcp.f32 %v1686_v18  ;;  %v1687_v26 = vadd.f32 1.0, %v2543_v21  ;;  %v1488_v27 = vpop.f32.mrb[95].mxu0  ;;  %v2083_v28 = vmul.f32 -1.442695, %v1484_v22 }
 0x1d7   : > { %v1487_v29 = vadd.f32 %v1486_v24, %v1255_v23 }
 0x1d8   : > { %v2545_v30 = vpop.eup %2544  ;;  %2554 = vrcp.f32 %v1687_v26 }
 0x1d9   : > { %1831 = vst [vmem:[%s2863_s11 + $0x140] sm:$0xff] %v2545_v30  ;;  %2556 = vpow2.f32 %v2083_v28  ;;  %v2084_v31 = vmul.f32 -1.442695, %v1487_v29  ;;  %v1259_v33 = vpop.f32.mrb[96].mxu1  ;;  %v1491_v36 = vpop.f32.mrb[96].mxu0 }
 0x1da   : > { %v2547_v32 = vpop.eup %2546  ;;  %v1260_v35 = vadd.f32 %v2938_v7, %v1259_v33  ;;  %v1261_v37 = vpop.f32.mrb[97].mxu1 }
 0x1db   : > { %v2549_v34 = vpop.eup %2548  ;;  %1832 = vst [vmem:[%s2863_s11 + $0x148] sm:$0xff] %v2547_v32  ;;  %2558 = vpow2.f32 %v2084_v31  ;;  %v1493_v39 = vpop.f32.mrb[97].mxu0 }
 0x1dc   : > { %v1688_v38 = vadd.f32 1.0, %v2549_v34  ;;  %v1262_v40 = vpop.f32.mrb[98].mxu1  ;;  %v1492_v42 = vadd.f32 %v1491_v36, %v1260_v35  ;;  %v1494_v43 = vpop.f32.mrb[98].mxu0 }
 0x1dd   : > { %v2551_v41 = vpop.eup %2550  ;;  %v1263_v44 = vpop.f32.mrb[99].mxu1 }
 0x1de   : > { %2560 = vrcp.f32 %v1688_v38  ;;  %v1689_v45 = vadd.f32 1.0, %v2551_v41  ;;  %v1495_v46 = vpop.f32.mrb[99].mxu0  ;;  %v2085_v47 = vmul.f32 -1.442695, %v1492_v42 }
 0x1e0   : > { %v2553_v48 = vpop.eup %2552  ;;  %2562 = vrcp.f32 %v1689_v45 }
 0x1e1   : > { %1833 = vst [vmem:[%s2863_s11 + $0x150] sm:$0xff] %v2553_v48  ;;  %2564 = vpow2.f32 %v2085_v47 }
 0x1e2   : > { %v2555_v7 = vpop.eup %2554 }
 0x1e3   : > { %v2557_v49 = vpop.eup %2556  ;;  %1834 = vst [vmem:[%s2863_s11 + $0x158] sm:$0xff] %v2555_v7 }
 0x1e4   : > { %v1690_v50 = vadd.f32 1.0, %v2557_v49 }
 0x1e5   : > { %v2559_v51 = vpop.eup %2558 }
 0x1e6   : > { %2566 = vrcp.f32 %v1690_v50  ;;  %v1691_v52 = vadd.f32 1.0, %v2559_v51 }
 0x1e8   : > { %v2561_v53 = vpop.eup %2560  ;;  %2568 = vrcp.f32 %v1691_v52 }
 0x1e9   : > { %1835 = vst [vmem:[%s2863_s11 + $0x160] sm:$0xff] %v2561_v53 }
 0x1ea   : > { %v2563_v54 = vpop.eup %2562 }
 0x1eb   : > { %v2565_v55 = vpop.eup %2564  ;;  %1836 = vst [vmem:[%s2863_s11 + $0x168] sm:$0xff] %v2563_v54 }
 0x1ec   : > { %v1692_v56 = vadd.f32 1.0, %v2565_v55 }
 0x1ee   : > { %2570 = vrcp.f32 %v1692_v56 }
 0x1f0   : > { %v2567_v57 = vpop.eup %2566 }
 0x1f1   : > { %1837 = vst [vmem:[%s2863_s11 + $0x170] sm:$0xff] %v2567_v57 }
 0x1f2   : > { %v2569_v58 = vpop.eup %2568 }
 0x1f3   : > { %1838 = vst [vmem:[%s2863_s11 + $0x178] sm:$0xff] %v2569_v58 }
 0x1f8   : > { %v2571_v59 = vpop.eup %2570 }
 0x1f9   : > { %1839 = vst [vmem:[%s2863_s11 + $0x180] sm:$0xff] %v2571_v59 }
 0x1fa PF: > { %s13_s12 = sadd.s32 1, %s2579_s12  }
 0x1fb   : > { %p10_p4 = scmp.ge.s32.totalorder %s13_s12, 6  }
 0x1fd   :  { %12 = sbr.rel (!%p10_p4) target bundleno = 1 (0x1), region = 62 }

</bundles_post_ra>
